<compile_context>
chip_gen: v7x
topology: tpu7x:2x2x1
jax: 0.10.0
libtpu: 0.0.40
codegen_flags: <defaults>
</compile_context>

<pallas_src>
import jax
import jax.numpy as jnp
from jax.experimental import pallas as pl
from jax.experimental.pallas import tpu as pltpu

CHANNEL_COUNT = 1
K = 300
J = 40
SAMPLE_LENGTH = 1200
N = SAMPLE_LENGTH // J          # 30 : width of the input signal
NH = N // 2                     # 15
NQ = N // 4                     # 7
D_IN = CHANNEL_COUNT * N        # 30 : flattened input per sample
D_DEC = N                       # 30 : flattened decoder output per sample


def _round_up(v, m):
    return ((v + m - 1) // m) * m


# ----------------------------------------------------------------------------
# Weight preprocessing: express each (height-1) conv / tconv / linear layer as a
# dense matrix acting on the channel-major flattened feature vector (index = c*W + w),
# matching PyTorch's Flatten / reshape ordering.  Done once, outside the kernel.
# ----------------------------------------------------------------------------
def _conv_to_dense(w, b, win, stride, pad):
    # w: (Cout, Cin, Kw)  -- forward Conv2d weight with the height-1 dim squeezed.
    cout, cin, kw = w.shape
    wout = (win + 2 * pad - kw) // stride + 1
    xi = jnp.arange(win)
    xo = jnp.arange(wout)
    kk = jnp.arange(kw)
    # sel[xi, xo, k] = 1  iff  xi == xo*stride + k - pad
    sel = (xi[:, None, None] == (xo[None, :, None] * stride + kk[None, None, :] - pad))
    sel = sel.astype(w.dtype)
    m = jnp.einsum("xyk,oik->ixoy", sel, w)          # (Cin, Win, Cout, Wout)
    m = m.reshape(cin * win, cout * wout)
    bvec = jnp.repeat(b, wout).reshape(1, cout * wout)
    return m, bvec


def _tconv_to_dense(w, b, win, stride, pad):
    # w: (Cin, Cout, Kw)  -- ConvTranspose2d weight with the height-1 dim squeezed.
    cin, cout, kw = w.shape
    wout = (win - 1) * stride - 2 * pad + kw
    xi = jnp.arange(win)
    xo = jnp.arange(wout)
    kk = jnp.arange(kw)
    # sel[xi, xo, k] = 1  iff  xo == xi*stride + k - pad
    sel = (xo[None, :, None] == (xi[:, None, None] * stride + kk[None, None, :] - pad))
    sel = sel.astype(w.dtype)
    m = jnp.einsum("xyk,iok->ixoy", sel, w)          # (Cin, Win, Cout, Wout)
    m = m.reshape(cin * win, cout * wout)
    bvec = jnp.repeat(b, wout).reshape(1, cout * wout)
    return m, bvec


def _linear_to_dense(w, b):
    # w: (out_features, in_features) -> y = x @ w.T + b
    return w.T, b.reshape(1, -1)


def build_dense_chain(p):
    """Returns the 10-layer chain of (matrix, bias-row) pairs, in forward order."""
    return [
        _conv_to_dense(p["conv1_w"][:, :, 0, :], p["conv1_b"], N, 1, 0),     # 30   -> 1200
        _conv_to_dense(p["conv2_w"][:, :, 0, :], p["conv2_b"], N, 2, 0),     # 1200 -> 600
        _conv_to_dense(p["conv3_w"][:, :, 0, :], p["conv3_b"], NH, 1, 5),    # 600  -> 600
        _linear_to_dense(p["lin1_w"], p["lin1_b"]),                          # 600  -> 280
        _linear_to_dense(p["lin2_w"], p["lin2_b"]),                          # 280  -> 300
        _linear_to_dense(p["lin3_w"], p["lin3_b"]),                          # 300  -> 280
        _linear_to_dense(p["lin4_w"], p["lin4_b"]),                          # 280  -> 600
        _tconv_to_dense(p["tconv3_w"][:, :, 0, :], p["tconv3_b"], NH, 1, 5), # 600  -> 600
        _tconv_to_dense(p["tconv2_w"][:, :, 0, :], p["tconv2_b"], NH, 2, 0), # 600  -> 1200
        _tconv_to_dense(p["tconv1_w"][:, :, 0, :], p["tconv1_b"], N, 1, 0),  # 1200 -> 30
    ]


# ----------------------------------------------------------------------------
# Pallas kernel: one batch tile -> 10 MXU matmuls + ReLUs, two outputs.
# ----------------------------------------------------------------------------
def arxiv_kernel(*refs):
    # refs = (x_ref,  m0, b0, ..., m9, b9,  bottleneck_ref, decoder_ref)
    x_ref = refs[0]
    w = refs[1:21]
    bott_ref, dec_ref = refs[21], refs[22]

    def layer(a, idx, relu=False):
        m_ref, b_ref = w[2 * idx], w[2 * idx + 1]
        y = jnp.dot(a, m_ref[...], preferred_element_type=jnp.float32) + b_ref[...]
        return jnp.maximum(y, 0.0) if relu else y

    a = x_ref[...]                  # (TB, 30)
    a = layer(a, 0)                 # conv1   -> (TB, 1200)
    a = layer(a, 1, relu=True)      # conv2 + ReLU (torch's double ReLU is idempotent)
    a = layer(a, 2)                 # conv3   -> (TB, 600)
    a = layer(a, 3)                 # lin1    -> (TB, 280)
    bott = layer(a, 4)              # lin2    -> (TB, 300)   bottleneck
    bott_ref[...] = bott.astype(bott_ref.dtype)
    a = layer(bott, 5)              # lin3    -> (TB, 280)
    a = layer(a, 6)                 # lin4    -> (TB, 600)
    a = layer(a, 7, relu=True)      # tconv3 + ReLU
    a = layer(a, 8, relu=True)      # tconv2 + ReLU
    a = layer(a, 9)                 # tconv1  -> (TB, 30)
    dec_ref[...] = a.astype(dec_ref.dtype)


def arxiv_forward(x, chain, *, tb=256):
    """x: (B, 1, CHANNEL_COUNT, N) float32. Returns (bottleneck (B,300), decoder (B,1,1,30))."""
    bsz = x.shape[0]
    x_flat = x.reshape(bsz, D_IN).astype(jnp.float32)

    # Batch tile: multiple of 8 sublanes, capped so VMEM stays comfortable.
    tb = max(8, min(tb, _round_up(bsz, 8)))
    bp = _round_up(bsz, tb)
    if bp != bsz:
        x_flat = jnp.pad(x_flat, ((0, bp - bsz), (0, 0)))
    grid = (bp // tb,)

    flat_params = []
    in_specs = [pl.BlockSpec((tb, D_IN), lambda i: (i, 0))]
    for m, b in chain:
        flat_params += [m, b]
        # Full-array blocks with constant index_map -> weights stay VMEM-resident.
        in_specs += [pl.BlockSpec(m.shape, lambda i: (0, 0)),
                     pl.BlockSpec(b.shape, lambda i: (0, 0))]

    out_specs = [pl.BlockSpec((tb, K), lambda i: (i, 0)),
                 pl.BlockSpec((tb, D_DEC), lambda i: (i, 0))]
    out_shape = [jax.ShapeDtypeStruct((bp, K), jnp.float32),
                 jax.ShapeDtypeStruct((bp, D_DEC), jnp.float32)]

    mults = sum(int(m.shape[0]) * int(m.shape[1]) for m, _ in chain)
    param_bytes = 4 * sum(int(m.size) + int(b.size) for m, b in chain)
    cost = pl.CostEstimate(
        flops=2 * bp * mults,
        transcendentals=0,
        bytes_accessed=4 * bp * (D_IN + K + D_DEC) + param_bytes,
    )

    bott, dec = pl.pallas_call(
        arxiv_kernel,
        grid=grid,
        in_specs=in_specs,
        out_specs=out_specs,
        out_shape=out_shape,
        compiler_params=pltpu.CompilerParams(
            dimension_semantics=("parallel",),
            vmem_limit_bytes=48 * 1024 * 1024,
        ),
        cost_estimate=cost,
    )(x_flat, *flat_params)

    bott = bott[:bsz]
    dec = dec[:bsz].reshape(bsz, 1, CHANNEL_COUNT, N)
    return bott, dec


# ----------------------------------------------------------------------------
# Pure-JAX reference (independent of the dense-matrix construction).
# ----------------------------------------------------------------------------
def _conv_ref(x, w, b, stride, pad):
    # x: (B, Cin, W); w: (Cout, Cin, Kw)
    bsz, cin, win = x.shape
    cout, _, kw = w.shape
    xp = jnp.pad(x, ((0, 0), (0, 0), (pad, pad)))
    wout = (win + 2 * pad - kw) // stride + 1
    out = jnp.broadcast_to(b[None, :, None], (bsz, cout, wout)).astype(x.dtype)
    for k in range(kw):
        sl = xp[:, :, k: k + stride * (wout - 1) + 1: stride]     # (B, Cin, Wout)
        out = out + jnp.einsum("biw,oi->bow", sl, w[:, :, k])
    return out


def _tconv_ref(x, w, b, stride, pad):
    # x: (B, Cin, W); w: (Cin, Cout, Kw)
    bsz, cin, win = x.shape
    _, cout, kw = w.shape
    wout = (win - 1) * stride - 2 * pad + kw
    full = jnp.zeros((bsz, cout, (win - 1) * stride + kw), x.dtype)
    for k in range(kw):
        contrib = jnp.einsum("biw,io->bow", x, w[:, :, k])        # (B, Cout, W)
        full = full.at[:, :, k: k + stride * (win - 1) + 1: stride].add(contrib)
    return full[:, :, pad: pad + wout] + b[None, :, None]


def ref_forward(x, p):
    bsz = x.shape[0]
    h = x.reshape(bsz, 1, N).astype(jnp.float32)
    h = _conv_ref(h, p["conv1_w"][:, :, 0, :], p["conv1_b"], 1, 0)
    h = _conv_ref(h, p["conv2_w"][:, :, 0, :], p["conv2_b"], 2, 0)
    h = jax.nn.relu(h)
    h = _conv_ref(h, p["conv3_w"][:, :, 0, :], p["conv3_b"], 1, 5)
    h = h.reshape(bsz, 40 * NH)                                   # channel-major flatten
    h = h @ p["lin1_w"].T + p["lin1_b"]
    bott = h @ p["lin2_w"].T + p["lin2_b"]
    d = bott @ p["lin3_w"].T + p["lin3_b"]
    d = d @ p["lin4_w"].T + p["lin4_b"]
    d = d.reshape(bsz, 40, NH)
    d = _tconv_ref(d, p["tconv3_w"][:, :, 0, :], p["tconv3_b"], 1, 5)
    d = jax.nn.relu(d)
    d = _tconv_ref(d, p["tconv2_w"][:, :, 0, :], p["tconv2_b"], 2, 0)
    d = jax.nn.relu(d)
    d = _tconv_ref(d, p["tconv1_w"][:, :, 0, :], p["tconv1_b"], 1, 0)
    return bott, d.reshape(bsz, 1, CHANNEL_COUNT, N)


if __name__ == "__main__":
    key = jax.random.PRNGKey(0)
    keys = jax.random.split(key, 21)

    def rnd(k, shape, scale=0.05):
        return scale * jax.random.normal(k, shape, dtype=jnp.float32)

    params = {
        "conv1_w": rnd(keys[0], (40, 1, 1, 1)),    "conv1_b": rnd(keys[1], (40,)),
        "conv2_w": rnd(keys[2], (40, 40, 1, 2)),   "conv2_b": rnd(keys[3], (40,)),
        "conv3_w": rnd(keys[4], (40, 40, 1, 11)),  "conv3_b": rnd(keys[5], (40,)),
        "lin1_w":  rnd(keys[6], (NQ * 40, NH * 40)), "lin1_b": rnd(keys[7], (NQ * 40,)),
        "lin2_w":  rnd(keys[8], (K, NQ * 40)),       "lin2_b": rnd(keys[9], (K,)),
        "lin3_w":  rnd(keys[10], (NQ * 40, K)),      "lin3_b": rnd(keys[11], (NQ * 40,)),
        "lin4_w":  rnd(keys[12], (NH * 40, NQ * 40)), "lin4_b": rnd(keys[13], (NH * 40,)),
        "tconv1_w": rnd(keys[14], (40, 1, 1, 1)),    "tconv1_b": rnd(keys[15], (1,)),
        "tconv2_w": rnd(keys[16], (40, 40, 1, 2)),   "tconv2_b": rnd(keys[17], (40,)),
        "tconv3_w": rnd(keys[18], (40, 40, 1, 11)),  "tconv3_b": rnd(keys[19], (40,)),
    }

    B = 8
    x = jax.random.normal(keys[20], (B, 1, CHANNEL_COUNT, N), dtype=jnp.float32)

    chain = build_dense_chain(params)
    bott, dec = arxiv_forward(x, chain)
    bott, dec = jax.block_until_ready((bott, dec))

    bott_ref, dec_ref = ref_forward(x, params)

    assert bott.shape == (B, K) and dec.shape == (B, 1, CHANNEL_COUNT, N)
    assert jnp.allclose(bott, bott_ref, atol=2e-3, rtol=2e-3), \
        float(jnp.max(jnp.abs(bott - bott_ref)))
    assert jnp.allclose(dec, dec_ref, atol=2e-3, rtol=2e-3), \
        float(jnp.max(jnp.abs(dec - dec_ref)))

    print("KERNEL_OK")
</pallas_src>

<mosaic_0001>
module attributes {stable_mosaic.version = 11 : i64} {
  func.func @arxiv_kernel(%arg0: i32, %arg1: memref<8x30xf32, #tpu.memory_space<vmem>>, %arg2: memref<30x1200xf32, #tpu.memory_space<vmem>>, %arg3: memref<1x1200xf32, #tpu.memory_space<vmem>>, %arg4: memref<1200x600xf32, #tpu.memory_space<vmem>>, %arg5: memref<1x600xf32, #tpu.memory_space<vmem>>, %arg6: memref<600x600xf32, #tpu.memory_space<vmem>>, %arg7: memref<1x600xf32, #tpu.memory_space<vmem>>, %arg8: memref<600x280xf32, #tpu.memory_space<vmem>>, %arg9: memref<1x280xf32, #tpu.memory_space<vmem>>, %arg10: memref<280x300xf32, #tpu.memory_space<vmem>>, %arg11: memref<1x300xf32, #tpu.memory_space<vmem>>, %arg12: memref<300x280xf32, #tpu.memory_space<vmem>>, %arg13: memref<1x280xf32, #tpu.memory_space<vmem>>, %arg14: memref<280x600xf32, #tpu.memory_space<vmem>>, %arg15: memref<1x600xf32, #tpu.memory_space<vmem>>, %arg16: memref<600x600xf32, #tpu.memory_space<vmem>>, %arg17: memref<1x600xf32, #tpu.memory_space<vmem>>, %arg18: memref<600x1200xf32, #tpu.memory_space<vmem>>, %arg19: memref<1x1200xf32, #tpu.memory_space<vmem>>, %arg20: memref<1200x30xf32, #tpu.memory_space<vmem>>, %arg21: memref<1x30xf32, #tpu.memory_space<vmem>>, %arg22: memref<8x300xf32, #tpu.memory_space<vmem>>, %arg23: memref<8x30xf32, #tpu.memory_space<vmem>>) attributes {dimension_semantics = [#tpu.dimension_semantics<parallel>], iteration_bounds = array<i64: 1>, scalar_prefetch = 0 : i64, scratch_operands = 0 : i64, tpu.core_type = #tpu.core_type<tc>, window_params = [{transform_indices = @transform_0, window_bounds = array<i64: 8, 30>}, {pipeline_mode = #tpu.pipeline_mode<synchronous>, transform_indices = @transform_1, window_bounds = array<i64: 30, 1200>}, {pipeline_mode = #tpu.pipeline_mode<synchronous>, transform_indices = @transform_2, window_bounds = array<i64: 1, 1200>}, {pipeline_mode = #tpu.pipeline_mode<synchronous>, transform_indices = @transform_3, window_bounds = array<i64: 1200, 600>}, {pipeline_mode = #tpu.pipeline_mode<synchronous>, transform_indices = @transform_4, window_bounds = array<i64: 1, 600>}, {pipeline_mode = #tpu.pipeline_mode<synchronous>, transform_indices = @transform_5, window_bounds = array<i64: 600, 600>}, {pipeline_mode = #tpu.pipeline_mode<synchronous>, transform_indices = @transform_6, window_bounds = array<i64: 1, 600>}, {pipeline_mode = #tpu.pipeline_mode<synchronous>, transform_indices = @transform_7, window_bounds = array<i64: 600, 280>}, {pipeline_mode = #tpu.pipeline_mode<synchronous>, transform_indices = @transform_8, window_bounds = array<i64: 1, 280>}, {pipeline_mode = #tpu.pipeline_mode<synchronous>, transform_indices = @transform_9, window_bounds = array<i64: 280, 300>}, {pipeline_mode = #tpu.pipeline_mode<synchronous>, transform_indices = @transform_10, window_bounds = array<i64: 1, 300>}, {pipeline_mode = #tpu.pipeline_mode<synchronous>, transform_indices = @transform_11, window_bounds = array<i64: 300, 280>}, {pipeline_mode = #tpu.pipeline_mode<synchronous>, transform_indices = @transform_12, window_bounds = array<i64: 1, 280>}, {pipeline_mode = #tpu.pipeline_mode<synchronous>, transform_indices = @transform_13, window_bounds = array<i64: 280, 600>}, {pipeline_mode = #tpu.pipeline_mode<synchronous>, transform_indices = @transform_14, window_bounds = array<i64: 1, 600>}, {pipeline_mode = #tpu.pipeline_mode<synchronous>, transform_indices = @transform_15, window_bounds = array<i64: 600, 600>}, {pipeline_mode = #tpu.pipeline_mode<synchronous>, transform_indices = @transform_16, window_bounds = array<i64: 1, 600>}, {pipeline_mode = #tpu.pipeline_mode<synchronous>, transform_indices = @transform_17, window_bounds = array<i64: 600, 1200>}, {pipeline_mode = #tpu.pipeline_mode<synchronous>, transform_indices = @transform_18, window_bounds = array<i64: 1, 1200>}, {pipeline_mode = #tpu.pipeline_mode<synchronous>, transform_indices = @transform_19, window_bounds = array<i64: 1200, 30>}, {pipeline_mode = #tpu.pipeline_mode<synchronous>, transform_indices = @transform_20, window_bounds = array<i64: 1, 30>}, {transform_indices = @transform_21, window_bounds = array<i64: 8, 300>}, {transform_indices = @transform_22, window_bounds = array<i64: 8, 30>}]} {
    %c0 = arith.constant 0 : index
    %c0_0 = arith.constant 0 : index
    %0 = vector.load %arg1[%c0, %c0_0] : memref<8x30xf32, #tpu.memory_space<vmem>>, vector<8x30xf32>
    %c0_1 = arith.constant 0 : index
    %c0_2 = arith.constant 0 : index
    %1 = vector.load %arg2[%c0_1, %c0_2] : memref<30x1200xf32, #tpu.memory_space<vmem>>, vector<30x1200xf32>
    %cst = arith.constant dense<0.000000e+00> : vector<8x1200xf32>
    %2 = tpu.matmul %0, %1, %cst {dimension_numbers = #tpu.dot_dimension_numbers<[1], [0], [0], [1], [0, 0, 1, 1], [], []>} : vector<8x30xf32>, vector<30x1200xf32>, vector<8x1200xf32> -> vector<8x1200xf32>
    %c0_3 = arith.constant 0 : index
    %c0_4 = arith.constant 0 : index
    %3 = vector.load %arg3[%c0_3, %c0_4] : memref<1x1200xf32, #tpu.memory_space<vmem>>, vector<1x1200xf32>
    %4 = vector.broadcast %3 : vector<1x1200xf32> to vector<8x1200xf32>
    %5 = arith.addf %2, %4 : vector<8x1200xf32>
    %c0_5 = arith.constant 0 : index
    %c0_6 = arith.constant 0 : index
    %6 = vector.load %arg4[%c0_5, %c0_6] : memref<1200x600xf32, #tpu.memory_space<vmem>>, vector<1200x600xf32>
    %cst_7 = arith.constant dense<0.000000e+00> : vector<8x600xf32>
    %7 = tpu.matmul %5, %6, %cst_7 {dimension_numbers = #tpu.dot_dimension_numbers<[1], [0], [0], [1], [0, 0, 1, 1], [], []>} : vector<8x1200xf32>, vector<1200x600xf32>, vector<8x600xf32> -> vector<8x600xf32>
    %c0_8 = arith.constant 0 : index
    %c0_9 = arith.constant 0 : index
    %8 = vector.load %arg5[%c0_8, %c0_9] : memref<1x600xf32, #tpu.memory_space<vmem>>, vector<1x600xf32>
    %9 = vector.broadcast %8 : vector<1x600xf32> to vector<8x600xf32>
    %10 = arith.addf %7, %9 : vector<8x600xf32>
    %cst_10 = arith.constant 0.000000e+00 : f32
    %11 = vector.broadcast %cst_10 : f32 to vector<8x600xf32>
    %12 = arith.maximumf %10, %11 : vector<8x600xf32>
    %c0_11 = arith.constant 0 : index
    %c0_12 = arith.constant 0 : index
    %13 = vector.load %arg6[%c0_11, %c0_12] : memref<600x600xf32, #tpu.memory_space<vmem>>, vector<600x600xf32>
    %cst_13 = arith.constant dense<0.000000e+00> : vector<8x600xf32>
    %14 = tpu.matmul %12, %13, %cst_13 {dimension_numbers = #tpu.dot_dimension_numbers<[1], [0], [0], [1], [0, 0, 1, 1], [], []>} : vector<8x600xf32>, vector<600x600xf32>, vector<8x600xf32> -> vector<8x600xf32>
    %c0_14 = arith.constant 0 : index
    %c0_15 = arith.constant 0 : index
    %15 = vector.load %arg7[%c0_14, %c0_15] : memref<1x600xf32, #tpu.memory_space<vmem>>, vector<1x600xf32>
    %16 = vector.broadcast %15 : vector<1x600xf32> to vector<8x600xf32>
    %17 = arith.addf %14, %16 : vector<8x600xf32>
    %c0_16 = arith.constant 0 : index
    %c0_17 = arith.constant 0 : index
    %18 = vector.load %arg8[%c0_16, %c0_17] : memref<600x280xf32, #tpu.memory_space<vmem>>, vector<600x280xf32>
    %cst_18 = arith.constant dense<0.000000e+00> : vector<8x280xf32>
    %19 = tpu.matmul %17, %18, %cst_18 {dimension_numbers = #tpu.dot_dimension_numbers<[1], [0], [0], [1], [0, 0, 1, 1], [], []>} : vector<8x600xf32>, vector<600x280xf32>, vector<8x280xf32> -> vector<8x280xf32>
    %c0_19 = arith.constant 0 : index
    %c0_20 = arith.constant 0 : index
    %20 = vector.load %arg9[%c0_19, %c0_20] : memref<1x280xf32, #tpu.memory_space<vmem>>, vector<1x280xf32>
    %21 = vector.broadcast %20 : vector<1x280xf32> to vector<8x280xf32>
    %22 = arith.addf %19, %21 : vector<8x280xf32>
    %c0_21 = arith.constant 0 : index
    %c0_22 = arith.constant 0 : index
    %23 = vector.load %arg10[%c0_21, %c0_22] : memref<280x300xf32, #tpu.memory_space<vmem>>, vector<280x300xf32>
    %cst_23 = arith.constant dense<0.000000e+00> : vector<8x300xf32>
    %24 = tpu.matmul %22, %23, %cst_23 {dimension_numbers = #tpu.dot_dimension_numbers<[1], [0], [0], [1], [0, 0, 1, 1], [], []>} : vector<8x280xf32>, vector<280x300xf32>, vector<8x300xf32> -> vector<8x300xf32>
    %c0_24 = arith.constant 0 : index
    %c0_25 = arith.constant 0 : index
    %25 = vector.load %arg11[%c0_24, %c0_25] : memref<1x300xf32, #tpu.memory_space<vmem>>, vector<1x300xf32>
    %26 = vector.broadcast %25 : vector<1x300xf32> to vector<8x300xf32>
    %27 = arith.addf %24, %26 : vector<8x300xf32>
    %c0_26 = arith.constant 0 : index
    %c0_27 = arith.constant 0 : index
    %28 = vector.load %arg22[%c0_26, %c0_27] : memref<8x300xf32, #tpu.memory_space<vmem>>, vector<8x300xf32>
    tpu.vector_store %arg22[%c0_26, %c0_27], %27 {strides = array<i32>} : memref<8x300xf32, #tpu.memory_space<vmem>>, vector<8x300xf32>,
    %c0_28 = arith.constant 0 : index
    %c0_29 = arith.constant 0 : index
    %29 = vector.load %arg12[%c0_28, %c0_29] : memref<300x280xf32, #tpu.memory_space<vmem>>, vector<300x280xf32>
    %cst_30 = arith.constant dense<0.000000e+00> : vector<8x280xf32>
    %30 = tpu.matmul %27, %29, %cst_30 {dimension_numbers = #tpu.dot_dimension_numbers<[1], [0], [0], [1], [0, 0, 1, 1], [], []>} : vector<8x300xf32>, vector<300x280xf32>, vector<8x280xf32> -> vector<8x280xf32>
    %c0_31 = arith.constant 0 : index
    %c0_32 = arith.constant 0 : index
    %31 = vector.load %arg13[%c0_31, %c0_32] : memref<1x280xf32, #tpu.memory_space<vmem>>, vector<1x280xf32>
    %32 = vector.broadcast %31 : vector<1x280xf32> to vector<8x280xf32>
    %33 = arith.addf %30, %32 : vector<8x280xf32>
    %c0_33 = arith.constant 0 : index
    %c0_34 = arith.constant 0 : index
    %34 = vector.load %arg14[%c0_33, %c0_34] : memref<280x600xf32, #tpu.memory_space<vmem>>, vector<280x600xf32>
    %cst_35 = arith.constant dense<0.000000e+00> : vector<8x600xf32>
    %35 = tpu.matmul %33, %34, %cst_35 {dimension_numbers = #tpu.dot_dimension_numbers<[1], [0], [0], [1], [0, 0, 1, 1], [], []>} : vector<8x280xf32>, vector<280x600xf32>, vector<8x600xf32> -> vector<8x600xf32>
    %c0_36 = arith.constant 0 : index
    %c0_37 = arith.constant 0 : index
    %36 = vector.load %arg15[%c0_36, %c0_37] : memref<1x600xf32, #tpu.memory_space<vmem>>, vector<1x600xf32>
    %37 = vector.broadcast %36 : vector<1x600xf32> to vector<8x600xf32>
    %38 = arith.addf %35, %37 : vector<8x600xf32>
    %c0_38 = arith.constant 0 : index
    %c0_39 = arith.constant 0 : index
    %39 = vector.load %arg16[%c0_38, %c0_39] : memref<600x600xf32, #tpu.memory_space<vmem>>, vector<600x600xf32>
    %cst_40 = arith.constant dense<0.000000e+00> : vector<8x600xf32>
    %40 = tpu.matmul %38, %39, %cst_40 {dimension_numbers = #tpu.dot_dimension_numbers<[1], [0], [0], [1], [0, 0, 1, 1], [], []>} : vector<8x600xf32>, vector<600x600xf32>, vector<8x600xf32> -> vector<8x600xf32>
    %c0_41 = arith.constant 0 : index
    %c0_42 = arith.constant 0 : index
    %41 = vector.load %arg17[%c0_41, %c0_42] : memref<1x600xf32, #tpu.memory_space<vmem>>, vector<1x600xf32>
    %42 = vector.broadcast %41 : vector<1x600xf32> to vector<8x600xf32>
    %43 = arith.addf %40, %42 : vector<8x600xf32>
    %cst_43 = arith.constant 0.000000e+00 : f32
    %44 = vector.broadcast %cst_43 : f32 to vector<8x600xf32>
    %45 = arith.maximumf %43, %44 : vector<8x600xf32>
    %c0_44 = arith.constant 0 : index
    %c0_45 = arith.constant 0 : index
    %46 = vector.load %arg18[%c0_44, %c0_45] : memref<600x1200xf32, #tpu.memory_space<vmem>>, vector<600x1200xf32>
    %cst_46 = arith.constant dense<0.000000e+00> : vector<8x1200xf32>
    %47 = tpu.matmul %45, %46, %cst_46 {dimension_numbers = #tpu.dot_dimension_numbers<[1], [0], [0], [1], [0, 0, 1, 1], [], []>} : vector<8x600xf32>, vector<600x1200xf32>, vector<8x1200xf32> -> vector<8x1200xf32>
    %c0_47 = arith.constant 0 : index
    %c0_48 = arith.constant 0 : index
    %48 = vector.load %arg19[%c0_47, %c0_48] : memref<1x1200xf32, #tpu.memory_space<vmem>>, vector<1x1200xf32>
    %49 = vector.broadcast %48 : vector<1x1200xf32> to vector<8x1200xf32>
    %50 = arith.addf %47, %49 : vector<8x1200xf32>
    %cst_49 = arith.constant 0.000000e+00 : f32
    %51 = vector.broadcast %cst_49 : f32 to vector<8x1200xf32>
    %52 = arith.maximumf %50, %51 : vector<8x1200xf32>
    %c0_50 = arith.constant 0 : index
    %c0_51 = arith.constant 0 : index
    %53 = vector.load %arg20[%c0_50, %c0_51] : memref<1200x30xf32, #tpu.memory_space<vmem>>, vector<1200x30xf32>
    %cst_52 = arith.constant dense<0.000000e+00> : vector<8x30xf32>
    %54 = tpu.matmul %52, %53, %cst_52 {dimension_numbers = #tpu.dot_dimension_numbers<[1], [0], [0], [1], [0, 0, 1, 1], [], []>} : vector<8x1200xf32>, vector<1200x30xf32>, vector<8x30xf32> -> vector<8x30xf32>
    %c0_53 = arith.constant 0 : index
    %c0_54 = arith.constant 0 : index
    %55 = vector.load %arg21[%c0_53, %c0_54] : memref<1x30xf32, #tpu.memory_space<vmem>>, vector<1x30xf32>
    %56 = vector.broadcast %55 : vector<1x30xf32> to vector<8x30xf32>
    %57 = arith.addf %54, %56 : vector<8x30xf32>
    %c0_55 = arith.constant 0 : index
    %c0_56 = arith.constant 0 : index
    %58 = vector.load %arg23[%c0_55, %c0_56] : memref<8x30xf32, #tpu.memory_space<vmem>>, vector<8x30xf32>
    tpu.vector_store %arg23[%c0_55, %c0_56], %57 {strides = array<i32>} : memref<8x30xf32, #tpu.memory_space<vmem>>, vector<8x30xf32>,
    return
  }
  func.func @transform_0(%arg0: i32) -> (i32, i32) {
    %c0_i32 = arith.constant 0 : i32
    %c0_i32_0 = arith.constant 0 : i32
    return %arg0, %c0_i32 : i32, i32
  }
  func.func @transform_1(%arg0: i32) -> (i32, i32) {
    %c0_i32 = arith.constant 0 : i32
    %c0_i32_0 = arith.constant 0 : i32
    %c0_i32_1 = arith.constant 0 : i32
    return %c0_i32, %c0_i32_0 : i32, i32
  }
  func.func @transform_2(%arg0: i32) -> (i32, i32) {
    %c0_i32 = arith.constant 0 : i32
    %c0_i32_0 = arith.constant 0 : i32
    %c0_i32_1 = arith.constant 0 : i32
    return %c0_i32, %c0_i32_0 : i32, i32
  }
  func.func @transform_3(%arg0: i32) -> (i32, i32) {
    %c0_i32 = arith.constant 0 : i32
    %c0_i32_0 = arith.constant 0 : i32
    %c0_i32_1 = arith.constant 0 : i32
    return %c0_i32, %c0_i32_0 : i32, i32
  }
  func.func @transform_4(%arg0: i32) -> (i32, i32) {
    %c0_i32 = arith.constant 0 : i32
    %c0_i32_0 = arith.constant 0 : i32
    %c0_i32_1 = arith.constant 0 : i32
    return %c0_i32, %c0_i32_0 : i32, i32
  }
  func.func @transform_5(%arg0: i32) -> (i32, i32) {
    %c0_i32 = arith.constant 0 : i32
    %c0_i32_0 = arith.constant 0 : i32
    %c0_i32_1 = arith.constant 0 : i32
    return %c0_i32, %c0_i32_0 : i32, i32
  }
  func.func @transform_6(%arg0: i32) -> (i32, i32) {
    %c0_i32 = arith.constant 0 : i32
    %c0_i32_0 = arith.constant 0 : i32
    %c0_i32_1 = arith.constant 0 : i32
    return %c0_i32, %c0_i32_0 : i32, i32
  }
  func.func @transform_7(%arg0: i32) -> (i32, i32) {
    %c0_i32 = arith.constant 0 : i32
    %c0_i32_0 = arith.constant 0 : i32
    %c0_i32_1 = arith.constant 0 : i32
    return %c0_i32, %c0_i32_0 : i32, i32
  }
  func.func @transform_8(%arg0: i32) -> (i32, i32) {
    %c0_i32 = arith.constant 0 : i32
    %c0_i32_0 = arith.constant 0 : i32
    %c0_i32_1 = arith.constant 0 : i32
    return %c0_i32, %c0_i32_0 : i32, i32
  }
  func.func @transform_9(%arg0: i32) -> (i32, i32) {
    %c0_i32 = arith.constant 0 : i32
    %c0_i32_0 = arith.constant 0 : i32
    %c0_i32_1 = arith.constant 0 : i32
    return %c0_i32, %c0_i32_0 : i32, i32
  }
  func.func @transform_10(%arg0: i32) -> (i32, i32) {
    %c0_i32 = arith.constant 0 : i32
    %c0_i32_0 = arith.constant 0 : i32
    %c0_i32_1 = arith.constant 0 : i32
    return %c0_i32, %c0_i32_0 : i32, i32
  }
  func.func @transform_11(%arg0: i32) -> (i32, i32) {
    %c0_i32 = arith.constant 0 : i32
    %c0_i32_0 = arith.constant 0 : i32
    %c0_i32_1 = arith.constant 0 : i32
    return %c0_i32, %c0_i32_0 : i32, i32
  }
  func.func @transform_12(%arg0: i32) -> (i32, i32) {
    %c0_i32 = arith.constant 0 : i32
    %c0_i32_0 = arith.constant 0 : i32
    %c0_i32_1 = arith.constant 0 : i32
    return %c0_i32, %c0_i32_0 : i32, i32
  }
  func.func @transform_13(%arg0: i32) -> (i32, i32) {
    %c0_i32 = arith.constant 0 : i32
    %c0_i32_0 = arith.constant 0 : i32
    %c0_i32_1 = arith.constant 0 : i32
    return %c0_i32, %c0_i32_0 : i32, i32
  }
  func.func @transform_14(%arg0: i32) -> (i32, i32) {
    %c0_i32 = arith.constant 0 : i32
    %c0_i32_0 = arith.constant 0 : i32
    %c0_i32_1 = arith.constant 0 : i32
    return %c0_i32, %c0_i32_0 : i32, i32
  }
  func.func @transform_15(%arg0: i32) -> (i32, i32) {
    %c0_i32 = arith.constant 0 : i32
    %c0_i32_0 = arith.constant 0 : i32
    %c0_i32_1 = arith.constant 0 : i32
    return %c0_i32, %c0_i32_0 : i32, i32
  }
  func.func @transform_16(%arg0: i32) -> (i32, i32) {
    %c0_i32 = arith.constant 0 : i32
    %c0_i32_0 = arith.constant 0 : i32
    %c0_i32_1 = arith.constant 0 : i32
    return %c0_i32, %c0_i32_0 : i32, i32
  }
  func.func @transform_17(%arg0: i32) -> (i32, i32) {
    %c0_i32 = arith.constant 0 : i32
    %c0_i32_0 = arith.constant 0 : i32
    %c0_i32_1 = arith.constant 0 : i32
    return %c0_i32, %c0_i32_0 : i32, i32
  }
  func.func @transform_18(%arg0: i32) -> (i32, i32) {
    %c0_i32 = arith.constant 0 : i32
    %c0_i32_0 = arith.constant 0 : i32
    %c0_i32_1 = arith.constant 0 : i32
    return %c0_i32, %c0_i32_0 : i32, i32
  }
  func.func @transform_19(%arg0: i32) -> (i32, i32) {
    %c0_i32 = arith.constant 0 : i32
    %c0_i32_0 = arith.constant 0 : i32
    %c0_i32_1 = arith.constant 0 : i32
    return %c0_i32, %c0_i32_0 : i32, i32
  }
  func.func @transform_20(%arg0: i32) -> (i32, i32) {
    %c0_i32 = arith.constant 0 : i32
    %c0_i32_0 = arith.constant 0 : i32
    %c0_i32_1 = arith.constant 0 : i32
    return %c0_i32, %c0_i32_0 : i32, i32
  }
  func.func @transform_21(%arg0: i32) -> (i32, i32) {
    %c0_i32 = arith.constant 0 : i32
    %c0_i32_0 = arith.constant 0 : i32
    return %arg0, %c0_i32 : i32, i32
  }
  func.func @transform_22(%arg0: i32) -> (i32, i32) {
    %c0_i32 = arith.constant 0 : i32
    %c0_i32_0 = arith.constant 0 : i32
    return %arg0, %c0_i32 : i32, i32
  }
}

</mosaic_0001>

<bundles_post_ra>
// kernel: tpu_custom_call.1
= control target key start
LH: loop header
LB: loop body
LE: loop exit
PB: predicated region body
PF: predicated region fallthrough
CT: control target
= control target key end

     0   :  { %s17878_s0 = inlined_call_operand.vmem [shape: f32[8,30], index: 0, kind: input, shape index: {}]   ;;  %s17879_s1 = inlined_call_operand.vmem [shape: f32[30,1200], index: 1, kind: input, shape index: {}]   ;;  %s17880_s2 = inlined_call_operand.vmem [shape: f32[1,1200], index: 2, kind: input, shape index: {}]   ;;  %s17881_s3 = inlined_call_operand.vmem [shape: f32[1200,600], index: 3, kind: input, shape index: {}]   ;;  %s17882_s4 = inlined_call_operand.vmem [shape: f32[1,600], index: 4, kind: input, shape index: {}]   ;;  %s17883_s5 = inlined_call_operand.hbm [shape: f32[600,600], index: 5, kind: input, shape index: {}]   ;;  %s17884_s6 = inlined_call_operand.vmem [shape: f32[1,600], index: 6, kind: input, shape index: {}]   ;;  %s17885_s7 = inlined_call_operand.vmem [shape: f32[600,280], index: 7, kind: input, shape index: {}]   ;;  %s17886_s8 = inlined_call_operand.vmem [shape: f32[1,280], index: 8, kind: input, shape index: {}]   ;;  %s17887_s9 = inlined_call_operand.hbm [shape: f32[280,300], index: 9, kind: input, shape index: {}]   ;;  %s17888_s10 = inlined_call_operand.vmem [shape: f32[1,300], index: 10, kind: input, shape index: {}]   ;;  %s17889_s11 = inlined_call_operand.vmem [shape: f32[300,280], index: 11, kind: input, shape index: {}]   ;;  %s17890_s12 = inlined_call_operand.vmem [shape: f32[1,280], index: 12, kind: input, shape index: {}]   ;;  %s17891_s13 = inlined_call_operand.hbm [shape: f32[280,600], index: 13, kind: input, shape index: {}]   ;;  %s17892_s14 = inlined_call_operand.vmem [shape: f32[1,600], index: 14, kind: input, shape index: {}]   ;;  %s17893_s15 = inlined_call_operand.hbm [shape: f32[600,600], index: 15, kind: input, shape index: {}]   ;;  %s17894_s16 = inlined_call_operand.vmem [shape: f32[1,600], index: 16, kind: input, shape index: {}]   ;;  %s17895_s17 = inlined_call_operand.hbm [shape: f32[600,1200], index: 17, kind: input, shape index: {}]   ;;  %s17896_s18 = inlined_call_operand.vmem [shape: f32[1,1200], index: 18, kind: input, shape index: {}]   ;;  %s17897_s19 = inlined_call_operand.vmem [shape: f32[1200,30], index: 19, kind: input, shape index: {}]   ;;  %s17898_s20 = inlined_call_operand.vmem [shape: f32[1,30], index: 20, kind: input, shape index: {}]   ;;  %s17899_s21 = inlined_call_operand.hbm [shape: f32[8,300], index: 21, kind: output, shape index: {0}]   ;;  %s17900_s22 = inlined_call_operand.hbm [shape: f32[8,30], index: 22, kind: output, shape index: {1}]  }
   0x1   :  { %17906 = sst [smem:[#allocation19_spill]] %s17878_s0 }
   0x2   :  { %17907 = sst [smem:[#allocation20_spill]] %s17879_s1 }
   0x3   :  { %17908 = sst [smem:[#allocation21_spill]] %s17880_s2 }
   0x4   :  { %17909 = sst [smem:[#allocation22_spill]] %s17881_s3 }
   0x5   :  { %17910 = sst [smem:[#allocation23_spill]] %s17882_s4 }
   0x6   :  { %17911 = sst [smem:[#allocation24_spill]] %s17883_s5 }
   0x7   :  { %17912 = sst [smem:[#allocation25_spill]] %s17884_s6 }
   0x8   :  { %17913 = sst [smem:[#allocation26_spill]] %s17900_s22 }
   0x9   :  { %28 = vsyncpa [#allocation3], 0 }
   0xa   :  { %29 = vsyncpa [#allocation6], 0 }
   0xb   :  { %30 = vsyncpa [#allocation9], 0 }
   0xc   :  { %31 = vsyncpa [#allocation4], 0 }
   0xd   :  { %32 = vsyncpa [#allocation13], 0  ;;  %s13276_s3 = smov [#allocation5]   ;;  %s13112_s4 = scalar_lea.hbm %s17887_s9, 13440 }
   0xe   :  { %s66_s28 = sshll.u32 %s13276_s3, 4  ;;  %p13113_p0 = scmp.ne.s32.totalorder %s17887_s9, %s13112_s4  ;;  %s67_s28 = int_to_ptr.vmem [resolvable:$true] %s66_s28 }
   0xf   :  { %p13116_p1 = scmp.lt.u32.totalorder %s13112_s4, %s17887_s9 }
  0x11   :  { %p13118_p2 = pnand %p13116_p1, %p13113_p0 }
  0x13   :  { %13121 = shalt.err (!%p13118_p2)
}
  0x14   :  { %s13122_s24 = scalar_lea.vmem %s67_s28, 13440  ;;  %p13127_p4 = scmp.lt.s32.totalorder %s67_s28, %s67_s28 }
  0x15   :  { %p13123_p3 = scmp.ne.s32.totalorder %s67_s28, %s13122_s24  ;;  %p13128_p5 = scmp.lt.s32.totalorder %s13122_s24, %s13122_s24 }
  0x17   :  { %p13129_p6 = por %p13128_p5, %p13127_p4 }
  0x19   :  { %p13130_p7 = pnand %p13129_p6, %p13123_p3 }
  0x1b   :  { %13133 = shalt.err (!%p13130_p7)
}
  0x1c   :  { %s13277_s6 = smov 384   ;;  %s13278_s25 = smov 24  }
  0x1d   :  { %72 = dma.hbm_to_vmem [thread:$0]  %s17887_s9, 13440, %s67_s28, [#allocation6], %s13277_s6, %s13277_s6, %s13278_s25  }
  0x1e   :  { %s13279_s27 = smov [#allocation8]   ;;  %s13280_s29 = smov [#allocation2]  }
  0x1f   :  { %s98_s3 = sshll.u32 %s13279_s27, 4  ;;  %s48_s30 = sshll.u32 %s13280_s29, 4  ;;  %s99_s3 = int_to_ptr.vmem [resolvable:$true] %s98_s3  ;;  %s49_s30 = int_to_ptr.vmem [resolvable:$true] %s48_s30 }
  0x20   :  { %s13134_s23 = scalar_lea.hbm %s17893_s15, 48000 }
  0x21   :  { %p13135_p8 = scmp.ne.s32.totalorder %s17893_s15, %s13134_s23  ;;  %p13138_p9 = scmp.lt.u32.totalorder %s13134_s23, %s17893_s15 }
  0x23   :  { %p13140_p10 = pnand %p13138_p9, %p13135_p8 }
  0x25   :  { %13143 = shalt.err (!%p13140_p10)
}
  0x26   :  { %s13144_s9 = scalar_lea.vmem %s99_s3, 48000  ;;  %p13149_p12 = scmp.lt.s32.totalorder %s99_s3, %s99_s3 }
  0x27   :  { %p13145_p11 = scmp.ne.s32.totalorder %s99_s3, %s13144_s9  ;;  %p13150_p13 = scmp.lt.s32.totalorder %s13144_s9, %s13144_s9 }
  0x29   :  { %p13151_p0 = por %p13150_p13, %p13149_p12 }
  0x2b   :  { %p13152_p1 = pnand %p13151_p0, %p13145_p11 }
  0x2d   :  { %13155 = shalt.err (!%p13152_p1)
}
  0x2e   :  { %s13281_s28 = smov 640   ;;  %s13282_s6 = smov 40  }
  0x2f   :  { %104 = dma.hbm_to_vmem [thread:$0]  %s17893_s15, 48000, %s99_s3, [#allocation9], %s13281_s28, %s13281_s28, %s13282_s6  }
  0x30   :  { %s17914_s27 = sld [smem:[#allocation24_spill]] }
  0x36   :  { %s13156_s29 = scalar_lea.hbm %s17914_s27, 48000 }
  0x37   :  { %p13157_p2 = scmp.ne.s32.totalorder %s17914_s27, %s13156_s29  ;;  %p13160_p3 = scmp.lt.u32.totalorder %s13156_s29, %s17914_s27 }
  0x39   :  { %p13162_p4 = pnand %p13160_p3, %p13157_p2 }
  0x3b   :  { %13165 = shalt.err (!%p13162_p4)
}
  0x3c   :  { %s13166_s5 = scalar_lea.vmem %s49_s30, 48000  ;;  %p13171_p6 = scmp.lt.s32.totalorder %s49_s30, %s49_s30 }
  0x3d   :  { %p13167_p5 = scmp.ne.s32.totalorder %s49_s30, %s13166_s5  ;;  %p13172_p7 = scmp.lt.s32.totalorder %s13166_s5, %s13166_s5 }
  0x3f   :  { %p13173_p8 = por %p13172_p7, %p13171_p6 }
  0x41   :  { %p13174_p9 = pnand %p13173_p8, %p13167_p5 }
  0x43   :  { %13177 = shalt.err (!%p13174_p9)
}
  0x44   :  { %54 = dma.hbm_to_vmem [thread:$0]  %s17914_s27, 48000, %s49_s30, [#allocation3], %s13281_s28, %s13281_s28, %s13282_s6  }
  0x45   :  { %s13283_s24 = smov [#allocation7]   ;;  %s13284_s25 = smov [#allocation10]  }
  0x46   :  { %s84_s9 = sshll.u32 %s13283_s24, 4  ;;  %s112_s26 = sshll.u32 %s13284_s25, 4  ;;  %s85_s9 = int_to_ptr.vmem [resolvable:$true] %s84_s9  ;;  %s113_s26 = int_to_ptr.vmem [resolvable:$true] %s112_s26 }
  0x47   :  { %s13178_s29 = scalar_lea.hbm %s17891_s13, 22400 }
  0x48   :  { %p13179_p10 = scmp.ne.s32.totalorder %s17891_s13, %s13178_s29  ;;  %p13182_p11 = scmp.lt.u32.totalorder %s13178_s29, %s17891_s13 }
  0x4a   :  { %p13184_p12 = pnand %p13182_p11, %p13179_p10 }
  0x4c   :  { %13187 = shalt.err (!%p13184_p12)
}
  0x4d   :  { %s13188_s30 = scalar_lea.vmem %s85_s9, 22400  ;;  %p13193_p0 = scmp.lt.s32.totalorder %s85_s9, %s85_s9 }
  0x4e   :  { %p13189_p13 = scmp.ne.s32.totalorder %s85_s9, %s13188_s30  ;;  %p13194_p1 = scmp.lt.s32.totalorder %s13188_s30, %s13188_s30 }
  0x50   :  { %p13195_p2 = por %p13194_p1, %p13193_p0 }
  0x52   :  { %p13196_p3 = pnand %p13195_p2, %p13189_p13 }
  0x54   :  { %13199 = shalt.err (!%p13196_p3)
}
  0x55   :  { %90 = dma.hbm_to_vmem [thread:$0]  %s17891_s13, 22400, %s85_s9, [#allocation6], %s13281_s28, %s13281_s28, %s13282_s6  }
  0x56   :  { %s13200_s24 = scalar_lea.hbm %s17895_s17, 96000 }
  0x57   :  { %p13201_p4 = scmp.ne.s32.totalorder %s17895_s17, %s13200_s24  ;;  %p13204_p5 = scmp.lt.u32.totalorder %s13200_s24, %s17895_s17 }
  0x59   :  { %p13206_p6 = pnand %p13204_p5, %p13201_p4 }
  0x5b   :  { %13209 = shalt.err (!%p13206_p6)
}
  0x5c   :  { %s13210_s4 = scalar_lea.vmem %s113_s26, 96000  ;;  %p13215_p8 = scmp.lt.s32.totalorder %s113_s26, %s113_s26 }
  0x5d   :  { %p13211_p7 = scmp.ne.s32.totalorder %s113_s26, %s13210_s4  ;;  %p13216_p9 = scmp.lt.s32.totalorder %s13210_s4, %s13210_s4 }
  0x5f   :  { %p13217_p10 = por %p13216_p9, %p13215_p8 }
  0x61   :  { %p13218_p11 = pnand %p13217_p10, %p13211_p7 }
  0x63   :  { %13221 = shalt.err (!%p13218_p11)
}
  0x64   :  { %s13285_s13 = smov 1280   ;;  %s13286_s28 = smov 80  }
  0x65   :  { %118 = dma.hbm_to_vmem [thread:$0]  %s17895_s17, 96000, %s113_s26, [#allocation9], %s13285_s13, %s13285_s13, %s13286_s28  }
  0x66   :  { %13266 = dma.done.wait [#allocation3], 48000  }
  0x67   :  { %13267 = vsyncadd [#allocation3], 4294919296 }
  0x68   :  { %13268 = dma.done.wait [#allocation6], 35840  }
  0x69   :  { %13269 = vsyncadd [#allocation6], 4294931456 }
  0x6a   :  { %13270 = dma.done.wait [#allocation9], 144000  }
  0x6b   :  { %13271 = vsyncadd [#allocation9], 4294823296  ;;  %v13287_v0 = vmov 0.0   ;;  %vm239_vm0 = vcmask 1045504   ;;  %s17915_s1 = sld [smem:[#allocation20_spill]]  ;;  %vm13288_vm1 = vmmov 1  }
  0x6c   :  { %334 = vmatprep.mubr.f32.mxu0 %v13287_v0  ;;  %405 = vmatprep.mubr.f32.mxu1 %v13287_v0  ;;  %vm13498_vm2 = vmpackc.low %vm239_vm0, %vm13288_vm1  ;;  %s17918_s3 = sld [smem:[#allocation19_spill]]  ;;  %vm235_vm3 = vcmask 244736   ;;  %s17919_s26 = sld [smem:[#allocation22_spill]]  ;;  %vm1402_vm4 = vcmask 392192   ;;  %vm2873_vm5 = vcmask 719872   ;;  %vm13290_vm6 = vmmov 0  }
  0x6d   :  { %s17921_s0 = sld [smem:[#allocation23_spill]]  ;;  %s17922_s22 = sld [smem:[#allocation25_spill]]  ;;  %vm4303_vm7 = vcmask 195584   ;;  %vm4727_vm8 = vcmask 1043456   ;;  %vm4591_vm9 = vcmask 359424  }
  0x6e   :  { %vm17186_vm10 = vmpackc.low %vm4727_vm8, %vm13288_vm1 }
  0x71   :  { %v142_v1 = vld [vmem:[%s17915_s1 + $0x8] sm:$0xff]  ;;  %v152_v2 = vld [vmem:[%s17915_s1 + $0x58] sm:$0xff]  ;;  %v141_v3 = vld [vmem:[%s17915_s1] sm:$0xff] }
  0x72   :  { %v9915_v4 = vpack.c.bf16 %v152_v2, %v142_v1  ;;  %v151_v5 = vld [vmem:[%s17915_s1 + $0x50] sm:$0xff]  ;;  %v162_v6 = vld [vmem:[%s17915_s1 + $0xa8] sm:$0xff]  ;;  %v172_v7 = vld [vmem:[%s17915_s1 + $0xf8] sm:$0x3f] }
  0x73   :  { %v9917_v8 = vpack.c.bf16 %v151_v5, %v141_v3  ;;  %v9919_v9 = vpack.c.bf16 %v172_v7, %v162_v6  ;;  %v161_v11 = vld [vmem:[%s17915_s1 + $0xa0] sm:$0xff]  ;;  %v171_v12 = vld [vmem:[%s17915_s1 + $0xf0] sm:$0x3f]  ;;  %v144_v13 = vld [vmem:[%s17915_s1 + $0x18] sm:$0xff] }
  0x74   :  { %9916 = vmatprep.subr.bf16.mxu0 %v9915_v4  ;;  %v154_v14 = vld [vmem:[%s17915_s1 + $0x68] sm:$0xff]  ;;  %v143_v15 = vld [vmem:[%s17915_s1 + $0x10] sm:$0xff]  ;;  %v9922_v16 = vpack.c.bf16 %v171_v12, %v161_v11  ;;  %v153_v18 = vld [vmem:[%s17915_s1 + $0x60] sm:$0xff] }
  0x75   :  { %9918 = vmatpush1.bf16.msra.mxu0 %v9917_v8  ;;  %v9925_v17 = vpack.c.bf16 %v154_v14, %v144_v13  ;;  %v164_v19 = vld [vmem:[%s17915_s1 + $0xb8] sm:$0xff]  ;;  %v174_v20 = vld [vmem:[%s17915_s1 + $0x108] sm:$0x3f]  ;;  %v9927_v21 = vpack.c.bf16 %v153_v18, %v143_v15  ;;  %v163_v23 = vld [vmem:[%s17915_s1 + $0xb0] sm:$0xff] }
  0x76   :  { %9921 = vmatprep.subr.msk.bf16.mxu0 %vm13498_vm2, %v9919_v9  ;;  %v9929_v22 = vpack.c.bf16 %v174_v20, %v164_v19  ;;  %v173_v24 = vld [vmem:[%s17915_s1 + $0x100] sm:$0x3f]  ;;  %v146_v25 = vld [vmem:[%s17915_s1 + $0x28] sm:$0xff]  ;;  %v156_v26 = vld [vmem:[%s17915_s1 + $0x78] sm:$0xff] }
  0x77   :  { %9926 = vmatprep.subr.bf16.mxu1 %v9925_v17  ;;  %v145_v27 = vld [vmem:[%s17915_s1 + $0x20] sm:$0xff]  ;;  %v155_v28 = vld [vmem:[%s17915_s1 + $0x70] sm:$0xff]  ;;  %v9932_v29 = vpack.c.bf16 %v173_v24, %v163_v23  ;;  %v9935_v30 = vpack.c.bf16 %v156_v26, %v146_v25  ;;  %v166_v31 = vld [vmem:[%s17915_s1 + $0xc8] sm:$0xff] }
  0x78   :  { %9928 = vmatpush1.bf16.msra.mxu1 %v9927_v21  ;;  %v176_v32 = vld [vmem:[%s17915_s1 + $0x118] sm:$0x3f]  ;;  %v13557_v33 = vld [vmem:[%s17918_s3] sm:$0xff]  ;;  %v9937_v34 = vpack.c.bf16 %v155_v28, %v145_v27  ;;  %v158_v36 = vld [vmem:[%s17915_s1 + $0x88] sm:$0xff]  ;;  %s17920_s3 = sld [smem:[#allocation21_spill]] }
  0x79   :  { %9924 = vmatpush1.bf16.msk.msra.mxu0 %vm13498_vm2, %v9922_v16  ;;  %9931 = vmatprep.subr.msk.bf16.mxu1 %vm13498_vm2, %v9929_v22  ;;  %v148_v35 = vld [vmem:[%s17915_s1 + $0x38] sm:$0xff]  ;;  %v9939_v37 = vpack.c.bf16 %v176_v32, %v166_v31  ;;  %v165_v38 = vld [vmem:[%s17915_s1 + $0xc0] sm:$0xff]  ;;  %v175_v39 = vld [vmem:[%s17915_s1 + $0x110] sm:$0x3f] }
  0x7a   :  { %9936 = vmatprep.subr.bf16.mxu0 %v9935_v30  ;;  %v9945_v40 = vpack.c.bf16 %v158_v36, %v148_v35  ;;  %v147_v41 = vld [vmem:[%s17915_s1 + $0x30] sm:$0xff]  ;;  %v150_v42 = vld [vmem:[%s17915_s1 + $0x48] sm:$0xff]  ;;  %v160_v43 = vld [vmem:[%s17915_s1 + $0x98] sm:$0xff]  ;;  %v9942_v48 = vpack.c.bf16 %v175_v39, %v165_v38 }
  0x7b   :  { %v157_v44 = vld [vmem:[%s17915_s1 + $0x80] sm:$0xff]  ;;  %v168_v46 = vld [vmem:[%s17915_s1 + $0xd8] sm:$0xff]  ;;  %v178_v47 = vld [vmem:[%s17915_s1 + $0x128] sm:$0x3f]  ;;  %v9955_v52 = vpack.c.bf16 %v160_v43, %v150_v42 }
  0x7c   :  { %9120 = vmatmul.mubr.msk.f32.vlgmr.msra.gmra.mrb[0].mxu0 %vm235_vm3, %v13557_v33  ;;  %9934 = vmatpush1.bf16.msk.msra.mxu1 %vm13498_vm2, %v9932_v29  ;;  %v9947_v45 = vpack.c.bf16 %v157_v44, %v147_v41  ;;  %v9949_v49 = vpack.c.bf16 %v178_v47, %v168_v46  ;;  %v167_v50 = vld [vmem:[%s17915_s1 + $0xd0] sm:$0xff]  ;;  %v177_v51 = vld [vmem:[%s17915_s1 + $0x120] sm:$0x3f]  ;;  %v170_v55 = vld [vmem:[%s17915_s1 + $0xe8] sm:$0xff] }
  0x7d   :  { %9938 = vmatpush1.bf16.msra.mxu0 %v9937_v34  ;;  %476 = vmatprep.mubr.f32.mxu0 %v13287_v0  ;;  %v149_v53 = vld [vmem:[%s17915_s1 + $0x40] sm:$0xff]  ;;  %v159_v54 = vld [vmem:[%s17915_s1 + $0x90] sm:$0xff]  ;;  %v180_v56 = vld [vmem:[%s17915_s1 + $0x138] sm:$0x3f]  ;;  %v9952_v59 = vpack.c.bf16 %v177_v51, %v167_v50 }
  0x7e   :  { %9941 = vmatprep.subr.msk.bf16.mxu0 %vm13498_vm2, %v9939_v37  ;;  %9946 = vmatprep.subr.bf16.mxu1 %v9945_v40  ;;  %v626_v57 = vld [vmem:[%s17919_s26 + $0x8] sm:$0xff]  ;;  %v631_v58 = vld [vmem:[%s17919_s26 + $0x30] sm:$0xff]  ;;  %v9957_v60 = vpack.c.bf16 %v159_v54, %v149_v53  ;;  %v169_v61 = vld [vmem:[%s17915_s1 + $0xe0] sm:$0xff]  ;;  %v9959_v1 = vpack.c.bf16 %v180_v56, %v170_v55 }
  0x7f   :  { %9123 = vmatmul.mubr.msk.f32.vlgmr.msra.gmra.mrb[0].mxu1 %vm235_vm3, %v13557_v33  ;;  %v625_v62 = vld [vmem:[%s17919_s26] sm:$0xff]  ;;  %v630_v63 = vld [vmem:[%s17919_s26 + $0x28] sm:$0xff]  ;;  %v179_v2 = vld [vmem:[%s17915_s1 + $0x130] sm:$0x3f]  ;;  %v9965_v3 = vpack.c.bf16 %v631_v58, %v626_v57 }
  0x80   :  { %9948 = vmatpush1.bf16.msra.mxu1 %v9947_v45  ;;  %547 = vmatprep.mubr.f32.mxu1 %v13287_v0  ;;  %v636_v4 = vld [vmem:[%s17919_s26 + $0x58] sm:$0xff]  ;;  %v641_v5 = vld [vmem:[%s17919_s26 + $0x80] sm:$0xff]  ;;  %v9967_v8 = vpack.c.bf16 %v630_v63, %v625_v62  ;;  %v9962_v9 = vpack.c.bf16 %v179_v2, %v169_v61  ;;  %v627_v11 = vld [vmem:[%s17919_s26 + $0x10] sm:$0xff] }
  0x81   :  { %9944 = vmatpush1.bf16.msk.msra.mxu0 %vm13498_vm2, %v9942_v48  ;;  %9951 = vmatprep.subr.msk.bf16.mxu1 %vm13498_vm2, %v9949_v49  ;;  %v628_v6 = vld [vmem:[%s17919_s26 + $0x18] sm:$0xff]  ;;  %v633_v7 = vld [vmem:[%s17919_s26 + $0x40] sm:$0xff]  ;;  %v9969_v12 = vpack.c.bf16 %v641_v5, %v636_v4  ;;  %v635_v13 = vld [vmem:[%s17919_s26 + $0x50] sm:$0xff] }
  0x82   :  { %9956 = vmatprep.subr.bf16.mxu0 %v9955_v52  ;;  %v640_v14 = vld [vmem:[%s17919_s26 + $0x78] sm:$0xff]  ;;  %v10265_v15 = vpack.c.bf16 %v633_v7, %v628_v6  ;;  %v646_v17 = vld [vmem:[%s17919_s26 + $0xa8] sm:$0xff]  ;;  %v651_v18 = vld [vmem:[%s17919_s26 + $0xd0] sm:$0xff] }
  0x83   :  { %v632_v16 = vld [vmem:[%s17919_s26 + $0x38] sm:$0xff]  ;;  %v638_v19 = vld [vmem:[%s17919_s26 + $0x68] sm:$0xff]  ;;  %v643_v20 = vld [vmem:[%s17919_s26 + $0x90] sm:$0xff]  ;;  %v9971_v21 = vpack.c.bf16 %v640_v14, %v635_v13  ;;  %v9973_v24 = vpack.c.bf16 %v651_v18, %v646_v17 }
  0x84   :  { %9126 = vmatmul.mubr.msk.f32.vlgmr.msra.gmra.mrb[2].mxu0 %vm235_vm3, %v13557_v33  ;;  %9954 = vmatpush1.bf16.msk.msra.mxu1 %vm13498_vm2, %v9952_v59  ;;  %v10267_v22 = vpack.c.bf16 %v632_v16, %v627_v11  ;;  %v637_v23 = vld [vmem:[%s17919_s26 + $0x60] sm:$0xff]  ;;  %v650_v26 = vld [vmem:[%s17919_s26 + $0xc8] sm:$0xff]  ;;  %v10269_v27 = vpack.c.bf16 %v643_v20, %v638_v19  ;;  %v656_v28 = vld [vmem:[%s17919_s26 + $0xf8] sm:$0xff] }
  0x85   :  { %9958 = vmatpush1.bf16.msra.mxu0 %v9957_v60  ;;  %618 = vmatprep.mubr.f32.mxu0 %v13287_v0  ;;  %v645_v25 = vld [vmem:[%s17919_s26 + $0xa0] sm:$0xff]  ;;  %v642_v10 = vld [vmem:[%s17919_s26 + $0x88] sm:$0xff]  ;;  %v648_v30 = vld [vmem:[%s17919_s26 + $0xb8] sm:$0xff] }
  0x86   :  { %9961 = vmatprep.subr.msk.bf16.mxu0 %vm13498_vm2, %v9959_v1  ;;  %9966 = vmatprep.subr.bf16.mxu1 %v9965_v3  ;;  %v661_v29 = vld [vmem:[%s17919_s26 + $0x120] sm:$0xff]  ;;  %v9975_v32 = vpack.c.bf16 %v650_v26, %v645_v25  ;;  %v10271_v34 = vpack.c.bf16 %v642_v10, %v637_v23  ;;  %v647_v35 = vld [vmem:[%s17919_s26 + $0xb0] sm:$0xff]  ;;  %v660_v38 = vld [vmem:[%s17919_s26 + $0x118] sm:$0xff] }
  0x87   :  { %9129 = vmatmul.mubr.msk.f32.vlgmr.msra.gmra.mrb[2].mxu1 %vm235_vm3, %v13557_v33  ;;  %v653_v31 = vld [vmem:[%s17919_s26 + $0xe0] sm:$0xff]  ;;  %v9977_v36 = vpack.c.bf16 %v661_v29, %v656_v28  ;;  %v655_v37 = vld [vmem:[%s17919_s26 + $0xf0] sm:$0xff]  ;;  %v652_v39 = vld [vmem:[%s17919_s26 + $0xd8] sm:$0xff] }
  0x88   :  { %9968 = vmatpush1.bf16.msra.mxu1 %v9967_v8  ;;  %v666_v40 = vld [vmem:[%s17919_s26 + $0x148] sm:$0xff]  ;;  %v671_v41 = vld [vmem:[%s17919_s26 + $0x170] sm:$0xff]  ;;  %v9979_v44 = vpack.c.bf16 %v660_v38, %v655_v37  ;;  %v10275_v45 = vpack.c.bf16 %v652_v39, %v647_v35  ;;  %v657_v46 = vld [vmem:[%s17919_s26 + $0x100] sm:$0xff] }
  0x89   :  { %9964 = vmatpush1.bf16.msk.msra.mxu0 %vm13498_vm2, %v9962_v9  ;;  %9970 = vmatprep.subr.bf16.mxu1 %v9969_v12  ;;  %v658_v42 = vld [vmem:[%s17919_s26 + $0x108] sm:$0xff]  ;;  %v663_v43 = vld [vmem:[%s17919_s26 + $0x130] sm:$0xff]  ;;  %v9981_v47 = vpack.c.bf16 %v671_v41, %v666_v40  ;;  %v665_v48 = vld [vmem:[%s17919_s26 + $0x140] sm:$0xff] }
  0x8a   :  { %10266 = vmatprep.subr.bf16.mxu0 %v10265_v15  ;;  %v670_v49 = vld [vmem:[%s17919_s26 + $0x168] sm:$0xff]  ;;  %v10277_v50 = vpack.c.bf16 %v663_v43, %v658_v42  ;;  %v676_v52 = vld [vmem:[%s17919_s26 + $0x198] sm:$0xff]  ;;  %v681_v53 = vld [vmem:[%s17919_s26 + $0x1c0] sm:$0xff] }
  0x8b   :  { %v662_v51 = vld [vmem:[%s17919_s26 + $0x128] sm:$0xff]  ;;  %v668_v54 = vld [vmem:[%s17919_s26 + $0x158] sm:$0xff]  ;;  %v673_v55 = vld [vmem:[%s17919_s26 + $0x180] sm:$0xff]  ;;  %v9983_v56 = vpack.c.bf16 %v670_v49, %v665_v48  ;;  %v9985_v59 = vpack.c.bf16 %v681_v53, %v676_v52 }
  0x8c   :  { %9132 = vmatmul.mubr.msk.f32.vlgmr.msra.gmra.mrb[4].mxu0 %vm235_vm3, %v13557_v33  ;;  %9972 = vmatpush1.bf16.msra.mxu1 %v9971_v21  ;;  %v10273_v33 = vpack.c.bf16 %v653_v31, %v648_v30  ;;  %v10279_v57 = vpack.c.bf16 %v662_v51, %v657_v46  ;;  %v667_v58 = vld [vmem:[%s17919_s26 + $0x150] sm:$0xff]  ;;  %v680_v61 = vld [vmem:[%s17919_s26 + $0x1b8] sm:$0xff]  ;;  %v10281_v62 = vpack.c.bf16 %v673_v55, %v668_v54  ;;  %v686_v1 = vld [vmem:[%s17919_s26 + $0x1e8] sm:$0xff] }
  0x8d   :  { %10268 = vmatpush1.bf16.msra.mxu0 %v10267_v22  ;;  %9974 = vmatprep.subr.bf16.mxu1 %v9973_v24  ;;  %v675_v60 = vld [vmem:[%s17919_s26 + $0x190] sm:$0xff]  ;;  %v672_v63 = vld [vmem:[%s17919_s26 + $0x178] sm:$0xff]  ;;  %v678_v3 = vld [vmem:[%s17919_s26 + $0x1a8] sm:$0xff] }
  0x8e   :  { %10270 = vmatprep.subr.bf16.mxu0 %v10269_v27  ;;  %v691_v2 = vld [vmem:[%s17919_s26 + $0x210] sm:$0xff]  ;;  %v9987_v5 = vpack.c.bf16 %v680_v61, %v675_v60  ;;  %v10283_v6 = vpack.c.bf16 %v672_v63, %v667_v58  ;;  %v677_v7 = vld [vmem:[%s17919_s26 + $0x1a0] sm:$0xff]  ;;  %v690_v11 = vld [vmem:[%s17919_s26 + $0x208] sm:$0xff] }
  0x8f   :  { %v683_v4 = vld [vmem:[%s17919_s26 + $0x1d0] sm:$0xff]  ;;  %v9989_v8 = vpack.c.bf16 %v691_v2, %v686_v1  ;;  %v685_v9 = vld [vmem:[%s17919_s26 + $0x1e0] sm:$0xff]  ;;  %v682_v13 = vld [vmem:[%s17919_s26 + $0x1c8] sm:$0xff] }
  0x90   :  { %9976 = vmatpush1.bf16.msra.mxu1 %v9975_v32  ;;  %v10285_v12 = vpack.c.bf16 %v683_v4, %v678_v3  ;;  %v696_v14 = vld [vmem:[%s17919_s26 + $0x238] sm:$0xff]  ;;  %v701_v15 = vld [vmem:[%s17919_s26 + $0x260] sm:$0xff]  ;;  %v9991_v18 = vpack.c.bf16 %v690_v11, %v685_v9  ;;  %v10287_v19 = vpack.c.bf16 %v682_v13, %v677_v7  ;;  %v687_v20 = vld [vmem:[%s17919_s26 + $0x1f0] sm:$0xff] }
  0x91   :  { %10272 = vmatpush1.bf16.msra.mxu0 %v10271_v34  ;;  %9978 = vmatprep.subr.bf16.mxu1 %v9977_v36  ;;  %v688_v16 = vld [vmem:[%s17919_s26 + $0x1f8] sm:$0xff]  ;;  %v693_v17 = vld [vmem:[%s17919_s26 + $0x220] sm:$0xff]  ;;  %v9993_v21 = vpack.c.bf16 %v701_v15, %v696_v14  ;;  %v695_v22 = vld [vmem:[%s17919_s26 + $0x230] sm:$0xff] }
  0x92   :  { %10274 = vmatprep.subr.bf16.mxu0 %v10273_v33  ;;  %v700_v23 = vld [vmem:[%s17919_s26 + $0x258] sm:$0xff]  ;;  %v10289_v24 = vpack.c.bf16 %v693_v17, %v688_v16  ;;  %v706_v26 = vld [vmem:[%s17919_s26 + $0x288] sm:$0xff]  ;;  %v711_v27 = vld [vmem:[%s17919_s26 + $0x2b0] sm:$0xff] }
  0x93   :  { %v692_v25 = vld [vmem:[%s17919_s26 + $0x218] sm:$0xff]  ;;  %v698_v10 = vld [vmem:[%s17919_s26 + $0x248] sm:$0xff]  ;;  %v703_v28 = vld [vmem:[%s17919_s26 + $0x270] sm:$0xff]  ;;  %v9995_v29 = vpack.c.bf16 %v700_v23, %v695_v22  ;;  %v9997_v32 = vpack.c.bf16 %v711_v27, %v706_v26 }
  0x94   :  { %9980 = vmatpush1.bf16.msra.mxu1 %v9979_v44  ;;  %v10291_v30 = vpack.c.bf16 %v692_v25, %v687_v20  ;;  %v697_v31 = vld [vmem:[%s17919_s26 + $0x240] sm:$0xff]  ;;  %v710_v35 = vld [vmem:[%s17919_s26 + $0x2a8] sm:$0xff]  ;;  %v10293_v36 = vpack.c.bf16 %v703_v28, %v698_v10  ;;  %v716_v38 = vld [vmem:[%s17919_s26 + $0x2d8] sm:$0xff] }
  0x95   :  { %10276 = vmatpush1.bf16.msra.mxu0 %v10275_v45  ;;  %9982 = vmatprep.subr.bf16.mxu1 %v9981_v47  ;;  %v705_v34 = vld [vmem:[%s17919_s26 + $0x280] sm:$0xff]  ;;  %v702_v37 = vld [vmem:[%s17919_s26 + $0x268] sm:$0xff]  ;;  %v708_v39 = vld [vmem:[%s17919_s26 + $0x298] sm:$0xff] }
  0x96   :  { %10278 = vmatprep.subr.bf16.mxu0 %v10277_v50  ;;  %v721_v33 = vld [vmem:[%s17919_s26 + $0x300] sm:$0xff]  ;;  %v9999_v41 = vpack.c.bf16 %v710_v35, %v705_v34  ;;  %v10295_v42 = vpack.c.bf16 %v702_v37, %v697_v31  ;;  %v707_v43 = vld [vmem:[%s17919_s26 + $0x290] sm:$0xff]  ;;  %v720_v46 = vld [vmem:[%s17919_s26 + $0x2f8] sm:$0xff] }
  0x97   :  { %v713_v40 = vld [vmem:[%s17919_s26 + $0x2c0] sm:$0xff]  ;;  %v10001_v44 = vpack.c.bf16 %v721_v33, %v716_v38  ;;  %v715_v45 = vld [vmem:[%s17919_s26 + $0x2d0] sm:$0xff]  ;;  %v712_v48 = vld [vmem:[%s17919_s26 + $0x2b8] sm:$0xff] }
  0x98   :  { %9984 = vmatpush1.bf16.msra.mxu1 %v9983_v56  ;;  %v10297_v47 = vpack.c.bf16 %v713_v40, %v708_v39  ;;  %v726_v49 = vld [vmem:[%s17919_s26 + $0x328] sm:$0xff]  ;;  %v731_v50 = vld [vmem:[%s17919_s26 + $0x350] sm:$0xff]  ;;  %v10003_v53 = vpack.c.bf16 %v720_v46, %v715_v45  ;;  %v10299_v54 = vpack.c.bf16 %v712_v48, %v707_v43  ;;  %v717_v55 = vld [vmem:[%s17919_s26 + $0x2e0] sm:$0xff] }
  0x99   :  { %10280 = vmatpush1.bf16.msra.mxu0 %v10279_v57  ;;  %9986 = vmatprep.subr.bf16.mxu1 %v9985_v59  ;;  %v718_v51 = vld [vmem:[%s17919_s26 + $0x2e8] sm:$0xff]  ;;  %v723_v52 = vld [vmem:[%s17919_s26 + $0x310] sm:$0xff]  ;;  %v10005_v56 = vpack.c.bf16 %v731_v50, %v726_v49  ;;  %v725_v57 = vld [vmem:[%s17919_s26 + $0x320] sm:$0xff] }
  0x9a   :  { %10282 = vmatprep.subr.bf16.mxu0 %v10281_v62  ;;  %v730_v58 = vld [vmem:[%s17919_s26 + $0x348] sm:$0xff]  ;;  %v10301_v59 = vpack.c.bf16 %v723_v52, %v718_v51  ;;  %v736_v61 = vld [vmem:[%s17919_s26 + $0x378] sm:$0xff]  ;;  %v741_v62 = vld [vmem:[%s17919_s26 + $0x3a0] sm:$0xff] }
  0x9b   :  { %v722_v60 = vld [vmem:[%s17919_s26 + $0x308] sm:$0xff]  ;;  %v728_v63 = vld [vmem:[%s17919_s26 + $0x338] sm:$0xff]  ;;  %v733_v1 = vld [vmem:[%s17919_s26 + $0x360] sm:$0xff]  ;;  %v10007_v2 = vpack.c.bf16 %v730_v58, %v725_v57 }
  0x9c   :  { %9988 = vmatpush1.bf16.msra.mxu1 %v9987_v5  ;;  %v10303_v3 = vpack.c.bf16 %v722_v60, %v717_v55  ;;  %v727_v4 = vld [vmem:[%s17919_s26 + $0x330] sm:$0xff]  ;;  %v10009_v5 = vpack.c.bf16 %v741_v62, %v736_v61  ;;  %v740_v7 = vld [vmem:[%s17919_s26 + $0x398] sm:$0xff]  ;;  %v746_v11 = vld [vmem:[%s17919_s26 + $0x3c8] sm:$0xff] }
  0x9d   :  { %10284 = vmatpush1.bf16.msra.mxu0 %v10283_v6  ;;  %9990 = vmatprep.subr.bf16.mxu1 %v9989_v8  ;;  %v735_v6 = vld [vmem:[%s17919_s26 + $0x370] sm:$0xff]  ;;  %v10305_v8 = vpack.c.bf16 %v733_v1, %v728_v63  ;;  %v732_v9 = vld [vmem:[%s17919_s26 + $0x358] sm:$0xff]  ;;  %v738_v13 = vld [vmem:[%s17919_s26 + $0x388] sm:$0xff] }
  0x9e   :  { %10286 = vmatprep.subr.bf16.mxu0 %v10285_v12  ;;  %v751_v12 = vld [vmem:[%s17919_s26 + $0x3f0] sm:$0xff]  ;;  %v10011_v15 = vpack.c.bf16 %v740_v7, %v735_v6  ;;  %v10307_v16 = vpack.c.bf16 %v732_v9, %v727_v4  ;;  %v737_v17 = vld [vmem:[%s17919_s26 + $0x380] sm:$0xff]  ;;  %v750_v20 = vld [vmem:[%s17919_s26 + $0x3e8] sm:$0xff]  ;;  %v185_v9 = vlaneseq }
  0x9f   :  { %v743_v14 = vld [vmem:[%s17919_s26 + $0x3b0] sm:$0xff]  ;;  %v742_v22 = vld [vmem:[%s17919_s26 + $0x3a8] sm:$0xff]  ;;  %v756_v23 = vld [vmem:[%s17919_s26 + $0x418] sm:$0xff] }
  0xa0   :  { %9992 = vmatpush1.bf16.msra.mxu1 %v9991_v18  ;;  %v10013_v18 = vpack.c.bf16 %v751_v12, %v746_v11  ;;  %v748_v25 = vld [vmem:[%s17919_s26 + $0x3d8] sm:$0xff]  ;;  %v753_v26 = vld [vmem:[%s17919_s26 + $0x400] sm:$0xff]  ;;  %v10311_v10 = vpack.c.bf16 %v742_v22, %v737_v17  ;;  %v747_v28 = vld [vmem:[%s17919_s26 + $0x3d0] sm:$0xff]  ;;  %v14038_v11 = vshrl.u32 %v185_v9, 7 }
  0xa1   :  { %10288 = vmatpush1.bf16.msra.mxu0 %v10287_v19  ;;  %9994 = vmatprep.subr.bf16.mxu1 %v9993_v21  ;;  %v745_v19 = vld [vmem:[%s17919_s26 + $0x3c0] sm:$0xff]  ;;  %v10309_v21 = vpack.c.bf16 %v743_v14, %v738_v13  ;;  %v760_v31 = vld [vmem:[%s17919_s26 + $0x438] sm:$0xff]  ;;  %v766_v35 = vld [vmem:[%s17919_s26 + $0x468] sm:$0xff] }
  0xa2   :  { %10290 = vmatprep.subr.bf16.mxu0 %v10289_v24  ;;  %v761_v24 = vld [vmem:[%s17919_s26 + $0x440] sm:$0xff]  ;;  %v10015_v27 = vpack.c.bf16 %v750_v20, %v745_v19  ;;  %v752_v34 = vld [vmem:[%s17919_s26 + $0x3f8] sm:$0xff]  ;;  %v758_v37 = vld [vmem:[%s17919_s26 + $0x428] sm:$0xff]  ;;  %v14041_v12 = vsub.s32 1, %v14038_v11  ;;  %v14049_v14 = vsub.s32 0, %v14038_v11 }
  0xa3   :  { %v763_v38 = vld [vmem:[%s17919_s26 + $0x450] sm:$0xff]  ;;  %v10315_v39 = vpack.c.bf16 %v752_v34, %v747_v28  ;;  %v762_v45 = vld [vmem:[%s17919_s26 + $0x448] sm:$0xff]  ;;  %v768_v46 = vld [vmem:[%s17919_s26 + $0x478] sm:$0xff] }
  0xa4   :  { %9996 = vmatpush1.bf16.msra.mxu1 %v9995_v29  ;;  %v10017_v29 = vpack.c.bf16 %v761_v24, %v756_v23  ;;  %v10317_v43 = vpack.c.bf16 %v763_v38, %v758_v37  ;;  %v767_v51 = vld [vmem:[%s17919_s26 + $0x470] sm:$0xff]  ;;  %v772_v52 = vld [vmem:[%s17919_s26 + $0x498] sm:$0xff]  ;;  %v781_v55 = vld [vmem:[%s17919_s26 + $0x4e0] sm:$0xff] }
  0xa5   :  { %10292 = vmatpush1.bf16.msra.mxu0 %v10291_v30  ;;  %9998 = vmatprep.subr.bf16.mxu1 %v9997_v32  ;;  %v755_v30 = vld [vmem:[%s17919_s26 + $0x410] sm:$0xff]  ;;  %v10313_v32 = vpack.c.bf16 %v753_v26, %v748_v25  ;;  %v780_v60 = vld [vmem:[%s17919_s26 + $0x4d8] sm:$0xff]  ;;  %v777_v63 = vld [vmem:[%s17919_s26 + $0x4c0] sm:$0xff] }
  0xa6   :  { %10294 = vmatprep.subr.bf16.mxu0 %v10293_v36  ;;  %v771_v36 = vld [vmem:[%s17919_s26 + $0x490] sm:$0xff]  ;;  %v10019_v33 = vpack.c.bf16 %v760_v31, %v755_v30  ;;  %v782_v1 = vld [vmem:[%s17919_s26 + $0x4e8] sm:$0xff]  ;;  %v793_v7 = vld [vmem:[%s17919_s26 + $0x540] sm:$0xff] }
  0xa7   :  { %v10021_v40 = vpack.c.bf16 %v771_v36, %v766_v35  ;;  %v783_v58 = vld [vmem:[%s17919_s26 + $0x4f0] sm:$0xff]  ;;  %v14046_v13 = vld [vmem:[%s17920_s3] sm:$0xff]  ;;  %v796_v22 = vld [vmem:[%s17919_s26 + $0x558] sm:$0xff] }
  0xa8   :  { %10000 = vmatpush1.bf16.msra.mxu1 %v9999_v41  ;;  %v765_v41 = vld [vmem:[%s17919_s26 + $0x460] sm:$0xff]  ;;  %v791_v4 = vld [vmem:[%s17919_s26 + $0x530] sm:$0xff]  ;;  %v188_v19 = vrot.slane %v14046_v13, %v14049_v14  ;;  %v798_v25 = vld [vmem:[%s17919_s26 + $0x568] sm:$0xff] }
  0xa9   :  { %10296 = vmatpush1.bf16.msra.mxu0 %v10295_v42  ;;  %10002 = vmatprep.subr.bf16.mxu1 %v10001_v44  ;;  %v770_v42 = vld [vmem:[%s17919_s26 + $0x488] sm:$0xff]  ;;  %v757_v44 = vld [vmem:[%s17919_s26 + $0x420] sm:$0xff]  ;;  %v787_v20 = vld [vmem:[%s17919_s26 + $0x510] sm:$0xff] }
  0xaa   :  { %10298 = vmatprep.subr.bf16.mxu0 %v10297_v47  ;;  %v773_v47 = vld [vmem:[%s17919_s26 + $0x4a0] sm:$0xff]  ;;  %v10023_v48 = vpack.c.bf16 %v770_v42, %v765_v41  ;;  %v10319_v49 = vpack.c.bf16 %v762_v45, %v757_v44  ;;  %v803_v26 = vld [vmem:[%s17919_s26 + $0x590] sm:$0xff]  ;;  %v802_v38 = vld [vmem:[%s17919_s26 + $0x588] sm:$0xff] }
  0xab   :  { %v10321_v50 = vpack.c.bf16 %v773_v47, %v768_v46  ;;  %v785_v17 = vld [vmem:[%s17919_s26 + $0x500] sm:$0xff]  ;;  %v795_v31 = vld [vmem:[%s17919_s26 + $0x550] sm:$0xff]  ;;  %v10333_v36 = vpack.c.bf16 %v803_v26, %v798_v25  ;;  %v808_v41 = vld [vmem:[%s17919_s26 + $0x5b8] sm:$0xff] }
  0xac   :  { %10004 = vmatpush1.bf16.msra.mxu1 %v10003_v53  ;;  %v10323_v53 = vpack.c.bf16 %v772_v52, %v767_v51  ;;  %v801_v24 = vld [vmem:[%s17919_s26 + $0x580] sm:$0xff]  ;;  %v807_v51 = vld [vmem:[%s17919_s26 + $0x5b0] sm:$0xff]  ;;  %v812_v52 = vld [vmem:[%s17919_s26 + $0x5d8] sm:$0xff] }
  0xad   :  { %10300 = vmatpush1.bf16.msra.mxu0 %v10299_v54  ;;  %10006 = vmatprep.subr.bf16.mxu1 %v10005_v56  ;;  %v776_v54 = vld [vmem:[%s17919_s26 + $0x4b8] sm:$0xff]  ;;  %v778_v56 = vld [vmem:[%s17919_s26 + $0x4c8] sm:$0xff]  ;;  %v10033_v35 = vpack.c.bf16 %v801_v24, %v796_v22  ;;  %v797_v37 = vld [vmem:[%s17919_s26 + $0x560] sm:$0xff] }
  0xae   :  { %10302 = vmatprep.subr.bf16.mxu0 %v10301_v59  ;;  %v10025_v57 = vpack.c.bf16 %v781_v55, %v776_v54  ;;  %v775_v59 = vld [vmem:[%s17919_s26 + $0x4b0] sm:$0xff]  ;;  %v10325_v61 = vpack.c.bf16 %v783_v58, %v778_v56  ;;  %v813_v42 = vld [vmem:[%s17919_s26 + $0x5e0] sm:$0xff]  ;;  %v10335_v46 = vpack.c.bf16 %v802_v38, %v797_v37  ;;  %v818_v55 = vld [vmem:[%s17919_s26 + $0x608] sm:$0xff] }
  0xaf   :  { %v10027_v62 = vpack.c.bf16 %v780_v60, %v775_v59  ;;  %v805_v47 = vld [vmem:[%s17919_s26 + $0x5a0] sm:$0xff]  ;;  %v823_v56 = vld [vmem:[%s17919_s26 + $0x630] sm:$0xff]  ;;  %v10339_v60 = vpack.c.bf16 %v812_v52, %v807_v51  ;;  %v836_v22 = vld [vmem:[%s17919_s26 + $0x698] sm:$0xff] }
  0xb0   :  { %10008 = vmatpush1.bf16.msra.mxu1 %v10007_v2  ;;  %v10327_v2 = vpack.c.bf16 %v782_v1, %v777_v63  ;;  %v821_v54 = vld [vmem:[%s17919_s26 + $0x620] sm:$0xff]  ;;  %v10341_v1 = vpack.c.bf16 %v823_v56, %v818_v55  ;;  %v838_v24 = vld [vmem:[%s17919_s26 + $0x6a8] sm:$0xff]  ;;  %v843_v25 = vld [vmem:[%s17919_s26 + $0x6d0] sm:$0xff] }
  0xb1   :  { %10304 = vmatpush1.bf16.msra.mxu0 %v10303_v3  ;;  %10010 = vmatprep.subr.bf16.mxu1 %v10009_v5  ;;  %v786_v3 = vld [vmem:[%s17919_s26 + $0x508] sm:$0xff]  ;;  %v788_v5 = vld [vmem:[%s17919_s26 + $0x518] sm:$0xff]  ;;  %v851_v37 = vld [vmem:[%s17919_s26 + $0x710] sm:$0xff] }
  0xb2   :  { %10306 = vmatprep.subr.bf16.mxu0 %v10305_v8  ;;  %v10029_v6 = vpack.c.bf16 %v791_v4, %v786_v3  ;;  %v10329_v8 = vpack.c.bf16 %v793_v7, %v788_v5  ;;  %v822_v3 = vld [vmem:[%s17919_s26 + $0x628] sm:$0xff]  ;;  %v831_v5 = vld [vmem:[%s17919_s26 + $0x670] sm:$0xff]  ;;  %v833_v7 = vld [vmem:[%s17919_s26 + $0x680] sm:$0xff] }
  0xb3   :  { %v826_v4 = vld [vmem:[%s17919_s26 + $0x648] sm:$0xff]  ;;  %v848_v38 = vld [vmem:[%s17919_s26 + $0x6f8] sm:$0xff]  ;;  %v861_v52 = vld [vmem:[%s17919_s26 + $0x760] sm:$0xff] }
  0xb4   :  { %10012 = vmatpush1.bf16.msra.mxu1 %v10011_v15  ;;  %v14052_v15 = vsub.s32 3, %v14038_v11 }
  0xb5   :  { %10308 = vmatpush1.bf16.msra.mxu0 %v10307_v16  ;;  %10014 = vmatprep.subr.bf16.mxu1 %v10013_v18  ;;  %v192_v16 = vrot.slane %v14046_v13, %v14041_v12  ;;  %v790_v18 = vld [vmem:[%s17919_s26 + $0x528] sm:$0xff] }
  0xb6   :  { %10310 = vmatprep.subr.bf16.mxu0 %v10309_v21  ;;  %v792_v21 = vld [vmem:[%s17919_s26 + $0x538] sm:$0xff] }
  0xb7   :  { %v10331_v30 = vpack.c.bf16 %v792_v21, %v787_v20  ;;  %v827_v20 = vld [vmem:[%s17919_s26 + $0x650] sm:$0xff]  ;;  %v832_v21 = vld [vmem:[%s17919_s26 + $0x678] sm:$0xff] }
  0xb8   :  { %10016 = vmatpush1.bf16.msra.mxu1 %v10015_v27 }
  0xb9   :  { %10312 = vmatpush1.bf16.msra.mxu0 %v10311_v10  ;;  %10018 = vmatprep.subr.bf16.mxu1 %v10017_v29  ;;  %v200_v10 = vrot.slane %v14046_v13, %v14052_v15  ;;  %v10031_v29 = vpack.c.bf16 %v790_v18, %v785_v17  ;;  %v830_v17 = vld [vmem:[%s17919_s26 + $0x668] sm:$0xff]  ;;  %v10045_v18 = vpack.c.bf16 %v831_v5, %v826_v4  ;;  %v868_v4 = vld [vmem:[%s17919_s26 + $0x798] sm:$0xff]  ;;  %v873_v5 = vld [vmem:[%s17919_s26 + $0x7c0] sm:$0xff] }
  0xba   :  { %10314 = vmatprep.subr.bf16.mxu0 %v10313_v32  ;;  %v800_v32 = vld [vmem:[%s17919_s26 + $0x578] sm:$0xff] }
  0xbb   :  { %v10035_v45 = vpack.c.bf16 %v800_v32, %v795_v31  ;;  %v10349_v31 = vpack.c.bf16 %v843_v25, %v838_v24  ;;  %v837_v32 = vld [vmem:[%s17919_s26 + $0x6a0] sm:$0xff] }
  0xbc   :  { %10020 = vmatpush1.bf16.msra.mxu1 %v10019_v33  ;;  %v806_v33 = vld [vmem:[%s17919_s26 + $0x5a8] sm:$0xff] }
  0xbd   :  { %10316 = vmatpush1.bf16.msra.mxu0 %v10315_v39  ;;  %10022 = vmatprep.subr.bf16.mxu1 %v10021_v40  ;;  %v811_v40 = vld [vmem:[%s17919_s26 + $0x5d0] sm:$0xff] }
  0xbe   :  { %10318 = vmatprep.subr.bf16.mxu0 %v10317_v43 }
  0xc0   :  { %10024 = vmatpush1.bf16.msra.mxu1 %v10023_v48  ;;  %v810_v48 = vld [vmem:[%s17919_s26 + $0x5c8] sm:$0xff] }
  0xc1   :  { %10320 = vmatpush1.bf16.msra.mxu0 %v10319_v49  ;;  %10026 = vmatprep.subr.bf16.mxu1 %v10025_v57  ;;  %v10037_v49 = vpack.c.bf16 %v811_v40, %v806_v33  ;;  %v10039_v59 = vpack.c.bf16 %v810_v48, %v805_v47  ;;  %v853_v33 = vld [vmem:[%s17919_s26 + $0x720] sm:$0xff]  ;;  %v847_v48 = vld [vmem:[%s17919_s26 + $0x6f0] sm:$0xff] }
  0xc2   :  { %10322 = vmatprep.subr.bf16.mxu0 %v10321_v50  ;;  %v10337_v50 = vpack.c.bf16 %v813_v42, %v808_v41  ;;  %v845_v42 = vld [vmem:[%s17919_s26 + $0x6e0] sm:$0xff]  ;;  %v10353_v47 = vpack.c.bf16 %v853_v33, %v848_v38 }
  0xc4   :  { %10028 = vmatpush1.bf16.msra.mxu1 %v10027_v62  ;;  %v820_v62 = vld [vmem:[%s17919_s26 + $0x618] sm:$0xff] }
  0xc5   :  { %10324 = vmatpush1.bf16.msra.mxu0 %v10323_v53  ;;  %10030 = vmatprep.subr.bf16.mxu1 %v10029_v6  ;;  %v816_v53 = vld [vmem:[%s17919_s26 + $0x5f8] sm:$0xff] }
  0xc6   :  { %10326 = vmatprep.subr.bf16.mxu0 %v10325_v61  ;;  %v815_v61 = vld [vmem:[%s17919_s26 + $0x5f0] sm:$0xff]  ;;  %v10041_v63 = vpack.c.bf16 %v821_v54, %v816_v53  ;;  %v828_v6 = vld [vmem:[%s17919_s26 + $0x658] sm:$0xff]  ;;  %v858_v53 = vld [vmem:[%s17919_s26 + $0x748] sm:$0xff] }
  0xc7   :  { %v863_v54 = vld [vmem:[%s17919_s26 + $0x770] sm:$0xff] }
  0xc9   :  { %10328 = vmatpush1.bf16.msra.mxu0 %v10327_v2  ;;  %v817_v2 = vld [vmem:[%s17919_s26 + $0x600] sm:$0xff] }
  0xca   :  { %10330 = vmatprep.subr.bf16.mxu0 %v10329_v8  ;;  %v10043_v8 = vpack.c.bf16 %v820_v62, %v815_v61  ;;  %v10343_v9 = vpack.c.bf16 %v822_v3, %v817_v2  ;;  %v10357_v62 = vpack.c.bf16 %v863_v54, %v858_v53  ;;  %v866_v2 = vld [vmem:[%s17919_s26 + $0x788] sm:$0xff]  ;;  %v871_v3 = vld [vmem:[%s17919_s26 + $0x7b0] sm:$0xff] }
 0x14f   :  { %v336_v23 = vpop.f32.mrb[0].mxu0 }
 0x150   :  { %v338_v27 = vpop.f32.mrb[1].mxu0  ;;  %v14092_v34 = vadd.f32 %v336_v23, %v188_v19  ;;  %v10345_v19 = vpack.c.bf16 %v833_v7, %v828_v6  ;;  %v841_v23 = vld [vmem:[%s17919_s26 + $0x6c0] sm:$0xff] }
 0x151   :  { %v14084_v28 = vadd.f32 %v338_v27, %v192_v16  ;;  %v825_v16 = vld [vmem:[%s17919_s26 + $0x640] sm:$0xff]  ;;  %v10347_v27 = vpack.c.bf16 %v832_v21, %v827_v20  ;;  %v876_v20 = vld [vmem:[%s17919_s26 + $0x7d8] sm:$0xff] }
 0x152   :  { %v14103_v39 = vpop.f32.mrb[0].mxu1  ;;  %v10047_v26 = vpack.c.bf16 %v830_v17, %v825_v16  ;;  %v10061_v16 = vpack.c.bf16 %v871_v3, %v866_v2  ;;  %v10361_v17 = vpack.c.bf16 %v873_v5, %v868_v4  ;;  %v881_v21 = vld [vmem:[%s17919_s26 + $0x800] sm:$0xff]  ;;  %v908_v2 = vld [vmem:[%s17919_s26 + $0x8d8] sm:$0xff] }
 0x153   :  { %1470 = vmatprep.mubr.f32.mxu1 %v14084_v28  ;;  %1825 = vmatprep.mubr.f32.mxu0 %v14084_v28  ;;  %v409_v43 = vpop.f32.mrb[1].mxu1  ;;  %v913_v3 = vld [vmem:[%s17919_s26 + $0x900] sm:$0xff] }
 0x154   :  { %1471 = vmatmul.mubr.f32.vlgmr.msra.gmra.mrb[4].mxu1 %v14092_v34  ;;  %1826 = vmatmul.mubr.f32.vlgmr.msra.gmra.mrb[6].mxu0 %v14092_v34  ;;  %v14118_v44 = vadd.f32 %v409_v43, %v200_v10  ;;  %v835_v10 = vld [vmem:[%s17919_s26 + $0x690] sm:$0xff]  ;;  %v850_v43 = vld [vmem:[%s17919_s26 + $0x708] sm:$0xff] }
 0x155   :  { %10032 = vmatpush1.bf16.msra.mxu1 %v10031_v29  ;;  %10332 = vmatpush1.bf16.msra.mxu0 %v10331_v30  ;;  %v840_v29 = vld [vmem:[%s17919_s26 + $0x6b8] sm:$0xff]  ;;  %v10049_v30 = vpack.c.bf16 %v841_v23, %v836_v22  ;;  %v10055_v55 = vpack.c.bf16 %v850_v43, %v845_v42  ;;  %v878_v22 = vld [vmem:[%s17919_s26 + $0x7e8] sm:$0xff]  ;;  %v883_v23 = vld [vmem:[%s17919_s26 + $0x810] sm:$0xff] }
 0x156   :  { %10034 = vmatprep.subr.bf16.mxu1 %v10033_v35  ;;  %10334 = vmatprep.subr.bf16.mxu0 %v10333_v36  ;;  %v842_v35 = vld [vmem:[%s17919_s26 + $0x6c8] sm:$0xff]  ;;  %v10051_v40 = vpack.c.bf16 %v840_v29, %v835_v10  ;;  %v10065_v10 = vpack.c.bf16 %v881_v21, %v876_v20  ;;  %v10365_v29 = vpack.c.bf16 %v883_v23, %v878_v22  ;;  %v923_v21 = vld [vmem:[%s17919_s26 + $0x950] sm:$0xff] }
 0x157   :  { %1541 = vmatprep.mubr.f32.mxu1 %v14118_v44  ;;  %1896 = vmatprep.mubr.f32.mxu0 %v14118_v44  ;;  %v14146_v57 = vpop.f32.mrb[2].mxu0  ;;  %v846_v36 = vld [vmem:[%s17919_s26 + $0x6e8] sm:$0xff]  ;;  %v10351_v41 = vpack.c.bf16 %v842_v35, %v837_v32  ;;  %v891_v35 = vld [vmem:[%s17919_s26 + $0x850] sm:$0xff] }
 0x158   :  { %v14148_v58 = vpop.f32.mrb[3].mxu0  ;;  %v886_v32 = vld [vmem:[%s17919_s26 + $0x828] sm:$0xff] }
 0x159   :  { %10036 = vmatpush1.bf16.msra.mxu1 %v10035_v45  ;;  %10336 = vmatpush1.bf16.msra.mxu0 %v10335_v46  ;;  %v10053_v46 = vpack.c.bf16 %v851_v37, %v846_v36  ;;  %v888_v36 = vld [vmem:[%s17919_s26 + $0x838] sm:$0xff]  ;;  %v893_v37 = vld [vmem:[%s17919_s26 + $0x860] sm:$0xff]  ;;  %v10069_v42 = vpack.c.bf16 %v891_v35, %v886_v32  ;;  %v918_v20 = vld [vmem:[%s17919_s26 + $0x928] sm:$0xff] }
 0x15a   :  { %10038 = vmatprep.subr.bf16.mxu1 %v10037_v49  ;;  %10338 = vmatprep.subr.bf16.mxu0 %v10337_v50  ;;  %v14228_v45 = vpop.f32.mrb[2].mxu1  ;;  %v852_v49 = vld [vmem:[%s17919_s26 + $0x718] sm:$0xff]  ;;  %v10369_v43 = vpack.c.bf16 %v893_v37, %v888_v36  ;;  %v933_v35 = vld [vmem:[%s17919_s26 + $0x9a0] sm:$0xff] }
 0x15b   :  { %v856_v50 = vld [vmem:[%s17919_s26 + $0x738] sm:$0xff]  ;;  %v14239_v51 = vpop.f32.mrb[3].mxu1  ;;  %v10355_v56 = vpack.c.bf16 %v852_v49, %v847_v48  ;;  %v901_v49 = vld [vmem:[%s17919_s26 + $0x8a0] sm:$0xff] }
 0x15c   :  { %v10057_v61 = vpack.c.bf16 %v861_v52, %v856_v50  ;;  %v896_v48 = vld [vmem:[%s17919_s26 + $0x878] sm:$0xff]  ;;  %v898_v50 = vld [vmem:[%s17919_s26 + $0x888] sm:$0xff]  ;;  %v903_v52 = vld [vmem:[%s17919_s26 + $0x8b0] sm:$0xff] }
 0x15d   :  { %10040 = vmatpush1.bf16.msra.mxu1 %v10039_v59  ;;  %10340 = vmatpush1.bf16.msra.mxu0 %v10339_v60  ;;  %v855_v59 = vld [vmem:[%s17919_s26 + $0x730] sm:$0xff]  ;;  %v860_v60 = vld [vmem:[%s17919_s26 + $0x758] sm:$0xff] }
 0x15e   :  { %10042 = vmatprep.subr.bf16.mxu1 %v10041_v63  ;;  %10342 = vmatprep.subr.bf16.mxu0 %v10341_v1  ;;  %v857_v63 = vld [vmem:[%s17919_s26 + $0x740] sm:$0xff]  ;;  %v862_v1 = vld [vmem:[%s17919_s26 + $0x768] sm:$0xff]  ;;  %v10059_v6 = vpack.c.bf16 %v860_v60, %v855_v59  ;;  %v10073_v59 = vpack.c.bf16 %v901_v49, %v896_v48  ;;  %v10373_v60 = vpack.c.bf16 %v903_v52, %v898_v50  ;;  %v928_v32 = vld [vmem:[%s17919_s26 + $0x978] sm:$0xff]  ;;  %v14443_v50 = vsub.s32 2, %v14038_v11 }
 0x15f   :  { %v10359_v7 = vpack.c.bf16 %v862_v1, %v857_v63  ;;  %v906_v63 = vld [vmem:[%s17919_s26 + $0x8c8] sm:$0xff]  ;;  %v911_v1 = vld [vmem:[%s17919_s26 + $0x8f0] sm:$0xff] }
 0x160   :  { %v938_v48 = vld [vmem:[%s17919_s26 + $0x9c8] sm:$0xff]  ;;  %v943_v49 = vld [vmem:[%s17919_s26 + $0x9f0] sm:$0xff] }
 0x161   :  { %10044 = vmatpush1.bf16.msra.mxu1 %v10043_v8  ;;  %10344 = vmatpush1.bf16.msra.mxu0 %v10343_v9  ;;  %v865_v8 = vld [vmem:[%s17919_s26 + $0x780] sm:$0xff]  ;;  %v870_v9 = vld [vmem:[%s17919_s26 + $0x7a8] sm:$0xff] }
 0x162   :  { %10046 = vmatprep.subr.bf16.mxu1 %v10045_v18  ;;  %10346 = vmatprep.subr.bf16.mxu0 %v10345_v19  ;;  %v867_v18 = vld [vmem:[%s17919_s26 + $0x790] sm:$0xff]  ;;  %v872_v19 = vld [vmem:[%s17919_s26 + $0x7b8] sm:$0xff]  ;;  %v10063_v24 = vpack.c.bf16 %v870_v9, %v865_v8  ;;  %v10077_v8 = vpack.c.bf16 %v911_v1, %v906_v63  ;;  %v10377_v9 = vpack.c.bf16 %v913_v3, %v908_v2  ;;  %v953_v2 = vld [vmem:[%s17919_s26 + $0xa40] sm:$0xff]  ;;  %v207_v3 = vsub.s32 5, %v14038_v11 }
 0x163   :  { %v10363_v25 = vpack.c.bf16 %v872_v19, %v867_v18  ;;  %v916_v18 = vld [vmem:[%s17919_s26 + $0x918] sm:$0xff]  ;;  %v921_v19 = vld [vmem:[%s17919_s26 + $0x940] sm:$0xff]  ;;  %v951_v63 = vld [vmem:[%s17919_s26 + $0xa30] sm:$0xff] }
 0x164   :  { %v948_v1 = vld [vmem:[%s17919_s26 + $0xa18] sm:$0xff] }
 0x165   :  { %10048 = vmatpush1.bf16.msra.mxu1 %v10047_v26  ;;  %10348 = vmatpush1.bf16.msra.mxu0 %v10347_v27  ;;  %v875_v26 = vld [vmem:[%s17919_s26 + $0x7d0] sm:$0xff]  ;;  %v880_v27 = vld [vmem:[%s17919_s26 + $0x7f8] sm:$0xff] }
 0x166   :  { %10050 = vmatprep.subr.bf16.mxu1 %v10049_v30  ;;  %10350 = vmatprep.subr.bf16.mxu0 %v10349_v31  ;;  %v877_v30 = vld [vmem:[%s17919_s26 + $0x7e0] sm:$0xff]  ;;  %v882_v31 = vld [vmem:[%s17919_s26 + $0x808] sm:$0xff]  ;;  %v10067_v38 = vpack.c.bf16 %v880_v27, %v875_v26  ;;  %v10081_v26 = vpack.c.bf16 %v921_v19, %v916_v18  ;;  %v10381_v27 = vpack.c.bf16 %v923_v21, %v918_v20  ;;  %v947_v18 = vld [vmem:[%s17919_s26 + $0xa10] sm:$0xff] }
 0x167   :  { %v10367_v33 = vpack.c.bf16 %v882_v31, %v877_v30  ;;  %v926_v30 = vld [vmem:[%s17919_s26 + $0x968] sm:$0xff]  ;;  %v931_v31 = vld [vmem:[%s17919_s26 + $0x990] sm:$0xff]  ;;  %v952_v19 = vld [vmem:[%s17919_s26 + $0xa38] sm:$0xff] }
 0x168   :  { %v956_v20 = vld [vmem:[%s17919_s26 + $0xa58] sm:$0xff] }
 0x169   :  { %10052 = vmatpush1.bf16.msra.mxu1 %v10051_v40  ;;  %10352 = vmatpush1.bf16.msra.mxu0 %v10351_v41  ;;  %v885_v40 = vld [vmem:[%s17919_s26 + $0x820] sm:$0xff]  ;;  %v890_v41 = vld [vmem:[%s17919_s26 + $0x848] sm:$0xff] }
 0x16a   :  { %10054 = vmatprep.subr.bf16.mxu1 %v10053_v46  ;;  %10354 = vmatprep.subr.bf16.mxu0 %v10353_v47  ;;  %v887_v46 = vld [vmem:[%s17919_s26 + $0x830] sm:$0xff]  ;;  %v892_v47 = vld [vmem:[%s17919_s26 + $0x858] sm:$0xff]  ;;  %v10071_v53 = vpack.c.bf16 %v890_v41, %v885_v40  ;;  %v10085_v40 = vpack.c.bf16 %v931_v31, %v926_v30  ;;  %v10385_v41 = vpack.c.bf16 %v933_v35, %v928_v32  ;;  %v966_v35 = vld [vmem:[%s17919_s26 + $0xaa8] sm:$0xff] }
 0x16b   :  { %v10371_v54 = vpack.c.bf16 %v892_v47, %v887_v46  ;;  %v936_v46 = vld [vmem:[%s17919_s26 + $0x9b8] sm:$0xff]  ;;  %v941_v47 = vld [vmem:[%s17919_s26 + $0x9e0] sm:$0xff] }
 0x16c   :  { %v960_v30 = vld [vmem:[%s17919_s26 + $0xa78] sm:$0xff] }
 0x16d   :  { %10056 = vmatpush1.bf16.msra.mxu1 %v10055_v55  ;;  %10356 = vmatpush1.bf16.msra.mxu0 %v10355_v56  ;;  %v895_v55 = vld [vmem:[%s17919_s26 + $0x870] sm:$0xff]  ;;  %v900_v56 = vld [vmem:[%s17919_s26 + $0x898] sm:$0xff] }
 0x16e   :  { %10058 = vmatprep.subr.bf16.mxu1 %v10057_v61  ;;  %10358 = vmatprep.subr.bf16.mxu0 %v10357_v62  ;;  %v897_v61 = vld [vmem:[%s17919_s26 + $0x880] sm:$0xff]  ;;  %v902_v62 = vld [vmem:[%s17919_s26 + $0x8a8] sm:$0xff]  ;;  %v10075_v4 = vpack.c.bf16 %v900_v56, %v895_v55  ;;  %v940_v55 = vld [vmem:[%s17919_s26 + $0x9d8] sm:$0xff]  ;;  %v10089_v56 = vpack.c.bf16 %v941_v47, %v936_v46 }
 0x16f   :  { %v10375_v5 = vpack.c.bf16 %v902_v62, %v897_v61  ;;  %v942_v61 = vld [vmem:[%s17919_s26 + $0x9e8] sm:$0xff]  ;;  %v967_v47 = vld [vmem:[%s17919_s26 + $0xab0] sm:$0xff] }
 0x170   :  { %v946_v62 = vld [vmem:[%s17919_s26 + $0xa08] sm:$0xff] }
 0x171   :  { %10060 = vmatpush1.bf16.msra.mxu1 %v10059_v6  ;;  %10360 = vmatpush1.bf16.msra.mxu0 %v10359_v7  ;;  %v905_v6 = vld [vmem:[%s17919_s26 + $0x8c0] sm:$0xff]  ;;  %v910_v7 = vld [vmem:[%s17919_s26 + $0x8e8] sm:$0xff] }
 0x172   :  { %10062 = vmatprep.subr.bf16.mxu1 %v10061_v16  ;;  %10362 = vmatprep.subr.bf16.mxu0 %v10361_v17  ;;  %v907_v16 = vld [vmem:[%s17919_s26 + $0x8d0] sm:$0xff]  ;;  %v912_v17 = vld [vmem:[%s17919_s26 + $0x8f8] sm:$0xff]  ;;  %v10079_v22 = vpack.c.bf16 %v910_v7, %v905_v6  ;;  %v945_v7 = vld [vmem:[%s17919_s26 + $0xa00] sm:$0xff] }
 0x173   :  { %v10379_v23 = vpack.c.bf16 %v912_v17, %v907_v16  ;;  %v10093_v16 = vpack.c.bf16 %v951_v63, %v946_v62  ;;  %v10393_v17 = vpack.c.bf16 %v953_v2, %v948_v1  ;;  %v977_v63 = vld [vmem:[%s17919_s26 + $0xb00] sm:$0xff]  ;;  %v982_v1 = vld [vmem:[%s17919_s26 + $0xb28] sm:$0xff] }
 0x174   :  { %v986_v2 = vld [vmem:[%s17919_s26 + $0xb48] sm:$0xff] }
 0x175   :  { %10064 = vmatpush1.bf16.msra.mxu1 %v10063_v24  ;;  %10364 = vmatpush1.bf16.msra.mxu0 %v10363_v25  ;;  %v915_v24 = vld [vmem:[%s17919_s26 + $0x910] sm:$0xff]  ;;  %v920_v25 = vld [vmem:[%s17919_s26 + $0x938] sm:$0xff] }
 0x176   :  { %10066 = vmatprep.subr.bf16.mxu1 %v10065_v10  ;;  %10366 = vmatprep.subr.bf16.mxu0 %v10365_v29  ;;  %v917_v10 = vld [vmem:[%s17919_s26 + $0x920] sm:$0xff]  ;;  %v922_v29 = vld [vmem:[%s17919_s26 + $0x948] sm:$0xff]  ;;  %v10083_v36 = vpack.c.bf16 %v920_v25, %v915_v24  ;;  %v963_v24 = vld [vmem:[%s17919_s26 + $0xa90] sm:$0xff]  ;;  %v208_v25 = vrot.slane %v14046_v13, %v207_v3 }
 0x177   :  { %v10383_v37 = vpack.c.bf16 %v922_v29, %v917_v10  ;;  %v10395_v10 = vpack.c.bf16 %v952_v19, %v947_v18  ;;  %v955_v29 = vld [vmem:[%s17919_s26 + $0xa50] sm:$0xff] }
 0x179   :  { %10068 = vmatpush1.bf16.msra.mxu1 %v10067_v38  ;;  %10368 = vmatpush1.bf16.msra.mxu0 %v10367_v33  ;;  %v925_v38 = vld [vmem:[%s17919_s26 + $0x960] sm:$0xff]  ;;  %v930_v33 = vld [vmem:[%s17919_s26 + $0x988] sm:$0xff] }
 0x17a   :  { %10070 = vmatprep.subr.bf16.mxu1 %v10069_v42  ;;  %10370 = vmatprep.subr.bf16.mxu0 %v10369_v43  ;;  %v927_v42 = vld [vmem:[%s17919_s26 + $0x970] sm:$0xff]  ;;  %v932_v43 = vld [vmem:[%s17919_s26 + $0x998] sm:$0xff]  ;;  %v10087_v52 = vpack.c.bf16 %v930_v33, %v925_v38  ;;  %v973_v38 = vld [vmem:[%s17919_s26 + $0xae0] sm:$0xff]  ;;  %v14531_v33 = vadd.f32 %v14148_v58, %v208_v25 }
 0x17b   :  { %v998_v25 = vld [vmem:[%s17919_s26 + $0xba8] sm:$0xff] }
 0x17d   :  { %10072 = vmatpush1.bf16.msra.mxu1 %v10071_v53  ;;  %10372 = vmatpush1.bf16.msra.mxu0 %v10371_v54  ;;  %v10387_v53 = vpack.c.bf16 %v932_v43, %v927_v42  ;;  %v935_v54 = vld [vmem:[%s17919_s26 + $0x9b0] sm:$0xff]  ;;  %v965_v42 = vld [vmem:[%s17919_s26 + $0xaa0] sm:$0xff]  ;;  %v970_v43 = vld [vmem:[%s17919_s26 + $0xac8] sm:$0xff] }
 0x17e   :  { %10074 = vmatprep.subr.bf16.mxu1 %v10073_v59  ;;  %10374 = vmatprep.subr.bf16.mxu0 %v10373_v60  ;;  %v10389_v59 = vpack.c.bf16 %v943_v49, %v938_v48  ;;  %v937_v60 = vld [vmem:[%s17919_s26 + $0x9c0] sm:$0xff]  ;;  %v972_v48 = vld [vmem:[%s17919_s26 + $0xad8] sm:$0xff] }
 0x17f   :  { %v10391_v6 = vpack.c.bf16 %v942_v61, %v937_v60  ;;  %v976_v49 = vld [vmem:[%s17919_s26 + $0xaf8] sm:$0xff] }
 0x180   :  { %v980_v60 = vld [vmem:[%s17919_s26 + $0xb18] sm:$0xff] }
 0x181   :  { %10076 = vmatpush1.bf16.msra.mxu1 %v10075_v4  ;;  %10376 = vmatpush1.bf16.msra.mxu0 %v10375_v5  ;;  %v196_v4 = vrot.slane %v14046_v13, %v14443_v50  ;;  %v10091_v5 = vpack.c.bf16 %v940_v55, %v935_v54  ;;  %v957_v13 = vld [vmem:[%s17919_s26 + $0xa60] sm:$0xff]  ;;  %v983_v54 = vld [vmem:[%s17919_s26 + $0xb30] sm:$0xff]  ;;  %v10103_v55 = vpack.c.bf16 %v970_v43, %v965_v42 }
 0x182   :  { %10078 = vmatprep.subr.bf16.mxu1 %v10077_v8  ;;  %10378 = vmatprep.subr.bf16.mxu0 %v10377_v9  ;;  %v950_v8 = vld [vmem:[%s17919_s26 + $0xa28] sm:$0xff]  ;;  %v14478_v9 = vpop.f32.mrb[4].mxu0  ;;  %v1005_v43 = vld [vmem:[%s17919_s26 + $0xbe0] sm:$0xff] }
 0x183   :  { %v14489_v21 = vpop.f32.mrb[5].mxu0 }
 0x185   :  { %10080 = vmatpush1.bf16.msra.mxu1 %v10079_v22  ;;  %10380 = vmatpush1.bf16.msra.mxu0 %v10379_v23  ;;  %v961_v22 = vld [vmem:[%s17919_s26 + $0xa80] sm:$0xff]  ;;  %v958_v23 = vld [vmem:[%s17919_s26 + $0xa68] sm:$0xff] }
 0x186   :  { %10082 = vmatprep.subr.bf16.mxu1 %v10081_v26  ;;  %10382 = vmatprep.subr.bf16.mxu0 %v10381_v27  ;;  %v14504_v26 = vadd.f32 %v14103_v39, %v196_v4  ;;  %v10095_v27 = vpack.c.bf16 %v950_v8, %v945_v7  ;;  %v10097_v31 = vpack.c.bf16 %v961_v22, %v956_v20  ;;  %v962_v39 = vld [vmem:[%s17919_s26 + $0xa88] sm:$0xff]  ;;  %v991_v4 = vld [vmem:[%s17919_s26 + $0xb70] sm:$0xff]  ;;  %v992_v22 = vld [vmem:[%s17919_s26 + $0xb78] sm:$0xff] }
 0x187   :  { %v10397_v32 = vpack.c.bf16 %v963_v24, %v958_v23  ;;  %v10407_v8 = vpack.c.bf16 %v982_v1, %v977_v63  ;;  %v10109_v18 = vpack.c.bf16 %v991_v4, %v986_v2  ;;  %v987_v20 = vld [vmem:[%s17919_s26 + $0xb50] sm:$0xff]  ;;  %v996_v23 = vld [vmem:[%s17919_s26 + $0xb98] sm:$0xff]  ;;  %v1001_v24 = vld [vmem:[%s17919_s26 + $0xbc0] sm:$0xff] }
 0x188   :  { %v1017_v1 = vld [vmem:[%s17919_s26 + $0xc40] sm:$0xff]  ;;  %v1022_v2 = vld [vmem:[%s17919_s26 + $0xc68] sm:$0xff] }
 0x189   :  { %10084 = vmatpush1.bf16.msra.mxu1 %v10083_v36  ;;  %10384 = vmatpush1.bf16.msra.mxu0 %v10383_v37  ;;  %v971_v36 = vld [vmem:[%s17919_s26 + $0xad0] sm:$0xff]  ;;  %v968_v37 = vld [vmem:[%s17919_s26 + $0xab8] sm:$0xff]  ;;  %v1026_v4 = vld [vmem:[%s17919_s26 + $0xc88] sm:$0xff] }
 0x18a   :  { %10086 = vmatprep.subr.bf16.mxu1 %v10085_v40  ;;  %10386 = vmatprep.subr.bf16.mxu0 %v10385_v41  ;;  %v10099_v40 = vpack.c.bf16 %v960_v30, %v955_v29  ;;  %v10399_v41 = vpack.c.bf16 %v962_v39, %v957_v13  ;;  %v10101_v58 = vpack.c.bf16 %v971_v36, %v966_v35  ;;  %v995_v30 = vld [vmem:[%s17919_s26 + $0xb90] sm:$0xff]  ;;  %v997_v39 = vld [vmem:[%s17919_s26 + $0xba0] sm:$0xff]  ;;  %v1002_v35 = vld [vmem:[%s17919_s26 + $0xbc8] sm:$0xff] }
 0x18b   :  { %v10401_v46 = vpack.c.bf16 %v973_v38, %v968_v37  ;;  %v10411_v29 = vpack.c.bf16 %v992_v22, %v987_v20  ;;  %v1006_v36 = vld [vmem:[%s17919_s26 + $0xbe8] sm:$0xff]  ;;  %v1011_v37 = vld [vmem:[%s17919_s26 + $0xc10] sm:$0xff]  ;;  %v1008_v38 = vld [vmem:[%s17919_s26 + $0xbf8] sm:$0xff]  ;;  %v10415_v42 = vpack.c.bf16 %v1002_v35, %v997_v39 }
 0x18c   :  { %v1027_v22 = vld [vmem:[%s17919_s26 + $0xc90] sm:$0xff]  ;;  %v1037_v35 = vld [vmem:[%s17919_s26 + $0xce0] sm:$0xff] }
 0x18d   :  { %10088 = vmatpush1.bf16.msra.mxu1 %v10087_v52  ;;  %10388 = vmatpush1.bf16.msra.mxu0 %v10387_v53  ;;  %v981_v52 = vld [vmem:[%s17919_s26 + $0xb20] sm:$0xff]  ;;  %v978_v53 = vld [vmem:[%s17919_s26 + $0xb08] sm:$0xff] }
 0x18e   :  { %10090 = vmatprep.subr.bf16.mxu1 %v10089_v56  ;;  %10390 = vmatprep.subr.bf16.mxu0 %v10389_v59  ;;  %v10403_v56 = vpack.c.bf16 %v972_v48, %v967_v47  ;;  %v975_v59 = vld [vmem:[%s17919_s26 + $0xaf0] sm:$0xff]  ;;  %v10105_v61 = vpack.c.bf16 %v981_v52, %v976_v49  ;;  %v10405_v62 = vpack.c.bf16 %v983_v54, %v978_v53  ;;  %v1012_v49 = vld [vmem:[%s17919_s26 + $0xc18] sm:$0xff]  ;;  %v1021_v53 = vld [vmem:[%s17919_s26 + $0xc60] sm:$0xff] }
 0x18f   :  { %v10107_v7 = vpack.c.bf16 %v980_v60, %v975_v59  ;;  %v1007_v48 = vld [vmem:[%s17919_s26 + $0xbf0] sm:$0xff]  ;;  %v1016_v52 = vld [vmem:[%s17919_s26 + $0xc38] sm:$0xff]  ;;  %v1018_v54 = vld [vmem:[%s17919_s26 + $0xc48] sm:$0xff] }
 0x190   :  { %v10419_v59 = vpack.c.bf16 %v1012_v49, %v1007_v48  ;;  %v1015_v60 = vld [vmem:[%s17919_s26 + $0xc30] sm:$0xff] }
 0x191   :  { %10092 = vmatpush1.bf16.msra.mxu1 %v10091_v5  ;;  %10392 = vmatpush1.bf16.msra.mxu0 %v10391_v6  ;;  %v988_v5 = vld [vmem:[%s17919_s26 + $0xb58] sm:$0xff]  ;;  %v993_v6 = vld [vmem:[%s17919_s26 + $0xb80] sm:$0xff]  ;;  %v1047_v49 = vld [vmem:[%s17919_s26 + $0xd30] sm:$0xff] }
 0x192   :  { %10094 = vmatprep.subr.bf16.mxu1 %v10093_v16  ;;  %10394 = vmatprep.subr.bf16.mxu0 %v10393_v17  ;;  %v985_v16 = vld [vmem:[%s17919_s26 + $0xb40] sm:$0xff]  ;;  %v990_v17 = vld [vmem:[%s17919_s26 + $0xb68] sm:$0xff]  ;;  %v10409_v19 = vpack.c.bf16 %v993_v6, %v988_v5  ;;  %v1031_v5 = vld [vmem:[%s17919_s26 + $0xcb0] sm:$0xff] }
 0x193   :  { %v1028_v6 = vld [vmem:[%s17919_s26 + $0xc98] sm:$0xff] }
 0x194   :  { %1542 = vmatmul.mubr.f32.vlgmr.msra.gmra.mrb[4].mxu1 %v14504_v26  ;;  %1897 = vmatmul.mubr.f32.vlgmr.msra.gmra.mrb[6].mxu0 %v14504_v26 }
 0x195   :  { %10096 = vmatpush1.bf16.msra.mxu1 %v10095_v27  ;;  %10396 = vmatpush1.bf16.msra.mxu0 %v10395_v10  ;;  %v1003_v27 = vld [vmem:[%s17919_s26 + $0xbd0] sm:$0xff]  ;;  %v10111_v10 = vpack.c.bf16 %v990_v17, %v985_v16  ;;  %v10423_v16 = vpack.c.bf16 %v1022_v2, %v1017_v1  ;;  %v1025_v17 = vld [vmem:[%s17919_s26 + $0xc80] sm:$0xff] }
 0x196   :  { %10098 = vmatprep.subr.bf16.mxu1 %v10097_v31  ;;  %10398 = vmatprep.subr.bf16.mxu0 %v10397_v32  ;;  %v1000_v31 = vld [vmem:[%s17919_s26 + $0xbb8] sm:$0xff]  ;;  %v10113_v32 = vpack.c.bf16 %v1001_v24, %v996_v23  ;;  %v10413_v13 = vpack.c.bf16 %v1003_v27, %v998_v25  ;;  %v1041_v25 = vld [vmem:[%s17919_s26 + $0xd00] sm:$0xff]  ;;  %v1038_v27 = vld [vmem:[%s17919_s26 + $0xce8] sm:$0xff] }
 0x197   :  { %1612 = vmatprep.mubr.f32.mxu1 %v14531_v33  ;;  %1967 = vmatprep.mubr.f32.mxu0 %v14531_v33  ;;  %v1032_v23 = vld [vmem:[%s17919_s26 + $0xcb8] sm:$0xff]  ;;  %v1057_v2 = vld [vmem:[%s17919_s26 + $0xd80] sm:$0xff] }
 0x198   :  { %v1036_v24 = vld [vmem:[%s17919_s26 + $0xcd8] sm:$0xff] }
 0x199   :  { %10100 = vmatpush1.bf16.msra.mxu1 %v10099_v40  ;;  %10400 = vmatpush1.bf16.msra.mxu0 %v10399_v41  ;;  %v1013_v40 = vld [vmem:[%s17919_s26 + $0xc20] sm:$0xff]  ;;  %v10115_v41 = vpack.c.bf16 %v1000_v31, %v995_v30  ;;  %v10427_v30 = vpack.c.bf16 %v1032_v23, %v1027_v22  ;;  %v1035_v31 = vld [vmem:[%s17919_s26 + $0xcd0] sm:$0xff] }
 0x19a   :  { %10102 = vmatprep.subr.bf16.mxu1 %v10101_v58  ;;  %10402 = vmatprep.subr.bf16.mxu0 %v10401_v46  ;;  %v1010_v58 = vld [vmem:[%s17919_s26 + $0xc08] sm:$0xff]  ;;  %v10117_v46 = vpack.c.bf16 %v1011_v37, %v1006_v36  ;;  %v10417_v47 = vpack.c.bf16 %v1013_v40, %v1008_v38  ;;  %v1051_v38 = vld [vmem:[%s17919_s26 + $0xd50] sm:$0xff]  ;;  %v1048_v40 = vld [vmem:[%s17919_s26 + $0xd38] sm:$0xff] }
 0x19b   :  { %v1042_v36 = vld [vmem:[%s17919_s26 + $0xd08] sm:$0xff]  ;;  %v1067_v23 = vld [vmem:[%s17919_s26 + $0xdd0] sm:$0xff] }
 0x19c   :  { %v1046_v37 = vld [vmem:[%s17919_s26 + $0xd28] sm:$0xff] }
 0x19d   :  { %10104 = vmatpush1.bf16.msra.mxu1 %v10103_v55  ;;  %10404 = vmatpush1.bf16.msra.mxu0 %v10403_v56  ;;  %v1023_v55 = vld [vmem:[%s17919_s26 + $0xc70] sm:$0xff]  ;;  %v10119_v56 = vpack.c.bf16 %v1010_v58, %v1005_v43  ;;  %v10431_v43 = vpack.c.bf16 %v1042_v36, %v1037_v35  ;;  %v1045_v58 = vld [vmem:[%s17919_s26 + $0xd20] sm:$0xff] }
 0x19e   :  { %10106 = vmatprep.subr.bf16.mxu1 %v10105_v61  ;;  %10406 = vmatprep.subr.bf16.mxu0 %v10405_v62  ;;  %v1020_v61 = vld [vmem:[%s17919_s26 + $0xc58] sm:$0xff]  ;;  %v10121_v62 = vpack.c.bf16 %v1021_v53, %v1016_v52  ;;  %v10421_v63 = vpack.c.bf16 %v1023_v55, %v1018_v54  ;;  %v1061_v54 = vld [vmem:[%s17919_s26 + $0xda0] sm:$0xff]  ;;  %v1058_v55 = vld [vmem:[%s17919_s26 + $0xd88] sm:$0xff] }
 0x19f   :  { %v1052_v52 = vld [vmem:[%s17919_s26 + $0xd58] sm:$0xff]  ;;  %v1077_v36 = vld [vmem:[%s17919_s26 + $0xe20] sm:$0xff] }
 0x1a0   :  { %v1056_v53 = vld [vmem:[%s17919_s26 + $0xd78] sm:$0xff] }
 0x1a1   :  { %10108 = vmatpush1.bf16.msra.mxu1 %v10107_v7  ;;  %10408 = vmatpush1.bf16.msra.mxu0 %v10407_v8  ;;  %v1033_v7 = vld [vmem:[%s17919_s26 + $0xcc0] sm:$0xff]  ;;  %v10123_v8 = vpack.c.bf16 %v1020_v61, %v1015_v60  ;;  %v10435_v60 = vpack.c.bf16 %v1052_v52, %v1047_v49  ;;  %v1055_v61 = vld [vmem:[%s17919_s26 + $0xd70] sm:$0xff] }
 0x1a2   :  { %10110 = vmatprep.subr.bf16.mxu1 %v10109_v18  ;;  %10410 = vmatprep.subr.bf16.mxu0 %v10409_v19  ;;  %v1030_v18 = vld [vmem:[%s17919_s26 + $0xca8] sm:$0xff]  ;;  %v10125_v19 = vpack.c.bf16 %v1031_v5, %v1026_v4  ;;  %v10425_v20 = vpack.c.bf16 %v1033_v7, %v1028_v6  ;;  %v1071_v6 = vld [vmem:[%s17919_s26 + $0xdf0] sm:$0xff]  ;;  %v1068_v7 = vld [vmem:[%s17919_s26 + $0xdd8] sm:$0xff] }
 0x1a3   :  { %v1062_v4 = vld [vmem:[%s17919_s26 + $0xda8] sm:$0xff]  ;;  %v1087_v52 = vld [vmem:[%s17919_s26 + $0xe70] sm:$0xff] }
 0x1a4   :  { %v1066_v5 = vld [vmem:[%s17919_s26 + $0xdc8] sm:$0xff] }
 0x1a5   :  { %10112 = vmatpush1.bf16.msra.mxu1 %v10111_v10  ;;  %10412 = vmatpush1.bf16.msra.mxu0 %v10411_v29  ;;  %v1043_v10 = vld [vmem:[%s17919_s26 + $0xd10] sm:$0xff]  ;;  %v10127_v29 = vpack.c.bf16 %v1030_v18, %v1025_v17  ;;  %v10439_v17 = vpack.c.bf16 %v1062_v4, %v1057_v2  ;;  %v1065_v18 = vld [vmem:[%s17919_s26 + $0xdc0] sm:$0xff] }
 0x1a6   :  { %10114 = vmatprep.subr.bf16.mxu1 %v10113_v32  ;;  %10414 = vmatprep.subr.bf16.mxu0 %v10413_v13  ;;  %v1040_v32 = vld [vmem:[%s17919_s26 + $0xcf8] sm:$0xff]  ;;  %v10129_v13 = vpack.c.bf16 %v1041_v25, %v1036_v24  ;;  %v10429_v39 = vpack.c.bf16 %v1043_v10, %v1038_v27  ;;  %v1081_v27 = vld [vmem:[%s17919_s26 + $0xe40] sm:$0xff]  ;;  %v1078_v10 = vld [vmem:[%s17919_s26 + $0xe28] sm:$0xff] }
 0x1a7   :  { %v1072_v24 = vld [vmem:[%s17919_s26 + $0xdf8] sm:$0xff] }
 0x1a8   :  { %v1076_v25 = vld [vmem:[%s17919_s26 + $0xe18] sm:$0xff] }
 0x1a9   :  { %10116 = vmatpush1.bf16.msra.mxu1 %v10115_v41  ;;  %10416 = vmatpush1.bf16.msra.mxu0 %v10415_v42  ;;  %v1053_v41 = vld [vmem:[%s17919_s26 + $0xd60] sm:$0xff]  ;;  %v10131_v42 = vpack.c.bf16 %v1040_v32, %v1035_v31  ;;  %v10443_v31 = vpack.c.bf16 %v1072_v24, %v1067_v23  ;;  %v1075_v32 = vld [vmem:[%s17919_s26 + $0xe10] sm:$0xff] }
 0x1aa   :  { %10118 = vmatprep.subr.bf16.mxu1 %v10117_v46  ;;  %10418 = vmatprep.subr.bf16.mxu0 %v10417_v47  ;;  %v1050_v46 = vld [vmem:[%s17919_s26 + $0xd48] sm:$0xff]  ;;  %v10133_v47 = vpack.c.bf16 %v1051_v38, %v1046_v37  ;;  %v10433_v48 = vpack.c.bf16 %v1053_v41, %v1048_v40  ;;  %v1091_v40 = vld [vmem:[%s17919_s26 + $0xe90] sm:$0xff]  ;;  %v1088_v41 = vld [vmem:[%s17919_s26 + $0xe78] sm:$0xff] }
 0x1ab   :  { %v1082_v37 = vld [vmem:[%s17919_s26 + $0xe48] sm:$0xff]  ;;  %v1105_v24 = vld [vmem:[%s17919_s26 + $0xf00] sm:$0xff] }
 0x1ac   :  { %v1086_v38 = vld [vmem:[%s17919_s26 + $0xe68] sm:$0xff] }
 0x1ad   :  { %10120 = vmatpush1.bf16.msra.mxu1 %v10119_v56  ;;  %10420 = vmatpush1.bf16.msra.mxu0 %v10419_v59  ;;  %v1063_v56 = vld [vmem:[%s17919_s26 + $0xdb0] sm:$0xff]  ;;  %v10135_v59 = vpack.c.bf16 %v1050_v46, %v1045_v58  ;;  %v10447_v58 = vpack.c.bf16 %v1082_v37, %v1077_v36  ;;  %v1085_v46 = vld [vmem:[%s17919_s26 + $0xe60] sm:$0xff] }
 0x1ae   :  { %10122 = vmatprep.subr.bf16.mxu1 %v10121_v62  ;;  %10422 = vmatprep.subr.bf16.mxu0 %v10421_v63  ;;  %v1060_v62 = vld [vmem:[%s17919_s26 + $0xd98] sm:$0xff]  ;;  %v10137_v63 = vpack.c.bf16 %v1061_v54, %v1056_v53  ;;  %v10437_v1 = vpack.c.bf16 %v1063_v56, %v1058_v55  ;;  %v1101_v55 = vld [vmem:[%s17919_s26 + $0xee0] sm:$0xff]  ;;  %v1098_v56 = vld [vmem:[%s17919_s26 + $0xec8] sm:$0xff] }
 0x1af   :  { %v1092_v53 = vld [vmem:[%s17919_s26 + $0xe98] sm:$0xff] }
 0x1b0   :  { %v1096_v54 = vld [vmem:[%s17919_s26 + $0xeb8] sm:$0xff] }
 0x1b1   :  { %10124 = vmatpush1.bf16.msra.mxu1 %v10123_v8  ;;  %10424 = vmatpush1.bf16.msra.mxu0 %v10423_v16  ;;  %v1073_v8 = vld [vmem:[%s17919_s26 + $0xe00] sm:$0xff]  ;;  %v10139_v16 = vpack.c.bf16 %v1060_v62, %v1055_v61  ;;  %v10451_v62 = vpack.c.bf16 %v1092_v53, %v1087_v52  ;;  %v10153_v2 = vpack.c.bf16 %v1101_v55, %v1096_v54 }
 0x1b2   :  { %10126 = vmatprep.subr.bf16.mxu1 %v10125_v19  ;;  %10426 = vmatprep.subr.bf16.mxu0 %v10425_v20  ;;  %v1070_v19 = vld [vmem:[%s17919_s26 + $0xde8] sm:$0xff]  ;;  %v10141_v20 = vpack.c.bf16 %v1071_v6, %v1066_v5  ;;  %v10441_v22 = vpack.c.bf16 %v1073_v8, %v1068_v7  ;;  %v1097_v5 = vld [vmem:[%s17919_s26 + $0xec0] sm:$0xff]  ;;  %v1111_v8 = vld [vmem:[%s17919_s26 + $0xf30] sm:$0xff] }
 0x1b3   :  { %v1102_v6 = vld [vmem:[%s17919_s26 + $0xee8] sm:$0xff]  ;;  %v1125_v55 = vld [vmem:[%s17919_s26 + $0xfa0] sm:$0xff] }
 0x1b4   :  { %v1106_v7 = vld [vmem:[%s17919_s26 + $0xf08] sm:$0xff]  ;;  %v10455_v23 = vpack.c.bf16 %v1102_v6, %v1097_v5 }
 0x1b5   :  { %10128 = vmatpush1.bf16.msra.mxu1 %v10127_v29  ;;  %10428 = vmatpush1.bf16.msra.mxu0 %v10427_v30  ;;  %v1083_v29 = vld [vmem:[%s17919_s26 + $0xe50] sm:$0xff]  ;;  %v10143_v30 = vpack.c.bf16 %v1070_v19, %v1065_v18  ;;  %v215_v18 = vsub.s32 7, %v14038_v11  ;;  %v14880_v19 = vld [vmem:[%s17920_s3] sm:$0xff] }
 0x1b6   :  { %10130 = vmatprep.subr.bf16.mxu1 %v10129_v13  ;;  %10430 = vmatprep.subr.bf16.mxu0 %v10429_v39  ;;  %v1080_v13 = vld [vmem:[%s17919_s26 + $0xe38] sm:$0xff]  ;;  %v10145_v39 = vpack.c.bf16 %v1081_v27, %v1076_v25  ;;  %v10445_v35 = vpack.c.bf16 %v1083_v29, %v1078_v10  ;;  %v1110_v25 = vld [vmem:[%s17919_s26 + $0xf28] sm:$0xff]  ;;  %v10157_v27 = vpack.c.bf16 %v1111_v8, %v1106_v7  ;;  %v1107_v29 = vld [vmem:[%s17919_s26 + $0xf10] sm:$0xff] }
 0x1b7   :  { %v10159_v37 = vpack.c.bf16 %v1110_v25, %v1105_v24  ;;  %v1135_v7 = vld [vmem:[%s17919_s26 + $0xff0] sm:$0xff]  ;;  %v1140_v8 = vld [vmem:[%s17919_s26 + $0x1018] sm:$0xff] }
 0x1b8   :  { %v1151_v24 = vld [vmem:[%s17919_s26 + $0x1070] sm:$0xff]  ;;  %v1148_v25 = vld [vmem:[%s17919_s26 + $0x1058] sm:$0xff] }
 0x1b9   :  { %10132 = vmatpush1.bf16.msra.mxu1 %v10131_v42  ;;  %10432 = vmatpush1.bf16.msra.mxu0 %v10431_v43  ;;  %v1093_v42 = vld [vmem:[%s17919_s26 + $0xea0] sm:$0xff]  ;;  %v10147_v43 = vpack.c.bf16 %v1080_v13, %v1075_v32  ;;  %v1118_v13 = vld [vmem:[%s17919_s26 + $0xf68] sm:$0xff] }
 0x1ba   :  { %10134 = vmatprep.subr.bf16.mxu1 %v10133_v47  ;;  %10434 = vmatprep.subr.bf16.mxu0 %v10433_v48  ;;  %v1090_v47 = vld [vmem:[%s17919_s26 + $0xe88] sm:$0xff]  ;;  %v10149_v48 = vpack.c.bf16 %v1091_v40, %v1086_v38  ;;  %v10449_v49 = vpack.c.bf16 %v1093_v42, %v1088_v41  ;;  %v1121_v32 = vld [vmem:[%s17919_s26 + $0xf80] sm:$0xff]  ;;  %v1115_v40 = vld [vmem:[%s17919_s26 + $0xf50] sm:$0xff] }
 0x1bb   :  { %v10151_v61 = vpack.c.bf16 %v1090_v47, %v1085_v46  ;;  %v1120_v41 = vld [vmem:[%s17919_s26 + $0xf78] sm:$0xff]  ;;  %v1126_v46 = vld [vmem:[%s17919_s26 + $0xfa8] sm:$0xff]  ;;  %v1131_v47 = vld [vmem:[%s17919_s26 + $0xfd0] sm:$0xff] }
 0x1bc   :  { %v10163_v53 = vpack.c.bf16 %v1120_v41, %v1115_v40  ;;  %v1158_v40 = vld [vmem:[%s17919_s26 + $0x10a8] sm:$0xff]  ;;  %v1163_v41 = vld [vmem:[%s17919_s26 + $0x10d0] sm:$0xff] }
 0x1bd   :  { %10136 = vmatpush1.bf16.msra.mxu1 %v10135_v59  ;;  %10436 = vmatpush1.bf16.msra.mxu0 %v10435_v60  ;;  %v1103_v59 = vld [vmem:[%s17919_s26 + $0xef0] sm:$0xff]  ;;  %v14850_v60 = vsub.s32 4, %v14038_v11 }
 0x1be   :  { %10138 = vmatprep.subr.bf16.mxu1 %v10137_v63  ;;  %10438 = vmatprep.subr.bf16.mxu0 %v10437_v1  ;;  %v1095_v63 = vld [vmem:[%s17919_s26 + $0xeb0] sm:$0xff]  ;;  %v1100_v1 = vld [vmem:[%s17919_s26 + $0xed8] sm:$0xff]  ;;  %v10453_v4 = vpack.c.bf16 %v1103_v59, %v1098_v56  ;;  %v1130_v56 = vld [vmem:[%s17919_s26 + $0xfc8] sm:$0xff] }
 0x1bf   :  { %v10167_v5 = vpack.c.bf16 %v1130_v56, %v1125_v55  ;;  %v1168_v55 = vld [vmem:[%s17919_s26 + $0x10f8] sm:$0xff]  ;;  %v1173_v56 = vld [vmem:[%s17919_s26 + $0x1120] sm:$0xff] }
 0x1c1   :  { %10140 = vmatpush1.bf16.msra.mxu1 %v10139_v16  ;;  %10440 = vmatpush1.bf16.msra.mxu0 %v10439_v17  ;;  %v1108_v16 = vld [vmem:[%s17919_s26 + $0xf18] sm:$0xff]  ;;  %v1113_v17 = vld [vmem:[%s17919_s26 + $0xf40] sm:$0xff] }
 0x1c2   :  { %10142 = vmatprep.subr.bf16.mxu1 %v10141_v20  ;;  %10442 = vmatprep.subr.bf16.mxu0 %v10441_v22  ;;  %v204_v20 = vrot.slane %v14880_v19, %v14850_v60  ;;  %v10155_v22 = vpack.c.bf16 %v1100_v1, %v1095_v63  ;;  %v10457_v10 = vpack.c.bf16 %v1113_v17, %v1108_v16  ;;  %v1136_v63 = vld [vmem:[%s17919_s26 + $0xff8] sm:$0xff]  ;;  %v1141_v1 = vld [vmem:[%s17919_s26 + $0x1020] sm:$0xff] }
 0x1c3   :  { %v10169_v16 = vpack.c.bf16 %v1141_v1, %v1136_v63  ;;  %v10481_v1 = vpack.c.bf16 %v1173_v56, %v1168_v55  ;;  %v1197_v55 = vld [vmem:[%s17919_s26 + $0x11e0] sm:$0xff]  ;;  %v1202_v56 = vld [vmem:[%s17919_s26 + $0x1208] sm:$0xff] }
 0x1c4   :  { %v14912_v36 = vadd.f32 %v14146_v57, %v204_v20  ;;  %v1117_v57 = vld [vmem:[%s17919_s26 + $0xf60] sm:$0xff] }
 0x1c5   :  { %10144 = vmatpush1.bf16.msra.mxu1 %v10143_v30  ;;  %10444 = vmatpush1.bf16.msra.mxu0 %v10443_v31  ;;  %v1112_v30 = vld [vmem:[%s17919_s26 + $0xf38] sm:$0xff]  ;;  %v1137_v20 = vld [vmem:[%s17919_s26 + $0x1000] sm:$0xff] }
 0x1c6   :  { %10146 = vmatprep.subr.bf16.mxu1 %v10145_v39  ;;  %10446 = vmatprep.subr.bf16.mxu0 %v10445_v35  ;;  %v1116_v31 = vld [vmem:[%s17919_s26 + $0xf58] sm:$0xff]  ;;  %v1123_v39 = vld [vmem:[%s17919_s26 + $0xf90] sm:$0xff]  ;;  %v216_v35 = vrot.slane %v14880_v19, %v215_v18  ;;  %v10459_v38 = vpack.c.bf16 %v1112_v30, %v1107_v29  ;;  %v1145_v30 = vld [vmem:[%s17919_s26 + $0x1040] sm:$0xff] }
 0x1c7   :  { %v10161_v42 = vpack.c.bf16 %v1121_v32, %v1116_v31  ;;  %v1150_v31 = vld [vmem:[%s17919_s26 + $0x1068] sm:$0xff] }
 0x1c8   :  { %v14939_v52 = vadd.f32 %v14239_v51, %v216_v35  ;;  %v10165_v51 = vpack.c.bf16 %v1131_v47, %v1126_v46  ;;  %v1152_v35 = vld [vmem:[%s17919_s26 + $0x1078] sm:$0xff]  ;;  %v10477_v47 = vpack.c.bf16 %v1163_v41, %v1158_v40  ;;  %v1187_v40 = vld [vmem:[%s17919_s26 + $0x1190] sm:$0xff] }
 0x1c9   :  { %10148 = vmatpush1.bf16.msra.mxu1 %v10147_v43  ;;  %10448 = vmatpush1.bf16.msra.mxu0 %v10447_v58  ;;  %v10461_v43 = vpack.c.bf16 %v1123_v39, %v1118_v13  ;;  %v1122_v58 = vld [vmem:[%s17919_s26 + $0xf88] sm:$0xff]  ;;  %v1147_v39 = vld [vmem:[%s17919_s26 + $0x1050] sm:$0xff]  ;;  %v1192_v41 = vld [vmem:[%s17919_s26 + $0x11b8] sm:$0xff] }
 0x1ca   :  { %10150 = vmatprep.subr.bf16.mxu1 %v10149_v48  ;;  %10450 = vmatprep.subr.bf16.mxu0 %v10449_v49  ;;  %v1128_v48 = vld [vmem:[%s17919_s26 + $0xfb8] sm:$0xff]  ;;  %v1133_v49 = vld [vmem:[%s17919_s26 + $0xfe0] sm:$0xff]  ;;  %v10463_v54 = vpack.c.bf16 %v1122_v58, %v1117_v57  ;;  %v1155_v57 = vld [vmem:[%s17919_s26 + $0x1090] sm:$0xff] }
 0x1cb   :  { %v10465_v59 = vpack.c.bf16 %v1133_v49, %v1128_v48  ;;  %v1160_v58 = vld [vmem:[%s17919_s26 + $0x10b8] sm:$0xff]  ;;  %v1157_v48 = vld [vmem:[%s17919_s26 + $0x10a0] sm:$0xff]  ;;  %v1162_v49 = vld [vmem:[%s17919_s26 + $0x10c8] sm:$0xff] }
 0x1cd   :  { %10152 = vmatpush1.bf16.msra.mxu1 %v10151_v61  ;;  %10452 = vmatpush1.bf16.msra.mxu0 %v10451_v62  ;;  %v1127_v61 = vld [vmem:[%s17919_s26 + $0xfb0] sm:$0xff]  ;;  %v1132_v62 = vld [vmem:[%s17919_s26 + $0xfd8] sm:$0xff] }
 0x1ce   :  { %10154 = vmatprep.subr.bf16.mxu1 %v10153_v2  ;;  %10454 = vmatprep.subr.bf16.mxu0 %v10453_v4  ;;  %v1138_v2 = vld [vmem:[%s17919_s26 + $0x1008] sm:$0xff]  ;;  %v1143_v4 = vld [vmem:[%s17919_s26 + $0x1030] sm:$0xff]  ;;  %v10467_v6 = vpack.c.bf16 %v1132_v62, %v1127_v61  ;;  %v1165_v61 = vld [vmem:[%s17919_s26 + $0x10e0] sm:$0xff] }
 0x1cf   :  { %v10469_v17 = vpack.c.bf16 %v1143_v4, %v1138_v2  ;;  %v1170_v62 = vld [vmem:[%s17919_s26 + $0x1108] sm:$0xff]  ;;  %v1167_v2 = vld [vmem:[%s17919_s26 + $0x10f0] sm:$0xff]  ;;  %v1172_v4 = vld [vmem:[%s17919_s26 + $0x1118] sm:$0xff] }
 0x1d1   :  { %10156 = vmatpush1.bf16.msra.mxu1 %v10155_v22  ;;  %10456 = vmatpush1.bf16.msra.mxu0 %v10455_v23  ;;  %v1142_v22 = vld [vmem:[%s17919_s26 + $0x1028] sm:$0xff] }
 0x1d2   :  { %10158 = vmatprep.subr.bf16.mxu1 %v10157_v27  ;;  %10458 = vmatprep.subr.bf16.mxu0 %v10457_v10  ;;  %v1146_v23 = vld [vmem:[%s17919_s26 + $0x1048] sm:$0xff]  ;;  %v1153_v27 = vld [vmem:[%s17919_s26 + $0x1080] sm:$0xff]  ;;  %v10171_v10 = vpack.c.bf16 %v1140_v8, %v1135_v7  ;;  %v10471_v29 = vpack.c.bf16 %v1142_v22, %v1137_v20  ;;  %v1183_v8 = vld [vmem:[%s17919_s26 + $0x1170] sm:$0xff] }
 0x1d3   :  { %v10173_v32 = vpack.c.bf16 %v1151_v24, %v1146_v23  ;;  %v10473_v13 = vpack.c.bf16 %v1153_v27, %v1148_v25  ;;  %v1178_v7 = vld [vmem:[%s17919_s26 + $0x1148] sm:$0xff]  ;;  %v1175_v20 = vld [vmem:[%s17919_s26 + $0x1130] sm:$0xff]  ;;  %v1180_v22 = vld [vmem:[%s17919_s26 + $0x1158] sm:$0xff] }
 0x1d4   :  { %1613 = vmatmul.mubr.f32.vlgmr.msra.gmra.mrb[4].mxu1 %v14912_v36  ;;  %1968 = vmatmul.mubr.f32.vlgmr.msra.gmra.mrb[6].mxu0 %v14912_v36  ;;  %v10485_v24 = vpack.c.bf16 %v1183_v8, %v1178_v7  ;;  %v1177_v25 = vld [vmem:[%s17919_s26 + $0x1140] sm:$0xff]  ;;  %v1182_v27 = vld [vmem:[%s17919_s26 + $0x1168] sm:$0xff]  ;;  %v1207_v7 = vld [vmem:[%s17919_s26 + $0x1230] sm:$0xff] }
 0x1d5   :  { %10160 = vmatpush1.bf16.msra.mxu1 %v10159_v37  ;;  %10460 = vmatpush1.bf16.msra.mxu0 %v10459_v38  ;;  %v1156_v37 = vld [vmem:[%s17919_s26 + $0x1098] sm:$0xff]  ;;  %v1161_v38 = vld [vmem:[%s17919_s26 + $0x10c0] sm:$0xff] }
 0x1d6   :  { %10162 = vmatprep.subr.bf16.mxu1 %v10161_v42  ;;  %10462 = vmatprep.subr.bf16.mxu0 %v10461_v43  ;;  %v10175_v42 = vpack.c.bf16 %v1150_v31, %v1145_v30  ;;  %v10475_v43 = vpack.c.bf16 %v1152_v35, %v1147_v39  ;;  %v10177_v46 = vpack.c.bf16 %v1161_v38, %v1156_v37  ;;  %v1188_v30 = vld [vmem:[%s17919_s26 + $0x1198] sm:$0xff]  ;;  %v1193_v31 = vld [vmem:[%s17919_s26 + $0x11c0] sm:$0xff]  ;;  %v1190_v35 = vld [vmem:[%s17919_s26 + $0x11a8] sm:$0xff] }
 0x1d7   :  { %1683 = vmatprep.mubr.f32.mxu1 %v14939_v52  ;;  %2038 = vmatprep.mubr.f32.mxu0 %v14939_v52  ;;  %v1185_v39 = vld [vmem:[%s17919_s26 + $0x1180] sm:$0xff]  ;;  %v10489_v38 = vpack.c.bf16 %v1193_v31, %v1188_v30  ;;  %v1212_v8 = vld [vmem:[%s17919_s26 + $0x1258] sm:$0xff]  ;;  %v1222_v31 = vld [vmem:[%s17919_s26 + $0x12a8] sm:$0xff] }
 0x1d8   :  { %v1217_v30 = vld [vmem:[%s17919_s26 + $0x1280] sm:$0xff] }
 0x1d9   :  { %10164 = vmatpush1.bf16.msra.mxu1 %v10163_v53  ;;  %10464 = vmatpush1.bf16.msra.mxu0 %v10463_v54  ;;  %v1166_v53 = vld [vmem:[%s17919_s26 + $0x10e8] sm:$0xff]  ;;  %v1171_v54 = vld [vmem:[%s17919_s26 + $0x1110] sm:$0xff] }
 0x1da   :  { %10166 = vmatprep.subr.bf16.mxu1 %v10165_v51  ;;  %10466 = vmatprep.subr.bf16.mxu0 %v10465_v59  ;;  %v10179_v51 = vpack.c.bf16 %v1160_v58, %v1155_v57  ;;  %v10479_v59 = vpack.c.bf16 %v1162_v49, %v1157_v48  ;;  %v10181_v63 = vpack.c.bf16 %v1171_v54, %v1166_v53  ;;  %v1198_v57 = vld [vmem:[%s17919_s26 + $0x11e8] sm:$0xff]  ;;  %v1203_v58 = vld [vmem:[%s17919_s26 + $0x1210] sm:$0xff]  ;;  %v1200_v49 = vld [vmem:[%s17919_s26 + $0x11f8] sm:$0xff] }
 0x1db   :  { %v1195_v48 = vld [vmem:[%s17919_s26 + $0x11d0] sm:$0xff]  ;;  %v10493_v54 = vpack.c.bf16 %v1203_v58, %v1198_v57  ;;  %v1232_v58 = vld [vmem:[%s17919_s26 + $0x12f8] sm:$0xff] }
 0x1dc   :  { %v1227_v57 = vld [vmem:[%s17919_s26 + $0x12d0] sm:$0xff] }
 0x1dd   :  { %10168 = vmatpush1.bf16.msra.mxu1 %v10167_v5  ;;  %10468 = vmatpush1.bf16.msra.mxu0 %v10467_v6  ;;  %v1176_v5 = vld [vmem:[%s17919_s26 + $0x1138] sm:$0xff]  ;;  %v1181_v6 = vld [vmem:[%s17919_s26 + $0x1160] sm:$0xff] }
 0x1de   :  { %10170 = vmatprep.subr.bf16.mxu1 %v10169_v16  ;;  %10470 = vmatprep.subr.bf16.mxu0 %v10469_v17  ;;  %v10183_v16 = vpack.c.bf16 %v1170_v62, %v1165_v61  ;;  %v10483_v17 = vpack.c.bf16 %v1172_v4, %v1167_v2  ;;  %v10185_v23 = vpack.c.bf16 %v1181_v6, %v1176_v5  ;;  %v1208_v61 = vld [vmem:[%s17919_s26 + $0x1238] sm:$0xff]  ;;  %v1213_v62 = vld [vmem:[%s17919_s26 + $0x1260] sm:$0xff]  ;;  %v1210_v4 = vld [vmem:[%s17919_s26 + $0x1248] sm:$0xff] }
 0x1df   :  { %v1205_v2 = vld [vmem:[%s17919_s26 + $0x1220] sm:$0xff]  ;;  %v10497_v6 = vpack.c.bf16 %v1213_v62, %v1208_v61  ;;  %v1242_v62 = vld [vmem:[%s17919_s26 + $0x1348] sm:$0xff] }
 0x1e0   :  { %v1237_v61 = vld [vmem:[%s17919_s26 + $0x1320] sm:$0xff] }
 0x1e1   :  { %10172 = vmatpush1.bf16.msra.mxu1 %v10171_v10  ;;  %10472 = vmatpush1.bf16.msra.mxu0 %v10471_v29  ;;  %v1186_v10 = vld [vmem:[%s17919_s26 + $0x1188] sm:$0xff]  ;;  %v1191_v29 = vld [vmem:[%s17919_s26 + $0x11b0] sm:$0xff] }
 0x1e2   :  { %10174 = vmatprep.subr.bf16.mxu1 %v10173_v32  ;;  %10474 = vmatprep.subr.bf16.mxu0 %v10473_v13  ;;  %v10187_v32 = vpack.c.bf16 %v1180_v22, %v1175_v20  ;;  %v10487_v13 = vpack.c.bf16 %v1182_v27, %v1177_v25  ;;  %v10189_v37 = vpack.c.bf16 %v1191_v29, %v1186_v10  ;;  %v1218_v20 = vld [vmem:[%s17919_s26 + $0x1288] sm:$0xff]  ;;  %v1223_v22 = vld [vmem:[%s17919_s26 + $0x12b0] sm:$0xff]  ;;  %v1220_v27 = vld [vmem:[%s17919_s26 + $0x1298] sm:$0xff] }
 0x1e3   :  { %v1215_v25 = vld [vmem:[%s17919_s26 + $0x1270] sm:$0xff]  ;;  %v10501_v29 = vpack.c.bf16 %v1223_v22, %v1218_v20  ;;  %v1252_v22 = vld [vmem:[%s17919_s26 + $0x1398] sm:$0xff] }
 0x1e4   :  { %v1247_v20 = vld [vmem:[%s17919_s26 + $0x1370] sm:$0xff] }
 0x1e5   :  { %10176 = vmatpush1.bf16.msra.mxu1 %v10175_v42  ;;  %10476 = vmatpush1.bf16.msra.mxu0 %v10475_v43  ;;  %v1196_v42 = vld [vmem:[%s17919_s26 + $0x11d8] sm:$0xff]  ;;  %v1201_v43 = vld [vmem:[%s17919_s26 + $0x1200] sm:$0xff] }
 0x1e6   :  { %10178 = vmatprep.subr.bf16.mxu1 %v10177_v46  ;;  %10478 = vmatprep.subr.bf16.mxu0 %v10477_v47  ;;  %v10191_v46 = vpack.c.bf16 %v1190_v35, %v1185_v39  ;;  %v10491_v47 = vpack.c.bf16 %v1192_v41, %v1187_v40  ;;  %v10193_v53 = vpack.c.bf16 %v1201_v43, %v1196_v42  ;;  %v1228_v39 = vld [vmem:[%s17919_s26 + $0x12d8] sm:$0xff]  ;;  %v1233_v35 = vld [vmem:[%s17919_s26 + $0x1300] sm:$0xff]  ;;  %v1230_v41 = vld [vmem:[%s17919_s26 + $0x12e8] sm:$0xff] }
 0x1e7   :  { %v1225_v40 = vld [vmem:[%s17919_s26 + $0x12c0] sm:$0xff]  ;;  %v10505_v43 = vpack.c.bf16 %v1233_v35, %v1228_v39 }
 0x1e8   :  { %v1257_v35 = vld [vmem:[%s17919_s26 + $0x13c0] sm:$0xff] }
 0x1e9   :  { %10180 = vmatpush1.bf16.msra.mxu1 %v10179_v51  ;;  %10480 = vmatpush1.bf16.msra.mxu0 %v10479_v59  ;;  %v1206_v51 = vld [vmem:[%s17919_s26 + $0x1228] sm:$0xff]  ;;  %v1211_v59 = vld [vmem:[%s17919_s26 + $0x1250] sm:$0xff] }
 0x1ea   :  { %10182 = vmatprep.subr.bf16.mxu1 %v10181_v63  ;;  %10482 = vmatprep.subr.bf16.mxu0 %v10481_v1  ;;  %v10195_v63 = vpack.c.bf16 %v1200_v49, %v1195_v48  ;;  %v10495_v1 = vpack.c.bf16 %v1202_v56, %v1197_v55  ;;  %v10197_v5 = vpack.c.bf16 %v1211_v59, %v1206_v51  ;;  %v1238_v48 = vld [vmem:[%s17919_s26 + $0x1328] sm:$0xff]  ;;  %v1243_v49 = vld [vmem:[%s17919_s26 + $0x1350] sm:$0xff]  ;;  %v1240_v56 = vld [vmem:[%s17919_s26 + $0x1338] sm:$0xff] }
 0x1eb   :  { %v1235_v55 = vld [vmem:[%s17919_s26 + $0x1310] sm:$0xff]  ;;  %v10509_v59 = vpack.c.bf16 %v1243_v49, %v1238_v48  ;;  %v1265_v49 = vld [vmem:[%s17919_s26 + $0x1400] sm:$0xff] }
 0x1ed   :  { %10184 = vmatpush1.bf16.msra.mxu1 %v10183_v16  ;;  %10484 = vmatpush1.bf16.msra.mxu0 %v10483_v17  ;;  %v1216_v16 = vld [vmem:[%s17919_s26 + $0x1278] sm:$0xff]  ;;  %v1221_v17 = vld [vmem:[%s17919_s26 + $0x12a0] sm:$0xff] }
 0x1ee   :  { %10186 = vmatprep.subr.bf16.mxu1 %v10185_v23  ;;  %10486 = vmatprep.subr.bf16.mxu0 %v10485_v24  ;;  %v10199_v23 = vpack.c.bf16 %v1210_v4, %v1205_v2  ;;  %v10499_v24 = vpack.c.bf16 %v1212_v8, %v1207_v7  ;;  %v10201_v10 = vpack.c.bf16 %v1221_v17, %v1216_v16  ;;  %v1248_v2 = vld [vmem:[%s17919_s26 + $0x1378] sm:$0xff]  ;;  %v1253_v4 = vld [vmem:[%s17919_s26 + $0x13a0] sm:$0xff]  ;;  %v1250_v8 = vld [vmem:[%s17919_s26 + $0x1388] sm:$0xff] }
 0x1ef   :  { %v1245_v7 = vld [vmem:[%s17919_s26 + $0x1360] sm:$0xff]  ;;  %v10513_v17 = vpack.c.bf16 %v1253_v4, %v1248_v2  ;;  %v1275_v2 = vld [vmem:[%s17919_s26 + $0x1450] sm:$0xff]  ;;  %v1280_v4 = vld [vmem:[%s17919_s26 + $0x1478] sm:$0xff] }
 0x1f1   :  { %10188 = vmatpush1.bf16.msra.mxu1 %v10187_v32  ;;  %10488 = vmatpush1.bf16.msra.mxu0 %v10487_v13  ;;  %v1226_v32 = vld [vmem:[%s17919_s26 + $0x12c8] sm:$0xff]  ;;  %v1231_v13 = vld [vmem:[%s17919_s26 + $0x12f0] sm:$0xff] }
 0x1f2   :  { %10190 = vmatprep.subr.bf16.mxu1 %v10189_v37  ;;  %10490 = vmatprep.subr.bf16.mxu0 %v10489_v38  ;;  %v10203_v37 = vpack.c.bf16 %v1220_v27, %v1215_v25  ;;  %v10503_v38 = vpack.c.bf16 %v1222_v31, %v1217_v30  ;;  %v10205_v42 = vpack.c.bf16 %v1231_v13, %v1226_v32  ;;  %v1258_v25 = vld [vmem:[%s17919_s26 + $0x13c8] sm:$0xff]  ;;  %v1263_v27 = vld [vmem:[%s17919_s26 + $0x13f0] sm:$0xff]  ;;  %v1260_v31 = vld [vmem:[%s17919_s26 + $0x13d8] sm:$0xff]  ;;  %v211_v32 = vsub.s32 6, %v14038_v11 }
 0x1f3   :  { %v1255_v30 = vld [vmem:[%s17919_s26 + $0x13b0] sm:$0xff]  ;;  %v10517_v39 = vpack.c.bf16 %v1263_v27, %v1258_v25  ;;  %v1285_v25 = vld [vmem:[%s17919_s26 + $0x14a0] sm:$0xff]  ;;  %v1290_v27 = vld [vmem:[%s17919_s26 + $0x14c8] sm:$0xff] }
 0x1f4   :  { %v8704_v11 = vld [vmem:[%s17897_s19 + $0x400] sm:$0xff] }
 0x1f5   :  { %10192 = vmatpush1.bf16.msra.mxu1 %v10191_v46  ;;  %10492 = vmatpush1.bf16.msra.mxu0 %v10491_v47  ;;  %v1236_v46 = vld [vmem:[%s17919_s26 + $0x1318] sm:$0xff]  ;;  %v1241_v47 = vld [vmem:[%s17919_s26 + $0x1340] sm:$0xff] }
 0x1f6   :  { %10194 = vmatprep.subr.bf16.mxu1 %v10193_v53  ;;  %10494 = vmatprep.subr.bf16.mxu0 %v10493_v54  ;;  %v10207_v53 = vpack.c.bf16 %v1230_v41, %v1225_v40  ;;  %v10507_v54 = vpack.c.bf16 %v1232_v58, %v1227_v57  ;;  %v10209_v51 = vpack.c.bf16 %v1241_v47, %v1236_v46  ;;  %v1271_v40 = vld [vmem:[%s17919_s26 + $0x1430] sm:$0xff]  ;;  %v1268_v41 = vld [vmem:[%s17919_s26 + $0x1418] sm:$0xff] }
 0x1f7   :  { %v10219_v57 = vpack.c.bf16 %v1260_v31, %v1255_v30  ;;  %v212_v46 = vrot.slane %v14880_v19, %v211_v32  ;;  %v1272_v19 = vld [vmem:[%s17919_s26 + $0x1438] sm:$0xff] }
 0x1f8   :  { %v1292_v30 = vld [vmem:[%s17919_s26 + $0x14d8] sm:$0xff] }
 0x1f9   :  { %10196 = vmatpush1.bf16.msra.mxu1 %v10195_v63  ;;  %10496 = vmatpush1.bf16.msra.mxu0 %v10495_v1  ;;  %v1246_v63 = vld [vmem:[%s17919_s26 + $0x1368] sm:$0xff]  ;;  %v1251_v1 = vld [vmem:[%s17919_s26 + $0x1390] sm:$0xff]  ;;  %v1296_v31 = vld [vmem:[%s17919_s26 + $0x14f8] sm:$0xff] }
 0x1fa   :  { %10198 = vmatprep.subr.bf16.mxu1 %v10197_v5  ;;  %10498 = vmatprep.subr.bf16.mxu0 %v10497_v6  ;;  %v10211_v5 = vpack.c.bf16 %v1240_v56, %v1235_v55  ;;  %v10511_v6 = vpack.c.bf16 %v1242_v62, %v1237_v61  ;;  %v10213_v16 = vpack.c.bf16 %v1251_v1, %v1246_v63  ;;  %v1267_v55 = vld [vmem:[%s17919_s26 + $0x1410] sm:$0xff]  ;;  %v1276_v56 = vld [vmem:[%s17919_s26 + $0x1458] sm:$0xff] }
 0x1fb   :  { %v1283_v61 = vld [vmem:[%s17919_s26 + $0x1490] sm:$0xff]  ;;  %v15317_v63 = vadd.f32 %v14228_v45, %v212_v46  ;;  %v10523_v1 = vpack.c.bf16 %v1272_v19, %v1267_v55  ;;  %v1302_v46 = vld [vmem:[%s17919_s26 + $0x1528] sm:$0xff] }
 0x1fd   :  { %10200 = vmatpush1.bf16.msra.mxu1 %v10199_v23  ;;  %10500 = vmatpush1.bf16.msra.mxu0 %v10499_v24  ;;  %v1256_v23 = vld [vmem:[%s17919_s26 + $0x13b8] sm:$0xff]  ;;  %v1261_v24 = vld [vmem:[%s17919_s26 + $0x13e0] sm:$0xff] }
 0x1fe   :  { %10202 = vmatprep.subr.bf16.mxu1 %v10201_v10  ;;  %10502 = vmatprep.subr.bf16.mxu0 %v10501_v29  ;;  %v10215_v10 = vpack.c.bf16 %v1250_v8, %v1245_v7  ;;  %v10515_v29 = vpack.c.bf16 %v1252_v22, %v1247_v20  ;;  %v10217_v13 = vpack.c.bf16 %v1261_v24, %v1256_v23  ;;  %v1282_v8 = vld [vmem:[%s17919_s26 + $0x1488] sm:$0xff]  ;;  %v1293_v20 = vld [vmem:[%s17919_s26 + $0x14e0] sm:$0xff] }
 0x1ff   :  { %v10227_v22 = vpack.c.bf16 %v1280_v4, %v1275_v2  ;;  %v1321_v2 = vld [vmem:[%s17919_s26 + $0x15c0] sm:$0xff]  ;;  %v1318_v4 = vld [vmem:[%s17919_s26 + $0x15a8] sm:$0xff] }
 0x201   :  { %10204 = vmatpush1.bf16.msra.mxu1 %v10203_v37  ;;  %10504 = vmatpush1.bf16.msra.mxu0 %v10503_v38  ;;  %v1262_v37 = vld [vmem:[%s17919_s26 + $0x13e8] sm:$0xff] }
 0x202   :  { %10206 = vmatprep.subr.bf16.mxu1 %v10205_v42  ;;  %10506 = vmatprep.subr.bf16.mxu0 %v10505_v43  ;;  %v1266_v38 = vld [vmem:[%s17919_s26 + $0x1408] sm:$0xff]  ;;  %v1273_v42 = vld [vmem:[%s17919_s26 + $0x1440] sm:$0xff]  ;;  %v10519_v58 = vpack.c.bf16 %v1262_v37, %v1257_v35  ;;  %v1303_v35 = vld [vmem:[%s17919_s26 + $0x1530] sm:$0xff]  ;;  %v10231_v37 = vpack.c.bf16 %v1290_v27, %v1285_v25 }
 0x203   :  { %v15285_v43 = vld [vmem:[%s17920_s3 + $0x8] sm:$0x3]  ;;  %v10221_v47 = vpack.c.bf16 %v1271_v40, %v1266_v38  ;;  %v10521_v48 = vpack.c.bf16 %v1273_v42, %v1268_v41  ;;  %v1295_v41 = vld [vmem:[%s17919_s26 + $0x14f0] sm:$0xff]  ;;  %v1300_v42 = vld [vmem:[%s17919_s26 + $0x1518] sm:$0xff] }
 0x204   :  { %v1328_v25 = vld [vmem:[%s17919_s26 + $0x15f8] sm:$0xff]  ;;  %v1333_v27 = vld [vmem:[%s17919_s26 + $0x1620] sm:$0xff] }
 0x205   :  { %10208 = vmatpush1.bf16.msra.mxu1 %v10207_v53  ;;  %10508 = vmatpush1.bf16.msra.mxu0 %v10507_v54  ;;  %v1270_v53 = vld [vmem:[%s17919_s26 + $0x1428] sm:$0xff]  ;;  %v224_v54 = vrot.slane %v15285_v43, %v14041_v12 }
 0x206   :  { %10210 = vmatprep.subr.bf16.mxu1 %v10209_v51  ;;  %10510 = vmatprep.subr.bf16.mxu0 %v10509_v59  ;;  %v1281_v51 = vld [vmem:[%s17919_s26 + $0x1480] sm:$0xff]  ;;  %v1278_v59 = vld [vmem:[%s17919_s26 + $0x1468] sm:$0xff]  ;;  %v10223_v62 = vpack.c.bf16 %v1270_v53, %v1265_v49  ;;  %v1308_v49 = vld [vmem:[%s17919_s26 + $0x1558] sm:$0xff] }
 0x207   :  { %v10225_v45 = vpack.c.bf16 %v1281_v51, %v1276_v56  ;;  %v10525_v7 = vpack.c.bf16 %v1283_v61, %v1278_v59  ;;  %v1313_v53 = vld [vmem:[%s17919_s26 + $0x1580] sm:$0xff]  ;;  %v1310_v51 = vld [vmem:[%s17919_s26 + $0x1568] sm:$0xff]  ;;  %v1307_v59 = vld [vmem:[%s17919_s26 + $0x1550] sm:$0xff] }
 0x208   :  { %v1305_v56 = vld [vmem:[%s17919_s26 + $0x1540] sm:$0xff]  ;;  %v10537_v61 = vpack.c.bf16 %v1313_v53, %v1308_v49 }
 0x209   :  { %10212 = vmatpush1.bf16.msra.mxu1 %v10211_v5  ;;  %10512 = vmatpush1.bf16.msra.mxu0 %v10511_v6  ;;  %v1277_v5 = vld [vmem:[%s17919_s26 + $0x1460] sm:$0xff]  ;;  %v15329_v6 = vadd.f32 %v14489_v21, %v224_v54  ;;  %v1288_v21 = vld [vmem:[%s17919_s26 + $0x14b8] sm:$0xff]  ;;  %v10235_v54 = vpack.c.bf16 %v1300_v42, %v1295_v41  ;;  %v1338_v41 = vld [vmem:[%s17919_s26 + $0x1648] sm:$0xff] }
 0x20a   :  { %10214 = vmatprep.subr.bf16.mxu1 %v10213_v16  ;;  %10514 = vmatprep.subr.bf16.mxu0 %v10513_v17  ;;  %v1286_v16 = vld [vmem:[%s17919_s26 + $0x14a8] sm:$0xff]  ;;  %v1291_v17 = vld [vmem:[%s17919_s26 + $0x14d0] sm:$0xff]  ;;  %v10527_v23 = vpack.c.bf16 %v1282_v8, %v1277_v5  ;;  %v1337_v49 = vld [vmem:[%s17919_s26 + $0x1640] sm:$0xff] }
 0x20b   :  { %v10229_v24 = vpack.c.bf16 %v1291_v17, %v1286_v16  ;;  %v1323_v5 = vld [vmem:[%s17919_s26 + $0x15d0] sm:$0xff]  ;;  %v1320_v17 = vld [vmem:[%s17919_s26 + $0x15b8] sm:$0xff] }
 0x20c   :  { %v1315_v16 = vld [vmem:[%s17919_s26 + $0x1590] sm:$0xff] }
 0x20d   :  { %10216 = vmatpush1.bf16.msra.mxu1 %v10215_v10  ;;  %10516 = vmatpush1.bf16.msra.mxu0 %v10515_v29  ;;  %v1287_v10 = vld [vmem:[%s17919_s26 + $0x14b0] sm:$0xff]  ;;  %v10529_v29 = vpack.c.bf16 %v1293_v20, %v1288_v21  ;;  %v1317_v21 = vld [vmem:[%s17919_s26 + $0x15a0] sm:$0xff]  ;;  %v10541_v20 = vpack.c.bf16 %v1323_v5, %v1318_v4 }
 0x20e   :  { %10218 = vmatprep.subr.bf16.mxu1 %v10217_v13  ;;  %10518 = vmatprep.subr.bf16.mxu0 %v10517_v39  ;;  %v1301_v13 = vld [vmem:[%s17919_s26 + $0x1520] sm:$0xff]  ;;  %v1298_v39 = vld [vmem:[%s17919_s26 + $0x1508] sm:$0xff]  ;;  %v10531_v38 = vpack.c.bf16 %v1292_v30, %v1287_v10  ;;  %v10243_v10 = vpack.c.bf16 %v1320_v17, %v1315_v16  ;;  %v1343_v42 = vld [vmem:[%s17919_s26 + $0x1670] sm:$0xff] }
 0x20f   :  { %v10233_v40 = vpack.c.bf16 %v1301_v13, %v1296_v31  ;;  %v1325_v31 = vld [vmem:[%s17919_s26 + $0x15e0] sm:$0xff]  ;;  %v1330_v13 = vld [vmem:[%s17919_s26 + $0x1608] sm:$0xff]  ;;  %v10549_v53 = vpack.c.bf16 %v1343_v42, %v1338_v41  ;;  %v1347_v4 = vld [vmem:[%s17919_s26 + $0x1690] sm:$0xff] }
 0x210   :  { %v1358_v16 = vld [vmem:[%s17919_s26 + $0x16e8] sm:$0xff]  ;;  %v1363_v17 = vld [vmem:[%s17919_s26 + $0x1710] sm:$0xff] }
 0x211   :  { %10220 = vmatpush1.bf16.msra.mxu1 %v10219_v57  ;;  %10520 = vmatpush1.bf16.msra.mxu0 %v10519_v58  ;;  %v1297_v57 = vld [vmem:[%s17919_s26 + $0x1500] sm:$0xff]  ;;  %v10533_v58 = vpack.c.bf16 %v1303_v35, %v1298_v39  ;;  %v1327_v39 = vld [vmem:[%s17919_s26 + $0x15f0] sm:$0xff]  ;;  %v10545_v35 = vpack.c.bf16 %v1333_v27, %v1328_v25  ;;  %v10557_v27 = vpack.c.bf16 %v1363_v17, %v1358_v16 }
 0x212   :  { %10222 = vmatprep.subr.bf16.mxu1 %v10221_v47  ;;  %10522 = vmatprep.subr.bf16.mxu0 %v10521_v48  ;;  %v1306_v47 = vld [vmem:[%s17919_s26 + $0x1548] sm:$0xff]  ;;  %v1311_v48 = vld [vmem:[%s17919_s26 + $0x1570] sm:$0xff]  ;;  %v10535_v55 = vpack.c.bf16 %v1302_v46, %v1297_v57  ;;  %v10247_v57 = vpack.c.bf16 %v1330_v13, %v1325_v31  ;;  %v1357_v25 = vld [vmem:[%s17919_s26 + $0x16e0] sm:$0xff] }
 0x213   :  { %v10237_v19 = vpack.c.bf16 %v1311_v48, %v1306_v47  ;;  %v1335_v47 = vld [vmem:[%s17919_s26 + $0x1630] sm:$0xff]  ;;  %v1340_v48 = vld [vmem:[%s17919_s26 + $0x1658] sm:$0xff]  ;;  %v1373_v13 = vld [vmem:[%s17919_s26 + $0x1760] sm:$0xff] }
 0x214   :  { %1684 = vmatmul.mubr.f32.vlgmr.msra.gmra.mrb[4].mxu1 %v15317_v63  ;;  %2039 = vmatmul.mubr.f32.vlgmr.msra.gmra.mrb[6].mxu0 %v15317_v63  ;;  %v1368_v31 = vld [vmem:[%s17919_s26 + $0x1738] sm:$0xff]  ;;  %v1367_v41 = vld [vmem:[%s17919_s26 + $0x1730] sm:$0xff] }
 0x215   :  { %10224 = vmatpush1.bf16.msra.mxu1 %v10223_v62  ;;  %9133 = vmatprep.mubr.msk.f32.mxu1 %vm1402_vm4, %v15329_v6  ;;  %v1312_v62 = vld [vmem:[%s17919_s26 + $0x1578] sm:$0xff]  ;;  %v10561_v42 = vpack.c.bf16 %v1373_v13, %v1368_v31  ;;  %v799_v16 = vld [vmem:[%s17919_s26 + $0x570] sm:$0xff]  ;;  %v809_v31 = vld [vmem:[%s17919_s26 + $0x5c0] sm:$0xff] }
 0x216   :  { %10524 = vmatpush1.bf16.msra.mxu0 %v10523_v1  ;;  %9134 = vmatprep.mubr.msk.f32.mxu0 %vm1402_vm4, %v15329_v6  ;;  %v1316_v1 = vld [vmem:[%s17919_s26 + $0x1598] sm:$0xff] }
 0x217   :  { %10226 = vmatprep.subr.bf16.mxu1 %v10225_v45  ;;  %10526 = vmatprep.subr.bf16.mxu0 %v10525_v7  ;;  %v10239_v45 = vpack.c.bf16 %v1310_v51, %v1305_v56  ;;  %v10539_v7 = vpack.c.bf16 %v1312_v62, %v1307_v59  ;;  %v10241_v8 = vpack.c.bf16 %v1321_v2, %v1316_v1  ;;  %v1348_v56 = vld [vmem:[%s17919_s26 + $0x1698] sm:$0xff]  ;;  %v1353_v51 = vld [vmem:[%s17919_s26 + $0x16c0] sm:$0xff]  ;;  %v1350_v2 = vld [vmem:[%s17919_s26 + $0x16a8] sm:$0xff] }
 0x218   :  { %v10251_v59 = vpack.c.bf16 %v1340_v48, %v1335_v47  ;;  %v1345_v1 = vld [vmem:[%s17919_s26 + $0x1680] sm:$0xff]  ;;  %v10553_v5 = vpack.c.bf16 %v1353_v51, %v1348_v56  ;;  %v874_v48 = vld [vmem:[%s17919_s26 + $0x7c8] sm:$0xff] }
 0x219   :  { %10228 = vmatpush1.bf16.msra.mxu1 %v10227_v22  ;;  %v1322_v22 = vld [vmem:[%s17919_s26 + $0x15c8] sm:$0xff]  ;;  %v869_v47 = vld [vmem:[%s17919_s26 + $0x7a0] sm:$0xff] }
 0x21a   :  { %10528 = vmatpush1.bf16.msra.mxu0 %v10527_v23  ;;  %10230 = vmatprep.subr.bf16.mxu1 %v10229_v24  ;;  %v1326_v23 = vld [vmem:[%s17919_s26 + $0x15e8] sm:$0xff]  ;;  %v1331_v24 = vld [vmem:[%s17919_s26 + $0x1610] sm:$0xff]  ;;  %v10597_v51 = vpack.c.bf16 %v874_v48, %v869_v47  ;;  %v824_v47 = vld [vmem:[%s17919_s26 + $0x638] sm:$0xff] }
 0x21b   :  { %10530 = vmatprep.subr.bf16.mxu0 %v10529_v29  ;;  %v10543_v29 = vpack.c.bf16 %v1322_v22, %v1317_v21  ;;  %v10245_v30 = vpack.c.bf16 %v1331_v24, %v1326_v23  ;;  %v10255_v21 = vpack.c.bf16 %v1350_v2, %v1345_v1  ;;  %v1355_v23 = vld [vmem:[%s17919_s26 + $0x16d0] sm:$0xff]  ;;  %v1360_v24 = vld [vmem:[%s17919_s26 + $0x16f8] sm:$0xff]  ;;  %v634_v56 = vld [vmem:[%s17919_s26 + $0x48] sm:$0xff] }
 0x21c   :  { %v879_v2 = vld [vmem:[%s17919_s26 + $0x7f0] sm:$0xff]  ;;  %v749_v48 = vld [vmem:[%s17919_s26 + $0x3e0] sm:$0xff] }
 0x21d   :  { %10232 = vmatpush1.bf16.msra.mxu1 %v10231_v37  ;;  %v1332_v37 = vld [vmem:[%s17919_s26 + $0x1618] sm:$0xff] }
 0x21e   :  { %10532 = vmatpush1.bf16.msra.mxu0 %v10531_v38  ;;  %10234 = vmatprep.subr.bf16.mxu1 %v10233_v40  ;;  %v1336_v38 = vld [vmem:[%s17919_s26 + $0x1638] sm:$0xff]  ;;  %v1341_v40 = vld [vmem:[%s17919_s26 + $0x1660] sm:$0xff] }
 0x21f   :  { %10534 = vmatprep.subr.bf16.mxu0 %v10533_v58  ;;  %v10547_v58 = vpack.c.bf16 %v1332_v37, %v1327_v39  ;;  %v10249_v46 = vpack.c.bf16 %v1341_v40, %v1336_v38  ;;  %v10259_v39 = vpack.c.bf16 %v1360_v24, %v1355_v23  ;;  %v1365_v38 = vld [vmem:[%s17919_s26 + $0x1720] sm:$0xff]  ;;  %v1370_v40 = vld [vmem:[%s17919_s26 + $0x1748] sm:$0xff] }
 0x220   :  { %v889_v23 = vld [vmem:[%s17919_s26 + $0x840] sm:$0xff]  ;;  %v894_v24 = vld [vmem:[%s17919_s26 + $0x868] sm:$0xff] }
 0x221   :  { %10236 = vmatpush1.bf16.msra.mxu1 %v10235_v54  ;;  %v1342_v54 = vld [vmem:[%s17919_s26 + $0x1668] sm:$0xff]  ;;  %v10605_v13 = vpack.c.bf16 %v894_v24, %v889_v23  ;;  %v769_v23 = vld [vmem:[%s17919_s26 + $0x480] sm:$0xff] }
 0x222   :  { %10536 = vmatpush1.bf16.msra.mxu0 %v10535_v55  ;;  %10238 = vmatprep.subr.bf16.mxu1 %v10237_v19  ;;  %v1346_v55 = vld [vmem:[%s17919_s26 + $0x1688] sm:$0xff]  ;;  %v1351_v19 = vld [vmem:[%s17919_s26 + $0x16b0] sm:$0xff] }
 0x223   :  { %10538 = vmatprep.subr.bf16.mxu0 %v10537_v61  ;;  %v10551_v61 = vpack.c.bf16 %v1342_v54, %v1337_v49  ;;  %v10253_v62 = vpack.c.bf16 %v1351_v19, %v1346_v55  ;;  %v10263_v49 = vpack.c.bf16 %v1370_v40, %v1365_v38  ;;  %v629_v19 = vld [vmem:[%s17919_s26 + $0x20] sm:$0xff]  ;;  %v774_v24 = vld [vmem:[%s17919_s26 + $0x4a8] sm:$0xff] }
 0x224   :  { %v10567_v1 = vpack.c.bf16 %v634_v56, %v629_v19 }
 0x225   :  { %10240 = vmatpush1.bf16.msra.mxu1 %v10239_v45  ;;  %v1352_v45 = vld [vmem:[%s17919_s26 + $0x16b8] sm:$0xff] }
 0x226   :  { %10540 = vmatpush1.bf16.msra.mxu0 %v10539_v7  ;;  %10242 = vmatprep.subr.bf16.mxu1 %v10241_v8  ;;  %v1356_v7 = vld [vmem:[%s17919_s26 + $0x16d8] sm:$0xff]  ;;  %v1361_v8 = vld [vmem:[%s17919_s26 + $0x1700] sm:$0xff] }
 0x227   :  { %10542 = vmatprep.subr.bf16.mxu0 %v10541_v20  ;;  %v10555_v20 = vpack.c.bf16 %v1352_v45, %v1347_v4  ;;  %v10257_v22 = vpack.c.bf16 %v1361_v8, %v1356_v7  ;;  %v884_v4 = vld [vmem:[%s17919_s26 + $0x818] sm:$0xff]  ;;  %v639_v7 = vld [vmem:[%s17919_s26 + $0x70] sm:$0xff] }
 0x228   :  { %v644_v8 = vld [vmem:[%s17919_s26 + $0x98] sm:$0xff] }
 0x229   :  { %10244 = vmatpush1.bf16.msra.mxu1 %v10243_v10  ;;  %v1362_v10 = vld [vmem:[%s17919_s26 + $0x1708] sm:$0xff] }
 0x22a   :  { %10544 = vmatpush1.bf16.msra.mxu0 %v10543_v29  ;;  %10246 = vmatprep.subr.bf16.mxu1 %v10245_v30  ;;  %v1366_v29 = vld [vmem:[%s17919_s26 + $0x1728] sm:$0xff]  ;;  %v1371_v30 = vld [vmem:[%s17919_s26 + $0x1750] sm:$0xff] }
 0x22b   :  { %10546 = vmatprep.subr.bf16.mxu0 %v10545_v35  ;;  %v10559_v35 = vpack.c.bf16 %v1362_v10, %v1357_v25  ;;  %v10261_v37 = vpack.c.bf16 %v1371_v30, %v1366_v29  ;;  %v10571_v25 = vpack.c.bf16 %v644_v8, %v639_v7  ;;  %v649_v29 = vld [vmem:[%s17919_s26 + $0xc0] sm:$0xff]  ;;  %v654_v30 = vld [vmem:[%s17919_s26 + $0xe8] sm:$0xff] }
 0x22c   :  { %v10575_v38 = vpack.c.bf16 %v654_v30, %v649_v29  ;;  %v10589_v30 = vpack.c.bf16 %v774_v24, %v769_v23  ;;  %v1124_v23 = vld [vmem:[%s17919_s26 + $0xf98] sm:$0xff]  ;;  %v1049_v24 = vld [vmem:[%s17919_s26 + $0xd40] sm:$0xff] }
 0x22d   :  { %10248 = vmatpush1.bf16.msra.mxu1 %v10247_v57  ;;  %v1372_v57 = vld [vmem:[%s17919_s26 + $0x1758] sm:$0xff] }
 0x22e   :  { %10548 = vmatpush1.bf16.msra.mxu0 %v10547_v58  ;;  %10250 = vmatprep.subr.bf16.mxu1 %v10249_v46  ;;  %v709_v58 = vld [vmem:[%s17919_s26 + $0x2a0] sm:$0xff]  ;;  %v714_v46 = vld [vmem:[%s17919_s26 + $0x2c8] sm:$0xff]  ;;  %v10563_v54 = vpack.c.bf16 %v1372_v57, %v1367_v41  ;;  %v664_v57 = vld [vmem:[%s17919_s26 + $0x138] sm:$0xff] }
 0x22f   :  { %10550 = vmatprep.subr.bf16.mxu0 %v10549_v53  ;;  %v220_v53 = vrot.slane %v15285_v43, %v14049_v14  ;;  %v10565_v55 = vpack.c.bf16 %v714_v46, %v709_v58  ;;  %v794_v43 = vld [vmem:[%s17919_s26 + $0x548] sm:$0xff]  ;;  %v819_v58 = vld [vmem:[%s17919_s26 + $0x610] sm:$0xff] }
 0x230   :  { %v10611_v19 = vpack.c.bf16 %v824_v47, %v819_v58  ;;  %v699_v58 = vld [vmem:[%s17919_s26 + $0x250] sm:$0xff] }
 0x231   :  { %10252 = vmatpush1.bf16.msra.mxu1 %v10251_v59  ;;  %v789_v59 = vld [vmem:[%s17919_s26 + $0x520] sm:$0xff]  ;;  %v859_v47 = vld [vmem:[%s17919_s26 + $0x750] sm:$0xff] }
 0x232   :  { %10552 = vmatpush1.bf16.msra.mxu0 %v10551_v61  ;;  %10254 = vmatprep.subr.bf16.mxu1 %v10253_v62  ;;  %v719_v61 = vld [vmem:[%s17919_s26 + $0x2f0] sm:$0xff]  ;;  %v724_v62 = vld [vmem:[%s17919_s26 + $0x318] sm:$0xff]  ;;  %v10599_v45 = vpack.c.bf16 %v794_v43, %v789_v59  ;;  %v674_v59 = vld [vmem:[%s17919_s26 + $0x188] sm:$0xff] }
 0x233   :  { %10554 = vmatprep.subr.bf16.mxu0 %v10553_v5  ;;  %v15595_v5 = vadd.f32 %v14478_v9, %v220_v53  ;;  %v10569_v17 = vpack.c.bf16 %v724_v62, %v719_v61  ;;  %v804_v9 = vld [vmem:[%s17919_s26 + $0x598] sm:$0xff]  ;;  %v909_v53 = vld [vmem:[%s17919_s26 + $0x8e0] sm:$0xff]  ;;  %v834_v62 = vld [vmem:[%s17919_s26 + $0x688] sm:$0xff] }
 0x234   :  { %v829_v43 = vld [vmem:[%s17919_s26 + $0x660] sm:$0xff] }
 0x235   :  { %10256 = vmatpush1.bf16.msra.mxu1 %v10255_v21  ;;  %v729_v21 = vld [vmem:[%s17919_s26 + $0x340] sm:$0xff]  ;;  %v10615_v8 = vpack.c.bf16 %v834_v62, %v829_v43 }
 0x236   :  { %10556 = vmatpush1.bf16.msra.mxu0 %v10555_v20  ;;  %10258 = vmatprep.subr.bf16.mxu1 %v10257_v22  ;;  %v734_v20 = vld [vmem:[%s17919_s26 + $0x368] sm:$0xff]  ;;  %v10601_v22 = vpack.c.bf16 %v884_v4, %v879_v2  ;;  %v764_v2 = vld [vmem:[%s17919_s26 + $0x458] sm:$0xff]  ;;  %v919_v4 = vld [vmem:[%s17919_s26 + $0x930] sm:$0xff] }
 0x237   :  { %10558 = vmatprep.subr.bf16.mxu0 %v10557_v27  ;;  %v10603_v27 = vpack.c.bf16 %v804_v9, %v799_v16  ;;  %v10573_v10 = vpack.c.bf16 %v734_v20, %v729_v21  ;;  %v684_v9 = vld [vmem:[%s17919_s26 + $0x1d8] sm:$0xff]  ;;  %v839_v21 = vld [vmem:[%s17919_s26 + $0x6b0] sm:$0xff]  ;;  %v949_v43 = vld [vmem:[%s17919_s26 + $0xa20] sm:$0xff] }
 0x239   :  { %10260 = vmatpush1.bf16.msra.mxu1 %v10259_v39  ;;  %v739_v39 = vld [vmem:[%s17919_s26 + $0x390] sm:$0xff] }
 0x23a   :  { %10560 = vmatpush1.bf16.msra.mxu0 %v10559_v35  ;;  %10262 = vmatprep.subr.bf16.mxu1 %v10261_v37  ;;  %v744_v35 = vld [vmem:[%s17919_s26 + $0x3b8] sm:$0xff]  ;;  %v899_v37 = vld [vmem:[%s17919_s26 + $0x890] sm:$0xff] }
 0x23b   :  { %10562 = vmatprep.subr.bf16.mxu0 %v10561_v42  ;;  %v10577_v41 = vpack.c.bf16 %v744_v35, %v739_v39  ;;  %v659_v42 = vld [vmem:[%s17919_s26 + $0x110] sm:$0xff]  ;;  %v854_v35 = vld [vmem:[%s17919_s26 + $0x728] sm:$0xff] }
 0x23d   :  { %10264 = vmatpush1.bf16.msra.mxu1 %v10263_v49  ;;  %v754_v49 = vld [vmem:[%s17919_s26 + $0x408] sm:$0xff] }
 0x23e   :  { %10564 = vmatpush1.bf16.msra.mxu0 %v10563_v54  ;;  %10566 = vmatprep.subr.bf16.mxu1 %v10565_v55  ;;  %v914_v54 = vld [vmem:[%s17919_s26 + $0x908] sm:$0xff]  ;;  %v10579_v55 = vpack.c.bf16 %v664_v57, %v659_v42  ;;  %v10581_v56 = vpack.c.bf16 %v754_v49, %v749_v48  ;;  %v864_v49 = vld [vmem:[%s17919_s26 + $0x778] sm:$0xff] }
 0x23f   :  { %10598 = vmatprep.subr.bf16.mxu0 %v10597_v51  ;;  %v669_v51 = vld [vmem:[%s17919_s26 + $0x160] sm:$0xff]  ;;  %v10613_v61 = vpack.c.bf16 %v914_v54, %v909_v53  ;;  %v1034_v54 = vld [vmem:[%s17919_s26 + $0xcc8] sm:$0xff] }
 0x240   :  { %1755 = vmatmul.mubr.f32.vlgmr.msra.gmra.mrb[4].mxu1 %v15595_v5  ;;  %v10583_v7 = vpack.c.bf16 %v674_v59, %v669_v51  ;;  %v1029_v53 = vld [vmem:[%s17919_s26 + $0xca0] sm:$0xff]  ;;  %v10627_v51 = vpack.c.bf16 %v864_v49, %v859_v47  ;;  %v1144_v47 = vld [vmem:[%s17919_s26 + $0x1038] sm:$0xff]  ;;  %v1074_v49 = vld [vmem:[%s17919_s26 + $0xe08] sm:$0xff] }
 0x241   :  { %2110 = vmatmul.mubr.f32.vlgmr.msra.gmra.mrb[6].mxu0 %v15595_v5  ;;  %10568 = vmatpush3.bf16.msra.mxu1 %v10567_v1  ;;  %v759_v1 = vld [vmem:[%s17919_s26 + $0x430] sm:$0xff]  ;;  %v10629_v59 = vpack.c.bf16 %v1034_v54, %v1029_v53  ;;  %v1229_v53 = vld [vmem:[%s17919_s26 + $0x12e0] sm:$0xff]  ;;  %v1234_v54 = vld [vmem:[%s17919_s26 + $0x1308] sm:$0xff] }
 0x242   :  { %2180 = vmatprep.mubr.f32.mxu1 %v14084_v28  ;;  %10600 = vmatpush3.bf16.msra.mxu0 %v10599_v45  ;;  %v814_v28 = vld [vmem:[%s17919_s26 + $0x5e8] sm:$0xff]  ;;  %v924_v45 = vld [vmem:[%s17919_s26 + $0x958] sm:$0xff]  ;;  %v10585_v16 = vpack.c.bf16 %v764_v2, %v759_v1  ;;  %v1109_v1 = vld [vmem:[%s17919_s26 + $0xf20] sm:$0xff] }
 0x243   :  { %2250 = vmatprep.mubr.f32.mxu0 %v14118_v44  ;;  %10570 = vmatprep.subr.bf16.mxu1 %v10569_v17  ;;  %v904_v44 = vld [vmem:[%s17919_s26 + $0x8b8] sm:$0xff]  ;;  %v10607_v40 = vpack.c.bf16 %v814_v28, %v809_v31  ;;  %v679_v17 = vld [vmem:[%s17919_s26 + $0x1b0] sm:$0xff]  ;;  %v10617_v20 = vpack.c.bf16 %v924_v45, %v919_v4  ;;  %v689_v31 = vld [vmem:[%s17919_s26 + $0x200] sm:$0xff] }
 0x244   :  { %10602 = vmatprep.subr.bf16.mxu0 %v10601_v22  ;;  %v10609_v46 = vpack.c.bf16 %v904_v44, %v899_v37  ;;  %v844_v22 = vld [vmem:[%s17919_s26 + $0x6d8] sm:$0xff]  ;;  %v849_v28 = vld [vmem:[%s17919_s26 + $0x700] sm:$0xff]  ;;  %v779_v37 = vld [vmem:[%s17919_s26 + $0x4d0] sm:$0xff] }
 0x245   :  { %10572 = vmatpush3.bf16.msra.mxu1 %v10571_v25  ;;  %v929_v25 = vld [vmem:[%s17919_s26 + $0x980] sm:$0xff]  ;;  %v10619_v29 = vpack.c.bf16 %v844_v22, %v839_v21  ;;  %v784_v44 = vld [vmem:[%s17919_s26 + $0x4f8] sm:$0xff]  ;;  %v10623_v42 = vpack.c.bf16 %v854_v35, %v849_v28  ;;  %v1114_v2 = vld [vmem:[%s17919_s26 + $0xf48] sm:$0xff] }
 0x246   :  { %10604 = vmatpush3.bf16.msra.mxu0 %v10603_v27  ;;  %10574 = vmatprep.subr.bf16.mxu1 %v10573_v10  ;;  %v934_v27 = vld [vmem:[%s17919_s26 + $0x9a8] sm:$0xff]  ;;  %v10587_v10 = vpack.c.bf16 %v684_v9, %v679_v17  ;;  %v10593_v57 = vpack.c.bf16 %v784_v44, %v779_v37  ;;  %v1039_v4 = vld [vmem:[%s17919_s26 + $0xcf0] sm:$0xff]  ;;  %v1044_v45 = vld [vmem:[%s17919_s26 + $0xd18] sm:$0xff]  ;;  %v10663_v17 = vpack.c.bf16 %v1114_v2, %v1109_v1 }
 0x247   :  { %10606 = vmatprep.subr.bf16.mxu0 %v10605_v13  ;;  %v694_v13 = vld [vmem:[%s17919_s26 + $0x228] sm:$0xff]  ;;  %v10621_v39 = vpack.c.bf16 %v934_v27, %v929_v25  ;;  %v959_v9 = vld [vmem:[%s17919_s26 + $0xa70] sm:$0xff]  ;;  %v964_v21 = vld [vmem:[%s17919_s26 + $0xa98] sm:$0xff]  ;;  %v10633_v22 = vpack.c.bf16 %v1044_v45, %v1039_v4 }
 0x248   :  { %v1054_v25 = vld [vmem:[%s17919_s26 + $0xd68] sm:$0xff]  ;;  %v1059_v35 = vld [vmem:[%s17919_s26 + $0xd90] sm:$0xff]  ;;  %v1064_v37 = vld [vmem:[%s17919_s26 + $0xdb8] sm:$0xff] }
 0x249   :  { %10576 = vmatpush3.bf16.msra.mxu1 %v10575_v38  ;;  %v939_v38 = vld [vmem:[%s17919_s26 + $0x9d0] sm:$0xff]  ;;  %v974_v28 = vld [vmem:[%s17919_s26 + $0xae8] sm:$0xff]  ;;  %v1084_v2 = vld [vmem:[%s17919_s26 + $0xe58] sm:$0xff] }
 0x24a   :  { %10608 = vmatpush3.bf16.msra.mxu0 %v10607_v40  ;;  %10578 = vmatprep.subr.bf16.mxu1 %v10577_v41  ;;  %v944_v40 = vld [vmem:[%s17919_s26 + $0x9f8] sm:$0xff]  ;;  %v10591_v41 = vpack.c.bf16 %v694_v13, %v689_v31  ;;  %v10637_v13 = vpack.c.bf16 %v1054_v25, %v1049_v24  ;;  %v1219_v44 = vld [vmem:[%s17919_s26 + $0x1290] sm:$0xff]  ;;  %v1094_v24 = vld [vmem:[%s17919_s26 + $0xea8] sm:$0xff] }
 0x24b   :  { %10610 = vmatprep.subr.bf16.mxu0 %v10609_v46  ;;  %v704_v46 = vld [vmem:[%s17919_s26 + $0x278] sm:$0xff]  ;;  %v10625_v48 = vpack.c.bf16 %v944_v40, %v939_v38  ;;  %v1079_v1 = vld [vmem:[%s17919_s26 + $0xe30] sm:$0xff]  ;;  %v1249_v25 = vld [vmem:[%s17919_s26 + $0x1380] sm:$0xff] }
 0x24c   :  { %v1239_v4 = vld [vmem:[%s17919_s26 + $0x1330] sm:$0xff]  ;;  %v1244_v45 = vld [vmem:[%s17919_s26 + $0x1358] sm:$0xff] }
 0x24d   :  { %10580 = vmatpush3.bf16.msra.mxu1 %v10579_v55  ;;  %v1189_v55 = vld [vmem:[%s17919_s26 + $0x11a0] sm:$0xff] }
 0x24e   :  { %10612 = vmatpush3.bf16.msra.mxu0 %v10611_v19  ;;  %10582 = vmatprep.subr.bf16.mxu1 %v10581_v56  ;;  %v1194_v19 = vld [vmem:[%s17919_s26 + $0x11c8] sm:$0xff]  ;;  %v10595_v56 = vpack.c.bf16 %v704_v46, %v699_v58  ;;  %v1139_v58 = vld [vmem:[%s17919_s26 + $0x1010] sm:$0xff] }
 0x24f   :  { %10614 = vmatprep.subr.bf16.mxu0 %v10613_v61  ;;  %v954_v61 = vld [vmem:[%s17919_s26 + $0xa48] sm:$0xff]  ;;  %v10661_v62 = vpack.c.bf16 %v1194_v19, %v1189_v55  ;;  %v10675_v19 = vpack.c.bf16 %v1144_v47, %v1139_v58  ;;  %v1184_v58 = vld [vmem:[%s17919_s26 + $0x1178] sm:$0xff]  ;;  %v2477_v47 = vld [vmem:[#allocation2 + $0x30] sm:$0xff] }
 0x251   :  { %10584 = vmatpush3.bf16.msra.mxu1 %v10583_v7  ;;  %v10631_v7 = vpack.c.bf16 %v954_v61, %v949_v43  ;;  %v1149_v43 = vld [vmem:[%s17919_s26 + $0x1060] sm:$0xff]  ;;  %v10677_v61 = vpack.c.bf16 %v1234_v54, %v1229_v53  ;;  %v1274_v54 = vld [vmem:[%s17919_s26 + $0x1448] sm:$0xff] }
 0x252   :  { %10616 = vmatpush3.bf16.msra.mxu0 %v10615_v8  ;;  %10586 = vmatprep.subr.bf16.mxu1 %v10585_v16  ;;  %v1199_v8 = vld [vmem:[%s17919_s26 + $0x11f0] sm:$0xff]  ;;  %v1204_v16 = vld [vmem:[%s17919_s26 + $0x1218] sm:$0xff]  ;;  %v1269_v53 = vld [vmem:[%s17919_s26 + $0x1420] sm:$0xff] }
 0x253   :  { %10618 = vmatprep.subr.bf16.mxu0 %v10617_v20  ;;  %v1119_v20 = vld [vmem:[%s17919_s26 + $0xf70] sm:$0xff]  ;;  %v10665_v27 = vpack.c.bf16 %v1204_v16, %v1199_v8  ;;  %v10649_v16 = vpack.c.bf16 %v1084_v2, %v1079_v1  ;;  %v1284_v1 = vld [vmem:[%s17919_s26 + $0x1498] sm:$0xff] }
 0x254   :  { %v10667_v31 = vpack.c.bf16 %v1124_v23, %v1119_v20  ;;  %v10681_v20 = vpack.c.bf16 %v1244_v45, %v1239_v4  ;;  %v1089_v23 = vld [vmem:[%s17919_s26 + $0xe80] sm:$0xff]  ;;  %v2481_v45 = vld [vmem:[#allocation2 + $0x50] sm:$0xff] }
 0x255   :  { %10588 = vmatpush3.bf16.msra.mxu1 %v10587_v10  ;;  %v1209_v10 = vld [vmem:[%s17919_s26 + $0x1240] sm:$0xff] }
 0x256   :  { %10620 = vmatpush3.bf16.msra.mxu0 %v10619_v29  ;;  %10590 = vmatprep.subr.bf16.mxu1 %v10589_v30  ;;  %v1214_v29 = vld [vmem:[%s17919_s26 + $0x1268] sm:$0xff]  ;;  %v10635_v30 = vpack.c.bf16 %v964_v21, %v959_v9  ;;  %v1004_v9 = vld [vmem:[%s17919_s26 + $0xbd8] sm:$0xff]  ;;  %v1159_v21 = vld [vmem:[%s17919_s26 + $0x10b0] sm:$0xff] }
 0x257   :  { %10622 = vmatprep.subr.bf16.mxu0 %v10621_v39  ;;  %v1129_v39 = vld [vmem:[%s17919_s26 + $0xfc0] sm:$0xff] }
 0x259   :  { %10592 = vmatpush3.bf16.msra.mxu1 %v10591_v41  ;;  %v10641_v41 = vpack.c.bf16 %v1064_v37, %v1059_v35  ;;  %v1259_v35 = vld [vmem:[%s17919_s26 + $0x13d0] sm:$0xff]  ;;  %v1264_v37 = vld [vmem:[%s17919_s26 + $0x13f8] sm:$0xff] }
 0x25a   :  { %10624 = vmatpush3.bf16.msra.mxu0 %v10623_v42  ;;  %10594 = vmatprep.subr.bf16.mxu1 %v10593_v57  ;;  %v979_v42 = vld [vmem:[%s17919_s26 + $0xb10] sm:$0xff]  ;;  %v984_v57 = vld [vmem:[%s17919_s26 + $0xb38] sm:$0xff] }
 0x25b   :  { %10626 = vmatprep.subr.bf16.mxu0 %v10625_v48  ;;  %v1069_v48 = vld [vmem:[%s17919_s26 + $0xde0] sm:$0xff]  ;;  %v10643_v55 = vpack.c.bf16 %v984_v57, %v979_v42  ;;  %v10689_v42 = vpack.c.bf16 %v1264_v37, %v1259_v35  ;;  %v1179_v57 = vld [vmem:[%s17919_s26 + $0x1150] sm:$0xff] }
 0x25c   :  { %v2511_v37 = vld [vmem:[#allocation2 + $0x140] sm:$0xff] }
 0x25d   :  { %10596 = vmatpush3.bf16.msra.mxu1 %v10595_v56  ;;  %v10645_v56 = vpack.c.bf16 %v1074_v49, %v1069_v48  ;;  %v10691_v49 = vpack.c.bf16 %v1184_v58, %v1179_v57 }
 0x25e   :  { %10628 = vmatpush3.bf16.msra.mxu0 %v10627_v51  ;;  %10630 = vmatprep.subr.bf16.mxu1 %v10629_v59  ;;  %v989_v51 = vld [vmem:[%s17919_s26 + $0xb60] sm:$0xff]  ;;  %v994_v59 = vld [vmem:[%s17919_s26 + $0xb88] sm:$0xff] }
 0x25f   :  { %10662 = vmatprep.subr.bf16.mxu0 %v10661_v62  ;;  %v1154_v62 = vld [vmem:[%s17919_s26 + $0x1088] sm:$0xff] }
 0x260   :  { %2181 = vmatmul.mubr.f32.vlgmr.msra.gmra.mrb[6].mxu1 %v14092_v34  ;;  %v969_v34 = vld [vmem:[%s17919_s26 + $0xac0] sm:$0xff]  ;;  %v10679_v8 = vpack.c.bf16 %v1154_v62, %v1149_v43  ;;  %v1279_v62 = vld [vmem:[%s17919_s26 + $0x1470] sm:$0xff] }
 0x261   :  { %2251 = vmatmul.mubr.f32.vlgmr.msra.gmra.mrb[8].mxu0 %v14504_v26  ;;  %10632 = vmatpush3.bf16.msra.mxu1 %v10631_v7  ;;  %v10669_v26 = vpack.c.bf16 %v1214_v29, %v1209_v10  ;;  %v10639_v38 = vpack.c.bf16 %v974_v28, %v969_v34  ;;  %v10647_v7 = vpack.c.bf16 %v994_v59, %v989_v51  ;;  %v1169_v34 = vld [vmem:[%s17919_s26 + $0x1100] sm:$0xff]  ;;  %v2482_v59 = vld [vmem:[#allocation2 + $0x58] sm:$0xff] }
 0x262   :  { %2320 = vmatprep.mubr.f32.mxu1 %v14531_v33  ;;  %10664 = vmatpush3.bf16.msra.mxu0 %v10663_v17  ;;  %v1134_v33 = vld [vmem:[%s17919_s26 + $0xfe8] sm:$0xff]  ;;  %v999_v17 = vld [vmem:[%s17919_s26 + $0xbb0] sm:$0xff]  ;;  %v10694_v51 = vpack.c.bf16 %v1274_v54, %v1269_v53  ;;  %v2487_v43 = vld [vmem:[#allocation2 + $0x80] sm:$0xff] }
 0x263   :  { %2390 = vmatprep.mubr.f32.mxu0 %v14939_v52  ;;  %10634 = vmatprep.subr.bf16.mxu1 %v10633_v22  ;;  %v1224_v52 = vld [vmem:[%s17919_s26 + $0x12b8] sm:$0xff]  ;;  %v10671_v40 = vpack.c.bf16 %v1134_v33, %v1129_v39  ;;  %v10651_v10 = vpack.c.bf16 %v1004_v9, %v999_v17  ;;  %v1174_v39 = vld [vmem:[%s17919_s26 + $0x1128] sm:$0xff]  ;;  %v10730_v4 = vpack.c.bf16 %v2487_v43, %v2482_v59  ;;  %v2497_v17 = vld [vmem:[#allocation2 + $0xd0] sm:$0xff] }
 0x264   :  { %10666 = vmatprep.subr.bf16.mxu0 %v10665_v27  ;;  %v10673_v46 = vpack.c.bf16 %v1224_v52, %v1219_v44  ;;  %v1164_v22 = vld [vmem:[%s17919_s26 + $0x10d8] sm:$0xff]  ;;  %v1254_v27 = vld [vmem:[%s17919_s26 + $0x13a8] sm:$0xff]  ;;  %v10687_v52 = vpack.c.bf16 %v1174_v39, %v1169_v34  ;;  %v1289_v9 = vld [vmem:[%s17919_s26 + $0x14c0] sm:$0xff] }
 0x265   :  { %10636 = vmatpush3.bf16.msra.mxu1 %v10635_v30  ;;  %v10683_v29 = vpack.c.bf16 %v1164_v22, %v1159_v21  ;;  %v10653_v30 = vpack.c.bf16 %v1094_v24, %v1089_v23  ;;  %v10685_v28 = vpack.c.bf16 %v1254_v27, %v1249_v25  ;;  %v1104_v33 = vld [vmem:[%s17919_s26 + $0xef8] sm:$0xff]  ;;  %v2496_v22 = vld [vmem:[#allocation2 + $0xc8] sm:$0xff]  ;;  %v1299_v25 = vld [vmem:[%s17919_s26 + $0x1510] sm:$0xff] }
 0x266   :  { %10668 = vmatpush3.bf16.msra.mxu0 %v10667_v31  ;;  %10638 = vmatprep.subr.bf16.mxu1 %v10637_v13  ;;  %v1009_v31 = vld [vmem:[%s17919_s26 + $0xc00] sm:$0xff]  ;;  %v1014_v13 = vld [vmem:[%s17919_s26 + $0xc28] sm:$0xff]  ;;  %v2502_v24 = vld [vmem:[#allocation2 + $0xf8] sm:$0xff] }
 0x267   :  { %10670 = vmatprep.subr.bf16.mxu0 %v10669_v26  ;;  %v1099_v26 = vld [vmem:[%s17919_s26 + $0xed0] sm:$0xff]  ;;  %v10655_v44 = vpack.c.bf16 %v1014_v13, %v1009_v31  ;;  %v1304_v27 = vld [vmem:[%s17919_s26 + $0x1538] sm:$0xff]  ;;  %v2512_v34 = vld [vmem:[#allocation2 + $0x148] sm:$0xff] }
 0x268   :  { %v2506_v31 = vld [vmem:[#allocation2 + $0x118] sm:$0xff]  ;;  %v10703_v13 = vpack.c.bf16 %v1304_v27, %v1299_v25  ;;  %v1309_v39 = vld [vmem:[%s17919_s26 + $0x1560] sm:$0xff]  ;;  %v2537_v53 = vld [vmem:[#allocation2 + $0x210] sm:$0xff] }
 0x269   :  { %10640 = vmatpush3.bf16.msra.mxu1 %v10639_v38  ;;  %v10657_v38 = vpack.c.bf16 %v1104_v33, %v1099_v26  ;;  %v1314_v26 = vld [vmem:[%s17919_s26 + $0x1588] sm:$0xff]  ;;  %v1329_v54 = vld [vmem:[%s17919_s26 + $0x1600] sm:$0xff]  ;;  %v2562_v25 = vld [vmem:[#allocation2 + $0x2d8] sm:$0xff] }
 0x26a   :  { %10672 = vmatpush3.bf16.msra.mxu0 %v10671_v40  ;;  %10642 = vmatprep.subr.bf16.mxu1 %v10641_v41  ;;  %v1019_v40 = vld [vmem:[%s17919_s26 + $0xc50] sm:$0xff]  ;;  %v1024_v41 = vld [vmem:[%s17919_s26 + $0xc78] sm:$0xff]  ;;  %v2536_v59 = vld [vmem:[#allocation2 + $0x208] sm:$0xff] }
 0x26b   :  { %10674 = vmatprep.subr.bf16.mxu0 %v10673_v46  ;;  %v2472_v46 = vld [vmem:[#allocation2 + $0x8] sm:$0xff]  ;;  %v10659_v48 = vpack.c.bf16 %v1024_v41, %v1019_v40  ;;  %v2527_v40 = vld [vmem:[#allocation2 + $0x1c0] sm:$0xff]  ;;  %v1319_v41 = vld [vmem:[%s17919_s26 + $0x15b0] sm:$0xff] }
 0x26c   :  { %v2567_v27 = vld [vmem:[#allocation2 + $0x300] sm:$0xff] }
 0x26d   :  { %10644 = vmatpush3.bf16.msra.mxu1 %v10643_v55  ;;  %v10726_v55 = vpack.c.bf16 %v2477_v47, %v2472_v46  ;;  %v2521_v46 = vld [vmem:[#allocation2 + $0x190] sm:$0xff]  ;;  %v2526_v47 = vld [vmem:[#allocation2 + $0x1b8] sm:$0xff] }
 0x26e   :  { %10676 = vmatpush3.bf16.msra.mxu0 %v10675_v19  ;;  %10646 = vmatprep.subr.bf16.mxu1 %v10645_v56  ;;  %v2471_v19 = vld [vmem:[#allocation2] sm:$0xff]  ;;  %v2476_v56 = vld [vmem:[#allocation2 + $0x28] sm:$0xff] }
 0x26f   :  { %10678 = vmatprep.subr.bf16.mxu0 %v10677_v61  ;;  %v13289_v61 = vmov 0.0|0.0   ;;  %v10728_v2 = vpack.c.bf16 %v2476_v56, %v2471_v19  ;;  %v10748_v19 = vpack.c.bf16 %v2526_v47, %v2521_v46  ;;  %v2581_v46 = vld [vmem:[#allocation2 + $0x370] sm:$0xff]  ;;  %v2586_v47 = vld [vmem:[#allocation2 + $0x398] sm:$0xff] }
 0x271   :  { %10648 = vmatpush3.bf16.msra.mxu1 %v10647_v7  ;;  %v2486_v7 = vld [vmem:[#allocation2 + $0x78] sm:$0xff] }
 0x272   :  { %10680 = vmatpush3.bf16.msra.mxu0 %v10679_v8  ;;  %10650 = vmatprep.subr.bf16.mxu1 %v10649_v16  ;;  %v10697_v8 = vpack.c.bf16 %v1284_v1, %v1279_v62  ;;  %v2492_v16 = vld [vmem:[#allocation2 + $0xa8] sm:$0xff]  ;;  %v10732_v21 = vpack.c.bf16 %v2486_v7, %v2481_v45  ;;  %v2542_v62 = vld [vmem:[#allocation2 + $0x238] sm:$0xff]  ;;  %v2547_v1 = vld [vmem:[#allocation2 + $0x260] sm:$0xff] }
 0x273   :  { %10682 = vmatprep.subr.bf16.mxu0 %v10681_v20  ;;  %v2491_v20 = vld [vmem:[#allocation2 + $0xa0] sm:$0xff]  ;;  %v10754_v7 = vpack.c.bf16 %v2547_v1, %v2542_v62  ;;  %v2601_v62 = vld [vmem:[#allocation2 + $0x410] sm:$0xff]  ;;  %v2606_v1 = vld [vmem:[#allocation2 + $0x438] sm:$0xff] }
 0x275   :  { %10652 = vmatpush3.bf16.msra.mxu1 %v10651_v10  ;;  %v10736_v10 = vpack.c.bf16 %v2496_v22, %v2491_v20 }
 0x276   :  { %10684 = vmatpush3.bf16.msra.mxu0 %v10683_v29  ;;  %10654 = vmatprep.subr.bf16.mxu1 %v10653_v30  ;;  %v2501_v30 = vld [vmem:[#allocation2 + $0xf0] sm:$0xff] }
 0x277   :  { %10686 = vmatprep.subr.bf16.mxu0 %v10685_v28  ;;  %v2517_v28 = vld [vmem:[#allocation2 + $0x170] sm:$0xff]  ;;  %v10740_v33 = vpack.c.bf16 %v2506_v31, %v2501_v30  ;;  %v10762_v31 = vpack.c.bf16 %v2567_v27, %v2562_v25 }
 0x278   :  { %v10742_v35 = vpack.c.bf16 %v2517_v28, %v2512_v34  ;;  %v2566_v34 = vld [vmem:[#allocation2 + $0x2f8] sm:$0xff]  ;;  %v2797_v25 = vld [vmem:[#allocation2 + $0xa30] sm:$0xff] }
 0x279   :  { %10656 = vmatpush3.bf16.msra.mxu1 %v10655_v44  ;;  %v2516_v44 = vld [vmem:[#allocation2 + $0x168] sm:$0xff] }
 0x27a   :  { %10688 = vmatpush3.bf16.msra.mxu0 %v10687_v52  ;;  %10658 = vmatprep.subr.bf16.mxu1 %v10657_v38  ;;  %v10706_v52 = vpack.c.bf16 %v1314_v26, %v1309_v39  ;;  %v2522_v38 = vld [vmem:[#allocation2 + $0x198] sm:$0xff]  ;;  %v10744_v57 = vpack.c.bf16 %v2516_v44, %v2511_v37  ;;  %v2572_v39 = vld [vmem:[#allocation2 + $0x328] sm:$0xff]  ;;  %v2577_v26 = vld [vmem:[#allocation2 + $0x350] sm:$0xff] }
 0x27b   :  { %10690 = vmatprep.subr.bf16.mxu0 %v10689_v42  ;;  %v1324_v42 = vld [vmem:[%s17919_s26 + $0x15d8] sm:$0xff]  ;;  %v10746_v58 = vpack.c.bf16 %v2527_v40, %v2522_v38  ;;  %v10766_v44 = vpack.c.bf16 %v2577_v26, %v2572_v39  ;;  %v2576_v38 = vld [vmem:[#allocation2 + $0x348] sm:$0xff] }
 0x27c   :  { %v2806_v39 = vld [vmem:[#allocation2 + $0xa78] sm:$0xff] }
 0x27d   :  { %10660 = vmatpush3.bf16.msra.mxu1 %v10659_v48  ;;  %v10709_v48 = vpack.c.bf16 %v1324_v42, %v1319_v41  ;;  %v2582_v41 = vld [vmem:[#allocation2 + $0x378] sm:$0xff]  ;;  %v2587_v42 = vld [vmem:[#allocation2 + $0x3a0] sm:$0xff] }
 0x27e   :  { %10692 = vmatpush3.bf16.msra.mxu0 %v10691_v49  ;;  %10693 = vmatprep.subr.bf16.mxu1 %v13289_v61  ;;  %v2532_v49 = vld [vmem:[#allocation2 + $0x1e8] sm:$0xff] }
 0x27f   :  { %10727 = vmatprep.subr.bf16.mxu0 %v10726_v55  ;;  %v1334_v55 = vld [vmem:[%s17919_s26 + $0x1628] sm:$0xff]  ;;  %v10750_v56 = vpack.c.bf16 %v2537_v53, %v2532_v49  ;;  %v2597_v49 = vld [vmem:[#allocation2 + $0x3f0] sm:$0xff]  ;;  %v10772_v53 = vpack.c.bf16 %v2586_v47, %v2581_v46 }
 0x280   :  { %2321 = vmatmul.mubr.f32.vlgmr.msra.gmra.mrb[8].mxu1 %v14912_v36  ;;  %v1294_v36 = vld [vmem:[%s17919_s26 + $0x14e8] sm:$0xff]  ;;  %v10712_v43 = vpack.c.bf16 %v1334_v55, %v1329_v54  ;;  %v2591_v55 = vld [vmem:[#allocation2 + $0x3c0] sm:$0xff] }
 0x281   :  { %2391 = vmatmul.mubr.f32.vlgmr.msra.gmra.mrb[10].mxu0 %v15317_v63  ;;  %10695 = vmatpush1.bf16.msra.mxu1 %v10694_v51  ;;  %v10734_v63 = vpack.c.bf16 %v2497_v17, %v2492_v16  ;;  %v10700_v23 = vpack.c.bf16 %v1294_v36, %v1289_v9  ;;  %v2531_v51 = vld [vmem:[#allocation2 + $0x1e0] sm:$0xff]  ;;  %v2546_v16 = vld [vmem:[#allocation2 + $0x258] sm:$0xff]  ;;  %v2552_v9 = vld [vmem:[#allocation2 + $0x288] sm:$0xff] }
 0x282   :  { %9135 = vmatprep.mubr.msk.f32.mxu1 %vm1402_vm4, %v15329_v6  ;;  %10696 = vmatprep.subr.bf16.mxu1 %v13289_v61  ;;  %v2507_v6 = vld [vmem:[#allocation2 + $0x120] sm:$0xff]  ;;  %v10752_v45 = vpack.c.bf16 %v2536_v59, %v2531_v51  ;;  %v2557_v36 = vld [vmem:[#allocation2 + $0x2b0] sm:$0xff]  ;;  %v2832_v47 = vld [vmem:[#allocation2 + $0xb48] sm:$0xff] }
 0x283   :  { %10729 = vmatpush1.bf16.msra.mxu0 %v10728_v2  ;;  %v10738_v29 = vpack.c.bf16 %v2507_v6, %v2502_v24  ;;  %v1339_v2 = vld [vmem:[%s17919_s26 + $0x1650] sm:$0xff]  ;;  %v10758_v22 = vpack.c.bf16 %v2557_v36, %v2552_v9  ;;  %v2556_v24 = vld [vmem:[#allocation2 + $0x2a8] sm:$0xff]  ;;  %v2607_v51 = vld [vmem:[#allocation2 + $0x440] sm:$0xff] }
 0x284   :  { %10731 = vmatprep.subr.bf16.mxu0 %v10730_v4  ;;  %v1344_v4 = vld [vmem:[%s17919_s26 + $0x1678] sm:$0xff] }
 0x285   :  { %10698 = vmatpush1.bf16.msra.mxu1 %v10697_v8  ;;  %v2541_v8 = vld [vmem:[#allocation2 + $0x230] sm:$0xff]  ;;  %v10715_v17 = vpack.c.bf16 %v1344_v4, %v1339_v2  ;;  %v2612_v2 = vld [vmem:[#allocation2 + $0x468] sm:$0xff] }
 0x286   :  { %10699 = vmatprep.subr.bf16.mxu1 %v13289_v61  ;;  %v10756_v20 = vpack.c.bf16 %v2546_v16, %v2541_v8  ;;  %v2617_v4 = vld [vmem:[#allocation2 + $0x490] sm:$0xff]  ;;  %v2616_v8 = vld [vmem:[#allocation2 + $0x488] sm:$0xff]  ;;  %v2622_v16 = vld [vmem:[#allocation2 + $0x4b8] sm:$0xff] }
 0x287   :  { %10733 = vmatpush1.bf16.msra.mxu0 %v10732_v21  ;;  %v1349_v21 = vld [vmem:[%s17919_s26 + $0x16a0] sm:$0xff] }
 0x288   :  { %10735 = vmatprep.subr.bf16.mxu0 %v10734_v63  ;;  %v1354_v63 = vld [vmem:[%s17919_s26 + $0x16c8] sm:$0xff] }
 0x289   :  { %10701 = vmatpush1.bf16.msra.mxu1 %v10700_v23  ;;  %v2551_v23 = vld [vmem:[#allocation2 + $0x280] sm:$0xff]  ;;  %v10718_v6 = vpack.c.bf16 %v1354_v63, %v1349_v21  ;;  %v2621_v21 = vld [vmem:[#allocation2 + $0x4b0] sm:$0xff]  ;;  %v2626_v63 = vld [vmem:[#allocation2 + $0x4d8] sm:$0xff] }
 0x28a   :  { %10702 = vmatprep.subr.bf16.mxu1 %v13289_v61  ;;  %v10760_v30 = vpack.c.bf16 %v2556_v24, %v2551_v23  ;;  %v10788_v23 = vpack.c.bf16 %v2626_v63, %v2621_v21  ;;  %v2642_v21 = vld [vmem:[#allocation2 + $0x558] sm:$0xff]  ;;  %v2647_v63 = vld [vmem:[#allocation2 + $0x580] sm:$0xff] }
 0x28b   :  { %10737 = vmatpush1.bf16.msra.mxu0 %v10736_v10  ;;  %v1359_v10 = vld [vmem:[%s17919_s26 + $0x16f0] sm:$0xff] }
 0x28c   :  { %10739 = vmatprep.subr.bf16.mxu0 %v10738_v29  ;;  %v1364_v29 = vld [vmem:[%s17919_s26 + $0x1718] sm:$0xff] }
 0x28d   :  { %10704 = vmatpush1.bf16.msra.mxu1 %v10703_v13  ;;  %v2561_v13 = vld [vmem:[#allocation2 + $0x2d0] sm:$0xff]  ;;  %v10721_v28 = vpack.c.bf16 %v1364_v29, %v1359_v10  ;;  %v2791_v10 = vld [vmem:[#allocation2 + $0xa00] sm:$0xff]  ;;  %v2796_v29 = vld [vmem:[#allocation2 + $0xa28] sm:$0xff] }
 0x28e   :  { %10705 = vmatprep.subr.bf16.mxu1 %v13289_v61  ;;  %v10764_v37 = vpack.c.bf16 %v2566_v34, %v2561_v13  ;;  %v2807_v13 = vld [vmem:[#allocation2 + $0xa80] sm:$0xff] }
 0x28f   :  { %10741 = vmatpush1.bf16.msra.mxu0 %v10740_v33  ;;  %v1369_v33 = vld [vmem:[%s17919_s26 + $0x1740] sm:$0xff] }
 0x290   :  { %10743 = vmatprep.subr.bf16.mxu0 %v10742_v35  ;;  %v1374_v35 = vld [vmem:[%s17919_s26 + $0x1768] sm:$0xff] }
 0x291   :  { %10707 = vmatpush1.bf16.msra.mxu1 %v10706_v52  ;;  %v2571_v52 = vld [vmem:[#allocation2 + $0x320] sm:$0xff]  ;;  %v10724_v40 = vpack.c.bf16 %v1374_v35, %v1369_v33  ;;  %v2812_v33 = vld [vmem:[#allocation2 + $0xaa8] sm:$0xff]  ;;  %v2817_v35 = vld [vmem:[#allocation2 + $0xad0] sm:$0xff] }
 0x292   :  { %10708 = vmatprep.subr.bf16.mxu1 %v13289_v61 }
 0x293   :  { %10745 = vmatpush1.bf16.msra.mxu0 %v10744_v57  ;;  %v10768_v57 = vpack.c.bf16 %v2576_v38, %v2571_v52  ;;  %v2816_v52 = vld [vmem:[#allocation2 + $0xac8] sm:$0xff] }
 0x294   :  { %10747 = vmatprep.subr.bf16.mxu0 %v10746_v58  ;;  %v10770_v58 = vpack.c.bf16 %v2587_v42, %v2582_v41  ;;  %v2827_v41 = vld [vmem:[#allocation2 + $0xb20] sm:$0xff] }
 0x295   :  { %10710 = vmatpush1.bf16.msra.mxu1 %v10709_v48  ;;  %v2592_v48 = vld [vmem:[#allocation2 + $0x3c8] sm:$0xff] }
 0x296   :  { %10711 = vmatprep.subr.bf16.mxu1 %v13289_v61  ;;  %v10774_v54 = vpack.c.bf16 %v2597_v49, %v2592_v48  ;;  %v2837_v48 = vld [vmem:[#allocation2 + $0xb70] sm:$0xff] }
 0x297   :  { %10749 = vmatpush1.bf16.msra.mxu0 %v10748_v19  ;;  %v2596_v19 = vld [vmem:[#allocation2 + $0x3e8] sm:$0xff]  ;;  %v10870_v49 = vpack.c.bf16 %v2837_v48, %v2832_v47 }
 0x298   :  { %10751 = vmatprep.subr.bf16.mxu0 %v10750_v56  ;;  %v2602_v56 = vld [vmem:[#allocation2 + $0x418] sm:$0xff]  ;;  %v10776_v59 = vpack.c.bf16 %v2596_v19, %v2591_v55 }
 0x299   :  { %10713 = vmatpush1.bf16.msra.mxu1 %v10712_v43  ;;  %v10778_v43 = vpack.c.bf16 %v2607_v51, %v2602_v56  ;;  %v2842_v19 = vld [vmem:[#allocation2 + $0xb98] sm:$0xff]  ;;  %v2841_v56 = vld [vmem:[#allocation2 + $0xb90] sm:$0xff] }
 0x29a   :  { %10714 = vmatprep.subr.bf16.mxu1 %v13289_v61  ;;  %v2474_v51 = vld [vmem:[#allocation2 + $0x18] sm:$0xff] }
 0x29b   :  { %10753 = vmatpush1.bf16.msra.mxu0 %v10752_v45  ;;  %v10780_v45 = vpack.c.bf16 %v2606_v1, %v2601_v62  ;;  %v16039_v62 = vld [vmem:[%s17921_s0] sm:$0x1f] }
 0x29c   :  { %10755 = vmatprep.subr.bf16.mxu0 %v10754_v7  ;;  %v2611_v7 = vld [vmem:[#allocation2 + $0x460] sm:$0xff]  ;;  %v1380_v1 = vrot.slane %v16039_v62, %v14049_v14 }
 0x29d   :  { %10716 = vmatpush1.bf16.msra.mxu1 %v10715_v17  ;;  %v2627_v17 = vld [vmem:[#allocation2 + $0x4e0] sm:$0xff]  ;;  %v10784_v9 = vpack.c.bf16 %v2616_v8, %v2611_v7 }
 0x29e   :  { %10717 = vmatprep.subr.bf16.mxu1 %v13289_v61  ;;  %v10786_v36 = vpack.c.bf16 %v2627_v17, %v2622_v16  ;;  %v2631_v16 = vld [vmem:[#allocation2 + $0x500] sm:$0xff]  ;;  %v2636_v17 = vld [vmem:[#allocation2 + $0x528] sm:$0xff] }
 0x29f   :  { %10757 = vmatpush1.bf16.msra.mxu0 %v10756_v20  ;;  %v2632_v20 = vld [vmem:[#allocation2 + $0x508] sm:$0xff] }
 0x2a0   :  { %10759 = vmatprep.subr.bf16.mxu0 %v10758_v22  ;;  %v2637_v22 = vld [vmem:[#allocation2 + $0x530] sm:$0xff] }
 0x2a1   :  { %10719 = vmatpush1.bf16.msra.mxu1 %v10718_v6  ;;  %v10790_v24 = vpack.c.bf16 %v2637_v22, %v2632_v20  ;;  %v2792_v6 = vld [vmem:[#allocation2 + $0xa08] sm:$0xff] }
 0x2a2   :  { %10720 = vmatprep.subr.bf16.mxu1 %v13289_v61  ;;  %v10854_v27 = vpack.c.bf16 %v2797_v25, %v2792_v6  ;;  %v10794_v6 = vpack.c.bf16 %v2647_v63, %v2642_v21  ;;  %v2641_v25 = vld [vmem:[#allocation2 + $0x550] sm:$0xff] }
 0x2a3   :  { %10761 = vmatpush1.bf16.msra.mxu0 %v10760_v30  ;;  %v10856_v30 = vpack.c.bf16 %v2796_v29, %v2791_v10  ;;  %v2652_v29 = vld [vmem:[#allocation2 + $0x5a8] sm:$0xff] }
 0x2a4   :  { %10763 = vmatprep.subr.bf16.mxu0 %v10762_v31  ;;  %v2802_v31 = vld [vmem:[#allocation2 + $0xa58] sm:$0xff] }
 0x2a5   :  { %10722 = vmatpush1.bf16.msra.mxu1 %v10721_v28  ;;  %v10858_v34 = vpack.c.bf16 %v2807_v13, %v2802_v31  ;;  %v2801_v28 = vld [vmem:[#allocation2 + $0xa50] sm:$0xff] }
 0x2a6   :  { %10723 = vmatprep.subr.bf16.mxu1 %v13289_v61  ;;  %v10860_v26 = vpack.c.bf16 %v2806_v39, %v2801_v28  ;;  %v2656_v28 = vld [vmem:[#allocation2 + $0x5c8] sm:$0xff]  ;;  %v2662_v39 = vld [vmem:[#allocation2 + $0x5f8] sm:$0xff] }
 0x2a7   :  { %10765 = vmatpush1.bf16.msra.mxu0 %v10764_v37  ;;  %v10862_v37 = vpack.c.bf16 %v2817_v35, %v2812_v33 }
 0x2a8   :  { %10767 = vmatprep.subr.bf16.mxu0 %v10766_v44  ;;  %v2811_v44 = vld [vmem:[#allocation2 + $0xaa0] sm:$0xff] }
 0x2a9   :  { %10725 = vmatpush1.bf16.msra.mxu1 %v10724_v40  ;;  %v10864_v38 = vpack.c.bf16 %v2816_v52, %v2811_v44  ;;  %v2822_v40 = vld [vmem:[#allocation2 + $0xaf8] sm:$0xff]  ;;  %v2672_v52 = vld [vmem:[#allocation2 + $0x648] sm:$0xff] }
 0x2aa   :  { %10855 = vmatprep.subr.bf16.mxu1 %v10854_v27  ;;  %v10866_v42 = vpack.c.bf16 %v2827_v41, %v2822_v40  ;;  %v2646_v27 = vld [vmem:[#allocation2 + $0x578] sm:$0xff] }
 0x2ab   :  { %10769 = vmatpush1.bf16.msra.mxu0 %v10768_v57  ;;  %v2821_v57 = vld [vmem:[#allocation2 + $0xaf0] sm:$0xff]  ;;  %v10796_v31 = vpack.c.bf16 %v2646_v27, %v2641_v25  ;;  %v2666_v44 = vld [vmem:[#allocation2 + $0x618] sm:$0xff] }
 0x2ac   :  { %2461 = vmatmul.mubr.f32.vlgmr.msra.gmra.mrb[10].mxu1 %v15595_v5  ;;  %10771 = vmatprep.subr.bf16.mxu0 %v10770_v58  ;;  %v10782_v5 = vpack.c.bf16 %v2617_v4, %v2612_v2  ;;  %v2826_v58 = vld [vmem:[#allocation2 + $0xb18] sm:$0xff]  ;;  %v1384_v2 = vrot.slane %v16039_v62, %v14041_v12  ;;  %v1392_v4 = vrot.slane %v16039_v62, %v14052_v15 }
 0x2ad   :  { %3083 = vmatprep.mubr.f32.mxu1 %v13287_v0  ;;  %10857 = vmatpush1.bf16.msra.mxu1 %v10856_v30  ;;  %v10868_v46 = vpack.c.bf16 %v2826_v58, %v2821_v57  ;;  %v2657_v30 = vld [vmem:[#allocation2 + $0x5d0] sm:$0xff]  ;;  %v2676_v57 = vld [vmem:[#allocation2 + $0x668] sm:$0xff]  ;;  %v2682_v58 = vld [vmem:[#allocation2 + $0x698] sm:$0xff] }
 0x2ae   :  { %10859 = vmatprep.subr.bf16.mxu1 %v10858_v34  ;;  %v10798_v13 = vpack.c.bf16 %v2657_v30, %v2652_v29  ;;  %v2651_v34 = vld [vmem:[#allocation2 + $0x5a0] sm:$0xff]  ;;  %v2722_v29 = vld [vmem:[#allocation2 + $0x7d8] sm:$0xff] }
 0x2af   :  { %10773 = vmatpush1.bf16.msra.mxu0 %v10772_v53  ;;  %v2831_v53 = vld [vmem:[#allocation2 + $0xb40] sm:$0xff]  ;;  %v10800_v33 = vpack.c.bf16 %v2656_v28, %v2651_v34 }
 0x2b0   :  { %10775 = vmatprep.subr.bf16.mxu0 %v10774_v54  ;;  %v2836_v54 = vld [vmem:[#allocation2 + $0xb68] sm:$0xff]  ;;  %v2727_v30 = vld [vmem:[#allocation2 + $0x800] sm:$0xff] }
 0x2b1   :  { %10861 = vmatpush1.bf16.msra.mxu1 %v10860_v26  ;;  %v10872_v55 = vpack.c.bf16 %v2836_v54, %v2831_v53  ;;  %v2667_v26 = vld [vmem:[#allocation2 + $0x620] sm:$0xff]  ;;  %v2686_v53 = vld [vmem:[#allocation2 + $0x6b8] sm:$0xff]  ;;  %v2692_v54 = vld [vmem:[#allocation2 + $0x6e8] sm:$0xff]  ;;  %v10826_v28 = vpack.c.bf16 %v2727_v30, %v2722_v29 }
 0x2b2   :  { %10863 = vmatprep.subr.bf16.mxu1 %v10862_v37  ;;  %v10802_v35 = vpack.c.bf16 %v2667_v26, %v2662_v39  ;;  %v2661_v37 = vld [vmem:[#allocation2 + $0x5f0] sm:$0xff]  ;;  %v2726_v26 = vld [vmem:[#allocation2 + $0x7f8] sm:$0xff] }
 0x2b3   :  { %10777 = vmatpush1.bf16.msra.mxu0 %v10776_v59  ;;  %v2479_v59 = vld [vmem:[#allocation2 + $0x40] sm:$0xff]  ;;  %v10804_v40 = vpack.c.bf16 %v2666_v44, %v2661_v37  ;;  %v2721_v39 = vld [vmem:[#allocation2 + $0x7d0] sm:$0xff] }
 0x2b4   :  { %10779 = vmatprep.subr.bf16.mxu0 %v10778_v43  ;;  %v10874_v43 = vpack.c.bf16 %v2479_v59, %v2474_v51  ;;  %v2691_v51 = vld [vmem:[#allocation2 + $0x6e0] sm:$0xff]  ;;  %v2696_v59 = vld [vmem:[#allocation2 + $0x708] sm:$0xff]  ;;  %v2737_v37 = vld [vmem:[#allocation2 + $0x850] sm:$0xff]  ;;  %v10828_v44 = vpack.c.bf16 %v2726_v26, %v2721_v39 }
 0x2b5   :  { %10865 = vmatpush1.bf16.msra.mxu1 %v10864_v38  ;;  %v2677_v38 = vld [vmem:[#allocation2 + $0x670] sm:$0xff]  ;;  %v2475_v39 = vld [vmem:[#allocation2 + $0x20] sm:$0xff]  ;;  %v2480_v26 = vld [vmem:[#allocation2 + $0x48] sm:$0xff] }
 0x2b6   :  { %10867 = vmatprep.subr.bf16.mxu1 %v10866_v42  ;;  %v10806_v41 = vpack.c.bf16 %v2677_v38, %v2672_v52  ;;  %v2671_v42 = vld [vmem:[#allocation2 + $0x640] sm:$0xff] }
 0x2b7   :  { %10781 = vmatpush1.bf16.msra.mxu0 %v10780_v45  ;;  %v10808_v47 = vpack.c.bf16 %v2676_v57, %v2671_v42  ;;  %v2731_v38 = vld [vmem:[#allocation2 + $0x820] sm:$0xff] }
 0x2b8   :  { %10783 = vmatprep.subr.bf16.mxu0 %v10782_v5  ;;  %v2747_v42 = vld [vmem:[#allocation2 + $0x8a0] sm:$0xff] }
 0x2b9   :  { %10869 = vmatpush1.bf16.msra.mxu1 %v10868_v46  ;;  %v2687_v46 = vld [vmem:[#allocation2 + $0x6c0] sm:$0xff] }
 0x2ba   :  { %10871 = vmatprep.subr.bf16.mxu1 %v10870_v49  ;;  %v10810_v48 = vpack.c.bf16 %v2687_v46, %v2682_v58  ;;  %v2681_v49 = vld [vmem:[#allocation2 + $0x690] sm:$0xff] }
 0x2bb   :  { %10785 = vmatpush1.bf16.msra.mxu0 %v10784_v9  ;;  %v2741_v46 = vld [vmem:[#allocation2 + $0x870] sm:$0xff] }
 0x2bc   :  { %10787 = vmatprep.subr.bf16.mxu0 %v10786_v36 }
 0x2bd   :  { %10873 = vmatpush1.bf16.msra.mxu1 %v10872_v55  ;;  %v2697_v55 = vld [vmem:[#allocation2 + $0x710] sm:$0xff] }
 0x2be   :  { %3039 = vmatprep.subr.mxu1 %v2842_v19  ;;  %v10812_v19 = vpack.c.bf16 %v2686_v53, %v2681_v49  ;;  %v2757_v49 = vld [vmem:[#allocation2 + $0x8f0] sm:$0xff] }
 0x2bf   :  { %10789 = vmatpush1.bf16.msra.mxu0 %v10788_v23  ;;  %v10792_v23 = vpack.c.bf16 %v2636_v17, %v2631_v16  ;;  %v2717_v16 = vld [vmem:[#allocation2 + $0x7b0] sm:$0xff] }
 0x2c0   :  { %10791 = vmatprep.subr.bf16.mxu0 %v10790_v24 }
 0x2c1   :  { %3040 = vmatpush1.msra.mxu1 %v2841_v56  ;;  %v10814_v56 = vpack.c.bf16 %v2697_v55, %v2692_v54  ;;  %v2751_v55 = vld [vmem:[#allocation2 + $0x8c0] sm:$0xff] }
 0x2c2   :  { %10875 = vmatprep.subr.bf16.mxu1 %v10874_v43  ;;  %v2702_v43 = vld [vmem:[#allocation2 + $0x738] sm:$0xff] }
 0x313   :  { %v1756_v45 = vpop.f32.mrb[4].mxu1 }
 0x314   :  { %v12998_v5 = vadd.f32 %v1756_v45, %v1380_v1  ;;  %v16047_v7 = vpop.f32.mrb[6].mxu0  ;;  %v1758_v8 = vpop.f32.mrb[5].mxu1  ;;  %v2707_v1 = vld [vmem:[#allocation2 + $0x760] sm:$0xff]  ;;  %v2701_v45 = vld [vmem:[#allocation2 + $0x730] sm:$0xff] }
 0x315   :  { %v12999_v9 = vadd.f32 %v1758_v8, %v1384_v2  ;;  %v2113_v36 = vpop.f32.mrb[7].mxu0  ;;  %v10816_v2 = vpack.c.bf16 %v2696_v59, %v2691_v51  ;;  %v2712_v8 = vld [vmem:[#allocation2 + $0x788] sm:$0xff]  ;;  %v2767_v51 = vld [vmem:[#allocation2 + $0x940] sm:$0xff] }
 0x316   :  { %v13001_v20 = vadd.f32 %v2113_v36, %v1392_v4  ;;  %v16051_v24 = vmax.f32 %v12998_v5, 0.0  ;;  %v10818_v4 = vpack.c.bf16 %v2707_v1, %v2702_v43  ;;  %v2706_v5 = vld [vmem:[#allocation2 + $0x758] sm:$0xff]  ;;  %v2761_v1 = vld [vmem:[#allocation2 + $0x910] sm:$0xff] }
 0x317   :  { %v16049_v22 = vmax.f32 %v12999_v9, 0.0  ;;  %v1396_v9 = vrot.slane %v16039_v62, %v14850_v60  ;;  %v10820_v36 = vpack.c.bf16 %v2706_v5, %v2701_v45  ;;  %v2777_v45 = vld [vmem:[#allocation2 + $0x990] sm:$0xff] }
 0x318   :  { %v16053_v10 = vmax.f32 %v13001_v20, 0.0  ;;  %v10822_v20 = vpack.c.bf16 %v2717_v16, %v2712_v8  ;;  %v2771_v16 = vld [vmem:[#allocation2 + $0x960] sm:$0xff] }
 0x319   :  { %2941 = vmatprep.mubr.f32.mxu0 %v16049_v22 }
 0x31a   :  { %2942 = vmatmul.mubr.f32.vlgmr.msra.gmra.mrb[12].mxu0 %v16051_v24 }
 0x31b   :  { %10793 = vmatpush1.bf16.msra.mxu0 %v10792_v23  ;;  %3012 = vmatprep.mubr.f32.mxu0 %v16053_v10  ;;  %v2711_v23 = vld [vmem:[#allocation2 + $0x780] sm:$0xff] }
 0x31c   :  { %10795 = vmatprep.subr.bf16.mxu0 %v10794_v6  ;;  %v2716_v6 = vld [vmem:[#allocation2 + $0x7a8] sm:$0xff] }
 0x31d   :  { %v10824_v34 = vpack.c.bf16 %v2716_v6, %v2711_v23  ;;  %v2781_v23 = vld [vmem:[#allocation2 + $0x9b0] sm:$0xff]  ;;  %v2786_v6 = vld [vmem:[#allocation2 + $0x9d8] sm:$0xff] }
 0x31e   :  { %v10852_v30 = vpack.c.bf16 %v2786_v6, %v2781_v23 }
 0x31f   :  { %10797 = vmatpush1.bf16.msra.mxu0 %v10796_v31 }
 0x320   :  { %10799 = vmatprep.subr.bf16.mxu0 %v10798_v13 }
 0x323   :  { %10801 = vmatpush1.bf16.msra.mxu0 %v10800_v33 }
 0x324   :  { %10803 = vmatprep.subr.bf16.mxu0 %v10802_v35  ;;  %v2732_v35 = vld [vmem:[#allocation2 + $0x828] sm:$0xff] }
 0x325   :  { %v10830_v52 = vpack.c.bf16 %v2737_v37, %v2732_v35 }
 0x327   :  { %10805 = vmatpush1.bf16.msra.mxu0 %v10804_v40  ;;  %v2736_v40 = vld [vmem:[#allocation2 + $0x848] sm:$0xff] }
 0x328   :  { %10807 = vmatprep.subr.bf16.mxu0 %v10806_v41  ;;  %v2742_v41 = vld [vmem:[#allocation2 + $0x878] sm:$0xff]  ;;  %v10832_v57 = vpack.c.bf16 %v2736_v40, %v2731_v38  ;;  %v11024_v40 = vpack.c.bf16 %v2480_v26, %v2475_v39  ;;  %v2715_v39 = vld [vmem:[#allocation2 + $0x7a0] sm:$0xff]  ;;  %v2720_v26 = vld [vmem:[#allocation2 + $0x7c8] sm:$0xff] }
 0x329   :  { %v10834_v58 = vpack.c.bf16 %v2747_v42, %v2742_v41 }
 0x32b   :  { %10809 = vmatpush1.bf16.msra.mxu0 %v10808_v47  ;;  %v2746_v47 = vld [vmem:[#allocation2 + $0x898] sm:$0xff] }
 0x32c   :  { %10811 = vmatprep.subr.bf16.mxu0 %v10810_v48  ;;  %v2752_v48 = vld [vmem:[#allocation2 + $0x8c8] sm:$0xff]  ;;  %v10836_v53 = vpack.c.bf16 %v2746_v47, %v2741_v46 }
 0x32d   :  { %v10838_v54 = vpack.c.bf16 %v2757_v49, %v2752_v48  ;;  %v2580_v46 = vld [vmem:[#allocation2 + $0x368] sm:$0xff]  ;;  %v2495_v49 = vld [vmem:[#allocation2 + $0xc0] sm:$0xff] }
 0x32f   :  { %10813 = vmatpush1.bf16.msra.mxu0 %v10812_v19  ;;  %v2756_v19 = vld [vmem:[#allocation2 + $0x8e8] sm:$0xff] }
 0x330   :  { %10815 = vmatprep.subr.bf16.mxu0 %v10814_v56  ;;  %v2762_v56 = vld [vmem:[#allocation2 + $0x918] sm:$0xff]  ;;  %v10840_v59 = vpack.c.bf16 %v2756_v19, %v2751_v55 }
 0x331   :  { %v10842_v43 = vpack.c.bf16 %v2767_v51, %v2762_v56  ;;  %v2590_v55 = vld [vmem:[#allocation2 + $0x3b8] sm:$0xff]  ;;  %v2505_v51 = vld [vmem:[#allocation2 + $0x110] sm:$0xff] }
 0x333   :  { %10817 = vmatpush1.bf16.msra.mxu0 %v10816_v2  ;;  %v9193_v17 = vpop.f32.mrb[6].mxu1  ;;  %v2766_v2 = vld [vmem:[#allocation2 + $0x938] sm:$0xff] }
 0x334   :  { %v9228_v21 = vpop.f32.mrb[8].mxu0  ;;  %v9194_v63 = vpop.f32.mrb[7].mxu1  ;;  %10819 = vmatprep.subr.bf16.mxu0 %v10818_v4  ;;  %v2772_v4 = vld [vmem:[#allocation2 + $0x968] sm:$0xff]  ;;  %v10844_v5 = vpack.c.bf16 %v2766_v2, %v2761_v1 }
 0x335   :  { %v9195_v25 = vadd.f32 %v9194_v63, %v9193_v17  ;;  %v9229_v27 = vpop.f32.mrb[9].mxu0  ;;  %v10846_v8 = vpack.c.bf16 %v2777_v45, %v2772_v4  ;;  %v2776_v17 = vld [vmem:[#allocation2 + $0x988] sm:$0xff]  ;;  %v1388_v63 = vrot.slane %v16039_v62, %v14443_v50  ;;  %v2565_v62 = vld [vmem:[#allocation2 + $0x2f0] sm:$0xff]  ;;  %v2515_v45 = vld [vmem:[#allocation2 + $0x160] sm:$0xff] }
 0x336   :  { %v9230_v31 = vadd.f32 %v9229_v27, %v9228_v21  ;;  %v10848_v21 = vpack.c.bf16 %v2776_v17, %v2771_v16  ;;  %v2560_v27 = vld [vmem:[#allocation2 + $0x2c8] sm:$0xff]  ;;  %v2610_v16 = vld [vmem:[#allocation2 + $0x458] sm:$0xff] }
 0x337   :  { %v2183_v13 = vadd.f32 %v9195_v25, %v1396_v9  ;;  %10821 = vmatpush1.bf16.msra.mxu0 %v10820_v36  ;;  %v2782_v9 = vld [vmem:[#allocation2 + $0x9b8] sm:$0xff]  ;;  %v2787_v36 = vld [vmem:[#allocation2 + $0x9e0] sm:$0xff]  ;;  %v2600_v1 = vld [vmem:[#allocation2 + $0x408] sm:$0xff] }
 0x338   :  { %10823 = vmatprep.subr.bf16.mxu0 %v10822_v20  ;;  %v10850_v20 = vpack.c.bf16 %v2787_v36, %v2782_v9  ;;  %v2555_v25 = vld [vmem:[#allocation2 + $0x2a0] sm:$0xff]  ;;  %v2525_v36 = vld [vmem:[#allocation2 + $0x1b0] sm:$0xff] }
 0x339   :  { %v16060_v33 = vadd.f32 %v9230_v31, %v2183_v13  ;;  %v13000_v31 = vadd.f32 %v16047_v7, %v1388_v63  ;;  %v2485_v7 = vld [vmem:[#allocation2 + $0x70] sm:$0xff]  ;;  %v2615_v63 = vld [vmem:[#allocation2 + $0x480] sm:$0xff] }
 0x33b   :  { %10825 = vmatpush1.bf16.msra.mxu0 %v10824_v34  ;;  %v16066_v41 = vmax.f32 %v13000_v31, 0.0 }
 0x33c   :  { %10827 = vmatprep.subr.bf16.mxu0 %v10826_v28  ;;  %v11022_v28 = vpack.c.bf16 %v2560_v27, %v2555_v25  ;;  %v2535_v25 = vld [vmem:[#allocation2 + $0x200] sm:$0xff]  ;;  %v2540_v27 = vld [vmem:[#allocation2 + $0x228] sm:$0xff] }
 0x33d   :  { %v11048_v31 = vpack.c.bf16 %v2540_v27, %v2535_v25  ;;  %v2499_v25 = vld [vmem:[#allocation2 + $0xe0] sm:$0xff] }
 0x33e   :  { %v2675_v27 = vld [vmem:[#allocation2 + $0x660] sm:$0xff] }
 0x33f   :  { %10829 = vmatpush1.bf16.msra.mxu0 %v10828_v44  ;;  %v2570_v44 = vld [vmem:[#allocation2 + $0x318] sm:$0xff] }
 0x340   :  { %10831 = vmatprep.subr.bf16.mxu0 %v10830_v52  ;;  %v11026_v42 = vpack.c.bf16 %v2570_v44, %v2565_v62  ;;  %v2635_v62 = vld [vmem:[#allocation2 + $0x520] sm:$0xff]  ;;  %v2640_v44 = vld [vmem:[#allocation2 + $0x548] sm:$0xff] }
 0x343   :  { %10833 = vmatpush1.bf16.msra.mxu0 %v10832_v57  ;;  %v2490_v57 = vld [vmem:[#allocation2 + $0x98] sm:$0xff] }
 0x344   :  { %10835 = vmatprep.subr.bf16.mxu0 %v10834_v58  ;;  %v2575_v58 = vld [vmem:[#allocation2 + $0x340] sm:$0xff]  ;;  %v11028_v48 = vpack.c.bf16 %v2490_v57, %v2485_v7  ;;  %v2645_v7 = vld [vmem:[#allocation2 + $0x570] sm:$0xff]  ;;  %v2650_v57 = vld [vmem:[#allocation2 + $0x598] sm:$0xff] }
 0x347   :  { %10837 = vmatpush1.bf16.msra.mxu0 %v10836_v53  ;;  %v2500_v53 = vld [vmem:[#allocation2 + $0xe8] sm:$0xff] }
 0x348   :  { %10839 = vmatprep.subr.bf16.mxu0 %v10838_v54  ;;  %v2585_v54 = vld [vmem:[#allocation2 + $0x390] sm:$0xff]  ;;  %v11032_v19 = vpack.c.bf16 %v2500_v53, %v2495_v49  ;;  %v2655_v49 = vld [vmem:[#allocation2 + $0x5c0] sm:$0xff]  ;;  %v2660_v53 = vld [vmem:[#allocation2 + $0x5e8] sm:$0xff] }
 0x349   :  { %v11034_v56 = vpack.c.bf16 %v2590_v55, %v2585_v54  ;;  %v2745_v54 = vld [vmem:[#allocation2 + $0x890] sm:$0xff]  ;;  %v2750_v55 = vld [vmem:[#allocation2 + $0x8b8] sm:$0xff] }
 0x34b   :  { %10841 = vmatpush1.bf16.msra.mxu0 %v10840_v59  ;;  %v2510_v59 = vld [vmem:[#allocation2 + $0x138] sm:$0xff] }
 0x34c   :  { %10843 = vmatprep.subr.bf16.mxu0 %v10842_v43  ;;  %v2595_v43 = vld [vmem:[#allocation2 + $0x3e0] sm:$0xff]  ;;  %v11036_v2 = vpack.c.bf16 %v2510_v59, %v2505_v51  ;;  %v11064_v59 = vpack.c.bf16 %v2660_v53, %v2655_v49  ;;  %v2700_v53 = vld [vmem:[#allocation2 + $0x728] sm:$0xff] }
 0x34d   :  { %v11038_v4 = vpack.c.bf16 %v2600_v1, %v2595_v43  ;;  %v2484_v43 = vld [vmem:[#allocation2 + $0x68] sm:$0xff]  ;;  %v2489_v1 = vld [vmem:[#allocation2 + $0x90] sm:$0xff]  ;;  %v2695_v49 = vld [vmem:[#allocation2 + $0x700] sm:$0xff] }
 0x34f   :  { %10845 = vmatpush1.bf16.msra.mxu0 %v10844_v5  ;;  %v2520_v5 = vld [vmem:[#allocation2 + $0x188] sm:$0xff] }
 0x350   :  { %10847 = vmatprep.subr.bf16.mxu0 %v10846_v8  ;;  %v2605_v8 = vld [vmem:[#allocation2 + $0x430] sm:$0xff]  ;;  %v11040_v17 = vpack.c.bf16 %v2520_v5, %v2515_v45  ;;  %v11066_v45 = vpack.c.bf16 %v2750_v55, %v2745_v54 }
 0x351   :  { %v11042_v9 = vpack.c.bf16 %v2610_v16, %v2605_v8  ;;  %v2665_v5 = vld [vmem:[#allocation2 + $0x610] sm:$0xff]  ;;  %v2670_v8 = vld [vmem:[#allocation2 + $0x638] sm:$0xff] }
 0x352   :  { %v2785_v55 = vld [vmem:[#allocation2 + $0x9d0] sm:$0xff] }
 0x353   :  { %10849 = vmatpush1.bf16.msra.mxu0 %v10848_v21  ;;  %v9263_v29 = vpop.f32.mrb[8].mxu1  ;;  %v2530_v21 = vld [vmem:[#allocation2 + $0x1d8] sm:$0xff] }
 0x354   :  { %v9298_v13 = vpop.f32.mrb[10].mxu0  ;;  %v9264_v34 = vpop.f32.mrb[9].mxu1  ;;  %10851 = vmatprep.subr.bf16.mxu0 %v10850_v20  ;;  %v2620_v20 = vld [vmem:[#allocation2 + $0x4a8] sm:$0xff]  ;;  %v11044_v23 = vpack.c.bf16 %v2530_v21, %v2525_v36  ;;  %v10878_v21 = vpack.c.bf16 %v2489_v1, %v2484_v43  ;;  %v11080_v43 = vpack.c.bf16 %v2700_v53, %v2695_v49  ;;  %v2589_v53 = vld [vmem:[#allocation2 + $0x3b0] sm:$0xff] }
 0x355   :  { %v9265_v35 = vadd.f32 %v9264_v34, %v9263_v29  ;;  %v9299_v37 = vpop.f32.mrb[11].mxu0  ;;  %v11046_v6 = vpack.c.bf16 %v2620_v20, %v2615_v63  ;;  %v2625_v29 = vld [vmem:[#allocation2 + $0x4d0] sm:$0xff]  ;;  %v2483_v63 = vld [vmem:[#allocation2 + $0x60] sm:$0xff]  ;;  %v2488_v20 = vld [vmem:[#allocation2 + $0x88] sm:$0xff] }
 0x356   :  { %v9300_v52 = vadd.f32 %v9299_v37, %v9298_v13  ;;  %v2545_v34 = vld [vmem:[#allocation2 + $0x250] sm:$0xff]  ;;  %v11054_v37 = vpack.c.bf16 %v2720_v26, %v2715_v39  ;;  %v2498_v39 = vld [vmem:[#allocation2 + $0xd8] sm:$0xff]  ;;  %v2524_v1 = vld [vmem:[#allocation2 + $0x1a8] sm:$0xff] }
 0x357   :  { %v2323_v38 = vadd.f32 %v9265_v35, %v16060_v33  ;;  %10853 = vmatpush1.bf16.msra.mxu0 %v10852_v30  ;;  %v11030_v33 = vpack.c.bf16 %v2580_v46, %v2575_v58  ;;  %v2630_v30 = vld [vmem:[#allocation2 + $0x4f8] sm:$0xff]  ;;  %v2735_v58 = vld [vmem:[#allocation2 + $0x840] sm:$0xff]  ;;  %v2740_v46 = vld [vmem:[#allocation2 + $0x868] sm:$0xff] }
 0x358   :  { %11023 = vmatprep.subr.bf16.mxu0 %v11022_v28  ;;  %v11050_v13 = vpack.c.bf16 %v2630_v30, %v2625_v29  ;;  %v2550_v28 = vld [vmem:[#allocation2 + $0x278] sm:$0xff]  ;;  %v2680_v29 = vld [vmem:[#allocation2 + $0x688] sm:$0xff]  ;;  %v10880_v30 = vpack.c.bf16 %v2488_v20, %v2483_v63  ;;  %v2539_v20 = vld [vmem:[#allocation2 + $0x220] sm:$0xff] }
 0x359   :  { %v16068_v47 = vadd.f32 %v9300_v52, %v2323_v38  ;;  %v11052_v35 = vpack.c.bf16 %v2550_v28, %v2545_v34  ;;  %v2725_v52 = vld [vmem:[#allocation2 + $0x7f0] sm:$0xff]  ;;  %v2730_v38 = vld [vmem:[#allocation2 + $0x818] sm:$0xff]  ;;  %v11072_v26 = vpack.c.bf16 %v2680_v29, %v2675_v27  ;;  %v2544_v27 = vld [vmem:[#allocation2 + $0x248] sm:$0xff] }
 0x35a   :  { %3013 = vmatmul.mubr.f32.vlgmr.msra.gmra.mrb[12].mxu0 %v16066_v41  ;;  %v2493_v28 = vld [vmem:[#allocation2 + $0xb0] sm:$0xff]  ;;  %v2534_v63 = vld [vmem:[#allocation2 + $0x1f8] sm:$0xff]  ;;  %v2584_v49 = vld [vmem:[#allocation2 + $0x388] sm:$0xff] }
 0x35b   :  { %11025 = vmatpush3.bf16.msra.mxu0 %v11024_v40  ;;  %3367 = vmatprep.mubr.f32.mxu0 %v16049_v22  ;;  %v11056_v40 = vpack.c.bf16 %v2640_v44, %v2635_v62  ;;  %v2685_v44 = vld [vmem:[#allocation2 + $0x6b0] sm:$0xff] }
 0x35c   :  { %11027 = vmatprep.subr.bf16.mxu0 %v11026_v42  ;;  %v11058_v42 = vpack.c.bf16 %v2730_v38, %v2725_v52  ;;  %v2690_v52 = vld [vmem:[#allocation2 + $0x6d8] sm:$0xff]  ;;  %v10884_v38 = vpack.c.bf16 %v2498_v39, %v2493_v28  ;;  %v2549_v29 = vld [vmem:[#allocation2 + $0x270] sm:$0xff]  ;;  %v2559_v39 = vld [vmem:[#allocation2 + $0x2c0] sm:$0xff] }
 0x35d   :  { %v2554_v28 = vld [vmem:[#allocation2 + $0x298] sm:$0xff] }
 0x35f   :  { %11029 = vmatpush3.bf16.msra.mxu0 %v11028_v48  ;;  %v11060_v48 = vpack.c.bf16 %v2650_v57, %v2645_v7  ;;  %v2503_v7 = vld [vmem:[#allocation2 + $0x100] sm:$0xff]  ;;  %v2508_v57 = vld [vmem:[#allocation2 + $0x128] sm:$0xff] }
 0x360   :  { %11031 = vmatprep.subr.bf16.mxu0 %v11030_v33  ;;  %v11062_v33 = vpack.c.bf16 %v2740_v46, %v2735_v58  ;;  %v11076_v58 = vpack.c.bf16 %v2690_v52, %v2685_v44  ;;  %v2514_v46 = vld [vmem:[#allocation2 + $0x158] sm:$0xff]  ;;  %v10888_v54 = vpack.c.bf16 %v2508_v57, %v2503_v7  ;;  %v2564_v44 = vld [vmem:[#allocation2 + $0x2e8] sm:$0xff]  ;;  %v2569_v52 = vld [vmem:[#allocation2 + $0x310] sm:$0xff] }
 0x361   :  { %v2574_v7 = vld [vmem:[#allocation2 + $0x338] sm:$0xff]  ;;  %v2579_v57 = vld [vmem:[#allocation2 + $0x360] sm:$0xff] }
 0x363   :  { %11033 = vmatpush3.bf16.msra.mxu0 %v11032_v19  ;;  %v2473_v19 = vld [vmem:[#allocation2 + $0x10] sm:$0xff] }
 0x364   :  { %11035 = vmatprep.subr.bf16.mxu0 %v11034_v56  ;;  %v2478_v56 = vld [vmem:[#allocation2 + $0x38] sm:$0xff] }
 0x365   :  { %v10876_v16 = vpack.c.bf16 %v2478_v56, %v2473_v19  ;;  %v2790_v19 = vld [vmem:[#allocation2 + $0x9f8] sm:$0xff] }
 0x367   :  { %11037 = vmatpush3.bf16.msra.mxu0 %v11036_v2 }
 0x368   :  { %11039 = vmatprep.subr.bf16.mxu0 %v11038_v4 }
 0x36b   :  { %11041 = vmatpush3.bf16.msra.mxu0 %v11040_v17  ;;  %v2755_v17 = vld [vmem:[#allocation2 + $0x8e0] sm:$0xff] }
 0x36c   :  { %11043 = vmatprep.subr.bf16.mxu0 %v11042_v9  ;;  %v2760_v9 = vld [vmem:[#allocation2 + $0x908] sm:$0xff] }
 0x36f   :  { %11045 = vmatpush3.bf16.msra.mxu0 %v11044_v23  ;;  %v11068_v23 = vpack.c.bf16 %v2670_v8, %v2665_v5  ;;  %v2710_v5 = vld [vmem:[#allocation2 + $0x778] sm:$0xff] }
 0x370   :  { %11047 = vmatprep.subr.bf16.mxu0 %v11046_v6  ;;  %v2494_v6 = vld [vmem:[#allocation2 + $0xb8] sm:$0xff] }
 0x371   :  { %v10882_v34 = vpack.c.bf16 %v2499_v25, %v2494_v6  ;;  %v10898_v6 = vpack.c.bf16 %v2539_v20, %v2534_v63  ;;  %v2533_v25 = vld [vmem:[#allocation2 + $0x1f0] sm:$0xff]  ;;  %v2619_v63 = vld [vmem:[#allocation2 + $0x4a0] sm:$0xff] }
 0x373   :  { %11049 = vmatpush3.bf16.msra.mxu0 %v11048_v31  ;;  %v2765_v31 = vld [vmem:[#allocation2 + $0x930] sm:$0xff] }
 0x374   :  { %11051 = vmatprep.subr.bf16.mxu0 %v11050_v13  ;;  %v2770_v13 = vld [vmem:[#allocation2 + $0x958] sm:$0xff] }
 0x375   :  { %v11074_v62 = vpack.c.bf16 %v2770_v13, %v2765_v31  ;;  %v10902_v31 = vpack.c.bf16 %v2549_v29, %v2544_v27  ;;  %v2543_v13 = vld [vmem:[#allocation2 + $0x240] sm:$0xff]  ;;  %v2629_v27 = vld [vmem:[#allocation2 + $0x4f0] sm:$0xff] }
 0x377   :  { %11053 = vmatpush3.bf16.msra.mxu0 %v11052_v35  ;;  %v2504_v35 = vld [vmem:[#allocation2 + $0x108] sm:$0xff] }
 0x378   :  { %11055 = vmatprep.subr.bf16.mxu0 %v11054_v37  ;;  %v2509_v37 = vld [vmem:[#allocation2 + $0x130] sm:$0xff] }
 0x37a   :  { %3368 = vmatmul.mubr.f32.vlgmr.msra.gmra.mrb[14].mxu0 %v16051_v24 }
 0x37b   :  { %11057 = vmatpush3.bf16.msra.mxu0 %v11056_v40  ;;  %3437 = vmatprep.mubr.f32.mxu0 %v16053_v10  ;;  %v2775_v40 = vld [vmem:[#allocation2 + $0x980] sm:$0xff] }
 0x37c   :  { %11059 = vmatprep.subr.bf16.mxu0 %v11058_v42  ;;  %v2780_v42 = vld [vmem:[#allocation2 + $0x9a8] sm:$0xff] }
 0x37f   :  { %11061 = vmatpush3.bf16.msra.mxu0 %v11060_v48  ;;  %v2462_v51 = vpop.f32.mrb[10].mxu1  ;;  %v2519_v48 = vld [vmem:[#allocation2 + $0x180] sm:$0xff] }
 0x380   :  { %v2463_v2 = vadd.f32 %v2462_v51, %v16068_v47  ;;  %v2464_v4 = vpop.f32.mrb[11].mxu1  ;;  %11063 = vmatprep.subr.bf16.mxu0 %v11062_v33  ;;  %v11070_v47 = vpack.c.bf16 %v2760_v9, %v2755_v17  ;;  %v11078_v33 = vpack.c.bf16 %v2780_v42, %v2775_v40  ;;  %v10890_v56 = vpack.c.bf16 %v2519_v48, %v2514_v46  ;;  %v2513_v51 = vld [vmem:[#allocation2 + $0x150] sm:$0xff]  ;;  %v2523_v17 = vld [vmem:[#allocation2 + $0x1a0] sm:$0xff]  ;;  %v2528_v9 = vld [vmem:[#allocation2 + $0x1c8] sm:$0xff] }
 0x381   :  { %v11082_v4 = vpack.c.bf16 %v2790_v19, %v2785_v55  ;;  %v10910_v40 = vpack.c.bf16 %v2569_v52, %v2564_v44  ;;  %v2563_v42 = vld [vmem:[#allocation2 + $0x2e0] sm:$0xff]  ;;  %v10914_v46 = vpack.c.bf16 %v2579_v57, %v2574_v7  ;;  %v2573_v48 = vld [vmem:[#allocation2 + $0x330] sm:$0xff]  ;;  %v10918_v55 = vpack.c.bf16 %v2589_v53, %v2584_v49 }
 0x382   :  { %v16075_v36 = vmax.f32 %v2463_v2, 0.0  ;;  %v2529_v2 = vld [vmem:[#allocation2 + $0x1d0] sm:$0xff]  ;;  %v2583_v19 = vld [vmem:[#allocation2 + $0x380] sm:$0xff] }
 0x383   :  { %11065 = vmatpush3.bf16.msra.mxu0 %v11064_v59  ;;  %v2518_v59 = vld [vmem:[#allocation2 + $0x178] sm:$0xff]  ;;  %v2649_v7 = vld [vmem:[#allocation2 + $0x590] sm:$0xff]  ;;  %v3569_v57 = vld [vmem:[%s17885_s7 + $0x1c0] sm:$0xff] }
 0x384   :  { %9136 = vmatmul.mubr.msk.f32.vlgmr.msra.gmra.mrb[12].mxu1 %vm2873_vm5, %v16075_v36  ;;  %11067 = vmatprep.subr.bf16.mxu0 %v11066_v45  ;;  %v2705_v45 = vld [vmem:[#allocation2 + $0x750] sm:$0xff]  ;;  %v10892_v8 = vpack.c.bf16 %v2518_v59, %v2513_v51  ;;  %v2594_v51 = vld [vmem:[#allocation2 + $0x3d8] sm:$0xff]  ;;  %v2599_v59 = vld [vmem:[#allocation2 + $0x400] sm:$0xff] }
 0x385   :  { %10877 = vmatpush1.bf16.msra.mxu1 %v10876_v16  ;;  %3154 = vmatprep.mubr.f32.mxu1 %v16049_v22  ;;  %v10886_v22 = vpack.c.bf16 %v2509_v37, %v2504_v35  ;;  %v10894_v16 = vpack.c.bf16 %v2529_v2, %v2524_v1  ;;  %v10906_v35 = vpack.c.bf16 %v2559_v39, %v2554_v28  ;;  %v2553_v37 = vld [vmem:[#allocation2 + $0x290] sm:$0xff]  ;;  %v2639_v28 = vld [vmem:[#allocation2 + $0x540] sm:$0xff] }
 0x386   :  { %10879 = vmatprep.subr.bf16.mxu1 %v10878_v21  ;;  %v11084_v21 = vpack.c.bf16 %v2710_v5, %v2705_v45  ;;  %v10922_v1 = vpack.c.bf16 %v2599_v59, %v2594_v51  ;;  %v2593_v2 = vld [vmem:[#allocation2 + $0x3d0] sm:$0xff]  ;;  %v2604_v45 = vld [vmem:[#allocation2 + $0x428] sm:$0xff]  ;;  %v2659_v51 = vld [vmem:[#allocation2 + $0x5e0] sm:$0xff] }
 0x387   :  { %11069 = vmatpush3.bf16.msra.mxu0 %v11068_v23  ;;  %v10896_v23 = vpack.c.bf16 %v2528_v9, %v2523_v17  ;;  %v2609_v5 = vld [vmem:[#allocation2 + $0x450] sm:$0xff]  ;;  %v2603_v17 = vld [vmem:[#allocation2 + $0x420] sm:$0xff]  ;;  %v2608_v9 = vld [vmem:[#allocation2 + $0x448] sm:$0xff] }
 0x388   :  { %11071 = vmatprep.subr.bf16.mxu0 %v11070_v47  ;;  %v2538_v47 = vld [vmem:[#allocation2 + $0x218] sm:$0xff]  ;;  %v10928_v20 = vpack.c.bf16 %v2608_v9, %v2603_v17  ;;  %v3563_v39 = vld [vmem:[%s17885_s7 + $0x190] sm:$0xff]  ;;  %v2664_v9 = vld [vmem:[#allocation2 + $0x608] sm:$0xff] }
 0x389   :  { %10881 = vmatpush1.bf16.msra.mxu1 %v10880_v30  ;;  %v10900_v30 = vpack.c.bf16 %v2538_v47, %v2533_v25  ;;  %v2618_v25 = vld [vmem:[#allocation2 + $0x498] sm:$0xff]  ;;  %v2624_v47 = vld [vmem:[#allocation2 + $0x4c8] sm:$0xff]  ;;  %v3575_v59 = vld [vmem:[%s17885_s7 + $0x1f0] sm:$0xff] }
 0x38a   :  { %10883 = vmatprep.subr.bf16.mxu1 %v10882_v34  ;;  %v2548_v34 = vld [vmem:[#allocation2 + $0x268] sm:$0xff]  ;;  %v2658_v17 = vld [vmem:[#allocation2 + $0x5d8] sm:$0xff] }
 0x38b   :  { %11073 = vmatpush3.bf16.msra.mxu0 %v11072_v26  ;;  %v10904_v26 = vpack.c.bf16 %v2548_v34, %v2543_v13  ;;  %v2628_v13 = vld [vmem:[#allocation2 + $0x4e8] sm:$0xff]  ;;  %v2634_v34 = vld [vmem:[#allocation2 + $0x518] sm:$0xff] }
 0x38c   :  { %11075 = vmatprep.subr.bf16.mxu0 %v11074_v62  ;;  %v2558_v62 = vld [vmem:[#allocation2 + $0x2b8] sm:$0xff] }
 0x38d   :  { %10885 = vmatpush1.bf16.msra.mxu1 %v10884_v38  ;;  %v10908_v38 = vpack.c.bf16 %v2558_v62, %v2553_v37  ;;  %v3515_v37 = vld [vmem:[%s17885_s7 + $0x10] sm:$0xff]  ;;  %v3518_v62 = vld [vmem:[%s17885_s7 + $0x28] sm:$0xff] }
 0x38e   :  { %10887 = vmatprep.subr.bf16.mxu1 %v10886_v22  ;;  %v2568_v22 = vld [vmem:[#allocation2 + $0x308] sm:$0xff]  ;;  %v11251_v52 = vpack.c.bf16 %v3518_v62, %v3515_v37 }
 0x38f   :  { %11077 = vmatpush3.bf16.msra.mxu0 %v11076_v58  ;;  %v10912_v58 = vpack.c.bf16 %v2568_v22, %v2563_v42  ;;  %v2638_v42 = vld [vmem:[#allocation2 + $0x538] sm:$0xff]  ;;  %v2644_v22 = vld [vmem:[#allocation2 + $0x568] sm:$0xff] }
 0x390   :  { %11079 = vmatprep.subr.bf16.mxu0 %v11078_v33  ;;  %v2578_v33 = vld [vmem:[#allocation2 + $0x358] sm:$0xff] }
 0x391   :  { %10889 = vmatpush1.bf16.msra.mxu1 %v10888_v54  ;;  %v10916_v54 = vpack.c.bf16 %v2578_v33, %v2573_v48  ;;  %v3521_v48 = vld [vmem:[%s17885_s7 + $0x40] sm:$0xff]  ;;  %v3524_v33 = vld [vmem:[%s17885_s7 + $0x58] sm:$0xff] }
 0x392   :  { %10891 = vmatprep.subr.bf16.mxu1 %v10890_v56  ;;  %v2588_v56 = vld [vmem:[#allocation2 + $0x3a8] sm:$0xff]  ;;  %v11255_v53 = vpack.c.bf16 %v3524_v33, %v3521_v48 }
 0x393   :  { %11081 = vmatpush3.bf16.msra.mxu0 %v11080_v43  ;;  %v10920_v43 = vpack.c.bf16 %v2588_v56, %v2583_v19  ;;  %v2648_v19 = vld [vmem:[#allocation2 + $0x588] sm:$0xff]  ;;  %v2654_v56 = vld [vmem:[#allocation2 + $0x5b8] sm:$0xff] }
 0x394   :  { %11083 = vmatprep.subr.bf16.mxu0 %v11082_v4  ;;  %v2598_v4 = vld [vmem:[#allocation2 + $0x3f8] sm:$0xff] }
 0x395   :  { %10893 = vmatpush1.bf16.msra.mxu1 %v10892_v8  ;;  %v10924_v8 = vpack.c.bf16 %v2598_v4, %v2593_v2  ;;  %v3527_v2 = vld [vmem:[%s17885_s7 + $0x70] sm:$0xff]  ;;  %v3530_v4 = vld [vmem:[%s17885_s7 + $0x88] sm:$0xff] }
 0x396   :  { %10895 = vmatprep.subr.bf16.mxu1 %v10894_v16  ;;  %v10926_v16 = vpack.c.bf16 %v2609_v5, %v2604_v45  ;;  %v11259_v5 = vpack.c.bf16 %v3530_v4, %v3527_v2 }
 0x397   :  { %11085 = vmatpush3.bf16.msra.mxu0 %v11084_v21  ;;  %v2614_v21 = vld [vmem:[#allocation2 + $0x478] sm:$0xff] }
 0x399   :  { %10897 = vmatpush1.bf16.msra.mxu1 %v10896_v23  ;;  %v10930_v23 = vpack.c.bf16 %v2619_v63, %v2614_v21  ;;  %v3581_v21 = vld [vmem:[%s17885_s7 + $0x220] sm:$0xff]  ;;  %v3584_v63 = vld [vmem:[%s17885_s7 + $0x238] sm:$0xff] }
 0x39a   :  { %3438 = vmatmul.mubr.f32.vlgmr.msra.gmra.mrb[16].mxu0 %v16066_v41  ;;  %10899 = vmatprep.subr.bf16.mxu1 %v10898_v6  ;;  %v2613_v6 = vld [vmem:[#allocation2 + $0x470] sm:$0xff] }
 0x39b   :  { %v10932_v29 = vpack.c.bf16 %v2618_v25, %v2613_v6 }
 0x39d   :  { %10901 = vmatpush1.bf16.msra.mxu1 %v10900_v30  ;;  %v10934_v30 = vpack.c.bf16 %v2629_v27, %v2624_v47  ;;  %v2663_v27 = vld [vmem:[#allocation2 + $0x600] sm:$0xff] }
 0x39e   :  { %10903 = vmatprep.subr.bf16.mxu1 %v10902_v31  ;;  %v2623_v31 = vld [vmem:[#allocation2 + $0x4c0] sm:$0xff] }
 0x39f   :  { %v10936_v44 = vpack.c.bf16 %v2628_v13, %v2623_v31  ;;  %v2679_v31 = vld [vmem:[#allocation2 + $0x680] sm:$0xff]  ;;  %v3587_v13 = vld [vmem:[%s17885_s7 + $0x250] sm:$0xff] }
 0x3a1   :  { %10905 = vmatpush1.bf16.msra.mxu1 %v10904_v26  ;;  %v3566_v26 = vld [vmem:[%s17885_s7 + $0x1a8] sm:$0xff] }
 0x3a2   :  { %10907 = vmatprep.subr.bf16.mxu1 %v10906_v35  ;;  %v11249_v35 = vpack.c.bf16 %v3566_v26, %v3563_v39  ;;  %v3542_v39 = vld [vmem:[%s17885_s7 + $0xe8] sm:$0xff] }
 0x3a4   :  { %11250 = vmatprep.subr.bf16.mxu0 %v11249_v35 }
 0x3a5   :  { %10909 = vmatpush1.bf16.msra.mxu1 %v10908_v38  ;;  %v10938_v38 = vpack.c.bf16 %v2639_v28, %v2634_v34  ;;  %11252 = vmatpush3.bf16.msra.mxu0 %v11251_v52  ;;  %v3590_v34 = vld [vmem:[%s17885_s7 + $0x268] sm:$0xff]  ;;  %v3539_v28 = vld [vmem:[%s17885_s7 + $0xd0] sm:$0xff]  ;;  %v2678_v52 = vld [vmem:[#allocation2 + $0x678] sm:$0xff] }
 0x3a6   :  { %10911 = vmatprep.subr.bf16.mxu1 %v10910_v40  ;;  %v2633_v40 = vld [vmem:[#allocation2 + $0x510] sm:$0xff]  ;;  %v11265_v35 = vpack.c.bf16 %v3590_v34, %v3587_v13  ;;  %v11267_v37 = vpack.c.bf16 %v3542_v39, %v3539_v28  ;;  %v2718_v13 = vld [vmem:[#allocation2 + $0x7b8] sm:$0xff]  ;;  %v2724_v34 = vld [vmem:[#allocation2 + $0x7e8] sm:$0xff] }
 0x3a7   :  { %v10940_v49 = vpack.c.bf16 %v2638_v42, %v2633_v40  ;;  %v2689_v40 = vld [vmem:[#allocation2 + $0x6d0] sm:$0xff]  ;;  %v3593_v42 = vld [vmem:[%s17885_s7 + $0x280] sm:$0xff] }
 0x3a8   :  { %v2729_v28 = vld [vmem:[#allocation2 + $0x810] sm:$0xff] }
 0x3a9   :  { %10913 = vmatpush1.bf16.msra.mxu1 %v10912_v58  ;;  %v3572_v58 = vld [vmem:[%s17885_s7 + $0x1d8] sm:$0xff] }
 0x3aa   :  { %10915 = vmatprep.subr.bf16.mxu1 %v10914_v46  ;;  %v11253_v46 = vpack.c.bf16 %v3572_v58, %v3569_v57  ;;  %v3548_v57 = vld [vmem:[%s17885_s7 + $0x118] sm:$0xff] }
 0x3ac   :  { %11254 = vmatprep.subr.bf16.mxu0 %v11253_v46 }
 0x3ad   :  { %10917 = vmatpush1.bf16.msra.mxu1 %v10916_v54  ;;  %v10942_v54 = vpack.c.bf16 %v2649_v7, %v2644_v22  ;;  %11256 = vmatpush3.bf16.msra.mxu0 %v11255_v53  ;;  %v3596_v22 = vld [vmem:[%s17885_s7 + $0x298] sm:$0xff]  ;;  %v3545_v7 = vld [vmem:[%s17885_s7 + $0x100] sm:$0xff]  ;;  %v2688_v53 = vld [vmem:[#allocation2 + $0x6c8] sm:$0xff] }
 0x3ae   :  { %10919 = vmatprep.subr.bf16.mxu1 %v10918_v55  ;;  %v2643_v55 = vld [vmem:[#allocation2 + $0x560] sm:$0xff]  ;;  %v11269_v46 = vpack.c.bf16 %v3596_v22, %v3593_v42  ;;  %v11271_v48 = vpack.c.bf16 %v3548_v57, %v3545_v7  ;;  %v2738_v42 = vld [vmem:[#allocation2 + $0x858] sm:$0xff]  ;;  %v2744_v22 = vld [vmem:[#allocation2 + $0x888] sm:$0xff] }
 0x3af   :  { %v10944_v45 = vpack.c.bf16 %v2648_v19, %v2643_v55  ;;  %v2699_v55 = vld [vmem:[#allocation2 + $0x720] sm:$0xff]  ;;  %v3599_v19 = vld [vmem:[%s17885_s7 + $0x2b0] sm:$0xff] }
 0x3b0   :  { %v2749_v7 = vld [vmem:[#allocation2 + $0x8b0] sm:$0xff] }
 0x3b1   :  { %10921 = vmatpush1.bf16.msra.mxu1 %v10920_v43  ;;  %v3578_v43 = vld [vmem:[%s17885_s7 + $0x208] sm:$0xff] }
 0x3b2   :  { %10923 = vmatprep.subr.bf16.mxu1 %v10922_v1  ;;  %v11257_v1 = vpack.c.bf16 %v3578_v43, %v3575_v59  ;;  %v3551_v59 = vld [vmem:[%s17885_s7 + $0x130] sm:$0xff]  ;;  %v3554_v43 = vld [vmem:[%s17885_s7 + $0x148] sm:$0xff] }
 0x3b3   :  { %v11275_v2 = vpack.c.bf16 %v3554_v43, %v3551_v59 }
 0x3b4   :  { %11258 = vmatprep.subr.bf16.mxu0 %v11257_v1 }
 0x3b5   :  { %10925 = vmatpush1.bf16.msra.mxu1 %v10924_v8  ;;  %v10946_v8 = vpack.c.bf16 %v2659_v51, %v2654_v56  ;;  %11260 = vmatpush3.bf16.msra.mxu0 %v11259_v5  ;;  %v3602_v56 = vld [vmem:[%s17885_s7 + $0x2c8] sm:$0xff]  ;;  %v2698_v5 = vld [vmem:[#allocation2 + $0x718] sm:$0xff] }
 0x3b6   :  { %10927 = vmatprep.subr.bf16.mxu1 %v10926_v16  ;;  %v2653_v16 = vld [vmem:[#allocation2 + $0x5b0] sm:$0xff]  ;;  %v11273_v51 = vpack.c.bf16 %v3602_v56, %v3599_v19  ;;  %v2758_v19 = vld [vmem:[#allocation2 + $0x8f8] sm:$0xff]  ;;  %v2764_v56 = vld [vmem:[#allocation2 + $0x928] sm:$0xff] }
 0x3b7   :  { %v10948_v6 = vpack.c.bf16 %v2658_v17, %v2653_v16  ;;  %v2709_v16 = vld [vmem:[#allocation2 + $0x770] sm:$0xff]  ;;  %v3605_v17 = vld [vmem:[%s17885_s7 + $0x2e0] sm:$0xff] }
 0x3b9   :  { %10929 = vmatpush1.bf16.msra.mxu1 %v10928_v20  ;;  %v11261_v20 = vpack.c.bf16 %v3584_v63, %v3581_v21  ;;  %v3560_v21 = vld [vmem:[%s17885_s7 + $0x178] sm:$0xff] }
 0x3ba   :  { %10931 = vmatprep.subr.bf16.mxu1 %v10930_v23  ;;  %v3536_v23 = vld [vmem:[%s17885_s7 + $0xb8] sm:$0xff] }
 0x3bb   :  { %11262 = vmatprep.subr.bf16.mxu0 %v11261_v20 }
 0x3bd   :  { %10933 = vmatpush1.bf16.msra.mxu1 %v10932_v29  ;;  %v2668_v29 = vld [vmem:[#allocation2 + $0x628] sm:$0xff] }
 0x3be   :  { %10935 = vmatprep.subr.bf16.mxu1 %v10934_v30  ;;  %v2674_v30 = vld [vmem:[#allocation2 + $0x658] sm:$0xff]  ;;  %v10952_v26 = vpack.c.bf16 %v2668_v29, %v2663_v27  ;;  %v2719_v27 = vld [vmem:[#allocation2 + $0x7c0] sm:$0xff] }
 0x3bf   :  { %v10954_v62 = vpack.c.bf16 %v2679_v31, %v2674_v30  ;;  %v2713_v31 = vld [vmem:[#allocation2 + $0x790] sm:$0xff] }
 0x3c0   :  { %v10972_v39 = vpack.c.bf16 %v2718_v13, %v2713_v31  ;;  %v2809_v31 = vld [vmem:[#allocation2 + $0xa90] sm:$0xff] }
 0x3c1   :  { %10937 = vmatpush1.bf16.msra.mxu1 %v10936_v44  ;;  %v2673_v44 = vld [vmem:[#allocation2 + $0x650] sm:$0xff] }
 0x3c2   :  { %10939 = vmatprep.subr.bf16.mxu1 %v10938_v38  ;;  %v2684_v38 = vld [vmem:[#allocation2 + $0x6a8] sm:$0xff]  ;;  %v10956_v58 = vpack.c.bf16 %v2678_v52, %v2673_v44  ;;  %v2739_v44 = vld [vmem:[#allocation2 + $0x860] sm:$0xff] }
 0x3c3   :  { %v10958_v33 = vpack.c.bf16 %v2689_v40, %v2684_v38  ;;  %v2733_v40 = vld [vmem:[#allocation2 + $0x830] sm:$0xff] }
 0x3c4   :  { %3155 = vmatmul.mubr.f32.vlgmr.msra.gmra.mrb[14].mxu1 %v16051_v24  ;;  %v2669_v24 = vld [vmem:[#allocation2 + $0x630] sm:$0xff]  ;;  %v10980_v57 = vpack.c.bf16 %v2738_v42, %v2733_v40 }
 0x3c5   :  { %10941 = vmatpush1.bf16.msra.mxu1 %v10940_v49  ;;  %3225 = vmatprep.mubr.f32.mxu1 %v16053_v10  ;;  %v3533_v10 = vld [vmem:[%s17885_s7 + $0xa0] sm:$0xff]  ;;  %v10950_v47 = vpack.c.bf16 %v2669_v24, %v2664_v9  ;;  %v3608_v9 = vld [vmem:[%s17885_s7 + $0x2f8] sm:$0xff]  ;;  %v2829_v40 = vld [vmem:[#allocation2 + $0xb30] sm:$0xff] }
 0x3c6   :  { %10943 = vmatprep.subr.bf16.mxu1 %v10942_v54  ;;  %v11263_v25 = vpack.c.bf16 %v3536_v23, %v3533_v10  ;;  %v2683_v49 = vld [vmem:[#allocation2 + $0x6a0] sm:$0xff]  ;;  %v2694_v54 = vld [vmem:[#allocation2 + $0x6f8] sm:$0xff]  ;;  %v11277_v20 = vpack.c.bf16 %v3608_v9, %v3605_v17  ;;  %v2784_v9 = vld [vmem:[#allocation2 + $0x9c8] sm:$0xff] }
 0x3c7   :  { %v10960_v1 = vpack.c.bf16 %v2688_v53, %v2683_v49  ;;  %v10962_v4 = vpack.c.bf16 %v2699_v55, %v2694_v54  ;;  %v3557_v24 = vld [vmem:[%s17885_s7 + $0x160] sm:$0xff]  ;;  %v2753_v55 = vld [vmem:[#allocation2 + $0x8d0] sm:$0xff]  ;;  %v2778_v17 = vld [vmem:[#allocation2 + $0x998] sm:$0xff] }
 0x3c8   :  { %11264 = vmatpush3.bf16.msra.mxu0 %v11263_v25  ;;  %v11279_v10 = vpack.c.bf16 %v3560_v21, %v3557_v24  ;;  %v2708_v25 = vld [vmem:[#allocation2 + $0x768] sm:$0xff]  ;;  %v2759_v49 = vld [vmem:[#allocation2 + $0x900] sm:$0xff]  ;;  %v10988_v59 = vpack.c.bf16 %v2758_v19, %v2753_v55  ;;  %v2789_v24 = vld [vmem:[#allocation2 + $0x9f0] sm:$0xff] }
 0x3c9   :  { %10945 = vmatpush1.bf16.msra.mxu1 %v10944_v45  ;;  %11266 = vmatprep.subr.bf16.mxu0 %v11265_v35  ;;  %v2693_v45 = vld [vmem:[#allocation2 + $0x6f0] sm:$0xff]  ;;  %v2723_v35 = vld [vmem:[#allocation2 + $0x7e0] sm:$0xff] }
 0x3ca   :  { %10947 = vmatprep.subr.bf16.mxu1 %v10946_v8  ;;  %v2704_v8 = vld [vmem:[#allocation2 + $0x748] sm:$0xff]  ;;  %v10964_v63 = vpack.c.bf16 %v2698_v5, %v2693_v45  ;;  %v2779_v45 = vld [vmem:[#allocation2 + $0x9a0] sm:$0xff] }
 0x3cb   :  { %v10966_v23 = vpack.c.bf16 %v2709_v16, %v2704_v8  ;;  %v2773_v16 = vld [vmem:[#allocation2 + $0x970] sm:$0xff] }
 0x3cc   :  { %11268 = vmatpush3.bf16.msra.mxu0 %v11267_v37  ;;  %v2728_v37 = vld [vmem:[#allocation2 + $0x808] sm:$0xff]  ;;  %v10996_v21 = vpack.c.bf16 %v2778_v17, %v2773_v16  ;;  %v2825_v17 = vld [vmem:[#allocation2 + $0xb10] sm:$0xff] }
 0x3cd   :  { %10949 = vmatpush1.bf16.msra.mxu1 %v10948_v6  ;;  %11270 = vmatprep.subr.bf16.mxu0 %v11269_v46  ;;  %v2703_v6 = vld [vmem:[#allocation2 + $0x740] sm:$0xff]  ;;  %v10976_v52 = vpack.c.bf16 %v2728_v37, %v2723_v35 }
 0x3ce   :  { %10951 = vmatprep.subr.bf16.mxu1 %v10950_v47  ;;  %v2714_v47 = vld [vmem:[#allocation2 + $0x798] sm:$0xff]  ;;  %v10968_v29 = vpack.c.bf16 %v2708_v25, %v2703_v6  ;;  %v2743_v46 = vld [vmem:[#allocation2 + $0x880] sm:$0xff] }
 0x3cf   :  { %v10970_v30 = vpack.c.bf16 %v2719_v27, %v2714_v47  ;;  %v2799_v6 = vld [vmem:[#allocation2 + $0xa40] sm:$0xff]  ;;  %v2793_v27 = vld [vmem:[#allocation2 + $0xa10] sm:$0xff] }
 0x3d0   :  { %11272 = vmatpush3.bf16.msra.mxu0 %v11271_v48  ;;  %v2748_v48 = vld [vmem:[#allocation2 + $0x8a8] sm:$0xff]  ;;  %v2819_v35 = vld [vmem:[#allocation2 + $0xae0] sm:$0xff] }
 0x3d1   :  { %10953 = vmatpush1.bf16.msra.mxu1 %v10952_v26  ;;  %11274 = vmatprep.subr.bf16.mxu0 %v11273_v51  ;;  %v10974_v26 = vpack.c.bf16 %v2729_v28, %v2724_v34  ;;  %v10984_v53 = vpack.c.bf16 %v2748_v48, %v2743_v46  ;;  %v2769_v51 = vld [vmem:[#allocation2 + $0x950] sm:$0xff]  ;;  %v2803_v28 = vld [vmem:[#allocation2 + $0xa60] sm:$0xff] }
 0x3d2   :  { %10955 = vmatprep.subr.bf16.mxu1 %v10954_v62  ;;  %v2734_v62 = vld [vmem:[#allocation2 + $0x838] sm:$0xff]  ;;  %v10990_v43 = vpack.c.bf16 %v2769_v51, %v2764_v56  ;;  %v2839_v46 = vld [vmem:[#allocation2 + $0xb80] sm:$0xff]  ;;  %v2833_v48 = vld [vmem:[#allocation2 + $0xb50] sm:$0xff] }
 0x3d3   :  { %v10978_v38 = vpack.c.bf16 %v2739_v44, %v2734_v62  ;;  %v2813_v44 = vld [vmem:[#allocation2 + $0xab0] sm:$0xff]  ;;  %v2844_v56 = vld [vmem:[#allocation2 + $0xba8] sm:$0xff]  ;;  %v2795_v51 = vld [vmem:[#allocation2 + $0xa20] sm:$0xff] }
 0x3d4   :  { %11276 = vmatpush3.bf16.msra.mxu0 %v11275_v2  ;;  %v2768_v2 = vld [vmem:[#allocation2 + $0x948] sm:$0xff] }
 0x3d5   :  { %10957 = vmatpush1.bf16.msra.mxu1 %v10956_v58  ;;  %11278 = vmatprep.subr.bf16.mxu0 %v11277_v20  ;;  %v10982_v58 = vpack.c.bf16 %v2749_v7, %v2744_v22  ;;  %v2783_v20 = vld [vmem:[#allocation2 + $0x9c0] sm:$0xff] }
 0x3d6   :  { %10959 = vmatprep.subr.bf16.mxu1 %v10958_v33  ;;  %v2754_v33 = vld [vmem:[#allocation2 + $0x8d8] sm:$0xff]  ;;  %v2823_v7 = vld [vmem:[#allocation2 + $0xb00] sm:$0xff] }
 0x3d7   :  { %v10986_v54 = vpack.c.bf16 %v2759_v49, %v2754_v33  ;;  %v2838_v49 = vld [vmem:[#allocation2 + $0xb78] sm:$0xff] }
 0x3d8   :  { %11280 = vmatpush3.bf16.msra.mxu0 %v11279_v10  ;;  %v2788_v10 = vld [vmem:[#allocation2 + $0x9e8] sm:$0xff]  ;;  %v11020_v19 = vpack.c.bf16 %v2838_v49, %v2833_v48  ;;  %v3540_v49 = vld [vmem:[%s17885_s7 + $0xd8] sm:$0xff] }
 0x3d9   :  { %10961 = vmatpush1.bf16.msra.mxu1 %v10960_v1  ;;  %v2763_v1 = vld [vmem:[#allocation2 + $0x920] sm:$0xff]  ;;  %v11000_v25 = vpack.c.bf16 %v2788_v10, %v2783_v20  ;;  %v3514_v10 = vld [vmem:[%s17885_s7 + $0x8] sm:$0xff] }
 0x3da   :  { %10963 = vmatprep.subr.bf16.mxu1 %v10962_v4  ;;  %v2774_v4 = vld [vmem:[#allocation2 + $0x978] sm:$0xff]  ;;  %v10992_v5 = vpack.c.bf16 %v2768_v2, %v2763_v1  ;;  %v2805_v2 = vld [vmem:[#allocation2 + $0xa70] sm:$0xff] }
 0x3db   :  { %v10994_v8 = vpack.c.bf16 %v2779_v45, %v2774_v4  ;;  %v2810_v4 = vld [vmem:[#allocation2 + $0xa98] sm:$0xff] }
 0x3dc   :  { %v11090_v45 = vpack.c.bf16 %v2810_v4, %v2805_v2  ;;  %v3549_v4 = vld [vmem:[%s17885_s7 + $0x120] sm:$0xff] }
 0x3dd   :  { %10965 = vmatpush1.bf16.msra.mxu1 %v10964_v63  ;;  %v10998_v63 = vpack.c.bf16 %v2789_v24, %v2784_v9  ;;  %v2830_v9 = vld [vmem:[#allocation2 + $0xb38] sm:$0xff] }
 0x3de   :  { %10967 = vmatprep.subr.bf16.mxu1 %v10966_v23  ;;  %v2794_v23 = vld [vmem:[#allocation2 + $0xa18] sm:$0xff]  ;;  %v11096_v24 = vpack.c.bf16 %v2830_v9, %v2825_v17  ;;  %v3555_v9 = vld [vmem:[%s17885_s7 + $0x150] sm:$0xff] }
 0x3df   :  { %v11002_v47 = vpack.c.bf16 %v2799_v6, %v2794_v23  ;;  %v3517_v23 = vld [vmem:[%s17885_s7 + $0x20] sm:$0xff] }
 0x3e0   :  { %v3513_v6 = vld [vmem:[%s17885_s7] sm:$0xff] }
 0x3e1   :  { %10969 = vmatpush1.bf16.msra.mxu1 %v10968_v29  ;;  %v2798_v29 = vld [vmem:[#allocation2 + $0xa38] sm:$0xff] }
 0x3e2   :  { %10971 = vmatprep.subr.bf16.mxu1 %v10970_v30  ;;  %v2804_v30 = vld [vmem:[#allocation2 + $0xa68] sm:$0xff]  ;;  %v11004_v13 = vpack.c.bf16 %v2798_v29, %v2793_v27  ;;  %v3523_v27 = vld [vmem:[%s17885_s7 + $0x50] sm:$0xff] }
 0x3e3   :  { %v11006_v34 = vpack.c.bf16 %v2809_v31, %v2804_v30  ;;  %v2845_v29 = vld [vmem:[#allocation2 + $0xbb0] sm:$0xff]  ;;  %v11101_v30 = vpack.c.bf16 %v3517_v23, %v3514_v10  ;;  %v3561_v23 = vld [vmem:[%s17885_s7 + $0x180] sm:$0xff] }
 0x3e5   :  { %10973 = vmatpush1.bf16.msra.mxu1 %v10972_v39  ;;  %v2808_v39 = vld [vmem:[#allocation2 + $0xa88] sm:$0xff] }
 0x3e6   :  { %10975 = vmatprep.subr.bf16.mxu1 %v10974_v26  ;;  %v2814_v26 = vld [vmem:[#allocation2 + $0xab8] sm:$0xff]  ;;  %v11008_v37 = vpack.c.bf16 %v2808_v39, %v2803_v28  ;;  %v3519_v39 = vld [vmem:[%s17885_s7 + $0x30] sm:$0xff] }
 0x3e7   :  { %v11010_v62 = vpack.c.bf16 %v2819_v35, %v2814_v26  ;;  %v3522_v26 = vld [vmem:[%s17885_s7 + $0x48] sm:$0xff] }
 0x3e8   :  { %v3526_v35 = vld [vmem:[%s17885_s7 + $0x68] sm:$0xff] }
 0x3e9   :  { %10977 = vmatpush1.bf16.msra.mxu1 %v10976_v52  ;;  %v2818_v52 = vld [vmem:[#allocation2 + $0xad8] sm:$0xff] }
 0x3ea   :  { %10979 = vmatprep.subr.bf16.mxu1 %v10978_v38  ;;  %v2824_v38 = vld [vmem:[#allocation2 + $0xb08] sm:$0xff]  ;;  %v11012_v42 = vpack.c.bf16 %v2818_v52, %v2813_v44  ;;  %v3525_v52 = vld [vmem:[%s17885_s7 + $0x60] sm:$0xff] }
 0x3eb   :  { %v11014_v22 = vpack.c.bf16 %v2829_v40, %v2824_v38  ;;  %v3528_v38 = vld [vmem:[%s17885_s7 + $0x78] sm:$0xff] }
 0x3ec   :  { %v3532_v40 = vld [vmem:[%s17885_s7 + $0x98] sm:$0xff] }
 0x3ed   :  { %10981 = vmatpush1.bf16.msra.mxu1 %v10980_v57  ;;  %v2828_v57 = vld [vmem:[#allocation2 + $0xb28] sm:$0xff] }
 0x3ee   :  { %10983 = vmatprep.subr.bf16.mxu1 %v10982_v58  ;;  %v2834_v58 = vld [vmem:[#allocation2 + $0xb58] sm:$0xff] }
 0x3ef   :  { %v11018_v33 = vpack.c.bf16 %v2839_v46, %v2834_v58  ;;  %v3538_v58 = vld [vmem:[%s17885_s7 + $0xc8] sm:$0xff]  ;;  %v3541_v46 = vld [vmem:[%s17885_s7 + $0xe0] sm:$0xff] }
 0x3f0   :  { %v11117_v48 = vpack.c.bf16 %v3541_v46, %v3538_v58  ;;  %v3579_v58 = vld [vmem:[%s17885_s7 + $0x210] sm:$0xff]  ;;  %v3582_v46 = vld [vmem:[%s17885_s7 + $0x228] sm:$0xff] }
 0x3f1   :  { %10985 = vmatpush1.bf16.msra.mxu1 %v10984_v53  ;;  %v3659_v53 = vld [vmem:[%s17885_s7 + $0x490] sm:$0xff] }
 0x3f2   :  { %10987 = vmatprep.subr.bf16.mxu1 %v10986_v54  ;;  %v3662_v54 = vld [vmem:[%s17885_s7 + $0x4a8] sm:$0xff] }
 0x3f3   :  { %v11281_v55 = vpack.c.bf16 %v3662_v54, %v3659_v53  ;;  %v3544_v53 = vld [vmem:[%s17885_s7 + $0xf8] sm:$0xff]  ;;  %v3547_v54 = vld [vmem:[%s17885_s7 + $0x110] sm:$0xff] }
 0x3f5   :  { %10989 = vmatpush1.bf16.msra.mxu1 %v10988_v59  ;;  %11282 = vmatprep.subr.bf16.mxu0 %v11281_v55  ;;  %v2800_v59 = vld [vmem:[#allocation2 + $0xa48] sm:$0xff] }
 0x3f6   :  { %10991 = vmatprep.subr.bf16.mxu1 %v10990_v43  ;;  %v2843_v43 = vld [vmem:[#allocation2 + $0xba0] sm:$0xff]  ;;  %v11087_v1 = vpack.c.bf16 %v2800_v59, %v2795_v51  ;;  %v3546_v51 = vld [vmem:[%s17885_s7 + $0x108] sm:$0xff] }
 0x3f7   :  { %v3550_v59 = vld [vmem:[%s17885_s7 + $0x128] sm:$0xff] }
 0x3f9   :  { %10993 = vmatpush1.bf16.msra.mxu1 %v10992_v5  ;;  %v2815_v5 = vld [vmem:[#allocation2 + $0xac0] sm:$0xff] }
 0x3fa   :  { %10995 = vmatprep.subr.bf16.mxu1 %v10994_v8  ;;  %v2820_v8 = vld [vmem:[#allocation2 + $0xae8] sm:$0xff] }
 0x3fb   :  { %v11093_v16 = vpack.c.bf16 %v2820_v8, %v2815_v5  ;;  %v3556_v5 = vld [vmem:[%s17885_s7 + $0x158] sm:$0xff]  ;;  %v3559_v8 = vld [vmem:[%s17885_s7 + $0x170] sm:$0xff] }
 0x3fc   :  { %v11129_v17 = vpack.c.bf16 %v3559_v8, %v3556_v5  ;;  %v3592_v5 = vld [vmem:[%s17885_s7 + $0x278] sm:$0xff] }
 0x3fd   :  { %10997 = vmatpush1.bf16.msra.mxu1 %v10996_v21  ;;  %v2835_v21 = vld [vmem:[#allocation2 + $0xb60] sm:$0xff] }
 0x3fe   :  { %10999 = vmatprep.subr.bf16.mxu1 %v10998_v63  ;;  %v2840_v63 = vld [vmem:[#allocation2 + $0xb88] sm:$0xff] }
 0x3ff   :  { %v11099_v20 = vpack.c.bf16 %v2840_v63, %v2835_v21  ;;  %v3562_v21 = vld [vmem:[%s17885_s7 + $0x188] sm:$0xff]  ;;  %v3565_v63 = vld [vmem:[%s17885_s7 + $0x1a0] sm:$0xff] }
 0x400   :  { %v11133_v10 = vpack.c.bf16 %v3565_v63, %v3562_v21  ;;  %v3674_v21 = vld [vmem:[%s17885_s7 + $0x508] sm:$0xff] }
 0x401   :  { %11001 = vmatpush1.bf16.msra.mxu1 %v11000_v25  ;;  %v3516_v25 = vld [vmem:[%s17885_s7 + $0x18] sm:$0xff] }
 0x402   :  { %11003 = vmatprep.subr.bf16.mxu1 %v11002_v47  ;;  %v3520_v47 = vld [vmem:[%s17885_s7 + $0x38] sm:$0xff] }
 0x403   :  { %v11105_v28 = vpack.c.bf16 %v3523_v27, %v3520_v47  ;;  %v3571_v47 = vld [vmem:[%s17885_s7 + $0x1d0] sm:$0xff] }
 0x404   :  { %3226 = vmatmul.mubr.f32.vlgmr.msra.gmra.mrb[14].mxu1 %v16066_v41  ;;  %v11016_v41 = vpack.c.bf16 %v2828_v57, %v2823_v7  ;;  %v3531_v7 = vld [vmem:[%s17885_s7 + $0x90] sm:$0xff]  ;;  %v3534_v57 = vld [vmem:[%s17885_s7 + $0xa8] sm:$0xff] }
 0x405   :  { %11005 = vmatpush1.bf16.msra.mxu1 %v11004_v13  ;;  %3296 = vmatprep.mubr.f32.mxu1 %v13287_v0  ;;  %v11103_v13 = vpack.c.bf16 %v3516_v25, %v3513_v6  ;;  %v3564_v6 = vld [vmem:[%s17885_s7 + $0x198] sm:$0xff] }
 0x406   :  { %11007 = vmatprep.subr.bf16.mxu1 %v11006_v34  ;;  %v3568_v25 = vld [vmem:[%s17885_s7 + $0x1b8] sm:$0xff] }
 0x409   :  { %11009 = vmatpush1.bf16.msra.mxu1 %v11008_v37  ;;  %v3529_v37 = vld [vmem:[%s17885_s7 + $0x80] sm:$0xff] }
 0x40a   :  { %11011 = vmatprep.subr.bf16.mxu1 %v11010_v62  ;;  %v11107_v62 = vpack.c.bf16 %v3522_v26, %v3519_v39  ;;  %v11109_v44 = vpack.c.bf16 %v3529_v37, %v3526_v35  ;;  %v3570_v39 = vld [vmem:[%s17885_s7 + $0x1c8] sm:$0xff]  ;;  %v16326_v26 = vld [vmem:[%s17922_s22] sm:$0x1f] }
 0x40b   :  { %v3574_v37 = vld [vmem:[%s17885_s7 + $0x1e8] sm:$0xff] }
 0x40d   :  { %11013 = vmatpush1.bf16.msra.mxu1 %v11012_v42  ;;  %v11111_v42 = vpack.c.bf16 %v3528_v38, %v3525_v52  ;;  %v2851_v52 = vrot.slane %v16326_v26, %v14049_v14 }
 0x40e   :  { %11015 = vmatprep.subr.bf16.mxu1 %v11014_v22 }
 0x411   :  { %11017 = vmatpush1.bf16.msra.mxu1 %v11016_v41  ;;  %v11115_v41 = vpack.c.bf16 %v3534_v57, %v3531_v7  ;;  %v3583_v7 = vld [vmem:[%s17885_s7 + $0x230] sm:$0xff] }
 0x412   :  { %11019 = vmatprep.subr.bf16.mxu1 %v11018_v33  ;;  %v3537_v33 = vld [vmem:[%s17885_s7 + $0xc0] sm:$0xff] }
 0x413   :  { %v11119_v55 = vpack.c.bf16 %v3540_v49, %v3537_v33  ;;  %v3586_v33 = vld [vmem:[%s17885_s7 + $0x248] sm:$0xff]  ;;  %v3611_v49 = vld [vmem:[%s17885_s7 + $0x310] sm:$0xff] }
 0x415   :  { %11021 = vmatpush1.bf16.msra.mxu1 %v11020_v19  ;;  %v11121_v19 = vpack.c.bf16 %v3547_v54, %v3544_v53  ;;  %v3614_v53 = vld [vmem:[%s17885_s7 + $0x328] sm:$0xff] }
 0x416   :  { %3252 = vmatprep.subr.mxu1 %v2844_v56  ;;  %v3543_v56 = vld [vmem:[%s17885_s7 + $0xf0] sm:$0xff] }
 0x419   :  { %3253 = vmatpush1.msra.mxu1 %v2843_v43  ;;  %v3553_v43 = vld [vmem:[%s17885_s7 + $0x140] sm:$0xff] }
 0x41a   :  { %9137 = vmatmul.mubr.msk.f32.vlgmr.msra.gmra.mrb[14].mxu1 %vm2873_vm5, %v16075_v36  ;;  %11086 = vmatprep.subr.bf16.mxu1 %v13289_v61  ;;  %v11125_v2 = vpack.c.bf16 %v3553_v43, %v3550_v59 }
 0x41b   :  { %11088 = vmatpush3.bf16.msra.mxu1 %v11087_v1  ;;  %9829 = vmatprep.mubr.msk.f32.mxu1 %vm13290_vm6, %v13287_v0  ;;  %v11123_v1 = vpack.c.bf16 %v3546_v51, %v3543_v56  ;;  %v3668_v56 = vld [vmem:[%s17885_s7 + $0x4d8] sm:$0xff] }
 0x41c   :  { %11089 = vmatprep.subr.bf16.mxu1 %v13289_v61 }
 0x41f   :  { %11091 = vmatpush3.bf16.msra.mxu1 %v11090_v45  ;;  %v3552_v45 = vld [vmem:[%s17885_s7 + $0x138] sm:$0xff] }
 0x420   :  { %11092 = vmatprep.subr.bf16.mxu1 %v13289_v61 }
 0x423   :  { %11094 = vmatpush3.bf16.msra.mxu1 %v11093_v16  ;;  %v11127_v16 = vpack.c.bf16 %v3552_v45, %v3549_v4  ;;  %v11283_v4 = vpack.c.bf16 %v3614_v53, %v3611_v49  ;;  %v3610_v49 = vld [vmem:[%s17885_s7 + $0x308] sm:$0xff] }
 0x424   :  { %11095 = vmatprep.subr.bf16.mxu1 %v13289_v61 }
 0x427   :  { %11097 = vmatpush3.bf16.msra.mxu1 %v11096_v24  ;;  %v3558_v24 = vld [vmem:[%s17885_s7 + $0x168] sm:$0xff] }
 0x428   :  { %11098 = vmatprep.subr.bf16.mxu1 %v13289_v61 }
 0x42b   :  { %11100 = vmatpush3.bf16.msra.mxu1 %v11099_v20  ;;  %v11131_v20 = vpack.c.bf16 %v3558_v24, %v3555_v9  ;;  %v3595_v9 = vld [vmem:[%s17885_s7 + $0x290] sm:$0xff] }
 0x42c   :  { %9827 = vmatprep.subr.mxu1 %v13287_v0  ;;  %v3671_v24 = vld [vmem:[%s17885_s7 + $0x4f0] sm:$0xff] }
 0x42d   :  { %v16215_v31 = vpop.f32.mrb[12].mxu0 }
 0x42e   :  { %v16217_v34 = vpop.f32.mrb[13].mxu0 }
 0x42f   :  { %9828 = vmatpush3.msra.mxu1 %v2845_v29  ;;  %v11135_v29 = vpack.c.bf16 %v3564_v6, %v3561_v23  ;;  %v11153_v6 = vpack.c.bf16 %v3595_v9, %v3592_v5  ;;  %v3641_v5 = vld [vmem:[%s17885_s7 + $0x400] sm:$0xff]  ;;  %v3695_v9 = vld [vmem:[%s17885_s7 + $0x5b0] sm:$0xff] }
 0x430   :  { %9830 = vmatmul.mubr.msk.f32.vlgmr.msra.gmra.mrb[16].mxu1 %vm2873_vm5, %v16075_v36  ;;  %11102 = vmatprep.subr.bf16.mxu1 %v11101_v30  ;;  %v3535_v36 = vld [vmem:[%s17885_s7 + $0xb0] sm:$0xff] }
 0x431   :  { %11104 = vmatpush1.bf16.msra.mxu1 %v11103_v13  ;;  %v11113_v22 = vpack.c.bf16 %v3535_v36, %v3532_v40  ;;  %v11137_v13 = vpack.c.bf16 %v3571_v47, %v3568_v25  ;;  %v3573_v40 = vld [vmem:[%s17885_s7 + $0x1e0] sm:$0xff]  ;;  %v3576_v36 = vld [vmem:[%s17885_s7 + $0x1f8] sm:$0xff]  ;;  %v3598_v25 = vld [vmem:[%s17885_s7 + $0x2a8] sm:$0xff]  ;;  %v11289_v47 = vpack.c.bf16 %v3674_v21, %v3671_v24 }
 0x432   :  { %11106 = vmatprep.subr.bf16.mxu1 %v11105_v28  ;;  %v3567_v28 = vld [vmem:[%s17885_s7 + $0x1b0] sm:$0xff]  ;;  %v11143_v57 = vpack.c.bf16 %v3576_v36, %v3573_v40  ;;  %v3629_v36 = vld [vmem:[%s17885_s7 + $0x3a0] sm:$0xff]  ;;  %v3698_v24 = vld [vmem:[%s17885_s7 + $0x5c8] sm:$0xff] }
 0x435   :  { %11108 = vmatpush1.bf16.msra.mxu1 %v11107_v62  ;;  %v3577_v62 = vld [vmem:[%s17885_s7 + $0x200] sm:$0xff] }
 0x436   :  { %11110 = vmatprep.subr.bf16.mxu1 %v11109_v44  ;;  %v11139_v44 = vpack.c.bf16 %v3570_v39, %v3567_v28  ;;  %v11141_v38 = vpack.c.bf16 %v3577_v62, %v3574_v37  ;;  %v3680_v28 = vld [vmem:[%s17885_s7 + $0x538] sm:$0xff]  ;;  %v3597_v37 = vld [vmem:[%s17885_s7 + $0x2a0] sm:$0xff] }
 0x437   :  { %v3600_v62 = vld [vmem:[%s17885_s7 + $0x2b8] sm:$0xff] }
 0x439   :  { %11112 = vmatpush1.bf16.msra.mxu1 %v11111_v42  ;;  %v2855_v42 = vrot.slane %v16326_v26, %v14041_v12 }
 0x43a   :  { %11114 = vmatprep.subr.bf16.mxu1 %v11113_v22  ;;  %v3580_v22 = vld [vmem:[%s17885_s7 + $0x218] sm:$0xff] }
 0x43b   :  { %v13004_v54 = vadd.f32 %v16217_v34, %v2855_v42  ;;  %v3585_v34 = vld [vmem:[%s17885_s7 + $0x240] sm:$0xff]  ;;  %v3632_v42 = vld [vmem:[%s17885_s7 + $0x3b8] sm:$0xff] }
 0x43d   :  { %11116 = vmatpush1.bf16.msra.mxu1 %v11115_v41  ;;  %v13002_v41 = vadd.f32 %v16215_v31, %v2851_v52  ;;  %v3589_v31 = vld [vmem:[%s17885_s7 + $0x260] sm:$0xff] }
 0x43e   :  { %11118 = vmatprep.subr.bf16.mxu1 %v11117_v48  ;;  %v11145_v48 = vpack.c.bf16 %v3583_v7, %v3580_v22  ;;  %v11149_v45 = vpack.c.bf16 %v3589_v31, %v3586_v33  ;;  %v3607_v22 = vld [vmem:[%s17885_s7 + $0x2f0] sm:$0xff]  ;;  %v3613_v31 = vld [vmem:[%s17885_s7 + $0x320] sm:$0xff] }
 0x43f   :  { %v3683_v7 = vld [vmem:[%s17885_s7 + $0x550] sm:$0xff] }
 0x441   :  { %11120 = vmatpush1.bf16.msra.mxu1 %v11119_v55 }
 0x442   :  { %11122 = vmatprep.subr.bf16.mxu1 %v11121_v19  ;;  %v3665_v19 = vld [vmem:[%s17885_s7 + $0x4c0] sm:$0xff] }
 0x443   :  { %v11285_v8 = vpack.c.bf16 %v3668_v56, %v3665_v19  ;;  %v3689_v19 = vld [vmem:[%s17885_s7 + $0x580] sm:$0xff]  ;;  %v3692_v56 = vld [vmem:[%s17885_s7 + $0x598] sm:$0xff] }
 0x445   :  { %11124 = vmatpush1.bf16.msra.mxu1 %v11123_v1  ;;  %v11147_v1 = vpack.c.bf16 %v3582_v46, %v3579_v58  ;;  %v11159_v58 = vpack.c.bf16 %v3600_v62, %v3597_v37  ;;  %v3603_v46 = vld [vmem:[%s17885_s7 + $0x2d0] sm:$0xff]  ;;  %v3701_v37 = vld [vmem:[%s17885_s7 + $0x5e0] sm:$0xff]  ;;  %v3704_v62 = vld [vmem:[%s17885_s7 + $0x5f8] sm:$0xff] }
 0x446   :  { %11126 = vmatprep.subr.bf16.mxu1 %v11125_v2  ;;  %v3588_v2 = vld [vmem:[%s17885_s7 + $0x258] sm:$0xff] }
 0x447   :  { %v11151_v63 = vpack.c.bf16 %v3588_v2, %v3585_v34  ;;  %v11165_v2 = vpack.c.bf16 %v3613_v31, %v3610_v49  ;;  %v3634_v49 = vld [vmem:[%s17885_s7 + $0x3c8] sm:$0xff]  ;;  %v3633_v31 = vld [vmem:[%s17885_s7 + $0x3c0] sm:$0xff] }
 0x449   :  { %11128 = vmatpush1.bf16.msra.mxu1 %v11127_v16  ;;  %v3617_v16 = vld [vmem:[%s17885_s7 + $0x340] sm:$0xff] }
 0x44a   :  { %11130 = vmatprep.subr.bf16.mxu1 %v11129_v17  ;;  %v3620_v17 = vld [vmem:[%s17885_s7 + $0x358] sm:$0xff] }
 0x44b   :  { %v11287_v23 = vpack.c.bf16 %v3620_v17, %v3617_v16  ;;  %v2867_v16 = vrot.slane %v16326_v26, %v14850_v60  ;;  %v3619_v17 = vld [vmem:[%s17885_s7 + $0x350] sm:$0xff] }
 0x44d   :  { %v9333_v27 = vpop.f32.mrb[14].mxu0  ;;  %11132 = vmatpush1.bf16.msra.mxu1 %v11131_v20  ;;  %v3591_v20 = vld [vmem:[%s17885_s7 + $0x270] sm:$0xff] }
 0x44e   :  { %v9334_v30 = vpop.f32.mrb[15].mxu0  ;;  %11134 = vmatprep.subr.bf16.mxu1 %v11133_v10  ;;  %v3594_v10 = vld [vmem:[%s17885_s7 + $0x288] sm:$0xff] }
 0x44f   :  { %v16328_v35 = vadd.f32 %v9334_v30, %v9333_v27  ;;  %v3623_v27 = vld [vmem:[%s17885_s7 + $0x370] sm:$0xff]  ;;  %v3601_v30 = vld [vmem:[%s17885_s7 + $0x2c0] sm:$0xff]  ;;  %v11155_v39 = vpack.c.bf16 %v3594_v10, %v3591_v20  ;;  %v3618_v10 = vld [vmem:[%s17885_s7 + $0x348] sm:$0xff] }
 0x450   :  { %v11157_v52 = vpack.c.bf16 %v3601_v30, %v3598_v25  ;;  %v3615_v20 = vld [vmem:[%s17885_s7 + $0x330] sm:$0xff]  ;;  %v3650_v30 = vld [vmem:[%s17885_s7 + $0x448] sm:$0xff] }
 0x451   :  { %11136 = vmatpush1.bf16.msra.mxu1 %v11135_v29  ;;  %v3626_v29 = vld [vmem:[%s17885_s7 + $0x388] sm:$0xff] }
 0x452   :  { %11138 = vmatprep.subr.bf16.mxu1 %v11137_v13  ;;  %v3677_v13 = vld [vmem:[%s17885_s7 + $0x520] sm:$0xff] }
 0x453   :  { %v11293_v40 = vpack.c.bf16 %v3680_v28, %v3677_v13  ;;  %v3370_v13 = vadd.f32 %v16328_v35, %v2867_v16  ;;  %v3621_v35 = vld [vmem:[%s17885_s7 + $0x360] sm:$0xff] }
 0x454   :  { %v3645_v16 = vld [vmem:[%s17885_s7 + $0x420] sm:$0xff] }
 0x455   :  { %11140 = vmatpush1.bf16.msra.mxu1 %v11139_v44  ;;  %v11291_v44 = vpack.c.bf16 %v3626_v29, %v3623_v27  ;;  %v11305_v27 = vpack.c.bf16 %v3698_v24, %v3695_v9  ;;  %v3647_v29 = vld [vmem:[%s17885_s7 + $0x430] sm:$0xff]  ;;  %v3652_v9 = vld [vmem:[%s17885_s7 + $0x458] sm:$0xff] }
 0x456   :  { %11142 = vmatprep.subr.bf16.mxu1 %v11141_v38  ;;  %v3604_v38 = vld [vmem:[%s17885_s7 + $0x2d8] sm:$0xff]  ;;  %v3655_v24 = vld [vmem:[%s17885_s7 + $0x470] sm:$0xff] }
 0x457   :  { %v3085_v55 = vpop.f32.mrb[12].mxu1  ;;  %v11161_v33 = vpack.c.bf16 %v3607_v22, %v3604_v38  ;;  %v3656_v22 = vld [vmem:[%s17885_s7 + $0x478] sm:$0xff] }
 0x458   :  { %v16378_v51 = vadd.f32 %v13002_v41, %v3085_v55  ;;  %v3087_v59 = vpop.f32.mrb[13].mxu1  ;;  %v3606_v41 = vld [vmem:[%s17885_s7 + $0x2e8] sm:$0xff] }
 0x459   :  { %v13005_v43 = vadd.f32 %v13004_v54, %v3087_v59  ;;  %11144 = vmatpush1.bf16.msra.mxu1 %v11143_v57  ;;  %v3686_v57 = vld [vmem:[%s17885_s7 + $0x568] sm:$0xff]  ;;  %v3635_v54 = vld [vmem:[%s17885_s7 + $0x3d0] sm:$0xff]  ;;  %v11163_v59 = vpack.c.bf16 %v3606_v41, %v3603_v46 }
 0x45a   :  { %11146 = vmatprep.subr.bf16.mxu1 %v11145_v48  ;;  %v11295_v48 = vpack.c.bf16 %v3632_v42, %v3629_v36  ;;  %v11297_v53 = vpack.c.bf16 %v3686_v57, %v3683_v7  ;;  %v3638_v55 = vld [vmem:[%s17885_s7 + $0x3e8] sm:$0xff]  ;;  %v3624_v36 = vld [vmem:[%s17885_s7 + $0x378] sm:$0xff]  ;;  %v11309_v42 = vpack.c.bf16 %v3704_v62, %v3701_v37  ;;  %v3631_v57 = vld [vmem:[%s17885_s7 + $0x3b0] sm:$0xff] }
 0x45b   :  { %3822 = vmatprep.mubr.f32.mxu1 %v13005_v43  ;;  %4035 = vmatprep.mubr.f32.mxu0 %v13005_v43  ;;  %v3609_v43 = vld [vmem:[%s17885_s7 + $0x300] sm:$0xff]  ;;  %v11299_v34 = vpack.c.bf16 %v3638_v55, %v3635_v54  ;;  %v3628_v7 = vld [vmem:[%s17885_s7 + $0x398] sm:$0xff]  ;;  %v3663_v37 = vld [vmem:[%s17885_s7 + $0x4b0] sm:$0xff] }
 0x45c   :  { %4036 = vmatmul.mubr.f32.vlgmr.msra.gmra.mrb[18].mxu0 %v16378_v51  ;;  %v11177_v41 = vpack.c.bf16 %v3631_v57, %v3628_v7  ;;  %v3666_v62 = vld [vmem:[%s17885_s7 + $0x4c8] sm:$0xff] }
 0x45d   :  { %11148 = vmatpush1.bf16.msra.mxu1 %v11147_v1  ;;  %11284 = vmatpush3.bf16.msra.mxu0 %v11283_v4  ;;  %v3612_v1 = vld [vmem:[%s17885_s7 + $0x318] sm:$0xff] }
 0x45e   :  { %11150 = vmatprep.subr.bf16.mxu1 %v11149_v45  ;;  %11286 = vmatprep.subr.bf16.mxu0 %v11285_v8  ;;  %v3616_v4 = vld [vmem:[%s17885_s7 + $0x338] sm:$0xff]  ;;  %v11301_v45 = vpack.c.bf16 %v3692_v56, %v3689_v19 }
 0x45f   :  { %v3644_v8 = vld [vmem:[%s17885_s7 + $0x418] sm:$0xff]  ;;  %v11169_v25 = vpack.c.bf16 %v3619_v17, %v3616_v4  ;;  %v3646_v4 = vld [vmem:[%s17885_s7 + $0x428] sm:$0xff] }
 0x460   :  { %v3636_v19 = vld [vmem:[%s17885_s7 + $0x3d8] sm:$0xff] }
 0x461   :  { %11152 = vmatpush1.bf16.msra.mxu1 %v11151_v63  ;;  %11288 = vmatpush3.bf16.msra.mxu0 %v11287_v23  ;;  %v11167_v63 = vpack.c.bf16 %v3612_v1, %v3609_v43  ;;  %v11303_v23 = vpack.c.bf16 %v3644_v8, %v3641_v5  ;;  %v3640_v56 = vld [vmem:[%s17885_s7 + $0x3f8] sm:$0xff]  ;;  %v11183_v43 = vpack.c.bf16 %v3636_v19, %v3633_v31  ;;  %v3691_v31 = vld [vmem:[%s17885_s7 + $0x590] sm:$0xff] }
 0x462   :  { %11154 = vmatprep.subr.bf16.mxu1 %v11153_v6  ;;  %11290 = vmatprep.subr.bf16.mxu0 %v11289_v47  ;;  %v3622_v47 = vld [vmem:[%s17885_s7 + $0x368] sm:$0xff]  ;;  %v3648_v17 = vld [vmem:[%s17885_s7 + $0x438] sm:$0xff] }
 0x465   :  { %11156 = vmatpush1.bf16.msra.mxu1 %v11155_v39  ;;  %11292 = vmatpush3.bf16.msra.mxu0 %v11291_v44  ;;  %v3625_v39 = vld [vmem:[%s17885_s7 + $0x380] sm:$0xff]  ;;  %v11171_v44 = vpack.c.bf16 %v3618_v10, %v3615_v20  ;;  %v3651_v20 = vld [vmem:[%s17885_s7 + $0x450] sm:$0xff]  ;;  %v3654_v10 = vld [vmem:[%s17885_s7 + $0x468] sm:$0xff] }
 0x466   :  { %11158 = vmatprep.subr.bf16.mxu1 %v11157_v52  ;;  %11294 = vmatprep.subr.bf16.mxu0 %v11293_v40  ;;  %v11307_v52 = vpack.c.bf16 %v3650_v30, %v3647_v29  ;;  %v11173_v40 = vpack.c.bf16 %v3625_v39, %v3622_v47  ;;  %v3660_v29 = vld [vmem:[%s17885_s7 + $0x498] sm:$0xff] }
 0x467   :  { %v3664_v30 = vld [vmem:[%s17885_s7 + $0x4b8] sm:$0xff] }
 0x469   :  { %11160 = vmatpush1.bf16.msra.mxu1 %v11159_v58  ;;  %11296 = vmatpush3.bf16.msra.mxu0 %v11295_v48  ;;  %v11175_v58 = vpack.c.bf16 %v3624_v36, %v3621_v35  ;;  %v3627_v48 = vld [vmem:[%s17885_s7 + $0x390] sm:$0xff]  ;;  %v3673_v35 = vld [vmem:[%s17885_s7 + $0x500] sm:$0xff] }
 0x46a   :  { %11162 = vmatprep.subr.bf16.mxu1 %v11161_v33  ;;  %11298 = vmatprep.subr.bf16.mxu0 %v11297_v53  ;;  %v3630_v33 = vld [vmem:[%s17885_s7 + $0x3a8] sm:$0xff]  ;;  %v3637_v53 = vld [vmem:[%s17885_s7 + $0x3e0] sm:$0xff] }
 0x46b   :  { %v11179_v54 = vpack.c.bf16 %v3630_v33, %v3627_v48  ;;  %v11181_v55 = vpack.c.bf16 %v3637_v53, %v3634_v49  ;;  %v3669_v36 = vld [vmem:[%s17885_s7 + $0x4e0] sm:$0xff] }
 0x46c   :  { %v3685_v48 = vld [vmem:[%s17885_s7 + $0x560] sm:$0xff] }
 0x46d   :  { %v9368_v21 = vpop.f32.mrb[16].mxu0  ;;  %11164 = vmatpush1.bf16.msra.mxu1 %v11163_v59  ;;  %11300 = vmatpush3.bf16.msra.mxu0 %v11299_v34  ;;  %v3643_v59 = vld [vmem:[%s17885_s7 + $0x410] sm:$0xff]  ;;  %v3681_v53 = vld [vmem:[%s17885_s7 + $0x540] sm:$0xff] }
 0x46e   :  { %v9369_v6 = vpop.f32.mrb[17].mxu0  ;;  %11166 = vmatprep.subr.bf16.mxu1 %v11165_v2  ;;  %11302 = vmatprep.subr.bf16.mxu0 %v11301_v45  ;;  %v11185_v1 = vpack.c.bf16 %v3643_v59, %v3640_v56  ;;  %v3639_v34 = vld [vmem:[%s17885_s7 + $0x3f0] sm:$0xff]  ;;  %v3642_v2 = vld [vmem:[%s17885_s7 + $0x408] sm:$0xff]  ;;  %v3649_v45 = vld [vmem:[%s17885_s7 + $0x440] sm:$0xff] }
 0x46f   :  { %v9370_v28 = vadd.f32 %v9369_v6, %v9368_v21  ;;  %v11187_v5 = vpack.c.bf16 %v3642_v2, %v3639_v34  ;;  %v11189_v8 = vpack.c.bf16 %v3649_v45, %v3646_v4  ;;  %v11191_v21 = vpack.c.bf16 %v3648_v17, %v3645_v16  ;;  %v3661_v6 = vld [vmem:[%s17885_s7 + $0x4a0] sm:$0xff]  ;;  %v3687_v59 = vld [vmem:[%s17885_s7 + $0x570] sm:$0xff] }
 0x470   :  { %3823 = vmatmul.mubr.f32.vlgmr.msra.gmra.mrb[18].mxu1 %v16378_v51  ;;  %v3653_v51 = vld [vmem:[%s17885_s7 + $0x460] sm:$0xff]  ;;  %v3703_v16 = vld [vmem:[%s17885_s7 + $0x5f0] sm:$0xff] }
 0x471   :  { %11168 = vmatpush1.bf16.msra.mxu1 %v11167_v63  ;;  %11304 = vmatpush3.bf16.msra.mxu0 %v11303_v23  ;;  %v16532_v38 = vadd.f32 %v9370_v28, %v3370_v13  ;;  %v11311_v46 = vpack.c.bf16 %v3656_v22, %v3653_v51  ;;  %v11193_v63 = vpack.c.bf16 %v3655_v24, %v3652_v9  ;;  %v3658_v23 = vld [vmem:[%s17885_s7 + $0x488] sm:$0xff]  ;;  %v3667_v13 = vld [vmem:[%s17885_s7 + $0x4d0] sm:$0xff]  ;;  %v3676_v51 = vld [vmem:[%s17885_s7 + $0x518] sm:$0xff] }
 0x472   :  { %11170 = vmatprep.subr.bf16.mxu1 %v11169_v25  ;;  %11306 = vmatprep.subr.bf16.mxu0 %v11305_v27  ;;  %v11195_v25 = vpack.c.bf16 %v3654_v10, %v3651_v20  ;;  %v11197_v47 = vpack.c.bf16 %v3661_v6, %v3658_v23  ;;  %v3657_v27 = vld [vmem:[%s17885_s7 + $0x480] sm:$0xff]  ;;  %v11201_v39 = vpack.c.bf16 %v3667_v13, %v3664_v30  ;;  %v3679_v22 = vld [vmem:[%s17885_s7 + $0x530] sm:$0xff]  ;;  %v3710_v30 = vld [vmem:[%s17885_s7 + $0x628] sm:$0xff] }
 0x473   :  { %v11199_v28 = vpack.c.bf16 %v3660_v29, %v3657_v27  ;;  %v11209_v57 = vpack.c.bf16 %v3679_v22, %v3676_v51  ;;  %v3697_v34 = vld [vmem:[%s17885_s7 + $0x5c0] sm:$0xff]  ;;  %v3699_v24 = vld [vmem:[%s17885_s7 + $0x5d0] sm:$0xff]  ;;  %v2863_v6 = vrot.slane %v16326_v26, %v14052_v15  ;;  %v3708_v27 = vld [vmem:[%s17885_s7 + $0x618] sm:$0xff] }
 0x474   :  { %v3693_v45 = vld [vmem:[%s17885_s7 + $0x5a0] sm:$0xff]  ;;  %v3707_v29 = vld [vmem:[%s17885_s7 + $0x610] sm:$0xff]  ;;  %v3716_v51 = vld [vmem:[%s17885_s7 + $0x658] sm:$0xff] }
 0x475   :  { %11172 = vmatpush1.bf16.msra.mxu1 %v11171_v44  ;;  %11308 = vmatpush3.bf16.msra.mxu0 %v11307_v52  ;;  %v3670_v44 = vld [vmem:[%s17885_s7 + $0x4e8] sm:$0xff]  ;;  %v11203_v52 = vpack.c.bf16 %v3666_v62, %v3663_v37  ;;  %v3709_v20 = vld [vmem:[%s17885_s7 + $0x620] sm:$0xff] }
 0x476   :  { %11174 = vmatprep.subr.bf16.mxu1 %v11173_v40  ;;  %11310 = vmatprep.subr.bf16.mxu0 %v11309_v42  ;;  %v11205_v40 = vpack.c.bf16 %v3673_v35, %v3670_v44  ;;  %v3672_v42 = vld [vmem:[%s17885_s7 + $0x4f8] sm:$0xff]  ;;  %v11314_v44 = vpack.c.bf16 %v3710_v30, %v3707_v29  ;;  %v3711_v35 = vld [vmem:[%s17885_s7 + $0x630] sm:$0xff]  ;;  %v3718_v22 = vld [vmem:[%s17885_s7 + $0x668] sm:$0xff] }
 0x477   :  { %v11207_v7 = vpack.c.bf16 %v3672_v42, %v3669_v36  ;;  %v3714_v36 = vld [vmem:[%s17885_s7 + $0x648] sm:$0xff]  ;;  %v3713_v42 = vld [vmem:[%s17885_s7 + $0x640] sm:$0xff] }
 0x478   :  { %v4234_v29 = vld [vmem:[#allocation5 + $0x1a8] sm:$0xff] }
 0x479   :  { %11176 = vmatpush1.bf16.msra.mxu1 %v11175_v58  ;;  %11312 = vmatpush3.bf16.msra.mxu0 %v11311_v46  ;;  %v3675_v58 = vld [vmem:[%s17885_s7 + $0x510] sm:$0xff]  ;;  %v3678_v46 = vld [vmem:[%s17885_s7 + $0x528] sm:$0xff] }
 0x47a   :  { %11178 = vmatprep.subr.bf16.mxu1 %v11177_v41  ;;  %11313 = vmatprep.subr.bf16.mxu0 %v13289_v61  ;;  %v3682_v41 = vld [vmem:[%s17885_s7 + $0x548] sm:$0xff]  ;;  %v11211_v33 = vpack.c.bf16 %v3678_v46, %v3675_v58  ;;  %v11317_v58 = vpack.c.bf16 %v3716_v51, %v3713_v42  ;;  %v3717_v46 = vld [vmem:[%s17885_s7 + $0x660] sm:$0xff] }
 0x47b   :  { %v11213_v49 = vpack.c.bf16 %v3685_v48, %v3682_v41  ;;  %v3720_v48 = vld [vmem:[%s17885_s7 + $0x678] sm:$0xff]  ;;  %v4187_v42 = vld [vmem:[#allocation5 + $0x30] sm:$0xff] }
 0x47d   :  { %11180 = vmatpush1.bf16.msra.mxu1 %v11179_v54  ;;  %v3684_v54 = vld [vmem:[%s17885_s7 + $0x558] sm:$0xff] }
 0x47e   :  { %11182 = vmatprep.subr.bf16.mxu1 %v11181_v55  ;;  %v3688_v55 = vld [vmem:[%s17885_s7 + $0x578] sm:$0xff]  ;;  %v11215_v19 = vpack.c.bf16 %v3684_v54, %v3681_v53  ;;  %v3727_v54 = vld [vmem:[%s17885_s7 + $0x6b0] sm:$0xff] }
 0x47f   :  { %v11217_v56 = vpack.c.bf16 %v3691_v31, %v3688_v55  ;;  %v3724_v53 = vld [vmem:[%s17885_s7 + $0x698] sm:$0xff]  ;;  %v11239_v55 = vpack.c.bf16 %v3720_v48, %v3717_v46  ;;  %v4192_v46 = vld [vmem:[#allocation5 + $0x58] sm:$0xff] }
 0x481   :  { %11184 = vmatpush1.bf16.msra.mxu1 %v11183_v43  ;;  %v3690_v43 = vld [vmem:[%s17885_s7 + $0x588] sm:$0xff] }
 0x482   :  { %11186 = vmatprep.subr.bf16.mxu1 %v11185_v1  ;;  %v3694_v1 = vld [vmem:[%s17885_s7 + $0x5a8] sm:$0xff]  ;;  %v11219_v2 = vpack.c.bf16 %v3690_v43, %v3687_v59  ;;  %v3725_v43 = vld [vmem:[%s17885_s7 + $0x6a0] sm:$0xff] }
 0x483   :  { %v11221_v4 = vpack.c.bf16 %v3697_v34, %v3694_v1  ;;  %v3726_v59 = vld [vmem:[%s17885_s7 + $0x6a8] sm:$0xff]  ;;  %v3728_v1 = vld [vmem:[%s17885_s7 + $0x6b8] sm:$0xff] }
 0x484   :  { %v3730_v34 = vld [vmem:[%s17885_s7 + $0x6c8] sm:$0xff] }
 0x485   :  { %11188 = vmatpush1.bf16.msra.mxu1 %v11187_v5  ;;  %v3696_v5 = vld [vmem:[%s17885_s7 + $0x5b8] sm:$0xff] }
 0x486   :  { %11190 = vmatprep.subr.bf16.mxu1 %v11189_v8  ;;  %v3700_v8 = vld [vmem:[%s17885_s7 + $0x5d8] sm:$0xff]  ;;  %v11223_v17 = vpack.c.bf16 %v3696_v5, %v3693_v45  ;;  %v11323_v45 = vpack.c.bf16 %v3728_v1, %v3725_v43  ;;  %v3729_v5 = vld [vmem:[%s17885_s7 + $0x6c0] sm:$0xff] }
 0x487   :  { %v11225_v9 = vpack.c.bf16 %v3703_v16, %v3700_v8  ;;  %v3732_v16 = vld [vmem:[%s17885_s7 + $0x6d8] sm:$0xff]  ;;  %v4202_v43 = vld [vmem:[#allocation5 + $0xa8] sm:$0xff] }
 0x488   :  { %v4206_v1 = vld [vmem:[#allocation5 + $0xc8] sm:$0xff] }
 0x489   :  { %11192 = vmatpush1.bf16.msra.mxu1 %v11191_v21  ;;  %v3702_v21 = vld [vmem:[%s17885_s7 + $0x5e8] sm:$0xff] }
 0x48a   :  { %11194 = vmatprep.subr.bf16.mxu1 %v11193_v63  ;;  %v3706_v63 = vld [vmem:[%s17885_s7 + $0x608] sm:$0xff]  ;;  %v11227_v10 = vpack.c.bf16 %v3702_v21, %v3699_v24  ;;  %v11247_v24 = vpack.c.bf16 %v3732_v16, %v3729_v5  ;;  %v4208_v5 = vld [vmem:[#allocation5 + $0xd8] sm:$0xff] }
 0x48b   :  { %v11229_v23 = vpack.c.bf16 %v3709_v20, %v3706_v63  ;;  %v3736_v63 = vld [vmem:[%s17885_s7 + $0x6f8] sm:$0xff]  ;;  %v4182_v20 = vld [vmem:[#allocation5 + $0x8] sm:$0xff]  ;;  %v4215_v16 = vld [vmem:[#allocation5 + $0x110] sm:$0xff] }
 0x48d   :  { %11196 = vmatpush1.bf16.msra.mxu1 %v11195_v25  ;;  %v3705_v25 = vld [vmem:[%s17885_s7 + $0x600] sm:$0xff] }
 0x48e   :  { %11198 = vmatprep.subr.bf16.mxu1 %v11197_v47  ;;  %v2859_v47 = vrot.slane %v16326_v26, %v14443_v50  ;;  %v3715_v26 = vld [vmem:[%s17885_s7 + $0x650] sm:$0xff]  ;;  %v11231_v62 = vpack.c.bf16 %v3708_v27, %v3705_v25  ;;  %v3737_v25 = vld [vmem:[%s17885_s7 + $0x700] sm:$0xff]  ;;  %v4231_v27 = vld [vmem:[#allocation5 + $0x190] sm:$0xff] }
 0x491   :  { %11200 = vmatpush1.bf16.msra.mxu1 %v11199_v28  ;;  %v3712_v28 = vld [vmem:[%s17885_s7 + $0x638] sm:$0xff] }
 0x492   :  { %11202 = vmatprep.subr.bf16.mxu1 %v11201_v39 }
 0x495   :  { %11204 = vmatpush1.bf16.msra.mxu1 %v11203_v52 }
 0x496   :  { %11206 = vmatprep.subr.bf16.mxu1 %v11205_v40  ;;  %v11233_v40 = vpack.c.bf16 %v3715_v26, %v3712_v28  ;;  %v4183_v28 = vld [vmem:[#allocation5 + $0x10] sm:$0xff]  ;;  %v4186_v26 = vld [vmem:[#allocation5 + $0x28] sm:$0xff] }
 0x497   :  { %v11398_v51 = vpack.c.bf16 %v4186_v26, %v4183_v28  ;;  %v4226_v28 = vld [vmem:[#allocation5 + $0x168] sm:$0xff] }
 0x498   :  { %v4230_v26 = vld [vmem:[#allocation5 + $0x188] sm:$0xff] }
 0x499   :  { %11208 = vmatpush1.bf16.msra.mxu1 %v11207_v7  ;;  %v3721_v7 = vld [vmem:[%s17885_s7 + $0x680] sm:$0xff] }
 0x49a   :  { %11210 = vmatprep.subr.bf16.mxu1 %v11209_v57  ;;  %v11235_v57 = vpack.c.bf16 %v3714_v36, %v3711_v35  ;;  %v11237_v41 = vpack.c.bf16 %v3721_v7, %v3718_v22  ;;  %v4240_v35 = vld [vmem:[#allocation5 + $0x1d8] sm:$0xff]  ;;  %v4190_v7 = vld [vmem:[#allocation5 + $0x48] sm:$0xff] }
 0x49b   :  { %v11334_v48 = vpack.c.bf16 %v4190_v7, %v4187_v42 }
 0x49d   :  { %11212 = vmatpush1.bf16.msra.mxu1 %v11211_v33  ;;  %v3719_v33 = vld [vmem:[%s17885_s7 + $0x670] sm:$0xff] }
 0x49e   :  { %11214 = vmatprep.subr.bf16.mxu1 %v11213_v49  ;;  %v3722_v49 = vld [vmem:[%s17885_s7 + $0x688] sm:$0xff] }
 0x49f   :  { %v11320_v31 = vpack.c.bf16 %v3722_v49, %v3719_v33 }
 0x4a1   :  { %11216 = vmatpush1.bf16.msra.mxu1 %v11215_v19  ;;  %v3723_v19 = vld [vmem:[%s17885_s7 + $0x690] sm:$0xff] }
 0x4a2   :  { %11218 = vmatprep.subr.bf16.mxu1 %v11217_v56  ;;  %v11241_v56 = vpack.c.bf16 %v3727_v54, %v3724_v53  ;;  %v4193_v53 = vld [vmem:[#allocation5 + $0x60] sm:$0xff]  ;;  %v4196_v54 = vld [vmem:[#allocation5 + $0x78] sm:$0xff] }
 0x4a5   :  { %11220 = vmatpush1.bf16.msra.mxu1 %v11219_v2  ;;  %v3733_v2 = vld [vmem:[%s17885_s7 + $0x6e0] sm:$0xff] }
 0x4a6   :  { %11222 = vmatprep.subr.bf16.mxu1 %v11221_v4  ;;  %v11243_v4 = vpack.c.bf16 %v3726_v59, %v3723_v19  ;;  %v11245_v8 = vpack.c.bf16 %v3733_v2, %v3730_v34  ;;  %v11338_v19 = vpack.c.bf16 %v4196_v54, %v4193_v53  ;;  %v4199_v59 = vld [vmem:[#allocation5 + $0x90] sm:$0xff]  ;;  %v4209_v34 = vld [vmem:[#allocation5 + $0xe0] sm:$0xff]  ;;  %v4244_v54 = vld [vmem:[#allocation5 + $0x1f8] sm:$0xff] }
 0x4a7   :  { %v11342_v2 = vpack.c.bf16 %v4202_v43, %v4199_v59  ;;  %v4241_v53 = vld [vmem:[#allocation5 + $0x1e0] sm:$0xff]  ;;  %v4248_v59 = vld [vmem:[#allocation5 + $0x218] sm:$0xff] }
 0x4a9   :  { %11224 = vmatpush1.bf16.msra.mxu1 %v11223_v17  ;;  %v3731_v17 = vld [vmem:[%s17885_s7 + $0x6d0] sm:$0xff] }
 0x4aa   :  { %11226 = vmatprep.subr.bf16.mxu1 %v11225_v9  ;;  %v3734_v9 = vld [vmem:[%s17885_s7 + $0x6e8] sm:$0xff] }
 0x4ab   :  { %v11326_v21 = vpack.c.bf16 %v3734_v9, %v3731_v17 }
 0x4ad   :  { %11228 = vmatpush1.bf16.msra.mxu1 %v11227_v10  ;;  %v4185_v10 = vld [vmem:[#allocation5 + $0x20] sm:$0xff] }
 0x4ae   :  { %11230 = vmatprep.subr.bf16.mxu1 %v11229_v23  ;;  %v4181_v23 = vld [vmem:[#allocation5] sm:$0xff] }
 0x4ed   :  { %v3298_v13 = vpop.f32.mrb[14].mxu1 }
 0x4ee   :  { %v3300_v39 = vpop.f32.mrb[15].mxu1  ;;  %v13006_v52 = vadd.f32 %v3298_v13, %v2859_v47  ;;  %v4184_v47 = vld [vmem:[#allocation5 + $0x18] sm:$0xff] }
 0x4ef   :  { %v13007_v37 = vadd.f32 %v3300_v39, %v2863_v6  ;;  %v3735_v6 = vld [vmem:[%s17885_s7 + $0x6f0] sm:$0xff]  ;;  %v11330_v36 = vpack.c.bf16 %v4184_v47, %v4181_v23 }
 0x4f0   :  { %v4188_v13 = vld [vmem:[#allocation5 + $0x38] sm:$0xff] }
 0x4f1   :  { %3893 = vmatprep.mubr.f32.mxu1 %v13007_v37  ;;  %4105 = vmatprep.mubr.f32.mxu0 %v13007_v37  ;;  %v4224_v47 = vld [vmem:[#allocation5 + $0x158] sm:$0xff] }
 0x4f2   :  { %3894 = vmatmul.mubr.f32.vlgmr.msra.gmra.mrb[18].mxu1 %v13006_v52  ;;  %4106 = vmatmul.mubr.f32.vlgmr.msra.gmra.mrb[20].mxu0 %v13006_v52  ;;  %v11328_v52 = vpack.c.bf16 %v4185_v10, %v4182_v20  ;;  %v4221_v20 = vld [vmem:[#allocation5 + $0x140] sm:$0xff] }
 0x4f3   :  { %11232 = vmatpush1.bf16.msra.mxu1 %v11231_v62  ;;  %11315 = vmatpush3.bf16.msra.mxu0 %v11314_v44  ;;  %v4191_v62 = vld [vmem:[#allocation5 + $0x50] sm:$0xff]  ;;  %v4237_v44 = vld [vmem:[#allocation5 + $0x1c0] sm:$0xff] }
 0x4f4   :  { %11234 = vmatprep.subr.bf16.mxu1 %v11233_v40  ;;  %11316 = vmatprep.subr.bf16.mxu0 %v13289_v61  ;;  %v11396_v40 = vpack.c.bf16 %v4234_v29, %v4231_v27  ;;  %v11332_v22 = vpack.c.bf16 %v4191_v62, %v4188_v13  ;;  %v4227_v27 = vld [vmem:[#allocation5 + $0x170] sm:$0xff] }
 0x4f5   :  { %3964 = vmatprep.mubr.f32.mxu1 %v13287_v0  ;;  %9854 = vmatprep.mubr.msk.f32.mxu0 %vm13290_vm6, %v13287_v0  ;;  %v4223_v13 = vld [vmem:[#allocation5 + $0x150] sm:$0xff] }
 0x4f7   :  { %11236 = vmatpush1.bf16.msra.mxu1 %v11235_v57  ;;  %11318 = vmatpush3.bf16.msra.mxu0 %v11317_v58  ;;  %v11400_v57 = vpack.c.bf16 %v4240_v35, %v4237_v44  ;;  %v4189_v58 = vld [vmem:[#allocation5 + $0x40] sm:$0xff]  ;;  %v4232_v35 = vld [vmem:[#allocation5 + $0x198] sm:$0xff] }
 0x4f8   :  { %11238 = vmatprep.subr.bf16.mxu1 %v11237_v41  ;;  %11319 = vmatprep.subr.bf16.mxu0 %v13289_v61  ;;  %v4197_v41 = vld [vmem:[#allocation5 + $0x80] sm:$0xff]  ;;  %v11402_v33 = vpack.c.bf16 %v4192_v46, %v4189_v58 }
 0x4f9   :  { %v4229_v44 = vld [vmem:[#allocation5 + $0x180] sm:$0xff] }
 0x4fb   :  { %11240 = vmatpush1.bf16.msra.mxu1 %v11239_v55  ;;  %11321 = vmatpush3.bf16.msra.mxu0 %v11320_v31  ;;  %v4200_v55 = vld [vmem:[#allocation5 + $0x98] sm:$0xff]  ;;  %v4203_v31 = vld [vmem:[#allocation5 + $0xb0] sm:$0xff] }
 0x4fc   :  { %11242 = vmatprep.subr.bf16.mxu1 %v11241_v56  ;;  %11322 = vmatprep.subr.bf16.mxu0 %v13289_v61  ;;  %v11340_v56 = vpack.c.bf16 %v4203_v31, %v4200_v55  ;;  %v11370_v31 = vpack.c.bf16 %v4244_v54, %v4241_v53  ;;  %v4222_v53 = vld [vmem:[#allocation5 + $0x148] sm:$0xff] }
 0x4ff   :  { %11244 = vmatpush1.bf16.msra.mxu1 %v11243_v4  ;;  %11324 = vmatpush3.bf16.msra.mxu0 %v11323_v45  ;;  %v11344_v4 = vpack.c.bf16 %v4209_v34, %v4206_v1  ;;  %v4205_v45 = vld [vmem:[#allocation5 + $0xc0] sm:$0xff]  ;;  %v4251_v1 = vld [vmem:[#allocation5 + $0x230] sm:$0xff] }
 0x500   :  { %11246 = vmatprep.subr.bf16.mxu1 %v11245_v8  ;;  %11325 = vmatprep.subr.bf16.mxu0 %v13289_v61  ;;  %v4212_v8 = vld [vmem:[#allocation5 + $0xf8] sm:$0xff]  ;;  %v11346_v17 = vpack.c.bf16 %v4208_v5, %v4205_v45  ;;  %v4249_v34 = vld [vmem:[#allocation5 + $0x220] sm:$0xff]  ;;  %v4247_v5 = vld [vmem:[#allocation5 + $0x210] sm:$0xff] }
 0x501   :  { %v11348_v9 = vpack.c.bf16 %v4215_v16, %v4212_v8  ;;  %v4250_v8 = vld [vmem:[#allocation5 + $0x228] sm:$0xff]  ;;  %v4201_v16 = vld [vmem:[#allocation5 + $0xa0] sm:$0xff] }
 0x503   :  { %11248 = vmatpush1.bf16.msra.mxu1 %v11247_v24  ;;  %11327 = vmatpush3.bf16.msra.mxu0 %v11326_v21  ;;  %v3509_v30 = vpop.f32.mrb[16].mxu1  ;;  %v4211_v24 = vld [vmem:[#allocation5 + $0xf0] sm:$0xff]  ;;  %v4214_v21 = vld [vmem:[#allocation5 + $0x108] sm:$0xff] }
 0x504   :  { %v3510_v39 = vadd.f32 %v3509_v30, %v16532_v38  ;;  %v9831_v37 = vpop.f32.mrb[17].mxu1  ;;  %3920 = vmatprep.subr.mxu1 %v3736_v63  ;;  %9852 = vmatprep.subr.mxu0 %v13287_v0  ;;  %v4194_v38 = vld [vmem:[#allocation5 + $0x68] sm:$0xff]  ;;  %v11350_v10 = vpack.c.bf16 %v4214_v21, %v4211_v24  ;;  %v11356_v30 = vpack.c.bf16 %v4227_v27, %v4224_v47  ;;  %v4257_v21 = vld [vmem:[#allocation5 + $0x260] sm:$0xff]  ;;  %v4256_v47 = vld [vmem:[#allocation5 + $0x258] sm:$0xff] }
 0x505   :  { %v11336_v49 = vpack.c.bf16 %v4197_v41, %v4194_v38  ;;  %v4218_v63 = vld [vmem:[#allocation5 + $0x128] sm:$0xff]  ;;  %v11358_v37 = vpack.c.bf16 %v4226_v28, %v4223_v13  ;;  %v4245_v41 = vld [vmem:[#allocation5 + $0x200] sm:$0xff]  ;;  %v4207_v27 = vld [vmem:[#allocation5 + $0xd0] sm:$0xff] }
 0x506   :  { %v11352_v23 = vpack.c.bf16 %v4221_v20, %v4218_v63  ;;  %v4242_v38 = vld [vmem:[#allocation5 + $0x1e8] sm:$0xff]  ;;  %v4260_v13 = vld [vmem:[#allocation5 + $0x278] sm:$0xff]  ;;  %v4263_v28 = vld [vmem:[#allocation5 + $0x290] sm:$0xff] }
 0x507   :  { %3921 = vmatpush1.msra.mxu1 %v3735_v6  ;;  %9853 = vmatpush3.msra.mxu0 %v3737_v25  ;;  %v4217_v6 = vld [vmem:[#allocation5 + $0x120] sm:$0xff]  ;;  %v4220_v25 = vld [vmem:[#allocation5 + $0x138] sm:$0xff]  ;;  %v4254_v24 = vld [vmem:[#allocation5 + $0x248] sm:$0xff] }
 0x508   :  { %9139 = vmatmul.mubr.msk.f32.vlgmr.msra.gmra.mrb[18].mxu1 %vm2873_vm5, %v3510_v39  ;;  %9855 = vmatmul.mubr.msk.f32.vlgmr.msra.gmra.mrb[22].mxu0 %vm2873_vm5, %v3510_v39  ;;  %v11354_v29 = vpack.c.bf16 %v4220_v25, %v4217_v6  ;;  %v4233_v39 = vld [vmem:[#allocation5 + $0x1a0] sm:$0xff]  ;;  %v11376_v20 = vpack.c.bf16 %v4257_v21, %v4254_v24  ;;  %v4643_v24 = vld [vmem:[%s17889_s11 + $0x190] sm:$0xff]  ;;  %v4646_v21 = vld [vmem:[%s17889_s11 + $0x1a8] sm:$0xff] }
 0x509   :  { %11329 = vmatprep.subr.bf16.mxu0 %v11328_v52  ;;  %11397 = vmatprep.subr.bf16.mxu1 %v11396_v40  ;;  %v11360_v62 = vpack.c.bf16 %v4233_v39, %v4230_v26  ;;  %v4236_v52 = vld [vmem:[#allocation5 + $0x1b8] sm:$0xff]  ;;  %v4239_v40 = vld [vmem:[#allocation5 + $0x1d0] sm:$0xff]  ;;  %v4253_v6 = vld [vmem:[#allocation5 + $0x240] sm:$0xff] }
 0x50a   :  { %11331 = vmatpush1.bf16.msra.mxu0 %v11330_v36  ;;  %11399 = vmatpush3.bf16.msra.mxu1 %v11398_v51  ;;  %v11362_v36 = vpack.c.bf16 %v4232_v35, %v4229_v44  ;;  %v11364_v42 = vpack.c.bf16 %v4239_v40, %v4236_v52  ;;  %v4235_v51 = vld [vmem:[#allocation5 + $0x1b0] sm:$0xff]  ;;  %v4261_v26 = vld [vmem:[#allocation5 + $0x280] sm:$0xff]  ;;  %v4262_v35 = vld [vmem:[#allocation5 + $0x288] sm:$0xff] }
 0x50b   :  { %11333 = vmatprep.subr.bf16.mxu0 %v11332_v22  ;;  %11401 = vmatprep.subr.bf16.mxu1 %v11400_v57  ;;  %v4238_v22 = vld [vmem:[#allocation5 + $0x1c8] sm:$0xff]  ;;  %v4259_v44 = vld [vmem:[#allocation5 + $0x270] sm:$0xff]  ;;  %v4213_v40 = vld [vmem:[#allocation5 + $0x100] sm:$0xff] }
 0x50c   :  { %v11366_v7 = vpack.c.bf16 %v4238_v22, %v4235_v51  ;;  %v4269_v51 = vld [vmem:[#allocation5 + $0x2c0] sm:$0xff]  ;;  %v4267_v22 = vld [vmem:[#allocation5 + $0x2b0] sm:$0xff] }
 0x50e   :  { %11335 = vmatpush1.bf16.msra.mxu0 %v11334_v48  ;;  %11403 = vmatpush3.bf16.msra.mxu1 %v11402_v33  ;;  %v4243_v48 = vld [vmem:[#allocation5 + $0x1f0] sm:$0xff]  ;;  %v11368_v33 = vpack.c.bf16 %v4245_v41, %v4242_v38  ;;  %v4265_v41 = vld [vmem:[#allocation5 + $0x2a0] sm:$0xff] }
 0x50f   :  { %11337 = vmatprep.subr.bf16.mxu0 %v11336_v49  ;;  %v4246_v49 = vld [vmem:[#allocation5 + $0x208] sm:$0xff] }
 0x510   :  { %v11404_v55 = vpack.c.bf16 %v4246_v49, %v4243_v48  ;;  %v4268_v48 = vld [vmem:[#allocation5 + $0x2b8] sm:$0xff]  ;;  %v4219_v49 = vld [vmem:[#allocation5 + $0x130] sm:$0xff] }
 0x511   :  { %v11386_v54 = vpack.c.bf16 %v4268_v48, %v4265_v41  ;;  %v4655_v41 = vld [vmem:[%s17889_s11 + $0x1f0] sm:$0xff]  ;;  %v4658_v48 = vld [vmem:[%s17889_s11 + $0x208] sm:$0xff] }
 0x512   :  { %11339 = vmatpush1.bf16.msra.mxu0 %v11338_v19  ;;  %v4195_v19 = vld [vmem:[#allocation5 + $0x70] sm:$0xff]  ;;  %11405 = vmatprep.subr.bf16.mxu1 %v11404_v55  ;;  %v11422_v55 = vpack.c.bf16 %v4222_v53, %v4219_v49  ;;  %v4282_v53 = vld [vmem:[#allocation5 + $0x328] sm:$0xff] }
 0x513   :  { %11341 = vmatprep.subr.bf16.mxu0 %v11340_v56  ;;  %v4198_v56 = vld [vmem:[#allocation5 + $0x88] sm:$0xff]  ;;  %v4279_v49 = vld [vmem:[#allocation5 + $0x310] sm:$0xff] }
 0x514   :  { %v11406_v43 = vpack.c.bf16 %v4198_v56, %v4195_v19  ;;  %v4275_v19 = vld [vmem:[#allocation5 + $0x2f0] sm:$0xff]  ;;  %v4273_v56 = vld [vmem:[#allocation5 + $0x2e0] sm:$0xff] }
 0x516   :  { %11343 = vmatpush1.bf16.msra.mxu0 %v11342_v2  ;;  %v4252_v2 = vld [vmem:[#allocation5 + $0x238] sm:$0xff]  ;;  %11407 = vmatpush3.bf16.msra.mxu1 %v11406_v43 }
 0x517   :  { %11345 = vmatprep.subr.bf16.mxu0 %v11344_v4  ;;  %v11372_v4 = vpack.c.bf16 %v4251_v1, %v4248_v59  ;;  %v11408_v45 = vpack.c.bf16 %v4252_v2, %v4249_v34  ;;  %v4276_v43 = vld [vmem:[#allocation5 + $0x2f8] sm:$0xff]  ;;  %v4271_v1 = vld [vmem:[#allocation5 + $0x2d0] sm:$0xff]  ;;  %v4274_v34 = vld [vmem:[#allocation5 + $0x2e8] sm:$0xff] }
 0x518   :  { %v11424_v2 = vpack.c.bf16 %v4276_v43, %v4273_v56  ;;  %v4661_v56 = vld [vmem:[%s17889_s11 + $0x220] sm:$0xff]  ;;  %v11429_v43 = vpack.c.bf16 %v4282_v53, %v4279_v49  ;;  %v4623_v53 = vld [vmem:[%s17889_s11 + $0xf0] sm:$0xff] }
 0x519   :  { %11409 = vmatprep.subr.bf16.mxu1 %v11408_v45  ;;  %v4225_v45 = vld [vmem:[#allocation5 + $0x160] sm:$0xff] }
 0x51a   :  { %11347 = vmatpush1.bf16.msra.mxu0 %v11346_v17  ;;  %v11374_v17 = vpack.c.bf16 %v4250_v8, %v4247_v5  ;;  %v4228_v5 = vld [vmem:[#allocation5 + $0x178] sm:$0xff] }
 0x51b   :  { %11349 = vmatprep.subr.bf16.mxu0 %v11348_v9  ;;  %v4204_v9 = vld [vmem:[#allocation5 + $0xb8] sm:$0xff]  ;;  %v11426_v8 = vpack.c.bf16 %v4228_v5, %v4225_v45  ;;  %v4596_v45 = vld [vmem:[%s17889_s11 + $0x18] sm:$0xff] }
 0x51c   :  { %v11410_v63 = vpack.c.bf16 %v4204_v9, %v4201_v16  ;;  %v4278_v16 = vld [vmem:[#allocation5 + $0x308] sm:$0xff] }
 0x51e   :  { %11351 = vmatpush1.bf16.msra.mxu0 %v11350_v10  ;;  %v4255_v10 = vld [vmem:[#allocation5 + $0x250] sm:$0xff]  ;;  %11411 = vmatpush3.bf16.msra.mxu1 %v11410_v63  ;;  %v11509_v63 = vpack.c.bf16 %v4646_v21, %v4643_v24  ;;  %v4667_v24 = vld [vmem:[%s17889_s11 + $0x250] sm:$0xff] }
 0x51f   :  { %11353 = vmatprep.subr.bf16.mxu0 %v11352_v23  ;;  %v4258_v23 = vld [vmem:[#allocation5 + $0x268] sm:$0xff]  ;;  %v4670_v21 = vld [vmem:[%s17889_s11 + $0x268] sm:$0xff] }
 0x520   :  { %v11412_v25 = vpack.c.bf16 %v4258_v23, %v4255_v10 }
 0x522   :  { %11355 = vmatpush1.bf16.msra.mxu0 %v11354_v29  ;;  %v4210_v29 = vld [vmem:[#allocation5 + $0xe8] sm:$0xff]  ;;  %11413 = vmatprep.subr.bf16.mxu1 %v11412_v25 }
 0x523   :  { %11357 = vmatprep.subr.bf16.mxu0 %v11356_v30  ;;  %v11378_v30 = vpack.c.bf16 %v4256_v47, %v4253_v6  ;;  %v11414_v39 = vpack.c.bf16 %v4210_v29, %v4207_v27 }
 0x525   :  { %11415 = vmatpush3.bf16.msra.mxu1 %v11414_v39 }
 0x526   :  { %11359 = vmatpush1.bf16.msra.mxu0 %v11358_v37  ;;  %v11380_v37 = vpack.c.bf16 %v4263_v28, %v4260_v13  ;;  %v4277_v13 = vld [vmem:[#allocation5 + $0x300] sm:$0xff]  ;;  %v4280_v28 = vld [vmem:[#allocation5 + $0x318] sm:$0xff] }
 0x527   :  { %11361 = vmatprep.subr.bf16.mxu0 %v11360_v62  ;;  %v4264_v62 = vld [vmem:[#allocation5 + $0x298] sm:$0xff] }
 0x528   :  { %v11416_v52 = vpack.c.bf16 %v4264_v62, %v4261_v26  ;;  %v4598_v62 = vld [vmem:[%s17889_s11 + $0x28] sm:$0xff] }
 0x52a   :  { %11363 = vmatpush1.bf16.msra.mxu0 %v11362_v36  ;;  %v4216_v36 = vld [vmem:[#allocation5 + $0x118] sm:$0xff]  ;;  %11417 = vmatprep.subr.bf16.mxu1 %v11416_v52  ;;  %v4649_v52 = vld [vmem:[%s17889_s11 + $0x1c0] sm:$0xff] }
 0x52b   :  { %11365 = vmatprep.subr.bf16.mxu0 %v11364_v42  ;;  %v4266_v42 = vld [vmem:[#allocation5 + $0x2a8] sm:$0xff] }
 0x52c   :  { %v11384_v38 = vpack.c.bf16 %v4269_v51, %v4266_v42  ;;  %v11394_v42 = vpack.c.bf16 %v4280_v28, %v4277_v13  ;;  %v4606_v13 = vld [vmem:[%s17889_s11 + $0x68] sm:$0xff]  ;;  %v4609_v28 = vld [vmem:[%s17889_s11 + $0x80] sm:$0xff] }
 0x52e   :  { %11367 = vmatpush1.bf16.msra.mxu0 %v11366_v7  ;;  %v4270_v7 = vld [vmem:[#allocation5 + $0x2c8] sm:$0xff] }
 0x52f   :  { %v9415_v57 = vpop.f32.mrb[18].mxu0  ;;  %11369 = vmatprep.subr.bf16.mxu0 %v11368_v33  ;;  %v11420_v33 = vpack.c.bf16 %v4270_v7, %v4267_v22  ;;  %v4284_v7 = vld [vmem:[#allocation5 + $0x338] sm:$0xff] }
 0x530   :  { %v9416_v58 = vpop.f32.mrb[19].mxu0 }
 0x531   :  { %v16814_v46 = vadd.f32 %v9416_v58, %v9415_v57  ;;  %v11382_v57 = vpack.c.bf16 %v4262_v35, %v4259_v44  ;;  %v11418_v58 = vpack.c.bf16 %v4216_v36, %v4213_v40  ;;  %v4652_v40 = vld [vmem:[%s17889_s11 + $0x1d8] sm:$0xff] }
 0x532   :  { %11371 = vmatpush1.bf16.msra.mxu0 %v11370_v31  ;;  %v4272_v31 = vld [vmem:[#allocation5 + $0x2d8] sm:$0xff] }
 0x533   :  { %11373 = vmatprep.subr.bf16.mxu0 %v11372_v4  ;;  %11419 = vmatpush3.bf16.msra.mxu1 %v11418_v58  ;;  %v11388_v59 = vpack.c.bf16 %v4275_v19, %v4272_v31  ;;  %v11390_v4 = vpack.c.bf16 %v4274_v34, %v4271_v1  ;;  %v4601_v58 = vld [vmem:[%s17889_s11 + $0x40] sm:$0xff]  ;;  %v4607_v31 = vld [vmem:[%s17889_s11 + $0x70] sm:$0xff]  ;;  %v4610_v19 = vld [vmem:[%s17889_s11 + $0x88] sm:$0xff] }
 0x534   :  { %11421 = vmatprep.subr.bf16.mxu1 %v11420_v33  ;;  %v4283_v33 = vld [vmem:[#allocation5 + $0x330] sm:$0xff]  ;;  %v11519_v34 = vpack.c.bf16 %v4610_v19, %v4607_v31  ;;  %v4633_v31 = vld [vmem:[%s17889_s11 + $0x140] sm:$0xff] }
 0x535   :  { %v4594_v1 = vld [vmem:[%s17889_s11 + $0x8] sm:$0xff] }
 0x536   :  { %11375 = vmatpush1.bf16.msra.mxu0 %v11374_v17  ;;  %v4281_v17 = vld [vmem:[#allocation5 + $0x320] sm:$0xff] }
 0x537   :  { %11377 = vmatprep.subr.bf16.mxu0 %v11376_v20  ;;  %11423 = vmatpush3.bf16.msra.mxu1 %v11422_v55  ;;  %v11392_v9 = vpack.c.bf16 %v4281_v17, %v4278_v16  ;;  %v3738_v20 = vld [vmem:[%s17886_s8] sm:$0x7]  ;;  %v11517_v55 = vpack.c.bf16 %v4658_v48, %v4655_v41  ;;  %v4616_v17 = vld [vmem:[%s17889_s11 + $0xb8] sm:$0xff]  ;;  %v4627_v48 = vld [vmem:[%s17889_s11 + $0x110] sm:$0xff] }
 0x538   :  { %11425 = vmatprep.subr.bf16.mxu1 %v11424_v2  ;;  %v3751_v10 = vrot.slane %v3738_v20, %v14443_v50  ;;  %v3747_v29 = vrot.slane %v3738_v20, %v14041_v12  ;;  %v4597_v2 = vld [vmem:[%s17889_s11 + $0x20] sm:$0xff]  ;;  %v4624_v41 = vld [vmem:[%s17889_s11 + $0xf8] sm:$0xff] }
 0x539   :  { %v4613_v16 = vld [vmem:[%s17889_s11 + $0xa0] sm:$0xff]  ;;  %v11451_v49 = vpack.c.bf16 %v4627_v48, %v4624_v41  ;;  %v4676_v41 = vld [vmem:[%s17889_s11 + $0x298] sm:$0xff]  ;;  %v4671_v48 = vld [vmem:[%s17889_s11 + $0x270] sm:$0xff] }
 0x53a   :  { %11379 = vmatpush1.bf16.msra.mxu0 %v11378_v30  ;;  %v4038_v25 = vadd.f32 %v16814_v46, %v3751_v10  ;;  %v3743_v30 = vrot.slane %v3738_v20, %v14049_v14  ;;  %v11431_v20 = vpack.c.bf16 %v4597_v2, %v4594_v1  ;;  %v4636_v1 = vld [vmem:[%s17889_s11 + $0x158] sm:$0xff] }
 0x53b   :  { %11381 = vmatprep.subr.bf16.mxu0 %v11380_v37  ;;  %11427 = vmatpush3.bf16.msra.mxu1 %v11426_v8  ;;  %v4595_v37 = vld [vmem:[%s17889_s11 + $0x10] sm:$0xff]  ;;  %v4600_v8 = vld [vmem:[%s17889_s11 + $0x38] sm:$0xff] }
 0x53c   :  { %11510 = vmatprep.subr.bf16.mxu1 %v11509_v63  ;;  %v11511_v22 = vpack.c.bf16 %v4598_v62, %v4595_v37  ;;  %v4285_v63 = vld [vmem:[#allocation5 + $0x340] sm:$0xff]  ;;  %v11439_v37 = vpack.c.bf16 %v4609_v28, %v4606_v13  ;;  %v4605_v62 = vld [vmem:[%s17889_s11 + $0x60] sm:$0xff] }
 0x53d   :  { %v4653_v13 = vld [vmem:[%s17889_s11 + $0x1e0] sm:$0xff]  ;;  %v4656_v28 = vld [vmem:[%s17889_s11 + $0x1f8] sm:$0xff] }
 0x53e   :  { %11383 = vmatpush1.bf16.msra.mxu0 %v11382_v57  ;;  %v11513_v57 = vpack.c.bf16 %v4652_v40, %v4649_v52 }
 0x53f   :  { %11385 = vmatprep.subr.bf16.mxu0 %v11384_v38  ;;  %v4604_v38 = vld [vmem:[%s17889_s11 + $0x58] sm:$0xff] }
 0x542   :  { %11387 = vmatpush1.bf16.msra.mxu0 %v11386_v54  ;;  %v11515_v54 = vpack.c.bf16 %v4604_v38, %v4601_v58  ;;  %v4617_v58 = vld [vmem:[%s17889_s11 + $0xc0] sm:$0xff]  ;;  %v4620_v38 = vld [vmem:[%s17889_s11 + $0xd8] sm:$0xff] }
 0x543   :  { %11389 = vmatprep.subr.bf16.mxu0 %v11388_v59  ;;  %v4664_v59 = vld [vmem:[%s17889_s11 + $0x238] sm:$0xff] }
 0x544   :  { %v11521_v5 = vpack.c.bf16 %v4664_v59, %v4661_v56  ;;  %v4629_v59 = vld [vmem:[%s17889_s11 + $0x120] sm:$0xff] }
 0x546   :  { %11391 = vmatpush1.bf16.msra.mxu0 %v11390_v4  ;;  %v4593_v4 = vld [vmem:[%s17889_s11] sm:$0xff] }
 0x547   :  { %11393 = vmatprep.subr.bf16.mxu0 %v11392_v9  ;;  %v4603_v9 = vld [vmem:[%s17889_s11 + $0x50] sm:$0xff]  ;;  %v11433_v10 = vpack.c.bf16 %v4596_v45, %v4593_v4 }
 0x548   :  { %v4635_v45 = vld [vmem:[%s17889_s11 + $0x150] sm:$0xff] }
 0x5c5   :  { %v9450_v23 = vpop.f32.mrb[20].mxu0 }
 0x5c6   :  { %v9451_v6 = vpop.f32.mrb[21].mxu0 }
 0x5c7   :  { %v9452_v47 = vadd.f32 %v9451_v6, %v9450_v23  ;;  %v4599_v23 = vld [vmem:[%s17889_s11 + $0x30] sm:$0xff]  ;;  %v11523_v6 = vpack.c.bf16 %v4616_v17, %v4613_v16  ;;  %v4645_v16 = vld [vmem:[%s17889_s11 + $0x1a0] sm:$0xff] }
 0x5c9   :  { %v4108_v27 = vadd.f32 %v9452_v47, %v4038_v25  ;;  %v11435_v25 = vpack.c.bf16 %v4603_v9, %v4600_v8  ;;  %v4602_v47 = vld [vmem:[%s17889_s11 + $0x48] sm:$0xff] }
 0x5ca   :  { %v4642_v8 = vld [vmem:[%s17889_s11 + $0x188] sm:$0xff] }
 0x5cb   :  { %v11463_v9 = vpack.c.bf16 %v4645_v16, %v4642_v8  ;;  %v4634_v8 = vld [vmem:[%s17889_s11 + $0x148] sm:$0xff] }
 0x5db   :  { %v3966_v26 = vpop.f32.mrb[18].mxu1  ;;  %v4177_v39 = vpop.f32.mrb[22].mxu0 }
 0x5dc   :  { %v16835_v44 = vadd.f32 %v4177_v39, %v4108_v27  ;;  %v3968_v46 = vpop.f32.mrb[19].mxu1  ;;  %v9856_v35 = vpop.f32.mrb[23].mxu0  ;;  %v13008_v51 = vadd.f32 %v3966_v26, %v3743_v30  ;;  %v11525_v27 = vpack.c.bf16 %v4670_v21, %v4667_v24  ;;  %v4622_v30 = vld [vmem:[%s17889_s11 + $0xe8] sm:$0xff]  ;;  %v11437_v26 = vpack.c.bf16 %v4602_v47, %v4599_v23  ;;  %v4641_v24 = vld [vmem:[%s17889_s11 + $0x180] sm:$0xff]  ;;  %v4644_v21 = vld [vmem:[%s17889_s11 + $0x198] sm:$0xff] }
 0x5dd   :  { %v13009_v36 = vadd.f32 %v3968_v46, %v3747_v29  ;;  %v4619_v29 = vld [vmem:[%s17889_s11 + $0xd0] sm:$0xff]  ;;  %v4608_v46 = vld [vmem:[%s17889_s11 + $0x78] sm:$0xff]  ;;  %v4654_v47 = vld [vmem:[%s17889_s11 + $0x1e8] sm:$0xff] }
 0x5de   :  { %v11527_v39 = vpack.c.bf16 %v4622_v30, %v4619_v29  ;;  %v4615_v35 = vld [vmem:[%s17889_s11 + $0xb0] sm:$0xff]  ;;  %v11441_v52 = vpack.c.bf16 %v4608_v46, %v4605_v62 }
 0x5df   :  { %4371 = vmatprep.mubr.f32.mxu0 %v13009_v36  ;;  %4513 = vmatprep.mubr.f32.mxu1 %v13009_v36  ;;  %v4611_v36 = vld [vmem:[%s17889_s11 + $0x90] sm:$0xff] }
 0x5e0   :  { %4372 = vmatmul.mubr.f32.vlgmr.msra.gmra.mrb[24].mxu0 %v13008_v51  ;;  %4514 = vmatmul.mubr.f32.vlgmr.msra.gmra.mrb[20].mxu1 %v13008_v51  ;;  %v4618_v51 = vld [vmem:[%s17889_s11 + $0xc8] sm:$0xff]  ;;  %v4659_v46 = vld [vmem:[%s17889_s11 + $0x210] sm:$0xff] }
 0x5e1   :  { %11395 = vmatpush1.bf16.msra.mxu0 %v11394_v42  ;;  %4442 = vmatprep.mubr.f32.mxu0 %v13287_v0  ;;  %v4614_v42 = vld [vmem:[%s17889_s11 + $0xa8] sm:$0xff] }
 0x5e2   :  { %4382 = vmatprep.subr.mxu0 %v4284_v7  ;;  %11512 = vmatpush3.bf16.msra.mxu1 %v11511_v22  ;;  %v4621_v22 = vld [vmem:[%s17889_s11 + $0xe0] sm:$0xff]  ;;  %v11445_v7 = vpack.c.bf16 %v4614_v42, %v4611_v36 }
 0x5e3   :  { %11514 = vmatprep.subr.bf16.mxu1 %v11513_v57  ;;  %v11447_v57 = vpack.c.bf16 %v4621_v22, %v4618_v51  ;;  %v4665_v42 = vld [vmem:[%s17889_s11 + $0x240] sm:$0xff]  ;;  %v4668_v51 = vld [vmem:[%s17889_s11 + $0x258] sm:$0xff] }
 0x5e4   :  { %v11481_v22 = vpack.c.bf16 %v4668_v51, %v4665_v42  ;;  %v4696_v42 = vld [vmem:[%s17889_s11 + $0x338] sm:$0xff]  ;;  %v4699_v51 = vld [vmem:[%s17889_s11 + $0x350] sm:$0xff] }
 0x5e5   :  { %4383 = vmatpush1.msra.mxu0 %v4283_v33  ;;  %v11449_v33 = vpack.c.bf16 %v4620_v38, %v4617_v58  ;;  %v4673_v58 = vld [vmem:[%s17889_s11 + $0x280] sm:$0xff] }
 0x5e6   :  { %11428 = vmatprep.subr.bf16.mxu0 %v13289_v61  ;;  %11516 = vmatpush3.bf16.msra.mxu1 %v11515_v54  ;;  %v4626_v54 = vld [vmem:[%s17889_s11 + $0x108] sm:$0xff] }
 0x5e7   :  { %11518 = vmatprep.subr.bf16.mxu1 %v11517_v55  ;;  %v4630_v55 = vld [vmem:[%s17889_s11 + $0x128] sm:$0xff]  ;;  %v11453_v19 = vpack.c.bf16 %v4626_v54, %v4623_v53  ;;  %v4625_v54 = vld [vmem:[%s17889_s11 + $0x100] sm:$0xff] }
 0x5e8   :  { %9141 = vmatmul.mubr.msk.f32.vlgmr.msra.gmra.mrb[24].mxu0 %vm4303_vm7, %v16835_v44  ;;  %v11455_v56 = vpack.c.bf16 %v4633_v31, %v4630_v55  ;;  %v4628_v55 = vld [vmem:[%s17889_s11 + $0x118] sm:$0xff] }
 0x5e9   :  { %11430 = vmatpush3.bf16.msra.mxu0 %v11429_v43  ;;  %9863 = vmatprep.mubr.msk.f32.mxu0 %vm13290_vm6, %v13287_v0  ;;  %v4632_v43 = vld [vmem:[%s17889_s11 + $0x138] sm:$0xff]  ;;  %v11531_v31 = vpack.c.bf16 %v4628_v55, %v4625_v54  ;;  %v4702_v55 = vld [vmem:[%s17889_s11 + $0x368] sm:$0xff] }
 0x5ea   :  { %9861 = vmatprep.subr.mxu0 %v13287_v0  ;;  %11520 = vmatpush3.bf16.msra.mxu1 %v11519_v34  ;;  %v4639_v34 = vld [vmem:[%s17889_s11 + $0x170] sm:$0xff]  ;;  %v11457_v2 = vpack.c.bf16 %v4632_v43, %v4629_v59  ;;  %v4700_v54 = vld [vmem:[%s17889_s11 + $0x358] sm:$0xff] }
 0x5eb   :  { %11522 = vmatprep.subr.bf16.mxu1 %v11521_v5  ;;  %v11459_v4 = vpack.c.bf16 %v4639_v34, %v4636_v1  ;;  %v4638_v5 = vld [vmem:[%s17889_s11 + $0x168] sm:$0xff]  ;;  %v4679_v59 = vld [vmem:[%s17889_s11 + $0x2b0] sm:$0xff]  ;;  %v4677_v34 = vld [vmem:[%s17889_s11 + $0x2a0] sm:$0xff] }
 0x5ec   :  { %v11461_v17 = vpack.c.bf16 %v4638_v5, %v4635_v45  ;;  %v4682_v1 = vld [vmem:[%s17889_s11 + $0x2c8] sm:$0xff]  ;;  %v4631_v5 = vld [vmem:[%s17889_s11 + $0x130] sm:$0xff] }
 0x5ed   :  { %9862 = vmatpush3.msra.mxu0 %v4285_v63  ;;  %v4648_v63 = vld [vmem:[%s17889_s11 + $0x1b8] sm:$0xff]  ;;  %v11535_v16 = vpack.c.bf16 %v4634_v8, %v4631_v5  ;;  %v4703_v5 = vld [vmem:[%s17889_s11 + $0x370] sm:$0xff]  ;;  %v4706_v8 = vld [vmem:[%s17889_s11 + $0x388] sm:$0xf] }
 0x5ee   :  { %9864 = vmatmul.mubr.msk.f32.vlgmr.msra.gmra.mrb[26].mxu0 %vm4303_vm7, %v16835_v44  ;;  %11432 = vmatprep.subr.bf16.mxu0 %v11431_v20  ;;  %v4612_v44 = vld [vmem:[%s17889_s11 + $0x98] sm:$0xff]  ;;  %v4651_v20 = vld [vmem:[%s17889_s11 + $0x1d0] sm:$0xff] }
 0x5ef   :  { %11434 = vmatpush1.bf16.msra.mxu0 %v11433_v10  ;;  %11524 = vmatpush3.bf16.msra.mxu1 %v11523_v6  ;;  %v11443_v40 = vpack.c.bf16 %v4615_v35, %v4612_v44  ;;  %v11465_v10 = vpack.c.bf16 %v4644_v21, %v4641_v24  ;;  %v11467_v23 = vpack.c.bf16 %v4651_v20, %v4648_v63  ;;  %v4647_v6 = vld [vmem:[%s17889_s11 + $0x1b0] sm:$0xff]  ;;  %v4662_v44 = vld [vmem:[%s17889_s11 + $0x228] sm:$0xff]  ;;  %v4685_v24 = vld [vmem:[%s17889_s11 + $0x2e0] sm:$0xff] }
 0x5f0   :  { %11436 = vmatprep.subr.bf16.mxu0 %v11435_v25  ;;  %11526 = vmatprep.subr.bf16.mxu1 %v11525_v27  ;;  %v4650_v25 = vld [vmem:[%s17889_s11 + $0x1c8] sm:$0xff]  ;;  %v4657_v27 = vld [vmem:[%s17889_s11 + $0x200] sm:$0xff]  ;;  %v4688_v63 = vld [vmem:[%s17889_s11 + $0x2f8] sm:$0xff] }
 0x5f1   :  { %v11469_v29 = vpack.c.bf16 %v4650_v25, %v4647_v6  ;;  %v11471_v30 = vpack.c.bf16 %v4657_v27, %v4654_v47  ;;  %v4666_v35 = vld [vmem:[%s17889_s11 + $0x248] sm:$0xff]  ;;  %v4683_v20 = vld [vmem:[%s17889_s11 + $0x2d0] sm:$0xff]  ;;  %v4637_v25 = vld [vmem:[%s17889_s11 + $0x160] sm:$0xff] }
 0x5f2   :  { %v4640_v47 = vld [vmem:[%s17889_s11 + $0x178] sm:$0xff] }
 0x5f3   :  { %11438 = vmatpush1.bf16.msra.mxu0 %v11437_v26  ;;  %11528 = vmatpush3.bf16.msra.mxu1 %v11527_v39  ;;  %v4660_v26 = vld [vmem:[%s17889_s11 + $0x218] sm:$0xff]  ;;  %v4663_v39 = vld [vmem:[%s17889_s11 + $0x230] sm:$0xff]  ;;  %v11539_v27 = vpack.c.bf16 %v4640_v47, %v4637_v25 }
 0x5f4   :  { %11440 = vmatprep.subr.bf16.mxu0 %v11439_v37  ;;  %v11473_v37 = vpack.c.bf16 %v4656_v28, %v4653_v13  ;;  %v11475_v62 = vpack.c.bf16 %v4663_v39, %v4660_v26 }
 0x5f7   :  { %11442 = vmatpush1.bf16.msra.mxu0 %v11441_v52  ;;  %v4669_v52 = vld [vmem:[%s17889_s11 + $0x260] sm:$0xff] }
 0x5f8   :  { %11444 = vmatprep.subr.bf16.mxu0 %v11443_v40  ;;  %v11477_v40 = vpack.c.bf16 %v4662_v44, %v4659_v46  ;;  %v11479_v36 = vpack.c.bf16 %v4669_v52, %v4666_v35  ;;  %v4689_v44 = vld [vmem:[%s17889_s11 + $0x300] sm:$0xff]  ;;  %v4692_v35 = vld [vmem:[%s17889_s11 + $0x318] sm:$0xff]  ;;  %v4691_v52 = vld [vmem:[%s17889_s11 + $0x310] sm:$0xff] }
 0x5fb   :  { %11446 = vmatpush1.bf16.msra.mxu0 %v11445_v7  ;;  %v4672_v7 = vld [vmem:[%s17889_s11 + $0x278] sm:$0xff] }
 0x5fc   :  { %11448 = vmatprep.subr.bf16.mxu0 %v11447_v57  ;;  %v4675_v57 = vld [vmem:[%s17889_s11 + $0x290] sm:$0xff] }
 0x5fd   :  { %v11483_v38 = vpack.c.bf16 %v4675_v57, %v4672_v7 }
 0x5ff   :  { %11450 = vmatpush1.bf16.msra.mxu0 %v11449_v33  ;;  %v4674_v33 = vld [vmem:[%s17889_s11 + $0x288] sm:$0xff] }
 0x600   :  { %11452 = vmatprep.subr.bf16.mxu0 %v11451_v49  ;;  %v11529_v49 = vpack.c.bf16 %v4676_v41, %v4673_v58  ;;  %v11485_v53 = vpack.c.bf16 %v4674_v33, %v4671_v48  ;;  %v4695_v48 = vld [vmem:[%s17889_s11 + $0x330] sm:$0xff]  ;;  %v11499_v33 = vpack.c.bf16 %v4699_v51, %v4696_v42 }
 0x601   :  { %v5065_v42 = vld [vmem:[#allocation7 + $0x170] sm:$0xff] }
 0x602   :  { %11530 = vmatprep.subr.bf16.mxu1 %v11529_v49  ;;  %v4698_v49 = vld [vmem:[%s17889_s11 + $0x348] sm:$0xff] }
 0x603   :  { %11454 = vmatpush1.bf16.msra.mxu0 %v11453_v19  ;;  %v4678_v19 = vld [vmem:[%s17889_s11 + $0x2a8] sm:$0xff]  ;;  %11532 = vmatpush3.bf16.msra.mxu1 %v11531_v31  ;;  %v4705_v31 = vld [vmem:[%s17889_s11 + $0x380] sm:$0xf] }
 0x604   :  { %11456 = vmatprep.subr.bf16.mxu0 %v11455_v56  ;;  %v4681_v56 = vld [vmem:[%s17889_s11 + $0x2c0] sm:$0xff] }
 0x605   :  { %v11487_v43 = vpack.c.bf16 %v4681_v56, %v4678_v19 }
 0x607   :  { %11458 = vmatpush1.bf16.msra.mxu0 %v11457_v2  ;;  %v4680_v2 = vld [vmem:[%s17889_s11 + $0x2b8] sm:$0xff] }
 0x608   :  { %11460 = vmatprep.subr.bf16.mxu0 %v11459_v4  ;;  %v11533_v4 = vpack.c.bf16 %v4682_v1, %v4679_v59  ;;  %v11489_v45 = vpack.c.bf16 %v4680_v2, %v4677_v34  ;;  %v11501_v59 = vpack.c.bf16 %v4698_v49, %v4695_v48  ;;  %v4701_v1 = vld [vmem:[%s17889_s11 + $0x360] sm:$0xff]  ;;  %v5074_v49 = vld [vmem:[#allocation7 + $0x1b8] sm:$0xff] }
 0x60a   :  { %11534 = vmatprep.subr.bf16.mxu1 %v11533_v4  ;;  %v11503_v4 = vpack.c.bf16 %v4705_v31, %v4702_v55 }
 0x60b   :  { %11462 = vmatpush1.bf16.msra.mxu0 %v11461_v17  ;;  %v4684_v17 = vld [vmem:[%s17889_s11 + $0x2d8] sm:$0xff]  ;;  %11536 = vmatpush3.bf16.msra.mxu1 %v11535_v16 }
 0x60c   :  { %11464 = vmatprep.subr.bf16.mxu0 %v11463_v9  ;;  %v4687_v9 = vld [vmem:[%s17889_s11 + $0x2f0] sm:$0xff] }
 0x60d   :  { %v11491_v21 = vpack.c.bf16 %v4687_v9, %v4684_v17  ;;  %v5020_v17 = vld [vmem:[#allocation7 + $0x8] sm:$0xff]  ;;  %v5025_v9 = vld [vmem:[#allocation7 + $0x30] sm:$0xff] }
 0x60f   :  { %11466 = vmatpush1.bf16.msra.mxu0 %v11465_v10  ;;  %v4686_v10 = vld [vmem:[%s17889_s11 + $0x2e8] sm:$0xff] }
 0x610   :  { %11468 = vmatprep.subr.bf16.mxu0 %v11467_v23  ;;  %v11537_v23 = vpack.c.bf16 %v4688_v63, %v4685_v24  ;;  %v11493_v6 = vpack.c.bf16 %v4686_v10, %v4683_v20  ;;  %v11551_v63 = vpack.c.bf16 %v5025_v9, %v5020_v17  ;;  %v5019_v20 = vld [vmem:[#allocation7] sm:$0xff]  ;;  %v5024_v10 = vld [vmem:[#allocation7 + $0x28] sm:$0xff] }
 0x611   :  { %v11553_v25 = vpack.c.bf16 %v5024_v10, %v5019_v20  ;;  %v5099_v17 = vld [vmem:[#allocation7 + $0x280] sm:$0xff]  ;;  %v5104_v9 = vld [vmem:[#allocation7 + $0x2a8] sm:$0xff]  ;;  %v5109_v10 = vld [vmem:[#allocation7 + $0x2d0] sm:$0xff] }
 0x612   :  { %11538 = vmatprep.subr.bf16.mxu1 %v11537_v23  ;;  %v5030_v23 = vld [vmem:[#allocation7 + $0x58] sm:$0xff] }
 0x613   :  { %11470 = vmatpush1.bf16.msra.mxu0 %v11469_v29  ;;  %v4690_v29 = vld [vmem:[%s17889_s11 + $0x308] sm:$0xff]  ;;  %11540 = vmatpush3.bf16.msra.mxu1 %v11539_v27  ;;  %v5029_v27 = vld [vmem:[#allocation7 + $0x50] sm:$0xff] }
 0x614   :  { %11472 = vmatprep.subr.bf16.mxu0 %v11471_v30  ;;  %v4693_v30 = vld [vmem:[%s17889_s11 + $0x320] sm:$0xff]  ;;  %11541 = vmatprep.subr.bf16.mxu1 %v13289_v61 }
 0x615   :  { %v11495_v13 = vpack.c.bf16 %v4693_v30, %v4690_v29  ;;  %v5034_v29 = vld [vmem:[#allocation7 + $0x78] sm:$0xff]  ;;  %v5040_v30 = vld [vmem:[#allocation7 + $0xa8] sm:$0xff] }
 0x617   :  { %11474 = vmatpush1.bf16.msra.mxu0 %v11473_v37  ;;  %v4286_v37 = vld [vmem:[%s17888_s10] sm:$0x7] }
 0x618   :  { %11476 = vmatprep.subr.bf16.mxu0 %v11475_v62  ;;  %v4291_v62 = vrot.slane %v4286_v37, %v14049_v14  ;;  %v4295_v46 = vrot.slane %v4286_v37, %v14041_v12  ;;  %v4299_v57 = vrot.slane %v4286_v37, %v14443_v50  ;;  %v5044_v37 = vld [vmem:[#allocation7 + $0xc8] sm:$0xff] }
 0x61b   :  { %11478 = vmatpush1.bf16.msra.mxu0 %v11477_v40  ;;  %v4694_v40 = vld [vmem:[%s17889_s11 + $0x328] sm:$0xff] }
 0x61c   :  { %11480 = vmatprep.subr.bf16.mxu0 %v11479_v36  ;;  %v11542_v41 = vpack.c.bf16 %v4694_v40, %v4691_v52  ;;  %v5049_v52 = vld [vmem:[#allocation7 + $0xf0] sm:$0xff]  ;;  %v5054_v40 = vld [vmem:[#allocation7 + $0x118] sm:$0xff] }
 0x61d   :  { %v11565_v51 = vpack.c.bf16 %v5054_v40, %v5049_v52  ;;  %v5139_v40 = vld [vmem:[#allocation7 + $0x3c0] sm:$0xff] }
 0x61f   :  { %11482 = vmatpush1.bf16.msra.mxu0 %v11481_v22 }
 0x620   :  { %11484 = vmatprep.subr.bf16.mxu0 %v11483_v38  ;;  %v11497_v38 = vpack.c.bf16 %v4692_v35, %v4689_v44 }
 0x623   :  { %11486 = vmatpush1.bf16.msra.mxu0 %v11485_v53  ;;  %v4697_v53 = vld [vmem:[%s17889_s11 + $0x340] sm:$0xff] }
 0x624   :  { %11488 = vmatprep.subr.bf16.mxu0 %v11487_v43  ;;  %v11545_v43 = vpack.c.bf16 %v4700_v54, %v4697_v53  ;;  %v5080_v53 = vld [vmem:[#allocation7 + $0x1e8] sm:$0xff]  ;;  %v5085_v54 = vld [vmem:[#allocation7 + $0x210] sm:$0xff] }
 0x625   :  { %v11575_v31 = vpack.c.bf16 %v5085_v54, %v5080_v53 }
 0x627   :  { %11490 = vmatpush1.bf16.msra.mxu0 %v11489_v45  ;;  %v4704_v45 = vld [vmem:[%s17889_s11 + $0x378] sm:$0xf] }
 0x628   :  { %11492 = vmatprep.subr.bf16.mxu0 %v11491_v21  ;;  %v11506_v24 = vpack.c.bf16 %v4704_v45, %v4701_v1  ;;  %v11548_v21 = vpack.c.bf16 %v4706_v8, %v4703_v5  ;;  %v5100_v45 = vld [vmem:[#allocation7 + $0x288] sm:$0xff]  ;;  %v5105_v5 = vld [vmem:[#allocation7 + $0x2b0] sm:$0xff] }
 0x629   :  { %v11583_v16 = vpack.c.bf16 %v5105_v5, %v5100_v45  ;;  %v5174_v45 = vld [vmem:[#allocation7 + $0x4d8] sm:$0xff] }
 0x62a   :  { %v5190_v5 = vld [vmem:[#allocation7 + $0x558] sm:$0xff] }
 0x62b   :  { %11494 = vmatpush1.bf16.msra.mxu0 %v11493_v6  ;;  %v5035_v6 = vld [vmem:[#allocation7 + $0x80] sm:$0xff] }
 0x62c   :  { %11496 = vmatprep.subr.bf16.mxu0 %v11495_v13  ;;  %v11555_v47 = vpack.c.bf16 %v5035_v6, %v5030_v23  ;;  %v5045_v13 = vld [vmem:[#allocation7 + $0xd0] sm:$0xff]  ;;  %v5114_v23 = vld [vmem:[#allocation7 + $0x2f8] sm:$0xff]  ;;  %v5120_v6 = vld [vmem:[#allocation7 + $0x328] sm:$0xff] }
 0x6b3   :  { %v9497_v28 = vpop.f32.mrb[20].mxu1 }
 0x6b4   :  { %v9498_v26 = vpop.f32.mrb[21].mxu1 }
 0x6b5   :  { %v9499_v39 = vadd.f32 %v9498_v26, %v9497_v28  ;;  %v11557_v28 = vpack.c.bf16 %v5034_v29, %v5029_v27  ;;  %v11559_v26 = vpack.c.bf16 %v5045_v13, %v5040_v30  ;;  %v5119_v29 = vld [vmem:[#allocation7 + $0x320] sm:$0xff]  ;;  %v5124_v30 = vld [vmem:[#allocation7 + $0x348] sm:$0xff]  ;;  %v5130_v13 = vld [vmem:[#allocation7 + $0x378] sm:$0xff] }
 0x6b7   :  { %v4516_v19 = vadd.f32 %v9499_v39, %v4299_v57  ;;  %v5039_v39 = vld [vmem:[#allocation7 + $0xa0] sm:$0xff]  ;;  %v5064_v57 = vld [vmem:[#allocation7 + $0x168] sm:$0xff] }
 0x6b8   :  { %v11561_v44 = vpack.c.bf16 %v5044_v37, %v5039_v39  ;;  %v5129_v37 = vld [vmem:[#allocation7 + $0x370] sm:$0xff] }
 0x6bb   :  { %v4444_v36 = vpop.f32.mrb[24].mxu0 }
 0x6bc   :  { %v13010_v22 = vadd.f32 %v4444_v36, %v4291_v62  ;;  %v4446_v7 = vpop.f32.mrb[25].mxu0  ;;  %v5050_v62 = vld [vmem:[#allocation7 + $0xf8] sm:$0xff]  ;;  %v5060_v36 = vld [vmem:[#allocation7 + $0x148] sm:$0xff] }
 0x6bd   :  { %v13011_v58 = vadd.f32 %v4446_v7, %v4295_v46  ;;  %v5055_v46 = vld [vmem:[#allocation7 + $0x120] sm:$0xff] }
 0x6be   :  { %4589 = vst [vmem:[#allocation11] sm:$0xff] %v13010_v22  ;;  %v11563_v35 = vpack.c.bf16 %v5055_v46, %v5050_v62  ;;  %v5059_v7 = vld [vmem:[#allocation7 + $0x140] sm:$0xff]  ;;  %v5134_v62 = vld [vmem:[#allocation7 + $0x398] sm:$0xff]  ;;  %v5140_v46 = vld [vmem:[#allocation7 + $0x3c8] sm:$0xff] }
 0x6bf   :  { %4590 = vst [vmem:[#allocation11 + $0x8] sm:$0xff] %v13011_v58  ;;  %4801 = vmatprep.mubr.f32.mxu0 %v13011_v58  ;;  %4943 = vmatprep.mubr.f32.mxu1 %v13011_v58  ;;  %v5070_v58 = vld [vmem:[#allocation7 + $0x198] sm:$0xff] }
 0x6c0   :  { %4802 = vmatmul.mubr.f32.vlgmr.msra.gmra.mrb[28].mxu0 %v13010_v22  ;;  %4944 = vmatmul.mubr.f32.vlgmr.msra.gmra.mrb[22].mxu1 %v13010_v22  ;;  %v11567_v22 = vpack.c.bf16 %v5065_v42, %v5060_v36  ;;  %v5144_v36 = vld [vmem:[#allocation7 + $0x3e8] sm:$0xff] }
 0x6c1   :  { %v4585_v56 = vpop.f32.mrb[26].mxu0  ;;  %11498 = vmatpush1.bf16.msra.mxu0 %v11497_v38  ;;  %11543 = vmatpush3.bf16.msra.mxu1 %v11542_v41  ;;  %v5075_v38 = vld [vmem:[#allocation7 + $0x1c0] sm:$0xff]  ;;  %v11569_v41 = vpack.c.bf16 %v5064_v57, %v5059_v7  ;;  %v11601_v42 = vpack.c.bf16 %v5144_v36, %v5139_v40  ;;  %v5149_v57 = vld [vmem:[#allocation7 + $0x410] sm:$0xff]  ;;  %v5118_v40 = vld [vmem:[#allocation7 + $0x318] sm:$0xff] }
 0x6c2   :  { %v4586_v34 = vadd.f32 %v4585_v56, %v4516_v19  ;;  %v9865_v2 = vpop.f32.mrb[27].mxu0  ;;  %11500 = vmatprep.subr.bf16.mxu0 %v11499_v33  ;;  %11544 = vmatprep.subr.bf16.mxu1 %v13289_v61  ;;  %v11571_v48 = vpack.c.bf16 %v5075_v38, %v5070_v58  ;;  %v5069_v33 = vld [vmem:[#allocation7 + $0x190] sm:$0xff]  ;;  %v5079_v19 = vld [vmem:[#allocation7 + $0x1e0] sm:$0xff]  ;;  %v5084_v56 = vld [vmem:[#allocation7 + $0x208] sm:$0xff] }
 0x6c3   :  { %4872 = vmatprep.mubr.f32.mxu0 %v13287_v0  ;;  %9878 = vmatprep.mubr.msk.f32.mxu1 %vm13290_vm6, %v13287_v0  ;;  %v11573_v55 = vpack.c.bf16 %v5074_v49, %v5069_v33  ;;  %v11577_v1 = vpack.c.bf16 %v5084_v56, %v5079_v19  ;;  %v5089_v2 = vld [vmem:[#allocation7 + $0x230] sm:$0xff]  ;;  %v5154_v58 = vld [vmem:[#allocation7 + $0x438] sm:$0xff]  ;;  %v5160_v38 = vld [vmem:[#allocation7 + $0x468] sm:$0xff] }
 0x6c4   :  { %4592 = vst.msk [vmem:[#allocation11 + $0x10] sm:$0xff] %vm4591_vm9, %v4586_v34  ;;  %v5180_v33 = vld [vmem:[#allocation7 + $0x508] sm:$0xff]  ;;  %v5185_v49 = vld [vmem:[#allocation7 + $0x530] sm:$0xff]  ;;  %v5179_v19 = vld [vmem:[#allocation7 + $0x500] sm:$0xff] }
 0x6c5   :  { %11502 = vmatpush1.bf16.msra.mxu0 %v11501_v59  ;;  %11546 = vmatpush3.bf16.msra.mxu1 %v11545_v43  ;;  %v5090_v59 = vld [vmem:[#allocation7 + $0x238] sm:$0xff]  ;;  %v5095_v43 = vld [vmem:[#allocation7 + $0x260] sm:$0xff]  ;;  %v11615_v54 = vpack.c.bf16 %v5185_v49, %v5180_v33 }
 0x6c6   :  { %11505 = vmatprep.subr.msk.bf16.mxu0 %vm17186_vm10, %v11503_v4  ;;  %11547 = vmatprep.subr.bf16.mxu1 %v13289_v61  ;;  %v5094_v4 = vld [vmem:[#allocation7 + $0x258] sm:$0xff] }
 0x6c7   :  { %v11581_v8 = vpack.c.bf16 %v5094_v4, %v5089_v2  ;;  %v5169_v4 = vld [vmem:[#allocation7 + $0x4b0] sm:$0xff] }
 0x6c9   :  { %11508 = vmatpush1.bf16.msk.msra.mxu0 %vm17186_vm10, %v11506_v24  ;;  %11550 = vmatpush3.bf16.msk.msra.mxu1 %vm17186_vm10, %v11548_v21  ;;  %v5110_v24 = vld [vmem:[#allocation7 + $0x2d8] sm:$0xff]  ;;  %v5115_v21 = vld [vmem:[#allocation7 + $0x300] sm:$0xff] }
 0x6ca   :  { %11552 = vmatprep.subr.bf16.mxu1 %v11551_v63  ;;  %v11585_v63 = vpack.c.bf16 %v5104_v9, %v5099_v17  ;;  %v11587_v20 = vpack.c.bf16 %v5115_v21, %v5110_v24  ;;  %11616 = vmatprep.subr.bf16.mxu0 %v11615_v54  ;;  %v5027_v17 = vld [vmem:[#allocation7 + $0x40] sm:$0xff]  ;;  %v5189_v9 = vld [vmem:[#allocation7 + $0x550] sm:$0xff]  ;;  %v5038_v54 = vld [vmem:[#allocation7 + $0x98] sm:$0xff] }
 0x6cb   :  { %v5103_v21 = vld [vmem:[#allocation7 + $0x2a0] sm:$0xff] }
 0x6cc   :  { %9145 = vmatmul.mubr.msk.f32.vlgmr.msra.gmra.mrb[28].mxu0 %vm4591_vm9, %v4586_v34  ;;  %9879 = vmatmul.mubr.msk.f32.vlgmr.msra.gmra.mrb[24].mxu1 %vm4591_vm9, %v4586_v34  ;;  %v11579_v34 = vpack.c.bf16 %v5095_v43, %v5090_v59  ;;  %v5184_v59 = vld [vmem:[#allocation7 + $0x528] sm:$0xff] }
 0x6cd   :  { %11554 = vmatpush1.bf16.msra.mxu1 %v11553_v25  ;;  %5359 = vmatprep.mubr.f32.mxu0 %v13287_v0  ;;  %v5125_v25 = vld [vmem:[#allocation7 + $0x350] sm:$0xff]  ;;  %v11617_v43 = vpack.c.bf16 %v5184_v59, %v5179_v19  ;;  %v5128_v19 = vld [vmem:[#allocation7 + $0x368] sm:$0xff] }
 0x6ce   :  { %11556 = vmatprep.subr.bf16.mxu1 %v11555_v47  ;;  %v11589_v47 = vpack.c.bf16 %v5114_v23, %v5109_v10  ;;  %v11591_v27 = vpack.c.bf16 %v5125_v25, %v5120_v6  ;;  %v4707_v25 = vld [vmem:[%s17890_s12] sm:$0x7]  ;;  %v5041_v59 = vld [vmem:[#allocation7 + $0xb0] sm:$0xff] }
 0x6cf   :  { %11618 = vmatpush1.bf16.msra.mxu0 %v11617_v43  ;;  %v5046_v43 = vld [vmem:[#allocation7 + $0xd8] sm:$0xff] }
 0x6d0   :  { %5299 = vmatprep.subr.mxu0 %v5190_v5  ;;  %v5048_v5 = vld [vmem:[#allocation7 + $0xe8] sm:$0xff] }
 0x6d1   :  { %11558 = vmatpush1.bf16.msra.mxu1 %v11557_v28  ;;  %v5135_v28 = vld [vmem:[#allocation7 + $0x3a0] sm:$0xff] }
 0x6d2   :  { %11560 = vmatprep.subr.bf16.mxu1 %v11559_v26  ;;  %v11593_v26 = vpack.c.bf16 %v5124_v30, %v5119_v29  ;;  %v11595_v39 = vpack.c.bf16 %v5135_v28, %v5130_v13  ;;  %v5026_v29 = vld [vmem:[#allocation7 + $0x38] sm:$0xff]  ;;  %v4716_v30 = vrot.slane %v4707_v25, %v14041_v12  ;;  %v5023_v13 = vld [vmem:[#allocation7 + $0x20] sm:$0xff]  ;;  %v4712_v28 = vrot.slane %v4707_v25, %v14049_v14 }
 0x6d3   :  { %5300 = vmatpush1.msra.mxu0 %v5189_v9 }
 0x6d5   :  { %11562 = vmatpush1.bf16.msra.mxu1 %v11561_v44  ;;  %v5145_v44 = vld [vmem:[#allocation7 + $0x3f0] sm:$0xff] }
 0x6d6   :  { %11564 = vmatprep.subr.bf16.mxu1 %v11563_v35  ;;  %v11597_v35 = vpack.c.bf16 %v5134_v62, %v5129_v37  ;;  %v11599_v52 = vpack.c.bf16 %v5145_v44, %v5140_v46  ;;  %v5032_v37 = vld [vmem:[#allocation7 + $0x68] sm:$0xff]  ;;  %v5037_v62 = vld [vmem:[#allocation7 + $0x90] sm:$0xff] }
 0x6d9   :  { %11566 = vmatpush1.bf16.msra.mxu1 %v11565_v51  ;;  %v5150_v51 = vld [vmem:[#allocation7 + $0x418] sm:$0xff] }
 0x6da   :  { %11568 = vmatprep.subr.bf16.mxu1 %v11567_v22  ;;  %v5155_v22 = vld [vmem:[#allocation7 + $0x440] sm:$0xff] }
 0x6db   :  { %v11603_v7 = vpack.c.bf16 %v5155_v22, %v5150_v51  ;;  %v5031_v22 = vld [vmem:[#allocation7 + $0x60] sm:$0xff] }
 0x6dd   :  { %11570 = vmatpush1.bf16.msra.mxu1 %v11569_v41  ;;  %v11605_v41 = vpack.c.bf16 %v5154_v58, %v5149_v57 }
 0x6de   :  { %11572 = vmatprep.subr.bf16.mxu1 %v11571_v48  ;;  %v5165_v48 = vld [vmem:[#allocation7 + $0x490] sm:$0xff] }
 0x6df   :  { %v11607_v53 = vpack.c.bf16 %v5165_v48, %v5160_v38  ;;  %v11623_v38 = vpack.c.bf16 %v5037_v62, %v5032_v37  ;;  %v5047_v48 = vld [vmem:[#allocation7 + $0xe0] sm:$0xff]  ;;  %v5077_v37 = vld [vmem:[#allocation7 + $0x1d0] sm:$0xff] }
 0x6e1   :  { %11574 = vmatpush1.bf16.msra.mxu1 %v11573_v55  ;;  %v5159_v55 = vld [vmem:[#allocation7 + $0x460] sm:$0xff] }
 0x6e2   :  { %11576 = vmatprep.subr.bf16.mxu1 %v11575_v31  ;;  %v5164_v31 = vld [vmem:[#allocation7 + $0x488] sm:$0xff] }
 0x6e3   :  { %v11609_v56 = vpack.c.bf16 %v5164_v31, %v5159_v55  ;;  %v5123_v31 = vld [vmem:[#allocation7 + $0x340] sm:$0xff] }
 0x6e5   :  { %11578 = vmatpush1.bf16.msra.mxu1 %v11577_v1  ;;  %v5170_v1 = vld [vmem:[#allocation7 + $0x4b8] sm:$0xff] }
 0x6e6   :  { %11580 = vmatprep.subr.bf16.mxu1 %v11579_v34  ;;  %v5175_v34 = vld [vmem:[#allocation7 + $0x4e0] sm:$0xff] }
 0x6e7   :  { %v11611_v2 = vpack.c.bf16 %v5175_v34, %v5170_v1  ;;  %v5052_v34 = vld [vmem:[#allocation7 + $0x108] sm:$0xff] }
 0x6e9   :  { %11582 = vmatpush1.bf16.msra.mxu1 %v11581_v8  ;;  %v11613_v8 = vpack.c.bf16 %v5174_v45, %v5169_v4  ;;  %v11695_v4 = vpack.c.bf16 %v5128_v19, %v5123_v31  ;;  %v5043_v45 = vld [vmem:[#allocation7 + $0xc0] sm:$0xff]  ;;  %v5081_v31 = vld [vmem:[#allocation7 + $0x1f0] sm:$0xff]  ;;  %v5086_v19 = vld [vmem:[#allocation7 + $0x218] sm:$0xff] }
 0x6ea   :  { %11584 = vmatprep.subr.bf16.mxu1 %v11583_v16  ;;  %v5022_v16 = vld [vmem:[#allocation7 + $0x18] sm:$0xff] }
 0x6eb   :  { %v11619_v24 = vpack.c.bf16 %v5027_v17, %v5022_v16  ;;  %v5133_v16 = vld [vmem:[#allocation7 + $0x390] sm:$0xff]  ;;  %v5138_v17 = vld [vmem:[#allocation7 + $0x3b8] sm:$0xff] }
 0x6ed   :  { %11586 = vmatpush1.bf16.msra.mxu1 %v11585_v63  ;;  %11620 = vmatprep.subr.bf16.mxu0 %v11619_v24  ;;  %v5108_v63 = vld [vmem:[#allocation7 + $0x2c8] sm:$0xff]  ;;  %v5051_v24 = vld [vmem:[#allocation7 + $0x100] sm:$0xff] }
 0x6ee   :  { %11588 = vmatprep.subr.bf16.mxu1 %v11587_v20  ;;  %v11687_v20 = vpack.c.bf16 %v5108_v63, %v5103_v21  ;;  %v5056_v21 = vld [vmem:[#allocation7 + $0x128] sm:$0xff]  ;;  %v11697_v63 = vpack.c.bf16 %v5048_v5, %v5043_v45  ;;  %v5173_v45 = vld [vmem:[#allocation7 + $0x4d0] sm:$0xff]  ;;  %v5178_v5 = vld [vmem:[#allocation7 + $0x4f8] sm:$0xff] }
 0x6f1   :  { %11590 = vmatpush1.bf16.msra.mxu1 %v11589_v47  ;;  %v4720_v47 = vrot.slane %v4707_v25, %v14443_v50  ;;  %v5058_v25 = vld [vmem:[#allocation7 + $0x138] sm:$0xff] }
 0x6f2   :  { %11592 = vmatprep.subr.bf16.mxu1 %v11591_v27  ;;  %v5021_v27 = vld [vmem:[#allocation7 + $0x10] sm:$0xff] }
 0x6f5   :  { %11594 = vmatpush1.bf16.msra.mxu1 %v11593_v26 }
 0x6f6   :  { %11596 = vmatprep.subr.bf16.mxu1 %v11595_v39  ;;  %v5028_v39 = vld [vmem:[#allocation7 + $0x48] sm:$0xff] }
 0x6f7   :  { %v11689_v58 = vpack.c.bf16 %v5028_v39, %v5023_v13  ;;  %v5061_v13 = vld [vmem:[#allocation7 + $0x150] sm:$0xff]  ;;  %v5072_v39 = vld [vmem:[#allocation7 + $0x1a8] sm:$0xff] }
 0x6f9   :  { %11598 = vmatpush1.bf16.msra.mxu1 %v11597_v35  ;;  %v11621_v35 = vpack.c.bf16 %v5026_v29, %v5021_v27  ;;  %v5143_v27 = vld [vmem:[#allocation7 + $0x3e0] sm:$0xff]  ;;  %v5148_v29 = vld [vmem:[#allocation7 + $0x408] sm:$0xff] }
 0x6fa   :  { %11600 = vmatprep.subr.bf16.mxu1 %v11599_v52  ;;  %v5113_v52 = vld [vmem:[#allocation7 + $0x2f0] sm:$0xff]  ;;  %v11703_v62 = vpack.c.bf16 %v5148_v29, %v5143_v27  ;;  %v5106_v29 = vld [vmem:[#allocation7 + $0x2b8] sm:$0xff] }
 0x6fb   :  { %v11691_v49 = vpack.c.bf16 %v5118_v40, %v5113_v52  ;;  %v5153_v52 = vld [vmem:[#allocation7 + $0x430] sm:$0xff]  ;;  %v5158_v40 = vld [vmem:[#allocation7 + $0x458] sm:$0xff] }
 0x6fc   :  { %v5101_v27 = vld [vmem:[#allocation7 + $0x290] sm:$0xff] }
 0x6fd   :  { %11602 = vmatpush1.bf16.msra.mxu1 %v11601_v42 }
 0x6fe   :  { %11604 = vmatprep.subr.bf16.mxu1 %v11603_v7  ;;  %v5036_v7 = vld [vmem:[#allocation7 + $0x88] sm:$0xff] }
 0x6ff   :  { %v11625_v55 = vpack.c.bf16 %v5036_v7, %v5031_v22  ;;  %v5076_v22 = vld [vmem:[#allocation7 + $0x1c8] sm:$0xff] }
 0x701   :  { %11606 = vmatpush1.bf16.msra.mxu1 %v11605_v41  ;;  %v5042_v41 = vld [vmem:[#allocation7 + $0xb8] sm:$0xff] }
 0x702   :  { %11608 = vmatprep.subr.bf16.mxu1 %v11607_v53  ;;  %v5033_v53 = vld [vmem:[#allocation7 + $0x70] sm:$0xff] }
 0x703   :  { %v11693_v1 = vpack.c.bf16 %v5038_v54, %v5033_v53  ;;  %v5163_v53 = vld [vmem:[#allocation7 + $0x480] sm:$0xff]  ;;  %v5168_v54 = vld [vmem:[#allocation7 + $0x4a8] sm:$0xff] }
 0x705   :  { %11610 = vmatpush1.bf16.msra.mxu1 %v11609_v56  ;;  %v11627_v56 = vpack.c.bf16 %v5047_v48, %v5042_v41  ;;  %v5073_v41 = vld [vmem:[#allocation7 + $0x1b0] sm:$0xff]  ;;  %v5078_v48 = vld [vmem:[#allocation7 + $0x1d8] sm:$0xff] }
 0x706   :  { %11612 = vmatprep.subr.bf16.mxu1 %v11611_v2  ;;  %v5057_v2 = vld [vmem:[#allocation7 + $0x130] sm:$0xff] }
 0x707   :  { %v11631_v9 = vpack.c.bf16 %v5057_v2, %v5052_v34  ;;  %v5083_v34 = vld [vmem:[#allocation7 + $0x200] sm:$0xff]  ;;  %v5088_v2 = vld [vmem:[#allocation7 + $0x228] sm:$0xff] }
 0x709   :  { %11614 = vmatpush1.bf16.msra.mxu1 %v11613_v8  ;;  %v11629_v8 = vpack.c.bf16 %v5046_v43, %v5041_v59  ;;  %v5092_v59 = vld [vmem:[#allocation7 + $0x248] sm:$0xff]  ;;  %v5097_v43 = vld [vmem:[#allocation7 + $0x270] sm:$0xff] }
 0x70a   :  { %11688 = vmatprep.subr.bf16.mxu1 %v11687_v20  ;;  %v5062_v20 = vld [vmem:[#allocation7 + $0x158] sm:$0xff] }
 0x793   :  { %v9536_v10 = vpop.f32.mrb[22].mxu1 }
 0x794   :  { %v9537_v23 = vpop.f32.mrb[23].mxu1 }
 0x795   :  { %v9538_v6 = vadd.f32 %v9537_v23, %v9536_v10  ;;  %v5067_v10 = vld [vmem:[#allocation7 + $0x180] sm:$0xff]  ;;  %v11699_v23 = vpack.c.bf16 %v5138_v17, %v5133_v16  ;;  %v5096_v17 = vld [vmem:[#allocation7 + $0x268] sm:$0xff] }
 0x796   :  { %v5091_v16 = vld [vmem:[#allocation7 + $0x240] sm:$0xff] }
 0x797   :  { %v4946_v26 = vadd.f32 %v9538_v6, %v4720_v47  ;;  %v5053_v6 = vld [vmem:[#allocation7 + $0x110] sm:$0xff]  ;;  %v11633_v47 = vpack.c.bf16 %v5056_v21, %v5051_v24  ;;  %v5102_v24 = vld [vmem:[#allocation7 + $0x298] sm:$0xff]  ;;  %v5107_v21 = vld [vmem:[#allocation7 + $0x2c0] sm:$0xff] }
 0x79f   :  { %v4874_v46 = vpop.f32.mrb[28].mxu0  ;;  %v5015_v44 = vpop.f32.mrb[24].mxu1 }
 0x7a0   :  { %v17210_v36 = vadd.f32 %v5015_v44, %v4946_v26  ;;  %v4876_v42 = vpop.f32.mrb[29].mxu0  ;;  %v9880_v51 = vpop.f32.mrb[25].mxu1  ;;  %v17212_v33 = vadd.f32 %v4874_v46, %v4712_v28  ;;  %v5066_v28 = vld [vmem:[#allocation7 + $0x178] sm:$0xff]  ;;  %v11701_v26 = vpack.c.bf16 %v5058_v25, %v5053_v6  ;;  %v5063_v46 = vld [vmem:[#allocation7 + $0x160] sm:$0xff]  ;;  %v5068_v44 = vld [vmem:[#allocation7 + $0x188] sm:$0xff] }
 0x7a1   :  { %v13013_v57 = vadd.f32 %v4876_v42, %v4716_v30  ;;  %v11635_v30 = vpack.c.bf16 %v5067_v10, %v5062_v20  ;;  %v11639_v42 = vpack.c.bf16 %v5077_v37, %v5072_v39  ;;  %v5071_v51 = vld [vmem:[#allocation7 + $0x1a0] sm:$0xff]  ;;  %v11705_v7 = vpack.c.bf16 %v5068_v44, %v5063_v46  ;;  %v5093_v20 = vld [vmem:[#allocation7 + $0x250] sm:$0xff]  ;;  %v5098_v10 = vld [vmem:[#allocation7 + $0x278] sm:$0xff] }
 0x7a2   :  { %9148 = vmatmul.mubr.msk.f32.vlgmr.msra.gmra.mrb[30].mxu0 %vm4303_vm7, %v17210_v36  ;;  %v5651_v6 = vld [vmem:[#allocation8 + $0x18] sm:$0xff]  ;;  %v5656_v25 = vld [vmem:[#allocation8 + $0x40] sm:$0xff]  ;;  %v5650_v39 = vld [vmem:[#allocation8 + $0x10] sm:$0xff] }
 0x7a3   :  { %11622 = vmatpush1.bf16.msra.mxu0 %v11621_v35  ;;  %5288 = vmatprep.mubr.f32.mxu1 %v13013_v57  ;;  %v11637_v35 = vpack.c.bf16 %v5066_v28, %v5061_v13  ;;  %v5112_v13 = vld [vmem:[#allocation7 + $0x2e8] sm:$0xff]  ;;  %v5117_v28 = vld [vmem:[#allocation7 + $0x310] sm:$0xff]  ;;  %v5661_v46 = vld [vmem:[#allocation8 + $0x68] sm:$0xff] }
 0x7a4   :  { %5430 = vmatprep.mubr.f32.mxu0 %v13013_v57  ;;  %5289 = vmatmul.mubr.f32.vlgmr.msra.gmra.mrb[26].mxu1 %v17212_v33  ;;  %v5655_v37 = vld [vmem:[#allocation8 + $0x38] sm:$0xff]  ;;  %v5666_v44 = vld [vmem:[#allocation8 + $0x90] sm:$0xff] }
 0x7a5   :  { %11690 = vmatpush3.bf16.msra.mxu1 %v11689_v58  ;;  %11624 = vmatprep.subr.bf16.mxu0 %v11623_v38  ;;  %v5087_v58 = vld [vmem:[#allocation7 + $0x220] sm:$0xff]  ;;  %v11707_v38 = vpack.c.bf16 %v5158_v40, %v5153_v52  ;;  %v5116_v40 = vld [vmem:[#allocation7 + $0x308] sm:$0xff] }
 0x7a6   :  { %5572 = vmatprep.mubr.f32.mxu1 %v13013_v57  ;;  %11692 = vmatprep.subr.bf16.mxu1 %v11691_v49  ;;  %v5082_v57 = vld [vmem:[#allocation7 + $0x1f8] sm:$0xff]  ;;  %v11641_v49 = vpack.c.bf16 %v5076_v22, %v5071_v51  ;;  %v5111_v52 = vld [vmem:[#allocation7 + $0x2e0] sm:$0xff]  ;;  %v11872_v22 = vpack.c.bf16 %v5655_v37, %v5650_v39  ;;  %v5706_v37 = vld [vmem:[#allocation8 + $0x1d0] sm:$0xff] }
 0x7a7   :  { %11626 = vmatpush1.bf16.msra.mxu0 %v11625_v55  ;;  %v11643_v55 = vpack.c.bf16 %v5087_v58, %v5082_v57  ;;  %v5127_v51 = vld [vmem:[#allocation7 + $0x360] sm:$0xff]  ;;  %v5660_v57 = vld [vmem:[#allocation8 + $0x60] sm:$0xff] }
 0x7a8   :  { %11628 = vmatprep.subr.bf16.mxu0 %v11627_v56  ;;  %v11709_v56 = vpack.c.bf16 %v5078_v48, %v5073_v41  ;;  %v5665_v58 = vld [vmem:[#allocation8 + $0x88] sm:$0xff]  ;;  %v5671_v41 = vld [vmem:[#allocation8 + $0xb8] sm:$0xff]  ;;  %v5676_v48 = vld [vmem:[#allocation8 + $0xe0] sm:$0xff] }
 0x7a9   :  { %11694 = vmatpush3.bf16.msra.mxu1 %v11693_v1  ;;  %v11711_v1 = vpack.c.bf16 %v5168_v54, %v5163_v53  ;;  %v5121_v53 = vld [vmem:[#allocation7 + $0x330] sm:$0xff]  ;;  %v5126_v54 = vld [vmem:[#allocation7 + $0x358] sm:$0xff]  ;;  %v5701_v39 = vld [vmem:[#allocation8 + $0x1a8] sm:$0xff] }
 0x7aa   :  { %11696 = vmatprep.subr.bf16.mxu1 %v11695_v4  ;;  %v11645_v4 = vpack.c.bf16 %v5086_v19, %v5081_v31  ;;  %v5137_v31 = vld [vmem:[#allocation7 + $0x3b0] sm:$0xff]  ;;  %v11876_v19 = vpack.c.bf16 %v5665_v58, %v5660_v57  ;;  %v5716_v58 = vld [vmem:[#allocation8 + $0x220] sm:$0xff] }
 0x7ab   :  { %11630 = vmatpush1.bf16.msra.mxu0 %v11629_v8  ;;  %v11647_v8 = vpack.c.bf16 %v5097_v43, %v5092_v59  ;;  %v5670_v59 = vld [vmem:[#allocation8 + $0xb0] sm:$0xff]  ;;  %v5675_v43 = vld [vmem:[#allocation8 + $0xd8] sm:$0xff] }
 0x7ac   :  { %11632 = vmatprep.subr.bf16.mxu0 %v11631_v9  ;;  %v11713_v9 = vpack.c.bf16 %v5088_v2, %v5083_v34  ;;  %v5681_v34 = vld [vmem:[#allocation8 + $0x108] sm:$0xff]  ;;  %v5686_v2 = vld [vmem:[#allocation8 + $0x130] sm:$0xff]  ;;  %v5711_v57 = vld [vmem:[#allocation8 + $0x1f8] sm:$0xff] }
 0x7ad   :  { %11698 = vmatpush3.bf16.msra.mxu1 %v11697_v63  ;;  %v11715_v63 = vpack.c.bf16 %v5178_v5, %v5173_v45  ;;  %v5131_v45 = vld [vmem:[#allocation7 + $0x380] sm:$0xff]  ;;  %v5136_v5 = vld [vmem:[#allocation7 + $0x3a8] sm:$0xff] }
 0x7ae   :  { %11700 = vmatprep.subr.bf16.mxu1 %v11699_v23  ;;  %v11649_v23 = vpack.c.bf16 %v5096_v17, %v5091_v16  ;;  %v5147_v16 = vld [vmem:[#allocation7 + $0x400] sm:$0xff]  ;;  %v11880_v17 = vpack.c.bf16 %v5675_v43, %v5670_v59  ;;  %v5726_v43 = vld [vmem:[#allocation8 + $0x270] sm:$0xff] }
 0x7af   :  { %11634 = vmatpush1.bf16.msra.mxu0 %v11633_v47  ;;  %v11651_v47 = vpack.c.bf16 %v5107_v21, %v5102_v24  ;;  %v5680_v24 = vld [vmem:[#allocation8 + $0x100] sm:$0xff]  ;;  %v5685_v21 = vld [vmem:[#allocation8 + $0x128] sm:$0xff] }
 0x7b0   :  { %11636 = vmatprep.subr.bf16.mxu0 %v11635_v30  ;;  %v11717_v30 = vpack.c.bf16 %v5098_v10, %v5093_v20  ;;  %v5691_v20 = vld [vmem:[#allocation8 + $0x158] sm:$0xff]  ;;  %v5696_v10 = vld [vmem:[#allocation8 + $0x180] sm:$0xff]  ;;  %v5721_v59 = vld [vmem:[#allocation8 + $0x248] sm:$0xff] }
 0x7b1   :  { %11702 = vmatpush3.bf16.msra.mxu1 %v11701_v26  ;;  %v11870_v26 = vpack.c.bf16 %v5656_v25, %v5651_v6  ;;  %v5141_v6 = vld [vmem:[#allocation7 + $0x3d0] sm:$0xff]  ;;  %v5146_v25 = vld [vmem:[#allocation7 + $0x3f8] sm:$0xff] }
 0x7b2   :  { %11704 = vmatprep.subr.bf16.mxu1 %v11703_v62  ;;  %v11653_v62 = vpack.c.bf16 %v5106_v29, %v5101_v27  ;;  %v5157_v27 = vld [vmem:[#allocation7 + $0x450] sm:$0xff]  ;;  %v11884_v29 = vpack.c.bf16 %v5685_v21, %v5680_v24  ;;  %v5736_v21 = vld [vmem:[#allocation8 + $0x2c0] sm:$0xff] }
 0x7b3   :  { %11638 = vmatpush1.bf16.msra.mxu0 %v11637_v35  ;;  %v11655_v35 = vpack.c.bf16 %v5117_v28, %v5112_v13  ;;  %v5690_v13 = vld [vmem:[#allocation8 + $0x150] sm:$0xff]  ;;  %v5695_v28 = vld [vmem:[#allocation8 + $0x178] sm:$0xff] }
 0x7b4   :  { %11640 = vmatprep.subr.bf16.mxu0 %v11639_v42  ;;  %v5122_v42 = vld [vmem:[#allocation7 + $0x338] sm:$0xff]  ;;  %v5731_v24 = vld [vmem:[#allocation8 + $0x298] sm:$0xff] }
 0x7b5   :  { %11706 = vmatpush3.bf16.msra.mxu1 %v11705_v7  ;;  %v11874_v7 = vpack.c.bf16 %v5666_v44, %v5661_v46  ;;  %v5151_v46 = vld [vmem:[#allocation7 + $0x420] sm:$0xff]  ;;  %v5156_v44 = vld [vmem:[#allocation7 + $0x448] sm:$0xff] }
 0x7b6   :  { %11708 = vmatprep.subr.bf16.mxu1 %v11707_v38  ;;  %v11657_v38 = vpack.c.bf16 %v5116_v40, %v5111_v52  ;;  %v5167_v52 = vld [vmem:[#allocation7 + $0x4a0] sm:$0xff]  ;;  %v11888_v40 = vpack.c.bf16 %v5695_v28, %v5690_v13  ;;  %v5192_v13 = vld [vmem:[#allocation7 + $0x568] sm:$0xff] }
 0x7b7   :  { %11642 = vmatpush1.bf16.msra.mxu0 %v11641_v49  ;;  %v11659_v49 = vpack.c.bf16 %v5127_v51, %v5122_v42  ;;  %v11890_v42 = vpack.c.bf16 %v5706_v37, %v5701_v39  ;;  %v5700_v51 = vld [vmem:[#allocation8 + $0x1a0] sm:$0xff]  ;;  %v5745_v37 = vld [vmem:[#allocation8 + $0x308] sm:$0xff] }
 0x7b8   :  { %11644 = vmatprep.subr.bf16.mxu0 %v11643_v55  ;;  %v5132_v55 = vld [vmem:[#allocation7 + $0x388] sm:$0xff]  ;;  %v5740_v39 = vld [vmem:[#allocation8 + $0x2e0] sm:$0xff] }
 0x7b9   :  { %11710 = vmatpush3.bf16.msra.mxu1 %v11709_v56  ;;  %v11878_v56 = vpack.c.bf16 %v5676_v48, %v5671_v41  ;;  %v5161_v41 = vld [vmem:[#allocation7 + $0x470] sm:$0xff]  ;;  %v5166_v48 = vld [vmem:[#allocation7 + $0x498] sm:$0xff] }
 0x7ba   :  { %11712 = vmatprep.subr.bf16.mxu1 %v11711_v1  ;;  %v11661_v1 = vpack.c.bf16 %v5126_v54, %v5121_v53  ;;  %v5177_v53 = vld [vmem:[#allocation7 + $0x4f0] sm:$0xff] }
 0x7bb   :  { %11646 = vmatpush1.bf16.msra.mxu0 %v11645_v4  ;;  %v11663_v4 = vpack.c.bf16 %v5137_v31, %v5132_v55  ;;  %v11894_v55 = vpack.c.bf16 %v5716_v58, %v5711_v57  ;;  %v5710_v31 = vld [vmem:[#allocation8 + $0x1f0] sm:$0xff]  ;;  %v5649_v58 = vld [vmem:[#allocation8 + $0x8] sm:$0xff] }
 0x7bc   :  { %11648 = vmatprep.subr.bf16.mxu0 %v11647_v8  ;;  %v5142_v8 = vld [vmem:[#allocation7 + $0x3d8] sm:$0xff]  ;;  %v5766_v57 = vld [vmem:[#allocation8 + $0x3b0] sm:$0xff] }
 0x7bd   :  { %11714 = vmatpush3.bf16.msra.mxu1 %v11713_v9  ;;  %v11882_v9 = vpack.c.bf16 %v5686_v2, %v5681_v34  ;;  %v5171_v34 = vld [vmem:[#allocation7 + $0x4c0] sm:$0xff]  ;;  %v5176_v2 = vld [vmem:[#allocation7 + $0x4e8] sm:$0xff] }
 0x7be   :  { %11716 = vmatprep.subr.bf16.mxu1 %v11715_v63  ;;  %v11665_v63 = vpack.c.bf16 %v5136_v5, %v5131_v45  ;;  %v5187_v45 = vld [vmem:[#allocation7 + $0x540] sm:$0xff] }
 0x7bf   :  { %11650 = vmatpush1.bf16.msra.mxu0 %v11649_v23  ;;  %v11667_v23 = vpack.c.bf16 %v5147_v16, %v5142_v8  ;;  %v11898_v8 = vpack.c.bf16 %v5726_v43, %v5721_v59  ;;  %v5720_v16 = vld [vmem:[#allocation8 + $0x240] sm:$0xff]  ;;  %v5193_v43 = vld [vmem:[#allocation7 + $0x570] sm:$0xff] }
 0x7c0   :  { %11652 = vmatprep.subr.bf16.mxu0 %v11651_v47  ;;  %v5152_v47 = vld [vmem:[#allocation7 + $0x428] sm:$0xff]  ;;  %v5776_v59 = vld [vmem:[#allocation8 + $0x400] sm:$0xff] }
 0x7c1   :  { %11718 = vmatpush3.bf16.msra.mxu1 %v11717_v30  ;;  %v11886_v30 = vpack.c.bf16 %v5696_v10, %v5691_v20  ;;  %v5181_v20 = vld [vmem:[#allocation7 + $0x510] sm:$0xff]  ;;  %v5186_v10 = vld [vmem:[#allocation7 + $0x538] sm:$0xff] }
 0x7c2   :  { %11871 = vmatprep.subr.bf16.mxu1 %v11870_v26  ;;  %v11669_v26 = vpack.c.bf16 %v5146_v25, %v5141_v6  ;;  %v11902_v6 = vpack.c.bf16 %v5736_v21, %v5731_v24  ;;  %v5730_v25 = vld [vmem:[#allocation8 + $0x290] sm:$0xff]  ;;  %v5781_v21 = vld [vmem:[#allocation8 + $0x428] sm:$0xff] }
 0x7c3   :  { %11654 = vmatpush1.bf16.msra.mxu0 %v11653_v62  ;;  %v11671_v62 = vpack.c.bf16 %v5157_v27, %v5152_v47  ;;  %v5735_v47 = vld [vmem:[#allocation8 + $0x2b8] sm:$0xff]  ;;  %v11685_v27 = vpack.c.bf16 %v5186_v10, %v5181_v20  ;;  %v5674_v24 = vld [vmem:[#allocation8 + $0xd0] sm:$0xff]  ;;  %v5668_v10 = vld [vmem:[#allocation8 + $0xa0] sm:$0xff] }
 0x7c4   :  { %5573 = vmatmul.mubr.f32.vlgmr.msra.gmra.mrb[28].mxu1 %v17212_v33  ;;  %11656 = vmatprep.subr.bf16.mxu0 %v11655_v35  ;;  %v5162_v35 = vld [vmem:[#allocation7 + $0x478] sm:$0xff]  ;;  %v11904_v28 = vpack.c.bf16 %v5735_v47, %v5730_v25  ;;  %v5673_v25 = vld [vmem:[#allocation8 + $0xc8] sm:$0xff] }
 0x7c5   :  { %11873 = vmatpush1.bf16.msra.mxu1 %v11872_v22  ;;  %v5705_v22 = vld [vmem:[#allocation8 + $0x1c8] sm:$0xff] }
 0x7c6   :  { %11875 = vmatprep.subr.bf16.mxu1 %v11874_v7  ;;  %v11673_v7 = vpack.c.bf16 %v5156_v44, %v5151_v46  ;;  %v11892_v54 = vpack.c.bf16 %v5705_v22, %v5700_v51  ;;  %v5756_v46 = vld [vmem:[#allocation8 + $0x360] sm:$0xff]  ;;  %v5191_v44 = vld [vmem:[#allocation7 + $0x560] sm:$0xff]  ;;  %v5750_v51 = vld [vmem:[#allocation8 + $0x330] sm:$0xff] }
 0x7c7   :  { %11658 = vmatpush1.bf16.msra.mxu0 %v11657_v38  ;;  %v11675_v38 = vpack.c.bf16 %v5167_v52, %v5162_v35  ;;  %v5183_v35 = vld [vmem:[#allocation7 + $0x520] sm:$0xff]  ;;  %v5188_v52 = vld [vmem:[#allocation7 + $0x548] sm:$0xff]  ;;  %v5755_v22 = vld [vmem:[#allocation8 + $0x358] sm:$0xff] }
 0x7c8   :  { %11660 = vmatprep.subr.bf16.mxu0 %v11659_v49  ;;  %v5172_v49 = vld [vmem:[#allocation7 + $0x4c8] sm:$0xff] }
 0x7c9   :  { %11877 = vmatpush1.bf16.msra.mxu1 %v11876_v19  ;;  %v5715_v19 = vld [vmem:[#allocation8 + $0x218] sm:$0xff] }
 0x7ca   :  { %11879 = vmatprep.subr.bf16.mxu1 %v11878_v56  ;;  %v11677_v56 = vpack.c.bf16 %v5166_v48, %v5161_v41  ;;  %v11896_v5 = vpack.c.bf16 %v5715_v19, %v5710_v31  ;;  %v5648_v41 = vld [vmem:[#allocation8] sm:$0xff]  ;;  %v5653_v48 = vld [vmem:[#allocation8 + $0x28] sm:$0xff] }
 0x7cb   :  { %11662 = vmatpush1.bf16.msra.mxu0 %v11661_v1  ;;  %v11679_v1 = vpack.c.bf16 %v5177_v53, %v5172_v49  ;;  %v11912_v49 = vpack.c.bf16 %v5755_v22, %v5750_v51  ;;  %v5659_v53 = vld [vmem:[#allocation8 + $0x58] sm:$0xff]  ;;  %v5765_v31 = vld [vmem:[#allocation8 + $0x3a8] sm:$0xff]  ;;  %v5664_v19 = vld [vmem:[#allocation8 + $0x80] sm:$0xff] }
 0x7cc   :  { %11664 = vmatprep.subr.bf16.mxu0 %v11663_v4  ;;  %v5182_v4 = vld [vmem:[#allocation7 + $0x518] sm:$0xff] }
 0x7cd   :  { %11881 = vmatpush1.bf16.msra.mxu1 %v11880_v17  ;;  %v5725_v17 = vld [vmem:[#allocation8 + $0x268] sm:$0xff]  ;;  %v5688_v22 = vld [vmem:[#allocation8 + $0x140] sm:$0xff] }
 0x7ce   :  { %11883 = vmatprep.subr.bf16.mxu1 %v11882_v9  ;;  %v11681_v9 = vpack.c.bf16 %v5176_v2, %v5171_v34  ;;  %v11724_v34 = vpack.c.bf16 %v5653_v48, %v5648_v41  ;;  %v5658_v2 = vld [vmem:[#allocation8 + $0x50] sm:$0xff]  ;;  %v5704_v48 = vld [vmem:[#allocation8 + $0x1c0] sm:$0xff] }
 0x7cf   :  { %11666 = vmatpush1.bf16.msra.mxu0 %v11665_v63  ;;  %v11683_v63 = vpack.c.bf16 %v5187_v45, %v5182_v4  ;;  %v5663_v4 = vld [vmem:[#allocation8 + $0x78] sm:$0xff]  ;;  %v5806_v41 = vld [vmem:[#allocation8 + $0x4f0] sm:$0xff] }
 0x7d0   :  { %11668 = vmatprep.subr.bf16.mxu0 %v11667_v23  ;;  %v11900_v23 = vpack.c.bf16 %v5725_v17, %v5720_v16  ;;  %v5770_v17 = vld [vmem:[#allocation8 + $0x3d0] sm:$0xff]  ;;  %v11728_v20 = vpack.c.bf16 %v5663_v4, %v5658_v2  ;;  %v5816_v2 = vld [vmem:[#allocation8 + $0x540] sm:$0xff] }
 0x7d1   :  { %11885 = vmatpush1.bf16.msra.mxu1 %v11884_v29  ;;  %v5741_v29 = vld [vmem:[#allocation8 + $0x2e8] sm:$0xff] }
 0x7d2   :  { %11887 = vmatprep.subr.bf16.mxu1 %v11886_v30  ;;  %v5746_v30 = vld [vmem:[#allocation8 + $0x310] sm:$0xff] }
 0x7d3   :  { %11670 = vmatpush1.bf16.msra.mxu0 %v11669_v26  ;;  %v11906_v26 = vpack.c.bf16 %v5746_v30, %v5741_v29  ;;  %v5785_v29 = vld [vmem:[#allocation8 + $0x448] sm:$0xff]  ;;  %v5679_v30 = vld [vmem:[#allocation8 + $0xf8] sm:$0xff] }
 0x7d4   :  { %11672 = vmatprep.subr.bf16.mxu0 %v11671_v62  ;;  %v5751_v62 = vld [vmem:[#allocation8 + $0x338] sm:$0xff] }
 0x7d5   :  { %11889 = vmatpush1.bf16.msra.mxu1 %v11888_v40  ;;  %v11908_v40 = vpack.c.bf16 %v5745_v37, %v5740_v39  ;;  %v5791_v39 = vld [vmem:[#allocation8 + $0x478] sm:$0xff] }
 0x7d6   :  { %11891 = vmatprep.subr.bf16.mxu1 %v11890_v42  ;;  %v11910_v42 = vpack.c.bf16 %v5756_v46, %v5751_v62  ;;  %v5683_v62 = vld [vmem:[#allocation8 + $0x118] sm:$0xff]  ;;  %v5689_v46 = vld [vmem:[#allocation8 + $0x148] sm:$0xff] }
 0x7d7   :  { %11674 = vmatpush1.bf16.msra.mxu0 %v11673_v7  ;;  %v5761_v7 = vld [vmem:[#allocation8 + $0x388] sm:$0xff] }
 0x7d8   :  { %11676 = vmatprep.subr.bf16.mxu0 %v11675_v38  ;;  %v5654_v38 = vld [vmem:[#allocation8 + $0x30] sm:$0xff] }
 0x7d9   :  { %11893 = vmatpush1.bf16.msra.mxu1 %v11892_v54  ;;  %v11914_v54 = vpack.c.bf16 %v5766_v57, %v5761_v7  ;;  %v5801_v7 = vld [vmem:[#allocation8 + $0x4c8] sm:$0xff] }
 0x7da   :  { %11895 = vmatprep.subr.bf16.mxu1 %v11894_v55  ;;  %v5760_v55 = vld [vmem:[#allocation8 + $0x380] sm:$0xff] }
 0x7db   :  { %11678 = vmatpush1.bf16.msra.mxu0 %v11677_v56  ;;  %v5771_v56 = vld [vmem:[#allocation8 + $0x3d8] sm:$0xff]  ;;  %v11916_v45 = vpack.c.bf16 %v5765_v31, %v5760_v55 }
 0x7dc   :  { %11680 = vmatprep.subr.bf16.mxu0 %v11679_v1  ;;  %v11722_v1 = vpack.c.bf16 %v5654_v38, %v5649_v58  ;;  %v11918_v16 = vpack.c.bf16 %v5776_v59, %v5771_v56  ;;  %v5693_v58 = vld [vmem:[#allocation8 + $0x168] sm:$0xff]  ;;  %v5699_v38 = vld [vmem:[#allocation8 + $0x198] sm:$0xff]  ;;  %v5698_v56 = vld [vmem:[#allocation8 + $0x190] sm:$0xff] }
 0x7dd   :  { %11897 = vmatpush1.bf16.msra.mxu1 %v11896_v5  ;;  %v11726_v5 = vpack.c.bf16 %v5664_v19, %v5659_v53  ;;  %v5800_v53 = vld [vmem:[#allocation8 + $0x4c0] sm:$0xff]  ;;  %v11740_v55 = vpack.c.bf16 %v5693_v58, %v5688_v22  ;;  %v11742_v19 = vpack.c.bf16 %v5704_v48, %v5699_v38  ;;  %v5703_v59 = vld [vmem:[#allocation8 + $0x1b8] sm:$0xff]  ;;  %v5758_v22 = vld [vmem:[#allocation8 + $0x370] sm:$0xff] }
 0x7de   :  { %11899 = vmatprep.subr.bf16.mxu1 %v11898_v8  ;;  %v5669_v8 = vld [vmem:[#allocation8 + $0xa8] sm:$0xff] }
 0x7df   :  { %11682 = vmatpush1.bf16.msra.mxu0 %v11681_v9  ;;  %v5775_v9 = vld [vmem:[#allocation8 + $0x3f8] sm:$0xff]  ;;  %v5773_v48 = vld [vmem:[#allocation8 + $0x3e8] sm:$0xff] }
 0x7e0   :  { %11684 = vmatprep.subr.bf16.mxu0 %v11683_v63  ;;  %v5786_v63 = vld [vmem:[#allocation8 + $0x450] sm:$0xff] }
 0x7e1   :  { %11901 = vmatpush1.bf16.msra.mxu1 %v11900_v23  ;;  %v11920_v23 = vpack.c.bf16 %v5775_v9, %v5770_v17  ;;  %v11922_v47 = vpack.c.bf16 %v5786_v63, %v5781_v21  ;;  %v5719_v17 = vld [vmem:[#allocation8 + $0x238] sm:$0xff]  ;;  %v5724_v9 = vld [vmem:[#allocation8 + $0x260] sm:$0xff]  ;;  %v5718_v63 = vld [vmem:[#allocation8 + $0x230] sm:$0xff] }
 0x7e2   :  { %5431 = vmatmul.mubr.f32.vlgmr.msra.gmra.mrb[32].mxu0 %v17212_v33  ;;  %11903 = vmatprep.subr.bf16.mxu1 %v11902_v6  ;;  %v11720_v33 = vpack.c.bf16 %v5188_v52, %v5183_v35  ;;  %v11730_v6 = vpack.c.bf16 %v5674_v24, %v5669_v8  ;;  %v5694_v35 = vld [vmem:[#allocation8 + $0x170] sm:$0xff]  ;;  %v5708_v8 = vld [vmem:[#allocation8 + $0x1e0] sm:$0xff]  ;;  %v11750_v21 = vpack.c.bf16 %v5724_v9, %v5719_v17  ;;  %v5803_v17 = vld [vmem:[#allocation8 + $0x4d8] sm:$0xff] }
 0x7e3   :  { %11686 = vmatpush1.bf16.msra.mxu0 %v11685_v27  ;;  %5501 = vmatprep.mubr.f32.mxu0 %v13287_v0  ;;  %v5780_v27 = vld [vmem:[#allocation8 + $0x420] sm:$0xff]  ;;  %v11738_v57 = vpack.c.bf16 %v5694_v35, %v5689_v46  ;;  %v5753_v35 = vld [vmem:[#allocation8 + $0x348] sm:$0xff] }
 0x7e4   :  { %5441 = vmatprep.subr.mxu0 %v5192_v13  ;;  %v5684_v13 = vld [vmem:[#allocation8 + $0x120] sm:$0xff]  ;;  %v5809_v9 = vld [vmem:[#allocation8 + $0x508] sm:$0xff] }
 0x7e5   :  { %11905 = vmatpush1.bf16.msra.mxu1 %v11904_v28  ;;  %v11732_v28 = vpack.c.bf16 %v5673_v25, %v5668_v10  ;;  %v11734_v37 = vpack.c.bf16 %v5684_v13, %v5679_v30  ;;  %v5729_v10 = vld [vmem:[#allocation8 + $0x288] sm:$0xff]  ;;  %v5744_v30 = vld [vmem:[#allocation8 + $0x300] sm:$0xff] }
 0x7e6   :  { %11907 = vmatprep.subr.bf16.mxu1 %v11906_v26  ;;  %v5678_v26 = vld [vmem:[#allocation8 + $0xf0] sm:$0xff] }
 0x7e7   :  { %5442 = vmatpush1.msra.mxu0 %v5191_v44  ;;  %v5796_v44 = vld [vmem:[#allocation8 + $0x4a0] sm:$0xff]  ;;  %v11736_v51 = vpack.c.bf16 %v5683_v62, %v5678_v26  ;;  %v5738_v26 = vld [vmem:[#allocation8 + $0x2d0] sm:$0xff] }
 0x7e8   :  { %11719 = vmatprep.subr.bf16.mxu0 %v13289_v61  ;;  %v11926_v52 = vpack.c.bf16 %v5796_v44, %v5791_v39  ;;  %v5749_v39 = vld [vmem:[#allocation8 + $0x328] sm:$0xff]  ;;  %v5748_v44 = vld [vmem:[#allocation8 + $0x320] sm:$0xff] }
 0x7e9   :  { %11909 = vmatpush1.bf16.msra.mxu1 %v11908_v40  ;;  %v5790_v40 = vld [vmem:[#allocation8 + $0x470] sm:$0xff] }
 0x7ea   :  { %9149 = vmatmul.mubr.msk.f32.vlgmr.msra.gmra.mrb[32].mxu0 %vm4303_vm7, %v17210_v36  ;;  %11911 = vmatprep.subr.bf16.mxu1 %v11910_v42  ;;  %v5795_v42 = vld [vmem:[#allocation8 + $0x498] sm:$0xff] }
 0x7eb   :  { %11721 = vmatpush3.bf16.msra.mxu0 %v11720_v33  ;;  %9887 = vmatprep.mubr.msk.f32.mxu0 %vm13290_vm6, %v13287_v0  ;;  %v11928_v33 = vpack.c.bf16 %v5795_v42, %v5790_v40  ;;  %v5764_v40 = vld [vmem:[#allocation8 + $0x3a0] sm:$0xff]  ;;  %v11764_v42 = vpack.c.bf16 %v5753_v35, %v5748_v44 }
 0x7ec   :  { %9885 = vmatprep.subr.mxu0 %v13287_v0 }
 0x7ed   :  { %11913 = vmatpush1.bf16.msra.mxu1 %v11912_v49  ;;  %v11930_v49 = vpack.c.bf16 %v5806_v41, %v5801_v7  ;;  %v5769_v7 = vld [vmem:[#allocation8 + $0x3c8] sm:$0xff]  ;;  %v5768_v41 = vld [vmem:[#allocation8 + $0x3c0] sm:$0xff] }
 0x7ee   :  { %11915 = vmatprep.subr.bf16.mxu1 %v11914_v54  ;;  %v5805_v54 = vld [vmem:[#allocation8 + $0x4e8] sm:$0xff] }
 0x7ef   :  { %9886 = vmatpush3.msra.mxu0 %v5193_v43  ;;  %v11932_v31 = vpack.c.bf16 %v5805_v54, %v5800_v53  ;;  %v5811_v43 = vld [vmem:[#allocation8 + $0x518] sm:$0xff]  ;;  %v5784_v53 = vld [vmem:[#allocation8 + $0x440] sm:$0xff]  ;;  %v11772_v54 = vpack.c.bf16 %v5773_v48, %v5768_v41 }
 0x7f0   :  { %9888 = vmatmul.mubr.msk.f32.vlgmr.msra.gmra.mrb[34].mxu0 %vm4303_vm7, %v17210_v36  ;;  %11723 = vmatprep.subr.bf16.mxu0 %v11722_v1  ;;  %v11924_v36 = vpack.c.bf16 %v5785_v29, %v5780_v27  ;;  %v5709_v1 = vld [vmem:[#allocation8 + $0x1e8] sm:$0xff]  ;;  %v11934_v4 = vpack.c.bf16 %v5816_v2, %v5811_v43  ;;  %v5739_v29 = vld [vmem:[#allocation8 + $0x2d8] sm:$0xff]  ;;  %v5836_v48 = vld [vmem:[#allocation8 + $0x5e0] sm:$0xff] }
 0x7f1   :  { %11725 = vmatpush1.bf16.msra.mxu0 %v11724_v34  ;;  %11917 = vmatpush1.bf16.msra.mxu1 %v11916_v45  ;;  %v5714_v34 = vld [vmem:[#allocation8 + $0x210] sm:$0xff]  ;;  %v11744_v45 = vpack.c.bf16 %v5703_v59, %v5698_v56  ;;  %v5733_v27 = vld [vmem:[#allocation8 + $0x2a8] sm:$0xff]  ;;  %v5831_v41 = vld [vmem:[#allocation8 + $0x5b8] sm:$0xff] }
 0x7f2   :  { %11727 = vmatprep.subr.bf16.mxu0 %v11726_v5  ;;  %11919 = vmatprep.subr.bf16.mxu1 %v11918_v16  ;;  %v11746_v5 = vpack.c.bf16 %v5714_v34, %v5709_v1  ;;  %v5713_v16 = vld [vmem:[#allocation8 + $0x208] sm:$0xff]  ;;  %v5794_v59 = vld [vmem:[#allocation8 + $0x490] sm:$0xff]  ;;  %v5788_v34 = vld [vmem:[#allocation8 + $0x460] sm:$0xff] }
 0x7f3   :  { %v11748_v24 = vpack.c.bf16 %v5713_v16, %v5708_v8  ;;  %v5789_v56 = vld [vmem:[#allocation8 + $0x468] sm:$0xff]  ;;  %v5798_v16 = vld [vmem:[#allocation8 + $0x4b0] sm:$0xff] }
 0x7f4   :  { %v11778_v1 = vpack.c.bf16 %v5794_v59, %v5789_v56  ;;  %v5793_v2 = vld [vmem:[#allocation8 + $0x488] sm:$0xff]  ;;  %v5830_v56 = vld [vmem:[#allocation8 + $0x5b0] sm:$0xff]  ;;  %v5835_v59 = vld [vmem:[#allocation8 + $0x5d8] sm:$0xff] }
 0x7f5   :  { %11729 = vmatpush1.bf16.msra.mxu0 %v11728_v20  ;;  %11921 = vmatpush1.bf16.msra.mxu1 %v11920_v23  ;;  %v5723_v20 = vld [vmem:[#allocation8 + $0x258] sm:$0xff]  ;;  %v5734_v23 = vld [vmem:[#allocation8 + $0x2b0] sm:$0xff] }
 0x7f6   :  { %11731 = vmatprep.subr.bf16.mxu0 %v11730_v6  ;;  %11923 = vmatprep.subr.bf16.mxu1 %v11922_v47  ;;  %v11752_v6 = vpack.c.bf16 %v5723_v20, %v5718_v63  ;;  %v11754_v25 = vpack.c.bf16 %v5734_v23, %v5729_v10  ;;  %v5728_v47 = vld [vmem:[#allocation8 + $0x280] sm:$0xff]  ;;  %v17231_v20 = vld [vmem:[%s17892_s14] sm:$0x1f] }
 0x7f7   :  { %v11756_v13 = vpack.c.bf16 %v5733_v27, %v5728_v47  ;;  %v5199_v10 = vrot.slane %v17231_v20, %v14049_v14  ;;  %v5808_v27 = vld [vmem:[#allocation8 + $0x500] sm:$0xff] }
 0x7f9   :  { %11733 = vmatpush1.bf16.msra.mxu0 %v11732_v28  ;;  %11925 = vmatpush1.bf16.msra.mxu1 %v11924_v36  ;;  %v11758_v28 = vpack.c.bf16 %v5744_v30, %v5739_v29  ;;  %v5743_v36 = vld [vmem:[#allocation8 + $0x2f8] sm:$0xff]  ;;  %v5813_v29 = vld [vmem:[#allocation8 + $0x528] sm:$0xff] }
 0x7fa   :  { %11735 = vmatprep.subr.bf16.mxu0 %v11734_v37  ;;  %11927 = vmatprep.subr.bf16.mxu1 %v11926_v52  ;;  %v5754_v37 = vld [vmem:[#allocation8 + $0x350] sm:$0xff]  ;;  %v11760_v62 = vpack.c.bf16 %v5743_v36, %v5738_v26  ;;  %v5759_v52 = vld [vmem:[#allocation8 + $0x378] sm:$0xff] }
 0x7fb   :  { %v11762_v46 = vpack.c.bf16 %v5754_v37, %v5749_v39  ;;  %v5815_v26 = vld [vmem:[#allocation8 + $0x538] sm:$0xff]  ;;  %v5824_v37 = vld [vmem:[#allocation8 + $0x580] sm:$0xff] }
 0x7fc   :  { %v5819_v36 = vld [vmem:[#allocation8 + $0x558] sm:$0xff] }
 0x7fd   :  { %11737 = vmatpush1.bf16.msra.mxu0 %v11736_v51  ;;  %11929 = vmatpush1.bf16.msra.mxu1 %v11928_v33  ;;  %v11766_v51 = vpack.c.bf16 %v5764_v40, %v5759_v52  ;;  %v5763_v33 = vld [vmem:[#allocation8 + $0x398] sm:$0xff]  ;;  %v11788_v52 = vpack.c.bf16 %v5813_v29, %v5808_v27  ;;  %v5853_v27 = vld [vmem:[#allocation8 + $0x668] sm:$0xff] }
 0x7fe   :  { %11739 = vmatprep.subr.bf16.mxu0 %v11738_v57  ;;  %11931 = vmatprep.subr.bf16.mxu1 %v11930_v49  ;;  %v5774_v57 = vld [vmem:[#allocation8 + $0x3f0] sm:$0xff]  ;;  %v11768_v58 = vpack.c.bf16 %v5763_v33, %v5758_v22  ;;  %v5779_v49 = vld [vmem:[#allocation8 + $0x418] sm:$0xff]  ;;  %v11790_v22 = vpack.c.bf16 %v5824_v37, %v5819_v36  ;;  %v5864_v36 = vld [vmem:[#allocation8 + $0x6c0] sm:$0xff] }
 0x7ff   :  { %v11770_v38 = vpack.c.bf16 %v5774_v57, %v5769_v7  ;;  %v5820_v7 = vld [vmem:[#allocation8 + $0x560] sm:$0xff]  ;;  %v5825_v57 = vld [vmem:[#allocation8 + $0x588] sm:$0xff]  ;;  %v5866_v37 = vld [vmem:[#allocation8 + $0x6d0] sm:$0xff] }
 0x801   :  { %11741 = vmatpush1.bf16.msra.mxu0 %v11740_v55  ;;  %11933 = vmatpush1.bf16.msra.mxu1 %v11932_v31  ;;  %v11774_v55 = vpack.c.bf16 %v5784_v53, %v5779_v49  ;;  %v5778_v31 = vld [vmem:[#allocation8 + $0x410] sm:$0xff]  ;;  %v11940_v53 = vpack.c.bf16 %v5825_v57, %v5820_v7  ;;  %v5869_v7 = vld [vmem:[#allocation8 + $0x6e8] sm:$0xff] }
 0x802   :  { %11743 = vmatprep.subr.bf16.mxu0 %v11742_v19  ;;  %11935 = vmatprep.subr.bf16.mxu1 %v11934_v4  ;;  %v5783_v19 = vld [vmem:[#allocation8 + $0x438] sm:$0xff]  ;;  %v5874_v57 = vld [vmem:[#allocation8 + $0x710] sm:$0xff] }
 0x803   :  { %v11776_v43 = vpack.c.bf16 %v5783_v19, %v5778_v31  ;;  %v5799_v4 = vld [vmem:[#allocation8 + $0x4b8] sm:$0xff]  ;;  %v11942_v19 = vpack.c.bf16 %v5836_v48, %v5831_v41 }
 0x805   :  { %11745 = vmatpush1.bf16.msra.mxu0 %v11744_v45  ;;  %v5804_v45 = vld [vmem:[#allocation8 + $0x4e0] sm:$0xff] }
 0x806   :  { %11747 = vmatprep.subr.bf16.mxu0 %v11746_v5  ;;  %v11780_v5 = vpack.c.bf16 %v5793_v2, %v5788_v34  ;;  %v11782_v8 = vpack.c.bf16 %v5804_v45, %v5799_v4  ;;  %v5841_v34 = vld [vmem:[#allocation8 + $0x608] sm:$0xff]  ;;  %v5846_v2 = vld [vmem:[#allocation8 + $0x630] sm:$0xff]  ;;  %v11944_v45 = vpack.c.bf16 %v5835_v59, %v5830_v56  ;;  %v5879_v56 = vld [vmem:[#allocation8 + $0x738] sm:$0xff] }
 0x807   :  { %v5884_v59 = vld [vmem:[#allocation8 + $0x760] sm:$0xff] }
 0x809   :  { %11749 = vmatpush1.bf16.msra.mxu0 %v11748_v24  ;;  %v5814_v24 = vld [vmem:[#allocation8 + $0x530] sm:$0xff] }
 0x80a   :  { %11751 = vmatprep.subr.bf16.mxu0 %v11750_v21  ;;  %v11784_v21 = vpack.c.bf16 %v5803_v17, %v5798_v16  ;;  %v11786_v63 = vpack.c.bf16 %v5814_v24, %v5809_v9  ;;  %v11946_v17 = vpack.c.bf16 %v5846_v2, %v5841_v34  ;;  %v5840_v9 = vld [vmem:[#allocation8 + $0x600] sm:$0xff]  ;;  %v5845_v24 = vld [vmem:[#allocation8 + $0x628] sm:$0xff] }
 0x80d   :  { %11753 = vmatpush1.bf16.msra.mxu0 %v11752_v6  ;;  %v5203_v6 = vrot.slane %v17231_v20, %v14041_v12 }
 0x80e   :  { %11755 = vmatprep.subr.bf16.mxu0 %v11754_v25 }
 0x811   :  { %11757 = vmatpush1.bf16.msra.mxu0 %v11756_v13 }
 0x812   :  { %11759 = vmatprep.subr.bf16.mxu0 %v11758_v28  ;;  %v5810_v28 = vld [vmem:[#allocation8 + $0x510] sm:$0xff] }
 0x813   :  { %v11936_v40 = vpack.c.bf16 %v5815_v26, %v5810_v28  ;;  %v5855_v28 = vld [vmem:[#allocation8 + $0x678] sm:$0xff] }
 0x814   :  { %v5859_v26 = vld [vmem:[#allocation8 + $0x698] sm:$0xff] }
 0x815   :  { %11761 = vmatpush1.bf16.msra.mxu0 %v11760_v62  ;;  %v5821_v62 = vld [vmem:[#allocation8 + $0x568] sm:$0xff] }
 0x816   :  { %11763 = vmatprep.subr.bf16.mxu0 %v11762_v46  ;;  %v5826_v46 = vld [vmem:[#allocation8 + $0x590] sm:$0xff] }
 0x817   :  { %v11938_v33 = vpack.c.bf16 %v5826_v46, %v5821_v62 }
 0x819   :  { %11765 = vmatpush1.bf16.msra.mxu0 %v11764_v42  ;;  %v5818_v42 = vld [vmem:[#allocation8 + $0x550] sm:$0xff] }
 0x81a   :  { %11767 = vmatprep.subr.bf16.mxu0 %v11766_v51  ;;  %v5823_v51 = vld [vmem:[#allocation8 + $0x578] sm:$0xff] }
 0x81b   :  { %v11792_v49 = vpack.c.bf16 %v5823_v51, %v5818_v42  ;;  %v11806_v42 = vpack.c.bf16 %v5864_v36, %v5859_v26  ;;  %v5899_v26 = vld [vmem:[#allocation8 + $0x7d8] sm:$0xff] }
 0x81d   :  { %11769 = vmatpush1.bf16.msra.mxu0 %v11768_v58  ;;  %v5829_v58 = vld [vmem:[#allocation8 + $0x5a8] sm:$0xff] }
 0x81e   :  { %11771 = vmatprep.subr.bf16.mxu0 %v11770_v38  ;;  %v5834_v38 = vld [vmem:[#allocation8 + $0x5d0] sm:$0xff] }
 0x81f   :  { %v11794_v31 = vpack.c.bf16 %v5834_v38, %v5829_v58  ;;  %v5871_v58 = vld [vmem:[#allocation8 + $0x6f8] sm:$0xff]  ;;  %v5876_v38 = vld [vmem:[#allocation8 + $0x720] sm:$0xff] }
 0x821   :  { %11773 = vmatpush1.bf16.msra.mxu0 %v11772_v54  ;;  %v5828_v54 = vld [vmem:[#allocation8 + $0x5a0] sm:$0xff] }
 0x822   :  { %11775 = vmatprep.subr.bf16.mxu0 %v11774_v55  ;;  %v5833_v55 = vld [vmem:[#allocation8 + $0x5c8] sm:$0xff] }
 0x823   :  { %v11796_v4 = vpack.c.bf16 %v5833_v55, %v5828_v54  ;;  %v11810_v54 = vpack.c.bf16 %v5874_v57, %v5869_v7  ;;  %v11958_v55 = vpack.c.bf16 %v5876_v38, %v5871_v58  ;;  %v5905_v7 = vld [vmem:[#allocation8 + $0x808] sm:$0xff]  ;;  %v5914_v58 = vld [vmem:[#allocation8 + $0x850] sm:$0xff]  ;;  %v5911_v38 = vld [vmem:[#allocation8 + $0x838] sm:$0xff] }
 0x824   :  { %v5909_v57 = vld [vmem:[#allocation8 + $0x828] sm:$0xff] }
 0x825   :  { %11777 = vmatpush1.bf16.msra.mxu0 %v11776_v43  ;;  %v5839_v43 = vld [vmem:[#allocation8 + $0x5f8] sm:$0xff] }
 0x826   :  { %11779 = vmatprep.subr.bf16.mxu0 %v11778_v1  ;;  %v5844_v1 = vld [vmem:[#allocation8 + $0x620] sm:$0xff] }
 0x827   :  { %v11798_v16 = vpack.c.bf16 %v5844_v1, %v5839_v43  ;;  %v5881_v43 = vld [vmem:[#allocation8 + $0x748] sm:$0xff]  ;;  %v5886_v1 = vld [vmem:[#allocation8 + $0x770] sm:$0xff] }
 0x829   :  { %11781 = vmatpush1.bf16.msra.mxu0 %v11780_v5  ;;  %v5838_v5 = vld [vmem:[#allocation8 + $0x5f0] sm:$0xff] }
 0x82a   :  { %11783 = vmatprep.subr.bf16.mxu0 %v11782_v8  ;;  %v5843_v8 = vld [vmem:[#allocation8 + $0x618] sm:$0xff] }
 0x82d   :  { %11785 = vmatpush1.bf16.msra.mxu0 %v11784_v21  ;;  %v5849_v21 = vld [vmem:[#allocation8 + $0x648] sm:$0xff] }
 0x82e   :  { %11787 = vmatprep.subr.bf16.mxu0 %v11786_v63  ;;  %v5854_v63 = vld [vmem:[#allocation8 + $0x670] sm:$0xff] }
 0x82f   :  { %v11802_v29 = vpack.c.bf16 %v5854_v63, %v5849_v21  ;;  %v5891_v21 = vld [vmem:[#allocation8 + $0x798] sm:$0xff]  ;;  %v5896_v63 = vld [vmem:[#allocation8 + $0x7c0] sm:$0xff] }
 0x875   :  { %v5361_v23 = vpop.f32.mrb[30].mxu0 }
 0x876   :  { %v5363_v25 = vpop.f32.mrb[31].mxu0 }
 0x877   :  { %v5290_v47 = vpop.f32.mrb[26].mxu1 }
 0x878   :  { %v5291_v30 = vadd.f32 %v5290_v47, %v5199_v10  ;;  %v5292_v13 = vpop.f32.mrb[27].mxu1  ;;  %v5851_v10 = vld [vmem:[#allocation8 + $0x658] sm:$0xff]  ;;  %v5848_v47 = vld [vmem:[#allocation8 + $0x640] sm:$0xff] }
 0x879   :  { %v5293_v39 = vadd.f32 %v5292_v13, %v5203_v6  ;;  %v11800_v6 = vpack.c.bf16 %v5843_v8, %v5838_v5  ;;  %v5850_v13 = vld [vmem:[#allocation8 + $0x650] sm:$0xff]  ;;  %v11804_v62 = vpack.c.bf16 %v5853_v27, %v5848_v47  ;;  %v11814_v5 = vpack.c.bf16 %v5884_v59, %v5879_v56  ;;  %v5893_v47 = vld [vmem:[#allocation8 + $0x7a8] sm:$0xff]  ;;  %v5915_v56 = vld [vmem:[#allocation8 + $0x858] sm:$0xff] }
 0x87a   :  { %v17237_v44 = vadd.f32 %v5361_v23, %v5291_v30  ;;  %v5856_v23 = vld [vmem:[#allocation8 + $0x680] sm:$0xff]  ;;  %v11952_v46 = vpack.c.bf16 %v5855_v28, %v5850_v13  ;;  %v11962_v8 = vpack.c.bf16 %v5886_v1, %v5881_v43  ;;  %v5890_v13 = vld [vmem:[#allocation8 + $0x790] sm:$0xff]  ;;  %v5895_v28 = vld [vmem:[#allocation8 + $0x7b8] sm:$0xff] }
 0x87b   :  { %v17239_v35 = vadd.f32 %v5363_v25, %v5293_v39  ;;  %v11948_v25 = vpack.c.bf16 %v5845_v24, %v5840_v9  ;;  %v11950_v30 = vpack.c.bf16 %v5856_v23, %v5851_v10  ;;  %v5861_v39 = vld [vmem:[#allocation8 + $0x6a8] sm:$0xff]  ;;  %v5894_v24 = vld [vmem:[#allocation8 + $0x7b0] sm:$0xff]  ;;  %v5919_v59 = vld [vmem:[#allocation8 + $0x878] sm:$0xff] }
 0x87c   :  { %v11954_v51 = vpack.c.bf16 %v5866_v37, %v5861_v39  ;;  %v5889_v9 = vld [vmem:[#allocation8 + $0x788] sm:$0xff]  ;;  %v5904_v39 = vld [vmem:[#allocation8 + $0x800] sm:$0xff] }
 0x87d   :  { %6117 = vmatprep.mubr.f32.mxu0 %v17239_v35  ;;  %6330 = vmatprep.mubr.f32.mxu1 %v17239_v35  ;;  %v5901_v37 = vld [vmem:[#allocation8 + $0x7e8] sm:$0xff]  ;;  %v5924_v43 = vld [vmem:[#allocation8 + $0x8a0] sm:$0xff] }
 0x87e   :  { %6118 = vmatmul.mubr.f32.vlgmr.msra.gmra.mrb[36].mxu0 %v17237_v44  ;;  %6331 = vmatmul.mubr.f32.vlgmr.msra.gmra.mrb[30].mxu1 %v17237_v44  ;;  %v5921_v1 = vld [vmem:[#allocation8 + $0x888] sm:$0xff] }
 0x87f   :  { %11789 = vmatpush1.bf16.msra.mxu0 %v11788_v52  ;;  %11937 = vmatpush1.bf16.msra.mxu1 %v11936_v40  ;;  %v5858_v52 = vld [vmem:[#allocation8 + $0x690] sm:$0xff]  ;;  %v5863_v40 = vld [vmem:[#allocation8 + $0x6b8] sm:$0xff] }
 0x880   :  { %11791 = vmatprep.subr.bf16.mxu0 %v11790_v22  ;;  %11939 = vmatprep.subr.bf16.mxu1 %v11938_v33  ;;  %v5860_v22 = vld [vmem:[#allocation8 + $0x6a0] sm:$0xff]  ;;  %v5865_v33 = vld [vmem:[#allocation8 + $0x6c8] sm:$0xff]  ;;  %v11808_v41 = vpack.c.bf16 %v5863_v40, %v5858_v52  ;;  %v11968_v52 = vpack.c.bf16 %v5895_v28, %v5890_v13  ;;  %v5898_v40 = vld [vmem:[#allocation8 + $0x7d0] sm:$0xff] }
 0x881   :  { %v11956_v48 = vpack.c.bf16 %v5865_v33, %v5860_v22  ;;  %v5900_v33 = vld [vmem:[#allocation8 + $0x7e0] sm:$0xff]  ;;  %v5935_v13 = vld [vmem:[#allocation8 + $0x8f8] sm:$0xff] }
 0x882   :  { %v5939_v28 = vld [vmem:[#allocation8 + $0x918] sm:$0xff] }
 0x883   :  { %11793 = vmatpush1.bf16.msra.mxu0 %v11792_v49  ;;  %11941 = vmatpush1.bf16.msra.mxu1 %v11940_v53  ;;  %v5868_v49 = vld [vmem:[#allocation8 + $0x6e0] sm:$0xff]  ;;  %v5873_v53 = vld [vmem:[#allocation8 + $0x708] sm:$0xff] }
 0x884   :  { %11795 = vmatprep.subr.bf16.mxu0 %v11794_v31  ;;  %11943 = vmatprep.subr.bf16.mxu1 %v11942_v19  ;;  %v5870_v31 = vld [vmem:[#allocation8 + $0x6f0] sm:$0xff]  ;;  %v5875_v19 = vld [vmem:[#allocation8 + $0x718] sm:$0xff]  ;;  %v11812_v34 = vpack.c.bf16 %v5873_v53, %v5868_v49  ;;  %v11972_v49 = vpack.c.bf16 %v5905_v7, %v5900_v33  ;;  %v5908_v53 = vld [vmem:[#allocation8 + $0x820] sm:$0xff] }
 0x885   :  { %v11960_v2 = vpack.c.bf16 %v5875_v19, %v5870_v31  ;;  %v5910_v19 = vld [vmem:[#allocation8 + $0x830] sm:$0xff]  ;;  %v5945_v33 = vld [vmem:[#allocation8 + $0x948] sm:$0xff] }
 0x886   :  { %v5949_v7 = vld [vmem:[#allocation8 + $0x968] sm:$0xff] }
 0x887   :  { %11797 = vmatpush1.bf16.msra.mxu0 %v11796_v4  ;;  %11945 = vmatpush1.bf16.msra.mxu1 %v11944_v45  ;;  %v5878_v4 = vld [vmem:[#allocation8 + $0x730] sm:$0xff]  ;;  %v5883_v45 = vld [vmem:[#allocation8 + $0x758] sm:$0xff] }
 0x888   :  { %11799 = vmatprep.subr.bf16.mxu0 %v11798_v16  ;;  %11947 = vmatprep.subr.bf16.mxu1 %v11946_v17  ;;  %v5880_v16 = vld [vmem:[#allocation8 + $0x740] sm:$0xff]  ;;  %v5885_v17 = vld [vmem:[#allocation8 + $0x768] sm:$0xff]  ;;  %v11816_v23 = vpack.c.bf16 %v5883_v45, %v5878_v4  ;;  %v11976_v4 = vpack.c.bf16 %v5915_v56, %v5910_v19  ;;  %v5918_v45 = vld [vmem:[#allocation8 + $0x870] sm:$0xff] }
 0x889   :  { %v5955_v19 = vld [vmem:[#allocation8 + $0x998] sm:$0xff] }
 0x88a   :  { %v5959_v56 = vld [vmem:[#allocation8 + $0x9b8] sm:$0xff] }
 0x88b   :  { %11801 = vmatpush1.bf16.msra.mxu0 %v11800_v6  ;;  %11949 = vmatpush1.bf16.msra.mxu1 %v11948_v25  ;;  %v11964_v6 = vpack.c.bf16 %v5885_v17, %v5880_v16  ;;  %v5888_v25 = vld [vmem:[#allocation8 + $0x780] sm:$0xff] }
 0x88c   :  { %11803 = vmatprep.subr.bf16.mxu0 %v11802_v29  ;;  %11951 = vmatprep.subr.bf16.mxu1 %v11950_v30  ;;  %v11818_v29 = vpack.c.bf16 %v5894_v24, %v5889_v9  ;;  %v11966_v30 = vpack.c.bf16 %v5896_v63, %v5891_v21  ;;  %v5920_v17 = vld [vmem:[#allocation8 + $0x880] sm:$0xff]  ;;  %v5925_v9 = vld [vmem:[#allocation8 + $0x8a8] sm:$0xff]  ;;  %v5934_v21 = vld [vmem:[#allocation8 + $0x8f0] sm:$0xff] }
 0x88d   :  { %v5929_v24 = vld [vmem:[#allocation8 + $0x8c8] sm:$0xff]  ;;  %v5931_v63 = vld [vmem:[#allocation8 + $0x8d8] sm:$0xff] }
 0x88f   :  { %11805 = vmatpush1.bf16.msra.mxu0 %v11804_v62  ;;  %11953 = vmatpush1.bf16.msra.mxu1 %v11952_v46  ;;  %v5906_v62 = vld [vmem:[#allocation8 + $0x810] sm:$0xff]  ;;  %v11820_v46 = vpack.c.bf16 %v5893_v47, %v5888_v25  ;;  %v5928_v25 = vld [vmem:[#allocation8 + $0x8c0] sm:$0xff]  ;;  %v5933_v47 = vld [vmem:[#allocation8 + $0x8e8] sm:$0xff] }
 0x890   :  { %11807 = vmatprep.subr.bf16.mxu0 %v11806_v42  ;;  %11955 = vmatprep.subr.bf16.mxu1 %v11954_v51  ;;  %v5903_v42 = vld [vmem:[#allocation8 + $0x7f8] sm:$0xff]  ;;  %v11822_v51 = vpack.c.bf16 %v5904_v39, %v5899_v26  ;;  %v11970_v22 = vpack.c.bf16 %v5906_v62, %v5901_v37  ;;  %v5944_v26 = vld [vmem:[#allocation8 + $0x940] sm:$0xff]  ;;  %v5941_v39 = vld [vmem:[#allocation8 + $0x928] sm:$0xff]  ;;  %v11836_v62 = vpack.c.bf16 %v5933_v47, %v5928_v25 }
 0x891   :  { %v5946_v37 = vld [vmem:[#allocation8 + $0x950] sm:$0xff]  ;;  %v5211_v47 = vrot.slane %v17231_v20, %v14052_v15 }
 0x893   :  { %11809 = vmatpush1.bf16.msra.mxu0 %v11808_v41  ;;  %11957 = vmatpush1.bf16.msra.mxu1 %v11956_v48  ;;  %v5916_v41 = vld [vmem:[#allocation8 + $0x860] sm:$0xff]  ;;  %v11824_v48 = vpack.c.bf16 %v5903_v42, %v5898_v40  ;;  %v5943_v40 = vld [vmem:[#allocation8 + $0x938] sm:$0xff]  ;;  %v11838_v42 = vpack.c.bf16 %v5944_v26, %v5939_v28 }
 0x894   :  { %11811 = vmatprep.subr.bf16.mxu0 %v11810_v54  ;;  %11959 = vmatprep.subr.bf16.mxu1 %v11958_v55  ;;  %v5913_v54 = vld [vmem:[#allocation8 + $0x848] sm:$0xff]  ;;  %v11826_v55 = vpack.c.bf16 %v5914_v58, %v5909_v57  ;;  %v11974_v31 = vpack.c.bf16 %v5916_v41, %v5911_v38  ;;  %v5954_v57 = vld [vmem:[#allocation8 + $0x990] sm:$0xff]  ;;  %v5951_v58 = vld [vmem:[#allocation8 + $0x978] sm:$0xff] }
 0x895   :  { %v5956_v38 = vld [vmem:[#allocation8 + $0x9a0] sm:$0xff]  ;;  %v5975_v28 = vld [vmem:[#allocation8 + $0xa38] sm:$0xff] }
 0x896   :  { %v5979_v26 = vld [vmem:[#allocation8 + $0xa58] sm:$0xff] }
 0x897   :  { %v9578_v10 = vpop.f32.mrb[28].mxu1  ;;  %11813 = vmatpush1.bf16.msra.mxu0 %v11812_v34  ;;  %11961 = vmatpush1.bf16.msra.mxu1 %v11960_v2  ;;  %v5926_v34 = vld [vmem:[#allocation8 + $0x8b0] sm:$0xff]  ;;  %v11828_v2 = vpack.c.bf16 %v5913_v54, %v5908_v53  ;;  %v5953_v53 = vld [vmem:[#allocation8 + $0x988] sm:$0xff]  ;;  %v11842_v54 = vpack.c.bf16 %v5954_v57, %v5949_v7  ;;  %v5983_v7 = vld [vmem:[#allocation8 + $0xa78] sm:$0xff] }
 0x898   :  { %v9579_v27 = vpop.f32.mrb[29].mxu1  ;;  %11815 = vmatprep.subr.bf16.mxu0 %v11814_v5  ;;  %11963 = vmatprep.subr.bf16.mxu1 %v11962_v8  ;;  %v5923_v5 = vld [vmem:[#allocation8 + $0x898] sm:$0xff]  ;;  %v11830_v8 = vpack.c.bf16 %v5924_v43, %v5919_v59  ;;  %v11978_v16 = vpack.c.bf16 %v5926_v34, %v5921_v1  ;;  %v5964_v59 = vld [vmem:[#allocation8 + $0x9e0] sm:$0xff]  ;;  %v5961_v43 = vld [vmem:[#allocation8 + $0x9c8] sm:$0xff] }
 0x899   :  { %v17245_v36 = vadd.f32 %v9579_v27, %v9578_v10  ;;  %v5936_v10 = vld [vmem:[#allocation8 + $0x900] sm:$0xff]  ;;  %v11834_v27 = vpack.c.bf16 %v5934_v21, %v5929_v24  ;;  %v5966_v1 = vld [vmem:[#allocation8 + $0x9f0] sm:$0xff]  ;;  %v5971_v21 = vld [vmem:[#allocation8 + $0xa18] sm:$0xff] }
 0x89a   :  { %v5974_v24 = vld [vmem:[#allocation8 + $0xa30] sm:$0xff] }
 0x89b   :  { %11817 = vmatpush1.bf16.msra.mxu0 %v11816_v23  ;;  %11965 = vmatpush1.bf16.msra.mxu1 %v11964_v6  ;;  %v11832_v23 = vpack.c.bf16 %v5923_v5, %v5918_v45  ;;  %v11980_v6 = vpack.c.bf16 %v5925_v9, %v5920_v17  ;;  %v5963_v45 = vld [vmem:[#allocation8 + $0x9d8] sm:$0xff]  ;;  %v11846_v5 = vpack.c.bf16 %v5964_v59, %v5959_v56  ;;  %v5965_v17 = vld [vmem:[#allocation8 + $0x9e8] sm:$0xff]  ;;  %v5988_v59 = vld [vmem:[#allocation8 + $0xaa0] sm:$0xff] }
 0x89c   :  { %11819 = vmatprep.subr.bf16.mxu0 %v11818_v29  ;;  %11967 = vmatprep.subr.bf16.mxu1 %v11966_v30  ;;  %v11982_v29 = vpack.c.bf16 %v5936_v10, %v5931_v63  ;;  %v5930_v30 = vld [vmem:[#allocation8 + $0x8d0] sm:$0xff]  ;;  %v5969_v9 = vld [vmem:[#allocation8 + $0xa08] sm:$0xff]  ;;  %v5976_v63 = vld [vmem:[#allocation8 + $0xa40] sm:$0xff] }
 0x89d   :  { %v11998_v25 = vpack.c.bf16 %v5976_v63, %v5971_v21  ;;  %v5998_v21 = vld [vmem:[#allocation8 + $0xaf0] sm:$0xff]  ;;  %v6003_v63 = vld [vmem:[#allocation8 + $0xb18] sm:$0xff] }
 0x89f   :  { %11821 = vmatpush1.bf16.msra.mxu0 %v11820_v46  ;;  %11969 = vmatpush1.bf16.msra.mxu1 %v11968_v52  ;;  %v11984_v46 = vpack.c.bf16 %v5935_v13, %v5930_v30  ;;  %v5938_v52 = vld [vmem:[#allocation8 + $0x910] sm:$0xff]  ;;  %v5207_v30 = vrot.slane %v17231_v20, %v14443_v50 }
 0x8a0   :  { %11823 = vmatprep.subr.bf16.mxu0 %v11822_v51  ;;  %11971 = vmatprep.subr.bf16.mxu1 %v11970_v22  ;;  %v11986_v51 = vpack.c.bf16 %v5946_v37, %v5941_v39  ;;  %v5940_v22 = vld [vmem:[#allocation8 + $0x920] sm:$0xff]  ;;  %v11840_v41 = vpack.c.bf16 %v5943_v40, %v5938_v52  ;;  %v5970_v13 = vld [vmem:[#allocation8 + $0xa10] sm:$0xff]  ;;  %v5215_v40 = vrot.slane %v17231_v20, %v14850_v60 }
 0x8a1   :  { %v5984_v37 = vld [vmem:[#allocation8 + $0xa80] sm:$0xff] }
 0x8a2   :  { %v5996_v20 = vld [vmem:[#allocation8 + $0xae0] sm:$0xff] }
 0x8a3   :  { %11825 = vmatpush1.bf16.msra.mxu0 %v11824_v48  ;;  %11973 = vmatpush1.bf16.msra.mxu1 %v11972_v49  ;;  %v11988_v48 = vpack.c.bf16 %v5945_v33, %v5940_v22  ;;  %v5948_v49 = vld [vmem:[#allocation8 + $0x960] sm:$0xff]  ;;  %v12000_v22 = vpack.c.bf16 %v5975_v28, %v5970_v13  ;;  %v5978_v33 = vld [vmem:[#allocation8 + $0xa50] sm:$0xff]  ;;  %v11864_v13 = vpack.c.bf16 %v6003_v63, %v5998_v21  ;;  %v5917_v63 = vld [vmem:[#allocation8 + $0x868] sm:$0xff] }
 0x8a4   :  { %11827 = vmatprep.subr.bf16.mxu0 %v11826_v55  ;;  %11975 = vmatprep.subr.bf16.mxu1 %v11974_v31  ;;  %v11990_v55 = vpack.c.bf16 %v5956_v38, %v5951_v58  ;;  %v5950_v31 = vld [vmem:[#allocation8 + $0x970] sm:$0xff]  ;;  %v11844_v34 = vpack.c.bf16 %v5953_v53, %v5948_v49  ;;  %v11854_v58 = vpack.c.bf16 %v5984_v37, %v5979_v26  ;;  %v5989_v49 = vld [vmem:[#allocation8 + $0xaa8] sm:$0xff]  ;;  %v6008_v26 = vld [vmem:[#allocation8 + $0xb40] sm:$0xff] }
 0x8a5   :  { %v5994_v53 = vld [vmem:[#allocation8 + $0xad0] sm:$0xff]  ;;  %v5912_v21 = vld [vmem:[#allocation8 + $0x840] sm:$0xff] }
 0x8a7   :  { %11829 = vmatpush1.bf16.msra.mxu0 %v11828_v2  ;;  %11977 = vmatpush1.bf16.msra.mxu1 %v11976_v4  ;;  %v11992_v2 = vpack.c.bf16 %v5955_v19, %v5950_v31  ;;  %v5958_v4 = vld [vmem:[#allocation8 + $0x9b0] sm:$0xff]  ;;  %v11856_v19 = vpack.c.bf16 %v5983_v7, %v5978_v33  ;;  %v6021_v33 = vld [vmem:[#allocation8 + $0xba8] sm:$0xff]  ;;  %v5732_v7 = vld [vmem:[#allocation8 + $0x2a0] sm:$0xff] }
 0x8a8   :  { %11831 = vmatprep.subr.bf16.mxu0 %v11830_v8  ;;  %11979 = vmatprep.subr.bf16.mxu1 %v11978_v16  ;;  %v11994_v8 = vpack.c.bf16 %v5966_v1, %v5961_v43  ;;  %v5960_v16 = vld [vmem:[#allocation8 + $0x9c0] sm:$0xff]  ;;  %v11848_v10 = vpack.c.bf16 %v5963_v45, %v5958_v4  ;;  %v5993_v43 = vld [vmem:[#allocation8 + $0xac8] sm:$0xff]  ;;  %v5990_v45 = vld [vmem:[#allocation8 + $0xab0] sm:$0xff] }
 0x8ab   :  { %11833 = vmatpush1.bf16.msra.mxu0 %v11832_v23  ;;  %11981 = vmatpush1.bf16.msra.mxu1 %v11980_v6  ;;  %v11996_v23 = vpack.c.bf16 %v5965_v17, %v5960_v16  ;;  %v11850_v6 = vpack.c.bf16 %v5974_v24, %v5969_v9  ;;  %v6001_v16 = vld [vmem:[#allocation8 + $0xb08] sm:$0xff]  ;;  %v6006_v17 = vld [vmem:[#allocation8 + $0xb30] sm:$0xff]  ;;  %v11860_v9 = vpack.c.bf16 %v5993_v43, %v5988_v59  ;;  %v5747_v59 = vld [vmem:[#allocation8 + $0x318] sm:$0xff] }
 0x8ac   :  { %11835 = vmatprep.subr.bf16.mxu0 %v11834_v27  ;;  %11983 = vmatprep.subr.bf16.mxu1 %v11982_v29  ;;  %v5968_v27 = vld [vmem:[#allocation8 + $0xa00] sm:$0xff]  ;;  %v5973_v29 = vld [vmem:[#allocation8 + $0xa28] sm:$0xff]  ;;  %v5902_v43 = vld [vmem:[#allocation8 + $0x7f0] sm:$0xff] }
 0x8af   :  { %11837 = vmatpush1.bf16.msra.mxu0 %v11836_v62  ;;  %11985 = vmatpush1.bf16.msra.mxu1 %v11984_v46  ;;  %v5981_v62 = vld [vmem:[#allocation8 + $0xa68] sm:$0xff]  ;;  %v5986_v46 = vld [vmem:[#allocation8 + $0xa90] sm:$0xff] }
 0x8b0   :  { %11839 = vmatprep.subr.bf16.mxu0 %v11838_v42  ;;  %11987 = vmatprep.subr.bf16.mxu1 %v11986_v51  ;;  %v11852_v51 = vpack.c.bf16 %v5973_v29, %v5968_v27  ;;  %v12002_v38 = vpack.c.bf16 %v5986_v46, %v5981_v62  ;;  %v6014_v27 = vld [vmem:[#allocation8 + $0xb70] sm:$0xff]  ;;  %v6011_v29 = vld [vmem:[#allocation8 + $0xb58] sm:$0xff]  ;;  %v6013_v62 = vld [vmem:[#allocation8 + $0xb68] sm:$0xff] }
 0x8b1   :  { %v6010_v46 = vld [vmem:[#allocation8 + $0xb50] sm:$0xff] }
 0x8b3   :  { %11841 = vmatpush1.bf16.msra.mxu0 %v11840_v41  ;;  %11989 = vmatpush1.bf16.msra.mxu1 %v11988_v48  ;;  %v5980_v41 = vld [vmem:[#allocation8 + $0xa60] sm:$0xff]  ;;  %v5985_v48 = vld [vmem:[#allocation8 + $0xa88] sm:$0xff] }
 0x8b4   :  { %11843 = vmatprep.subr.bf16.mxu0 %v11842_v54  ;;  %11991 = vmatprep.subr.bf16.mxu1 %v11990_v55  ;;  %v5991_v54 = vld [vmem:[#allocation8 + $0xab8] sm:$0xff]  ;;  %v5575_v55 = vadd.f32 %v17245_v36, %v5215_v40  ;;  %v12004_v56 = vpack.c.bf16 %v5985_v48, %v5980_v41  ;;  %v11868_v40 = vpack.c.bf16 %v6013_v62, %v6008_v26  ;;  %v5892_v41 = vld [vmem:[#allocation8 + $0x7a0] sm:$0xff]  ;;  %v5897_v48 = vld [vmem:[#allocation8 + $0x7c8] sm:$0xff] }
 0x8b5   :  { %v12006_v4 = vpack.c.bf16 %v5996_v20, %v5991_v54  ;;  %v5995_v36 = vld [vmem:[#allocation8 + $0xad8] sm:$0xff]  ;;  %v5657_v54 = vld [vmem:[#allocation8 + $0x48] sm:$0xff]  ;;  %v5812_v20 = vld [vmem:[#allocation8 + $0x520] sm:$0xff] }
 0x8b6   :  { %v12008_v24 = vpack.c.bf16 %v5995_v36, %v5990_v45  ;;  %v5662_v45 = vld [vmem:[#allocation8 + $0x70] sm:$0xff]  ;;  %v5667_v36 = vld [vmem:[#allocation8 + $0x98] sm:$0xff] }
 0x8b7   :  { %11845 = vmatpush1.bf16.msra.mxu0 %v11844_v34  ;;  %11993 = vmatpush1.bf16.msra.mxu1 %v11992_v2  ;;  %v11858_v2 = vpack.c.bf16 %v5994_v53, %v5989_v49  ;;  %v6020_v49 = vld [vmem:[#allocation8 + $0xba0] sm:$0xff]  ;;  %v5922_v26 = vld [vmem:[#allocation8 + $0x890] sm:$0xff] }
 0x8b8   :  { %11847 = vmatprep.subr.bf16.mxu0 %v11846_v5  ;;  %11995 = vmatprep.subr.bf16.mxu1 %v11994_v8  ;;  %v5999_v5 = vld [vmem:[#allocation8 + $0xaf8] sm:$0xff]  ;;  %v6004_v8 = vld [vmem:[#allocation8 + $0xb20] sm:$0xff] }
 0x8b9   :  { %v5652_v53 = vld [vmem:[#allocation8 + $0x20] sm:$0xff] }
 0x8bb   :  { %11849 = vmatpush1.bf16.msra.mxu0 %v11848_v10  ;;  %11997 = vmatpush1.bf16.msra.mxu1 %v11996_v23  ;;  %v11862_v10 = vpack.c.bf16 %v6004_v8, %v5999_v5  ;;  %v12010_v23 = vpack.c.bf16 %v6006_v17, %v6001_v16  ;;  %v5822_v5 = vld [vmem:[#allocation8 + $0x570] sm:$0xff]  ;;  %v5827_v17 = vld [vmem:[#allocation8 + $0x598] sm:$0xff] }
 0x8bc   :  { %11851 = vmatprep.subr.bf16.mxu0 %v11850_v6  ;;  %11999 = vmatprep.subr.bf16.mxu1 %v11998_v25  ;;  %v6000_v6 = vld [vmem:[#allocation8 + $0xb00] sm:$0xff]  ;;  %v6005_v25 = vld [vmem:[#allocation8 + $0xb28] sm:$0xff] }
 0x8bd   :  { %v5503_v39 = vpop.f32.mrb[32].mxu0  ;;  %v12012_v28 = vpack.c.bf16 %v6005_v25, %v6000_v6  ;;  %v5672_v25 = vld [vmem:[#allocation8 + $0xc0] sm:$0xff] }
 0x8be   :  { %v5505_v52 = vpop.f32.mrb[33].mxu0  ;;  %v17255_v57 = vadd.f32 %v5503_v39, %v5207_v30  ;;  %v6016_v30 = vld [vmem:[#allocation8 + $0xb80] sm:$0xff] }
 0x8bf   :  { %v17253_v42 = vadd.f32 %v5505_v52, %v5211_v47  ;;  %v6009_v47 = vld [vmem:[#allocation8 + $0xb48] sm:$0xff]  ;;  %v12014_v37 = vpack.c.bf16 %v6016_v30, %v6011_v29  ;;  %v6015_v52 = vld [vmem:[#allocation8 + $0xb78] sm:$0xff]  ;;  %v12058_v29 = vpack.c.bf16 %v5917_v63, %v5912_v21 }
 0x8c0   :  { %v11866_v39 = vpack.c.bf16 %v6014_v27, %v6009_v47  ;;  %v5677_v47 = vld [vmem:[#allocation8 + $0xe8] sm:$0xff]  ;;  %v5832_v27 = vld [vmem:[#allocation8 + $0x5c0] sm:$0xff] }
 0x8c1   :  { %6188 = vmatprep.mubr.f32.mxu0 %v17253_v42  ;;  %6401 = vmatprep.mubr.f32.mxu1 %v17253_v42  ;;  %v5837_v30 = vld [vmem:[#allocation8 + $0x5e8] sm:$0xff] }
 0x8c2   :  { %6189 = vmatmul.mubr.f32.vlgmr.msra.gmra.mrb[36].mxu0 %v17255_v57  ;;  %6402 = vmatmul.mubr.f32.vlgmr.msra.gmra.mrb[30].mxu1 %v17255_v57 }
 0x8c3   :  { %v5644_v31 = vpop.f32.mrb[34].mxu0  ;;  %11853 = vmatpush1.bf16.msra.mxu0 %v11852_v51  ;;  %12001 = vmatpush1.bf16.msra.mxu1 %v12000_v22  ;;  %v12016_v51 = vpack.c.bf16 %v6015_v52, %v6010_v46  ;;  %v6019_v22 = vld [vmem:[#allocation8 + $0xb98] sm:$0xff]  ;;  %v5842_v52 = vld [vmem:[#allocation8 + $0x610] sm:$0xff] }
 0x8c4   :  { %v17262_v1 = vadd.f32 %v5644_v31, %v5575_v55  ;;  %v9889_v34 = vpop.f32.mrb[35].mxu0  ;;  %11855 = vmatprep.subr.bf16.mxu0 %v11854_v58  ;;  %12003 = vmatprep.subr.bf16.mxu1 %v12002_v38  ;;  %v6018_v58 = vld [vmem:[#allocation8 + $0xb90] sm:$0xff]  ;;  %v5737_v38 = vld [vmem:[#allocation8 + $0x2c8] sm:$0xff]  ;;  %v5687_v46 = vld [vmem:[#allocation8 + $0x138] sm:$0xff] }
 0x8c5   :  { %6259 = vmatprep.mubr.f32.mxu0 %v13287_v0  ;;  %6472 = vmatprep.mubr.f32.mxu1 %v13287_v0  ;;  %v5817_v55 = vld [vmem:[#allocation8 + $0x548] sm:$0xff]  ;;  %v5742_v31 = vld [vmem:[#allocation8 + $0x2f0] sm:$0xff]  ;;  %v5907_v34 = vld [vmem:[#allocation8 + $0x818] sm:$0xff] }
 0x8c6   :  { %v12022_v8 = vpack.c.bf16 %v5747_v59, %v5742_v31  ;;  %v12054_v16 = vpack.c.bf16 %v5907_v34, %v5902_v43  ;;  %v5782_v31 = vld [vmem:[#allocation8 + $0x430] sm:$0xff]  ;;  %v5947_v59 = vld [vmem:[#allocation8 + $0x958] sm:$0xff] }
 0x8c7   :  { %11857 = vmatpush1.bf16.msra.mxu0 %v11856_v19  ;;  %12005 = vmatpush1.bf16.msra.mxu1 %v12004_v56  ;;  %v12018_v19 = vpack.c.bf16 %v5737_v38, %v5732_v7  ;;  %v12050_v56 = vpack.c.bf16 %v5897_v48, %v5892_v41  ;;  %v5932_v7 = vld [vmem:[#allocation8 + $0x8e0] sm:$0xff] }
 0x8c8   :  { %11859 = vmatprep.subr.bf16.mxu0 %v11858_v2  ;;  %12007 = vmatprep.subr.bf16.mxu1 %v12006_v4  ;;  %v12020_v2 = vpack.c.bf16 %v5657_v54, %v5652_v53  ;;  %v12052_v4 = vpack.c.bf16 %v5817_v55, %v5812_v20  ;;  %v5697_v53 = vld [vmem:[#allocation8 + $0x188] sm:$0xff]  ;;  %v5852_v54 = vld [vmem:[#allocation8 + $0x660] sm:$0xff] }
 0x8c9   :  { %v5857_v55 = vld [vmem:[#allocation8 + $0x688] sm:$0xff] }
 0x8ca   :  { %v12068_v34 = vpack.c.bf16 %v5857_v55, %v5852_v54  ;;  %v6725_v54 = vld [vmem:[#allocation10 + $0xf8] sm:$0xff]  ;;  %v5987_v55 = vld [vmem:[#allocation8 + $0xa98] sm:$0xff] }
 0x8cb   :  { %11861 = vmatpush1.bf16.msra.mxu0 %v11860_v9  ;;  %12009 = vmatpush1.bf16.msra.mxu1 %v12008_v24  ;;  %v5752_v9 = vld [vmem:[#allocation8 + $0x340] sm:$0xff]  ;;  %v5757_v24 = vld [vmem:[#allocation8 + $0x368] sm:$0xff] }
 0x8cc   :  { %11863 = vmatprep.subr.bf16.mxu0 %v11862_v10  ;;  %12011 = vmatprep.subr.bf16.mxu1 %v12010_v23  ;;  %v12024_v10 = vpack.c.bf16 %v5667_v36, %v5662_v45  ;;  %v12056_v23 = vpack.c.bf16 %v5827_v17, %v5822_v5  ;;  %v12026_v6 = vpack.c.bf16 %v5757_v24, %v5752_v9  ;;  %v5707_v45 = vld [vmem:[#allocation8 + $0x1d8] sm:$0xff]  ;;  %v5862_v36 = vld [vmem:[#allocation8 + $0x6b0] sm:$0xff]  ;;  %v5797_v17 = vld [vmem:[#allocation8 + $0x4a8] sm:$0xff] }
 0x8cd   :  { %v5952_v9 = vld [vmem:[#allocation8 + $0x980] sm:$0xff]  ;;  %v5957_v24 = vld [vmem:[#allocation8 + $0x9a8] sm:$0xff] }
 0x8cf   :  { %11865 = vmatpush1.bf16.msra.mxu0 %v11864_v13  ;;  %12013 = vmatpush1.bf16.msra.mxu1 %v12012_v28  ;;  %v5762_v13 = vld [vmem:[#allocation8 + $0x390] sm:$0xff]  ;;  %v5767_v28 = vld [vmem:[#allocation8 + $0x3b8] sm:$0xff] }
 0x8d0   :  { %11867 = vmatprep.subr.bf16.mxu0 %v11866_v39  ;;  %12015 = vmatprep.subr.bf16.mxu1 %v12014_v37  ;;  %v5927_v39 = vld [vmem:[#allocation8 + $0x8b8] sm:$0xff]  ;;  %v12028_v37 = vpack.c.bf16 %v5677_v47, %v5672_v25  ;;  %v12030_v62 = vpack.c.bf16 %v5767_v28, %v5762_v13  ;;  %v5872_v25 = vld [vmem:[#allocation8 + $0x700] sm:$0xff]  ;;  %v12074_v47 = vpack.c.bf16 %v5957_v24, %v5952_v9  ;;  %v5962_v13 = vld [vmem:[#allocation8 + $0x9d0] sm:$0xff] }
 0x8d1   :  { %v5967_v28 = vld [vmem:[#allocation8 + $0x9f8] sm:$0xff]  ;;  %v6002_v9 = vld [vmem:[#allocation8 + $0xb10] sm:$0xff] }
 0x8d2   :  { %v6007_v24 = vld [vmem:[#allocation8 + $0xb38] sm:$0xff] }
 0x8d3   :  { %11869 = vmatpush1.bf16.msra.mxu0 %v11868_v40  ;;  %12017 = vmatpush1.bf16.msra.mxu1 %v12016_v51  ;;  %v12062_v40 = vpack.c.bf16 %v5927_v39, %v5922_v26  ;;  %v5847_v51 = vld [vmem:[#allocation8 + $0x638] sm:$0xff] }
 0x8d4   :  { %6215 = vmatprep.subr.mxu0 %v6019_v22  ;;  %6428 = vmatprep.subr.mxu1 %v6021_v33  ;;  %v5772_v22 = vld [vmem:[#allocation8 + $0x3e0] sm:$0xff]  ;;  %v5777_v33 = vld [vmem:[#allocation8 + $0x408] sm:$0xff]  ;;  %v12064_v41 = vpack.c.bf16 %v5847_v51, %v5842_v52  ;;  %v5887_v52 = vld [vmem:[#allocation8 + $0x778] sm:$0xff] }
 0x8d5   :  { %v12034_v48 = vpack.c.bf16 %v5777_v33, %v5772_v22  ;;  %v6705_v51 = vld [vmem:[#allocation10 + $0x58] sm:$0xff] }
 0x8d7   :  { %6216 = vmatpush1.msra.mxu0 %v6018_v58  ;;  %6429 = vmatpush1.msra.mxu1 %v6020_v49  ;;  %v5937_v58 = vld [vmem:[#allocation8 + $0x908] sm:$0xff]  ;;  %v5692_v49 = vld [vmem:[#allocation8 + $0x160] sm:$0xff] }
 0x8d8   :  { %9151 = vmatmul.mubr.msk.f32.vlgmr.msra.gmra.mrb[36].mxu0 %vm2873_vm5, %v17262_v1  ;;  %9152 = vmatmul.mubr.msk.f32.vlgmr.msra.gmra.mrb[30].mxu1 %vm2873_vm5, %v17262_v1  ;;  %v12066_v20 = vpack.c.bf16 %v5937_v58, %v5932_v7  ;;  %v12036_v43 = vpack.c.bf16 %v5697_v53, %v5692_v49  ;;  %v5972_v7 = vld [vmem:[#allocation8 + $0xa20] sm:$0xff]  ;;  %v5977_v58 = vld [vmem:[#allocation8 + $0xa48] sm:$0xff] }
 0x8d9   :  { %12019 = vmatprep.subr.bf16.mxu0 %v12018_v19  ;;  %12051 = vmatprep.subr.bf16.mxu1 %v12050_v56  ;;  %v5787_v19 = vld [vmem:[#allocation8 + $0x458] sm:$0xff]  ;;  %v5942_v56 = vld [vmem:[#allocation8 + $0x930] sm:$0xff]  ;;  %v12083_v49 = vpack.c.bf16 %v5977_v58, %v5972_v7  ;;  %v6715_v53 = vld [vmem:[#allocation10 + $0xa8] sm:$0xff] }
 0x8da   :  { %12021 = vmatpush3.bf16.msra.mxu0 %v12020_v2  ;;  %6543 = vmatprep.mubr.f32.mxu0 %v17239_v35  ;;  %v12060_v35 = vpack.c.bf16 %v5837_v30, %v5832_v27  ;;  %v12038_v2 = vpack.c.bf16 %v5787_v19, %v5782_v31  ;;  %v12070_v5 = vpack.c.bf16 %v5947_v59, %v5942_v56  ;;  %v5877_v27 = vld [vmem:[#allocation8 + $0x728] sm:$0xff]  ;;  %v5807_v30 = vld [vmem:[#allocation8 + $0x4f8] sm:$0xff]  ;;  %v6727_v58 = vld [vmem:[#allocation10 + $0x108] sm:$0xff] }
 0x8db   :  { %12053 = vmatpush3.bf16.msra.mxu1 %v12052_v4  ;;  %6613 = vmatprep.mubr.f32.mxu1 %v17253_v42  ;;  %v5682_v42 = vld [vmem:[#allocation8 + $0x110] sm:$0xff]  ;;  %v12076_v39 = vpack.c.bf16 %v5877_v27, %v5872_v25  ;;  %v12101_v19 = vpack.c.bf16 %v6725_v54, %v6715_v53  ;;  %v6714_v56 = vld [vmem:[#allocation10 + $0xa0] sm:$0xff]  ;;  %v6724_v59 = vld [vmem:[#allocation10 + $0xf0] sm:$0xff] }
 0x8dc   :  { %12023 = vmatprep.subr.bf16.mxu0 %v12022_v8  ;;  %12055 = vmatprep.subr.bf16.mxu1 %v12054_v16  ;;  %v12032_v38 = vpack.c.bf16 %v5687_v46, %v5682_v42  ;;  %v5702_v4 = vld [vmem:[#allocation8 + $0x1b0] sm:$0xff]  ;;  %v5867_v8 = vld [vmem:[#allocation8 + $0x6d8] sm:$0xff]  ;;  %v5792_v16 = vld [vmem:[#allocation8 + $0x480] sm:$0xff]  ;;  %v12078_v42 = vpack.c.bf16 %v5967_v28, %v5962_v13 }
 0x8dd   :  { %v12040_v21 = vpack.c.bf16 %v5707_v45, %v5702_v4  ;;  %v12072_v63 = vpack.c.bf16 %v5867_v8, %v5862_v36  ;;  %v5882_v46 = vld [vmem:[#allocation8 + $0x750] sm:$0xff]  ;;  %v5992_v4 = vld [vmem:[#allocation8 + $0xac0] sm:$0xff]  ;;  %v5997_v45 = vld [vmem:[#allocation8 + $0xae8] sm:$0xff]  ;;  %v12103_v36 = vpack.c.bf16 %v6724_v59, %v6714_v56 }
 0x8de   :  { %12025 = vmatpush3.bf16.msra.mxu0 %v12024_v10  ;;  %v12042_v10 = vpack.c.bf16 %v5797_v17, %v5792_v16  ;;  %v12080_v33 = vpack.c.bf16 %v5887_v52, %v5882_v46  ;;  %v6744_v8 = vld [vmem:[#allocation10 + $0x190] sm:$0xff]  ;;  %v12089_v16 = vpack.c.bf16 %v5997_v45, %v5992_v4  ;;  %v6765_v17 = vld [vmem:[#allocation10 + $0x238] sm:$0xff]  ;;  %v6775_v25 = vld [vmem:[#allocation10 + $0x288] sm:$0xff] }
 0x8df   :  { %12057 = vmatpush3.bf16.msra.mxu1 %v12056_v23  ;;  %12027 = vmatprep.subr.bf16.mxu0 %v12026_v6  ;;  %v5712_v23 = vld [vmem:[#allocation8 + $0x200] sm:$0xff]  ;;  %v5717_v6 = vld [vmem:[#allocation8 + $0x228] sm:$0xff]  ;;  %v6774_v28 = vld [vmem:[#allocation10 + $0x280] sm:$0xff] }
 0x8e0   :  { %12059 = vmatprep.subr.bf16.mxu1 %v12058_v29  ;;  %v5802_v29 = vld [vmem:[#allocation8 + $0x4d0] sm:$0xff]  ;;  %v12044_v26 = vpack.c.bf16 %v5717_v6, %v5712_v23  ;;  %v6764_v23 = vld [vmem:[#allocation10 + $0x230] sm:$0xff]  ;;  %v12092_v6 = vpack.c.bf16 %v6007_v24, %v6002_v9  ;;  %v6012_v27 = vld [vmem:[#allocation8 + $0xb60] sm:$0xff] }
 0x8e1   :  { %v6696_v46 = vld [vmem:[#allocation10 + $0x10] sm:$0xff]  ;;  %v6706_v52 = vld [vmem:[#allocation10 + $0x60] sm:$0xff]  ;;  %v6845_v4 = vld [vmem:[#allocation10 + $0x4b8] sm:$0xff] }
 0x8e2   :  { %12029 = vmatpush3.bf16.msra.mxu0 %v12028_v37  ;;  %v12046_v37 = vpack.c.bf16 %v5807_v30, %v5802_v29  ;;  %v6017_v29 = vld [vmem:[#allocation8 + $0xb88] sm:$0xff]  ;;  %v12247_v53 = vpack.c.bf16 %v6706_v52, %v6696_v46  ;;  %v6814_v59 = vld [vmem:[#allocation10 + $0x3c0] sm:$0xff]  ;;  %v6767_v24 = vld [vmem:[#allocation10 + $0x248] sm:$0xff] }
 0x8e3   :  { %12061 = vmatpush3.bf16.msra.mxu1 %v12060_v35  ;;  %12031 = vmatprep.subr.bf16.mxu0 %v12030_v62  ;;  %v5722_v35 = vld [vmem:[#allocation8 + $0x250] sm:$0xff]  ;;  %v5727_v62 = vld [vmem:[#allocation8 + $0x278] sm:$0xff]  ;;  %v6804_v7 = vld [vmem:[#allocation10 + $0x370] sm:$0xff] }
 0x8e4   :  { %12063 = vmatprep.subr.bf16.mxu1 %v12062_v40  ;;  %v6695_v40 = vld [vmem:[#allocation10 + $0x8] sm:$0xff]  ;;  %v12048_v22 = vpack.c.bf16 %v5727_v62, %v5722_v35  ;;  %v6805_v35 = vld [vmem:[#allocation10 + $0x378] sm:$0xff]  ;;  %v6716_v54 = vld [vmem:[#allocation10 + $0xb0] sm:$0xff] }
 0x8e5   :  { %v6697_v62 = vld [vmem:[#allocation10 + $0x18] sm:$0xff]  ;;  %v6844_v9 = vld [vmem:[#allocation10 + $0x4b0] sm:$0xff] }
 0x8e6   :  { %12033 = vmatpush3.bf16.msra.mxu0 %v12032_v38  ;;  %v12097_v38 = vpack.c.bf16 %v6705_v51, %v6695_v40  ;;  %v6717_v51 = vld [vmem:[#allocation10 + $0xb8] sm:$0xff] }
 0x8e7   :  { %12065 = vmatpush3.bf16.msra.mxu1 %v12064_v41  ;;  %12035 = vmatprep.subr.bf16.mxu0 %v12034_v48  ;;  %v6694_v41 = vld [vmem:[#allocation10] sm:$0xff]  ;;  %v6704_v48 = vld [vmem:[#allocation10 + $0x50] sm:$0xff]  ;;  %v6797_v46 = vld [vmem:[#allocation10 + $0x338] sm:$0xff] }
 0x8e8   :  { %12067 = vmatprep.subr.bf16.mxu1 %v12066_v20  ;;  %v5982_v20 = vld [vmem:[#allocation8 + $0xa70] sm:$0xff]  ;;  %v12099_v31 = vpack.c.bf16 %v6704_v48, %v6694_v41 }
 0x8e9   :  { %v6825_v41 = vld [vmem:[#allocation10 + $0x418] sm:$0xff] }
 0x8ea   :  { %12037 = vmatpush3.bf16.msra.mxu0 %v12036_v43  ;;  %v12086_v43 = vpack.c.bf16 %v5987_v55, %v5982_v20  ;;  %v6022_v48 = vld [vmem:[#allocation8 + $0xbb0] sm:$0xff]  ;;  %v6726_v20 = vld [vmem:[#allocation10 + $0x100] sm:$0xff] }
 0x8eb   :  { %12069 = vmatpush3.bf16.msra.mxu1 %v12068_v34  ;;  %12039 = vmatprep.subr.bf16.mxu0 %v12038_v2  ;;  %v6735_v34 = vld [vmem:[#allocation10 + $0x148] sm:$0xff]  ;;  %v6745_v2 = vld [vmem:[#allocation10 + $0x198] sm:$0xff]  ;;  %v12251_v45 = vpack.c.bf16 %v6726_v20, %v6716_v54  ;;  %v6894_v20 = vld [vmem:[#allocation10 + $0x640] sm:$0xff] }
 0x8ec   :  { %12071 = vmatprep.subr.bf16.mxu1 %v12070_v5  ;;  %v6734_v5 = vld [vmem:[#allocation10 + $0x140] sm:$0xff] }
 0x8ee   :  { %12041 = vmatpush3.bf16.msra.mxu0 %v12040_v21  ;;  %v12107_v21 = vpack.c.bf16 %v6744_v8, %v6734_v5 }
 0x8ef   :  { %12073 = vmatpush3.bf16.msra.mxu1 %v12072_v63  ;;  %12043 = vmatprep.subr.bf16.mxu0 %v12042_v10  ;;  %v6754_v10 = vld [vmem:[#allocation10 + $0x1e0] sm:$0xff] }
 0x8f0   :  { %12075 = vmatprep.subr.bf16.mxu1 %v12074_v47  ;;  %v6785_v47 = vld [vmem:[#allocation10 + $0x2d8] sm:$0xff]  ;;  %v12111_v30 = vpack.c.bf16 %v6764_v23, %v6754_v10  ;;  %v6766_v23 = vld [vmem:[#allocation10 + $0x240] sm:$0xff] }
 0x8f1   :  { %v12113_v13 = vpack.c.bf16 %v6785_v47, %v6775_v25  ;;  %v6777_v47 = vld [vmem:[#allocation10 + $0x298] sm:$0xff] }
 0x8f2   :  { %12045 = vmatpush3.bf16.msra.mxu0 %v12044_v26  ;;  %v6784_v26 = vld [vmem:[#allocation10 + $0x2d0] sm:$0xff] }
 0x8f3   :  { %12077 = vmatpush3.bf16.msra.mxu1 %v12076_v39  ;;  %12047 = vmatprep.subr.bf16.mxu0 %v12046_v37  ;;  %v12095_v39 = vpack.c.bf16 %v6017_v29, %v6012_v27  ;;  %v6795_v37 = vld [vmem:[#allocation10 + $0x328] sm:$0xff]  ;;  %v12115_v40 = vpack.c.bf16 %v6784_v26, %v6774_v28  ;;  %v6854_v29 = vld [vmem:[#allocation10 + $0x500] sm:$0xff]  ;;  %v6885_v26 = vld [vmem:[#allocation10 + $0x5f8] sm:$0xff] }
 0x8f4   :  { %12079 = vmatprep.subr.bf16.mxu1 %v12078_v42  ;;  %v6707_v42 = vld [vmem:[#allocation10 + $0x68] sm:$0xff] }
 0x8f5   :  { %v6875_v28 = vld [vmem:[#allocation10 + $0x5a8] sm:$0xff] }
 0x8f6   :  { %12049 = vmatpush3.bf16.msra.mxu0 %v12048_v22  ;;  %v12117_v22 = vpack.c.bf16 %v6805_v35, %v6795_v37  ;;  %v6776_v37 = vld [vmem:[#allocation10 + $0x290] sm:$0xff]  ;;  %v6786_v35 = vld [vmem:[#allocation10 + $0x2e0] sm:$0xff]  ;;  %v12133_v52 = vpack.c.bf16 %v6885_v26, %v6875_v28 }
 0x8f7   :  { %12081 = vmatpush3.bf16.msra.mxu1 %v12080_v33  ;;  %12082 = vmatprep.subr.bf16.mxu0 %v13289_v61  ;;  %v6794_v33 = vld [vmem:[#allocation10 + $0x320] sm:$0xff] }
 0x8f8   :  { %12098 = vmatprep.subr.bf16.mxu1 %v12097_v38  ;;  %v6815_v38 = vld [vmem:[#allocation10 + $0x3c8] sm:$0xff]  ;;  %v12119_v55 = vpack.c.bf16 %v6804_v7, %v6794_v33  ;;  %v6905_v7 = vld [vmem:[#allocation10 + $0x698] sm:$0xff] }
 0x8f9   :  { %6544 = vmatmul.mubr.f32.vlgmr.msra.gmra.mrb[38].mxu0 %v17237_v44  ;;  %v12105_v44 = vpack.c.bf16 %v6745_v2, %v6735_v34  ;;  %v12121_v56 = vpack.c.bf16 %v6825_v41, %v6815_v38  ;;  %v6747_v34 = vld [vmem:[#allocation10 + $0x1a8] sm:$0xff]  ;;  %v6796_v38 = vld [vmem:[#allocation10 + $0x330] sm:$0xff]  ;;  %v6806_v41 = vld [vmem:[#allocation10 + $0x380] sm:$0xff] }
 0x8fa   :  { %6614 = vmatmul.mubr.f32.vlgmr.msra.gmra.mrb[32].mxu1 %v17255_v57  ;;  %12084 = vmatpush3.bf16.msra.mxu0 %v12083_v49  ;;  %v6755_v57 = vld [vmem:[#allocation10 + $0x1e8] sm:$0xff]  ;;  %v12245_v49 = vpack.c.bf16 %v6707_v42, %v6697_v62 }
 0x8fb   :  { %12085 = vmatprep.subr.bf16.mxu0 %v13289_v61  ;;  %9912 = vmatprep.mubr.msk.f32.mxu0 %vm13290_vm6, %v13287_v0  ;;  %v12109_v63 = vpack.c.bf16 %v6765_v17, %v6755_v57  ;;  %v6835_v2 = vld [vmem:[#allocation10 + $0x468] sm:$0xff]  ;;  %v6834_v17 = vld [vmem:[#allocation10 + $0x460] sm:$0xff] }
 0x8fc   :  { %12100 = vmatpush1.bf16.msra.mxu1 %v12099_v31  ;;  %v12249_v31 = vpack.c.bf16 %v6727_v58, %v6717_v51  ;;  %v12125_v57 = vpack.c.bf16 %v6845_v4, %v6835_v2  ;;  %v6884_v51 = vld [vmem:[#allocation10 + $0x5f0] sm:$0xff]  ;;  %v6895_v33 = vld [vmem:[#allocation10 + $0x648] sm:$0xff]  ;;  %v12263_v58 = vpack.c.bf16 %v6786_v35, %v6776_v37  ;;  %v6954_v35 = vld [vmem:[#allocation10 + $0x820] sm:$0xff] }
 0x8fd   :  { %12102 = vmatprep.subr.bf16.mxu1 %v12101_v19  ;;  %v6737_v19 = vld [vmem:[#allocation10 + $0x158] sm:$0xff]  ;;  %v12137_v54 = vpack.c.bf16 %v6905_v7, %v6895_v33 }
 0x8fe   :  { %12087 = vmatpush3.bf16.msra.mxu0 %v12086_v43  ;;  %v6824_v43 = vld [vmem:[#allocation10 + $0x410] sm:$0xff]  ;;  %v12253_v8 = vpack.c.bf16 %v6747_v34, %v6737_v19  ;;  %v6915_v19 = vld [vmem:[#allocation10 + $0x6e8] sm:$0xff]  ;;  %v6826_v34 = vld [vmem:[#allocation10 + $0x420] sm:$0xff] }
 0x8ff   :  { %12088 = vmatprep.subr.bf16.mxu0 %v13289_v61  ;;  %v12123_v5 = vpack.c.bf16 %v6824_v43, %v6814_v59  ;;  %v12267_v59 = vpack.c.bf16 %v6806_v41, %v6796_v38  ;;  %v6816_v43 = vld [vmem:[#allocation10 + $0x3d0] sm:$0xff]  ;;  %v6974_v41 = vld [vmem:[#allocation10 + $0x8c0] sm:$0xff] }
 0x900   :  { %12104 = vmatpush1.bf16.msra.mxu1 %v12103_v36  ;;  %v6736_v36 = vld [vmem:[#allocation10 + $0x150] sm:$0xff] }
 0x901   :  { %12106 = vmatprep.subr.bf16.mxu1 %v12105_v44  ;;  %v6746_v44 = vld [vmem:[#allocation10 + $0x1a0] sm:$0xff] }
 0x902   :  { %12090 = vmatpush3.bf16.msra.mxu0 %v12089_v16  ;;  %v6757_v16 = vld [vmem:[#allocation10 + $0x1f8] sm:$0xff]  ;;  %v12255_v10 = vpack.c.bf16 %v6746_v44, %v6736_v36  ;;  %v6914_v44 = vld [vmem:[#allocation10 + $0x6e0] sm:$0xff] }
 0x903   :  { %12091 = vmatprep.subr.bf16.mxu0 %v13289_v61  ;;  %v12257_v25 = vpack.c.bf16 %v6767_v24, %v6757_v16  ;;  %v6935_v16 = vld [vmem:[#allocation10 + $0x788] sm:$0xff]  ;;  %v6846_v24 = vld [vmem:[#allocation10 + $0x4c0] sm:$0xff] }
 0x904   :  { %12108 = vmatpush1.bf16.msra.mxu1 %v12107_v21  ;;  %v6855_v21 = vld [vmem:[#allocation10 + $0x508] sm:$0xff] }
 0x905   :  { %12110 = vmatprep.subr.bf16.mxu1 %v12109_v63  ;;  %v6865_v63 = vld [vmem:[#allocation10 + $0x558] sm:$0xff] }
 0x906   :  { %12093 = vmatpush3.bf16.msra.mxu0 %v12092_v6  ;;  %v12127_v6 = vpack.c.bf16 %v6844_v9, %v6834_v17  ;;  %v12129_v27 = vpack.c.bf16 %v6865_v63, %v6855_v21  ;;  %v12271_v17 = vpack.c.bf16 %v6826_v34, %v6816_v43  ;;  %v6836_v9 = vld [vmem:[#allocation10 + $0x470] sm:$0xff]  ;;  %v6994_v34 = vld [vmem:[#allocation10 + $0x960] sm:$0xff] }
 0x907   :  { %12094 = vmatprep.subr.bf16.mxu0 %v13289_v61 }
 0x908   :  { %12112 = vmatpush1.bf16.msra.mxu1 %v12111_v30  ;;  %v6864_v30 = vld [vmem:[#allocation10 + $0x550] sm:$0xff] }
 0x909   :  { %12114 = vmatprep.subr.bf16.mxu1 %v12113_v13  ;;  %v6787_v13 = vld [vmem:[#allocation10 + $0x2e8] sm:$0xff]  ;;  %v12131_v62 = vpack.c.bf16 %v6864_v30, %v6854_v29  ;;  %v12275_v29 = vpack.c.bf16 %v6846_v24, %v6836_v9  ;;  %v6856_v30 = vld [vmem:[#allocation10 + $0x510] sm:$0xff]  ;;  %v6937_v9 = vld [vmem:[#allocation10 + $0x798] sm:$0xff] }
 0x90a   :  { %12096 = vmatpush3.bf16.msra.mxu0 %v12095_v39  ;;  %v12261_v42 = vpack.c.bf16 %v6787_v13, %v6777_v47  ;;  %v6955_v47 = vld [vmem:[#allocation10 + $0x828] sm:$0xff]  ;;  %v6866_v13 = vld [vmem:[#allocation10 + $0x560] sm:$0xff] }
 0x90b   :  { %9910 = vmatprep.subr.mxu0 %v13287_v0  ;;  %v6947_v24 = vld [vmem:[#allocation10 + $0x7e8] sm:$0xff] }
 0x90c   :  { %12116 = vmatpush1.bf16.msra.mxu1 %v12115_v40  ;;  %v6874_v40 = vld [vmem:[#allocation10 + $0x5a0] sm:$0xff] }
 0x90d   :  { %12118 = vmatprep.subr.bf16.mxu1 %v12117_v22  ;;  %v6807_v22 = vld [vmem:[#allocation10 + $0x388] sm:$0xff] }
 0x90e   :  { %9911 = vmatpush3.msra.mxu0 %v6022_v48  ;;  %v12135_v48 = vpack.c.bf16 %v6884_v51, %v6874_v40  ;;  %v12279_v40 = vpack.c.bf16 %v6866_v13, %v6856_v30  ;;  %v6876_v51 = vld [vmem:[#allocation10 + $0x5b0] sm:$0xff]  ;;  %v6977_v30 = vld [vmem:[#allocation10 + $0x8d8] sm:$0xff]  ;;  %v6987_v13 = vld [vmem:[#allocation10 + $0x928] sm:$0xff] }
 0x90f   :  { %9913 = vmatmul.mubr.msk.f32.vlgmr.msra.gmra.mrb[40].mxu0 %vm2873_vm5, %v17262_v1  ;;  %12246 = vmatprep.subr.bf16.mxu0 %v12245_v49  ;;  %v6756_v1 = vld [vmem:[#allocation10 + $0x1f0] sm:$0xff]  ;;  %v12265_v49 = vpack.c.bf16 %v6807_v22, %v6797_v46  ;;  %v6975_v46 = vld [vmem:[#allocation10 + $0x8c8] sm:$0xff]  ;;  %v6886_v22 = vld [vmem:[#allocation10 + $0x600] sm:$0xff] }
 0x910   :  { %12248 = vmatpush1.bf16.msra.mxu0 %v12247_v53  ;;  %12120 = vmatpush1.bf16.msra.mxu1 %v12119_v55  ;;  %v12259_v39 = vpack.c.bf16 %v6766_v23, %v6756_v1  ;;  %v6817_v53 = vld [vmem:[#allocation10 + $0x3d8] sm:$0xff]  ;;  %v6904_v55 = vld [vmem:[#allocation10 + $0x690] sm:$0xff]  ;;  %v6934_v23 = vld [vmem:[#allocation10 + $0x780] sm:$0xff] }
 0x911   :  { %12250 = vmatprep.subr.bf16.mxu0 %v12249_v31  ;;  %12122 = vmatprep.subr.bf16.mxu1 %v12121_v56  ;;  %v6827_v31 = vld [vmem:[#allocation10 + $0x428] sm:$0xff]  ;;  %v6925_v56 = vld [vmem:[#allocation10 + $0x738] sm:$0xff]  ;;  %v12139_v2 = vpack.c.bf16 %v6904_v55, %v6894_v20  ;;  %v12283_v20 = vpack.c.bf16 %v6886_v22, %v6876_v51  ;;  %v6896_v55 = vld [vmem:[#allocation10 + $0x650] sm:$0xff] }
 0x912   :  { %v12269_v4 = vpack.c.bf16 %v6827_v31, %v6817_v53  ;;  %v12141_v36 = vpack.c.bf16 %v6925_v56, %v6915_v19  ;;  %v6995_v53 = vld [vmem:[#allocation10 + $0x968] sm:$0xff]  ;;  %v6906_v31 = vld [vmem:[#allocation10 + $0x6a0] sm:$0xff]  ;;  %v7017_v51 = vld [vmem:[#allocation10 + $0xa18] sm:$0xff] }
 0x913   :  { %v7027_v22 = vld [vmem:[#allocation10 + $0xa68] sm:$0xff] }
 0x914   :  { %12252 = vmatpush1.bf16.msra.mxu0 %v12251_v45  ;;  %12124 = vmatpush1.bf16.msra.mxu1 %v12123_v5  ;;  %v6837_v45 = vld [vmem:[#allocation10 + $0x478] sm:$0xff]  ;;  %v6924_v5 = vld [vmem:[#allocation10 + $0x730] sm:$0xff] }
 0x915   :  { %12254 = vmatprep.subr.bf16.mxu0 %v12253_v8  ;;  %12126 = vmatprep.subr.bf16.mxu1 %v12125_v57  ;;  %v6847_v8 = vld [vmem:[#allocation10 + $0x4c8] sm:$0xff]  ;;  %v6945_v57 = vld [vmem:[#allocation10 + $0x7d8] sm:$0xff]  ;;  %v12143_v21 = vpack.c.bf16 %v6924_v5, %v6914_v44  ;;  %v12287_v44 = vpack.c.bf16 %v6906_v31, %v6896_v55 }
 0x916   :  { %v12273_v63 = vpack.c.bf16 %v6847_v8, %v6837_v45  ;;  %v12145_v1 = vpack.c.bf16 %v6945_v57, %v6935_v16  ;;  %v7015_v45 = vld [vmem:[#allocation10 + $0xa08] sm:$0xff]  ;;  %v6916_v16 = vld [vmem:[#allocation10 + $0x6f0] sm:$0xff]  ;;  %v6926_v57 = vld [vmem:[#allocation10 + $0x740] sm:$0xff] }
 0x918   :  { %12256 = vmatpush1.bf16.msra.mxu0 %v12255_v10  ;;  %12128 = vmatpush1.bf16.msra.mxu1 %v12127_v6  ;;  %v6857_v10 = vld [vmem:[#allocation10 + $0x518] sm:$0xff]  ;;  %v6944_v6 = vld [vmem:[#allocation10 + $0x7d0] sm:$0xff] }
 0x919   :  { %12258 = vmatprep.subr.bf16.mxu0 %v12257_v25  ;;  %12130 = vmatprep.subr.bf16.mxu1 %v12129_v27  ;;  %v6867_v25 = vld [vmem:[#allocation10 + $0x568] sm:$0xff]  ;;  %v6965_v27 = vld [vmem:[#allocation10 + $0x878] sm:$0xff]  ;;  %v12147_v28 = vpack.c.bf16 %v6944_v6, %v6934_v23 }
 0x91a   :  { %v12277_v26 = vpack.c.bf16 %v6867_v25, %v6857_v10  ;;  %v12149_v37 = vpack.c.bf16 %v6965_v27, %v6955_v47  ;;  %v6936_v10 = vld [vmem:[#allocation10 + $0x790] sm:$0xff]  ;;  %v6957_v23 = vld [vmem:[#allocation10 + $0x838] sm:$0xff]  ;;  %v6967_v6 = vld [vmem:[#allocation10 + $0x888] sm:$0xff] }
 0x91b   :  { %v12297_v47 = vpack.c.bf16 %v6967_v6, %v6957_v23  ;;  %v6956_v27 = vld [vmem:[#allocation10 + $0x830] sm:$0xff]  ;;  %v7057_v23 = vld [vmem:[#allocation10 + $0xb58] sm:$0xff]  ;;  %v7067_v6 = vld [vmem:[#allocation10 + $0xba8] sm:$0xff] }
 0x91c   :  { %12260 = vmatpush1.bf16.msra.mxu0 %v12259_v39  ;;  %12132 = vmatpush1.bf16.msra.mxu1 %v12131_v62  ;;  %v6877_v39 = vld [vmem:[#allocation10 + $0x5b8] sm:$0xff]  ;;  %v6964_v62 = vld [vmem:[#allocation10 + $0x870] sm:$0xff] }
 0x91d   :  { %12262 = vmatprep.subr.bf16.mxu0 %v12261_v42  ;;  %12134 = vmatprep.subr.bf16.mxu1 %v12133_v52  ;;  %v6887_v42 = vld [vmem:[#allocation10 + $0x608] sm:$0xff]  ;;  %v6985_v52 = vld [vmem:[#allocation10 + $0x918] sm:$0xff]  ;;  %v12151_v33 = vpack.c.bf16 %v6964_v62, %v6954_v35 }
 0x91e   :  { %v12281_v7 = vpack.c.bf16 %v6887_v42, %v6877_v39  ;;  %v12153_v38 = vpack.c.bf16 %v6985_v52, %v6975_v46  ;;  %v6976_v39 = vld [vmem:[#allocation10 + $0x8d0] sm:$0xff]  ;;  %v6997_v35 = vld [vmem:[#allocation10 + $0x978] sm:$0xff]  ;;  %v7007_v62 = vld [vmem:[#allocation10 + $0x9c8] sm:$0xff] }
 0x91f   :  { %v12305_v46 = vpack.c.bf16 %v7007_v62, %v6997_v35  ;;  %v6996_v52 = vld [vmem:[#allocation10 + $0x970] sm:$0xff]  ;;  %v7085_v35 = vld [vmem:[#allocation10 + $0xc38] sm:$0xff] }
 0x920   :  { %12264 = vmatpush1.bf16.msra.mxu0 %v12263_v58  ;;  %12136 = vmatpush1.bf16.msra.mxu1 %v12135_v48  ;;  %v6897_v58 = vld [vmem:[#allocation10 + $0x658] sm:$0xff]  ;;  %v6984_v48 = vld [vmem:[#allocation10 + $0x910] sm:$0xff] }
 0x921   :  { %12266 = vmatprep.subr.bf16.mxu0 %v12265_v49  ;;  %12138 = vmatprep.subr.bf16.mxu1 %v12137_v54  ;;  %v6907_v49 = vld [vmem:[#allocation10 + $0x6a8] sm:$0xff]  ;;  %v7005_v54 = vld [vmem:[#allocation10 + $0x9b8] sm:$0xff]  ;;  %v12155_v19 = vpack.c.bf16 %v6984_v48, %v6974_v41 }
 0x922   :  { %v12285_v56 = vpack.c.bf16 %v6907_v49, %v6897_v58  ;;  %v12157_v43 = vpack.c.bf16 %v7005_v54, %v6995_v53  ;;  %v17287_v58 = vld [vmem:[%s17894_s16] sm:$0x1f]  ;;  %v7014_v54 = vld [vmem:[#allocation10 + $0xa00] sm:$0xff]  ;;  %v7077_v62 = vld [vmem:[#allocation10 + $0xbf8] sm:$0xff] }
 0x923   :  { %v6032_v41 = vrot.slane %v17287_v58, %v14041_v12  ;;  %v6040_v48 = vrot.slane %v17287_v58, %v14052_v15 }
 0x924   :  { %12268 = vmatpush1.bf16.msra.mxu0 %v12267_v59  ;;  %12140 = vmatpush1.bf16.msra.mxu1 %v12139_v2  ;;  %v6917_v59 = vld [vmem:[#allocation10 + $0x6f8] sm:$0xff]  ;;  %v7004_v2 = vld [vmem:[#allocation10 + $0x9b0] sm:$0xff] }
 0x925   :  { %12270 = vmatprep.subr.bf16.mxu0 %v12269_v4  ;;  %12142 = vmatprep.subr.bf16.mxu1 %v12141_v36  ;;  %v6927_v4 = vld [vmem:[#allocation10 + $0x748] sm:$0xff]  ;;  %v7025_v36 = vld [vmem:[#allocation10 + $0xa58] sm:$0xff]  ;;  %v12159_v5 = vpack.c.bf16 %v7004_v2, %v6994_v34 }
 0x926   :  { %v12289_v8 = vpack.c.bf16 %v6927_v4, %v6917_v59  ;;  %v7026_v59 = vld [vmem:[#allocation10 + $0xa60] sm:$0xff]  ;;  %v7035_v34 = vld [vmem:[#allocation10 + $0xaa8] sm:$0xff]  ;;  %v7045_v4 = vld [vmem:[#allocation10 + $0xaf8] sm:$0xff] }
 0x928   :  { %12272 = vmatpush1.bf16.msra.mxu0 %v12271_v17  ;;  %12144 = vmatpush1.bf16.msra.mxu1 %v12143_v21  ;;  %v12161_v17 = vpack.c.bf16 %v7025_v36, %v7015_v45  ;;  %v12291_v21 = vpack.c.bf16 %v6926_v57, %v6916_v16  ;;  %v7037_v45 = vld [vmem:[#allocation10 + $0xab8] sm:$0xff]  ;;  %v7047_v36 = vld [vmem:[#allocation10 + $0xb08] sm:$0xff]  ;;  %v7034_v16 = vld [vmem:[#allocation10 + $0xaa0] sm:$0xff] }
 0x929   :  { %12274 = vmatprep.subr.bf16.mxu0 %v12273_v63  ;;  %12146 = vmatprep.subr.bf16.mxu1 %v12145_v1  ;;  %v12293_v63 = vpack.c.bf16 %v6947_v24, %v6937_v9  ;;  %v6946_v1 = vld [vmem:[#allocation10 + $0x7e0] sm:$0xff]  ;;  %v7044_v57 = vld [vmem:[#allocation10 + $0xaf0] sm:$0xff] }
 0x92a   :  { %v12295_v25 = vpack.c.bf16 %v6946_v1, %v6936_v10  ;;  %v7036_v9 = vld [vmem:[#allocation10 + $0xab0] sm:$0xff]  ;;  %v7046_v24 = vld [vmem:[#allocation10 + $0xb00] sm:$0xff]  ;;  %v12313_v10 = vpack.c.bf16 %v7047_v36, %v7037_v45  ;;  %v7065_v1 = vld [vmem:[#allocation10 + $0xb98] sm:$0xff] }
 0x92b   :  { %v7117_v45 = vld [vmem:[#allocation10 + $0xd38] sm:$0xff]  ;;  %v7127_v36 = vld [vmem:[#allocation10 + $0xd88] sm:$0xff] }
 0x92c   :  { %12276 = vmatpush1.bf16.msra.mxu0 %v12275_v29  ;;  %12148 = vmatpush1.bf16.msra.mxu1 %v12147_v28  ;;  %v6966_v29 = vld [vmem:[#allocation10 + $0x880] sm:$0xff] }
 0x92d   :  { %12278 = vmatprep.subr.bf16.mxu0 %v12277_v26  ;;  %12150 = vmatprep.subr.bf16.mxu1 %v12149_v37  ;;  %v12299_v28 = vpack.c.bf16 %v6966_v29, %v6956_v27  ;;  %v12301_v26 = vpack.c.bf16 %v6987_v13, %v6977_v30  ;;  %v6986_v37 = vld [vmem:[#allocation10 + $0x920] sm:$0xff]  ;;  %v12315_v27 = vpack.c.bf16 %v7046_v24, %v7036_v9  ;;  %v7064_v30 = vld [vmem:[#allocation10 + $0xb90] sm:$0xff] }
 0x92e   :  { %v12303_v42 = vpack.c.bf16 %v6986_v37, %v6976_v39  ;;  %v7054_v29 = vld [vmem:[#allocation10 + $0xb40] sm:$0xff]  ;;  %v7075_v37 = vld [vmem:[#allocation10 + $0xbe8] sm:$0xff]  ;;  %v12329_v24 = vpack.c.bf16 %v7127_v36, %v7117_v45 }
 0x92f   :  { %v7066_v39 = vld [vmem:[#allocation10 + $0xba0] sm:$0xff]  ;;  %v7195_v45 = vld [vmem:[#allocation10 + $0xfa8] sm:$0xff] }
 0x930   :  { %12280 = vmatpush1.bf16.msra.mxu0 %v12279_v40  ;;  %12152 = vmatpush1.bf16.msra.mxu1 %v12151_v33  ;;  %v7006_v40 = vld [vmem:[#allocation10 + $0x9c0] sm:$0xff] }
 0x931   :  { %12282 = vmatprep.subr.bf16.mxu0 %v12281_v7  ;;  %12154 = vmatprep.subr.bf16.mxu1 %v12153_v38  ;;  %v12307_v33 = vpack.c.bf16 %v7006_v40, %v6996_v52  ;;  %v12309_v7 = vpack.c.bf16 %v7027_v22, %v7017_v51  ;;  %v6028_v38 = vrot.slane %v17287_v58, %v14049_v14  ;;  %v7074_v40 = vld [vmem:[#allocation10 + $0xbe0] sm:$0xff]  ;;  %v7084_v51 = vld [vmem:[#allocation10 + $0xc30] sm:$0xff] }
 0x932   :  { %v12173_v22 = vpack.c.bf16 %v7085_v35, %v7075_v37  ;;  %v7155_v37 = vld [vmem:[#allocation10 + $0xe68] sm:$0xff]  ;;  %v7165_v35 = vld [vmem:[#allocation10 + $0xeb8] sm:$0xff] }
 0x934   :  { %12284 = vmatpush1.bf16.msra.mxu0 %v12283_v20  ;;  %12156 = vmatpush1.bf16.msra.mxu1 %v12155_v19  ;;  %v7024_v19 = vld [vmem:[#allocation10 + $0xa50] sm:$0xff] }
 0x935   :  { %12286 = vmatprep.subr.bf16.mxu0 %v12285_v56  ;;  %12158 = vmatprep.subr.bf16.mxu1 %v12157_v43  ;;  %v7016_v56 = vld [vmem:[#allocation10 + $0xa10] sm:$0xff] }
 0x938   :  { %12288 = vmatpush1.bf16.msra.mxu0 %v12287_v44  ;;  %12160 = vmatpush1.bf16.msra.mxu1 %v12159_v5  ;;  %v12163_v5 = vpack.c.bf16 %v7024_v19, %v7014_v54  ;;  %v7107_v54 = vld [vmem:[#allocation10 + $0xce8] sm:$0xff]  ;;  %v7104_v19 = vld [vmem:[#allocation10 + $0xcd0] sm:$0xff] }
 0x939   :  { %12290 = vmatprep.subr.bf16.mxu0 %v12289_v8  ;;  %12162 = vmatprep.subr.bf16.mxu1 %v12161_v17  ;;  %v12311_v8 = vpack.c.bf16 %v7026_v59, %v7016_v56 }
 0x93c   :  { %12292 = vmatpush1.bf16.msra.mxu0 %v12291_v21  ;;  %v7055_v21 = vld [vmem:[#allocation10 + $0xb48] sm:$0xff] }
 0x93d   :  { %12294 = vmatprep.subr.bf16.mxu0 %v12293_v63  ;;  %v12165_v63 = vpack.c.bf16 %v7045_v4, %v7035_v34  ;;  %v12169_v13 = vpack.c.bf16 %v7065_v1, %v7055_v21  ;;  %v7106_v34 = vld [vmem:[#allocation10 + $0xce0] sm:$0xff]  ;;  %v7125_v4 = vld [vmem:[#allocation10 + $0xd78] sm:$0xff]  ;;  %v7116_v21 = vld [vmem:[#allocation10 + $0xd30] sm:$0xff] }
 0x93e   :  { %v7145_v1 = vld [vmem:[#allocation10 + $0xe18] sm:$0xff] }
 0x940   :  { %12296 = vmatpush1.bf16.msra.mxu0 %v12295_v25 }
 0x941   :  { %12298 = vmatprep.subr.bf16.mxu0 %v12297_v47  ;;  %v12167_v47 = vpack.c.bf16 %v7044_v57, %v7034_v16  ;;  %v7114_v16 = vld [vmem:[#allocation10 + $0xd20] sm:$0xff]  ;;  %v7124_v57 = vld [vmem:[#allocation10 + $0xd70] sm:$0xff] }
 0x944   :  { %12300 = vmatpush1.bf16.msra.mxu0 %v12299_v28  ;;  %v12317_v28 = vpack.c.bf16 %v7067_v6, %v7057_v23  ;;  %v7137_v23 = vld [vmem:[#allocation10 + $0xdd8] sm:$0xff]  ;;  %v7147_v6 = vld [vmem:[#allocation10 + $0xe28] sm:$0xff] }
 0x945   :  { %12302 = vmatprep.subr.bf16.mxu0 %v12301_v26  ;;  %v7056_v26 = vld [vmem:[#allocation10 + $0xb50] sm:$0xff] }
 0x946   :  { %v12319_v52 = vpack.c.bf16 %v7066_v39, %v7056_v26  ;;  %v7136_v26 = vld [vmem:[#allocation10 + $0xdd0] sm:$0xff]  ;;  %v7146_v39 = vld [vmem:[#allocation10 + $0xe20] sm:$0xff] }
 0x948   :  { %12304 = vmatpush1.bf16.msra.mxu0 %v12303_v42  ;;  %v7087_v42 = vld [vmem:[#allocation10 + $0xc48] sm:$0xff] }
 0x949   :  { %12306 = vmatprep.subr.bf16.mxu0 %v12305_v46  ;;  %v12171_v46 = vpack.c.bf16 %v7064_v30, %v7054_v29  ;;  %v7134_v29 = vld [vmem:[#allocation10 + $0xdc0] sm:$0xff]  ;;  %v7144_v30 = vld [vmem:[#allocation10 + $0xe10] sm:$0xff] }
 0x94c   :  { %12308 = vmatpush1.bf16.msra.mxu0 %v12307_v33  ;;  %v12321_v33 = vpack.c.bf16 %v7087_v42, %v7077_v62  ;;  %v7157_v62 = vld [vmem:[#allocation10 + $0xe78] sm:$0xff]  ;;  %v7167_v42 = vld [vmem:[#allocation10 + $0xec8] sm:$0xff] }
 0x94d   :  { %12310 = vmatprep.subr.bf16.mxu0 %v12309_v7  ;;  %v7076_v7 = vld [vmem:[#allocation10 + $0xbf0] sm:$0xff] }
 0x9ab   :  { %v6261_v49 = vpop.f32.mrb[36].mxu0  ;;  %v17295_v53 = vpop.f32.mrb[30].mxu1 }
 0x9ac   :  { %v13020_v20 = vadd.f32 %v6261_v49, %v6028_v38  ;;  %v6263_v55 = vpop.f32.mrb[37].mxu0  ;;  %v6476_v31 = vpop.f32.mrb[31].mxu1  ;;  %v7086_v38 = vld [vmem:[#allocation10 + $0xc40] sm:$0xff]  ;;  %v7097_v49 = vld [vmem:[#allocation10 + $0xc98] sm:$0xff] }
 0x9ad   :  { %v13021_v43 = vadd.f32 %v6263_v55, %v6032_v41  ;;  %v13023_v2 = vadd.f32 %v6476_v31, %v6040_v48  ;;  %v7095_v41 = vld [vmem:[#allocation10 + $0xc88] sm:$0xff]  ;;  %v7105_v48 = vld [vmem:[#allocation10 + $0xcd8] sm:$0xff]  ;;  %v12323_v55 = vpack.c.bf16 %v7086_v38, %v7076_v7  ;;  %v7094_v31 = vld [vmem:[#allocation10 + $0xc80] sm:$0xff]  ;;  %v12325_v59 = vpack.c.bf16 %v7107_v54, %v7097_v49 }
 0x9ae   :  { %v17299_v17 = vmax.f32 %v13020_v20, 0.0  ;;  %v12175_v20 = vpack.c.bf16 %v7084_v51, %v7074_v40  ;;  %v12177_v56 = vpack.c.bf16 %v7105_v48, %v7095_v41  ;;  %v7154_v40 = vld [vmem:[#allocation10 + $0xe60] sm:$0xff]  ;;  %v7164_v51 = vld [vmem:[#allocation10 + $0xeb0] sm:$0xff]  ;;  %v7175_v41 = vld [vmem:[#allocation10 + $0xf08] sm:$0xff] }
 0x9af   :  { %v17297_v44 = vmax.f32 %v13021_v43, 0.0  ;;  %v17303_v25 = vmax.f32 %v13023_v2, 0.0  ;;  %v7096_v43 = vld [vmem:[#allocation10 + $0xc90] sm:$0xff]  ;;  %v7115_v2 = vld [vmem:[#allocation10 + $0xd28] sm:$0xff]  ;;  %v7166_v38 = vld [vmem:[#allocation10 + $0xec0] sm:$0xff] }
 0x9b0   :  { %v12181_v9 = vpack.c.bf16 %v7125_v4, %v7115_v2  ;;  %v7156_v7 = vld [vmem:[#allocation10 + $0xe70] sm:$0xff]  ;;  %v7185_v48 = vld [vmem:[#allocation10 + $0xf58] sm:$0xff]  ;;  %v7187_v54 = vld [vmem:[#allocation10 + $0xf68] sm:$0xff] }
 0x9b1   :  { %7565 = vmatprep.mubr.f32.mxu1 %v17297_v44  ;;  %7778 = vmatprep.mubr.f32.mxu0 %v17297_v44  ;;  %v7177_v49 = vld [vmem:[#allocation10 + $0xf18] sm:$0xff]  ;;  %v7176_v2 = vld [vmem:[#allocation10 + $0xf10] sm:$0xff]  ;;  %v7186_v4 = vld [vmem:[#allocation10 + $0xf60] sm:$0xff] }
 0x9b2   :  { %7566 = vmatmul.mubr.f32.vlgmr.msra.gmra.mrb[34].mxu1 %v17299_v17  ;;  %7779 = vmatmul.mubr.f32.vlgmr.msra.gmra.mrb[42].mxu0 %v17299_v17 }
 0x9b3   :  { %12164 = vmatpush1.bf16.msra.mxu1 %v12163_v5  ;;  %12312 = vmatpush1.bf16.msra.mxu0 %v12311_v8  ;;  %v12179_v5 = vpack.c.bf16 %v7104_v19, %v7094_v31  ;;  %v12327_v8 = vpack.c.bf16 %v7106_v34, %v7096_v43  ;;  %v7174_v31 = vld [vmem:[#allocation10 + $0xf00] sm:$0xff]  ;;  %v7184_v19 = vld [vmem:[#allocation10 + $0xf50] sm:$0xff]  ;;  %v12193_v43 = vpack.c.bf16 %v7185_v48, %v7175_v41  ;;  %v7247_v41 = vld [vmem:[#allocation10 + $0x1148] sm:$0xff] }
 0x9b4   :  { %7636 = vmatprep.mubr.f32.mxu1 %v17303_v25  ;;  %7849 = vmatprep.mubr.f32.mxu0 %v17303_v25  ;;  %v12341_v34 = vpack.c.bf16 %v7187_v54, %v7177_v49  ;;  %v7234_v54 = vld [vmem:[#allocation10 + $0x10e0] sm:$0xff] }
 0x9b5   :  { %12166 = vmatprep.subr.bf16.mxu1 %v12165_v63  ;;  %12314 = vmatprep.subr.bf16.mxu0 %v12313_v10  ;;  %v7126_v63 = vld [vmem:[#allocation10 + $0xd80] sm:$0xff]  ;;  %v7135_v10 = vld [vmem:[#allocation10 + $0xdc8] sm:$0xff] }
 0x9b7   :  { %12168 = vmatpush1.bf16.msra.mxu1 %v12167_v47  ;;  %12316 = vmatpush1.bf16.msra.mxu0 %v12315_v27  ;;  %v12183_v47 = vpack.c.bf16 %v7124_v57, %v7114_v16  ;;  %v12331_v27 = vpack.c.bf16 %v7126_v63, %v7116_v21  ;;  %v7197_v16 = vld [vmem:[#allocation10 + $0xfb8] sm:$0xff]  ;;  %v7207_v57 = vld [vmem:[#allocation10 + $0x1008] sm:$0xff]  ;;  %v12195_v63 = vpack.c.bf16 %v7184_v19, %v7174_v31  ;;  %v7236_v19 = vld [vmem:[#allocation10 + $0x10f0] sm:$0xff] }
 0x9b8   :  { %12170 = vmatprep.subr.bf16.mxu1 %v12169_v13  ;;  %12318 = vmatprep.subr.bf16.mxu0 %v12317_v28  ;;  %v12185_v13 = vpack.c.bf16 %v7145_v1, %v7135_v10  ;;  %v12333_v28 = vpack.c.bf16 %v7147_v6, %v7137_v23  ;;  %v12343_v10 = vpack.c.bf16 %v7186_v4, %v7176_v2  ;;  %v7194_v1 = vld [vmem:[#allocation10 + $0xfa0] sm:$0xff]  ;;  %v7204_v23 = vld [vmem:[#allocation10 + $0xff0] sm:$0xff]  ;;  %v7267_v2 = vld [vmem:[#allocation10 + $0x11e8] sm:$0xff] }
 0x9bb   :  { %12172 = vmatpush1.bf16.msra.mxu1 %v12171_v46  ;;  %12320 = vmatpush1.bf16.msra.mxu0 %v12319_v52  ;;  %v12187_v46 = vpack.c.bf16 %v7144_v30, %v7134_v29  ;;  %v12335_v52 = vpack.c.bf16 %v7146_v39, %v7136_v26  ;;  %v7196_v29 = vld [vmem:[#allocation10 + $0xfb0] sm:$0xff]  ;;  %v7206_v30 = vld [vmem:[#allocation10 + $0x1000] sm:$0xff]  ;;  %v7217_v26 = vld [vmem:[#allocation10 + $0x1058] sm:$0xff] }
 0x9bc   :  { %12174 = vmatprep.subr.bf16.mxu1 %v12173_v22  ;;  %12322 = vmatprep.subr.bf16.mxu0 %v12321_v33  ;;  %v12189_v22 = vpack.c.bf16 %v7165_v35, %v7155_v37  ;;  %v12337_v33 = vpack.c.bf16 %v7167_v42, %v7157_v62  ;;  %v7227_v39 = vld [vmem:[#allocation10 + $0x10a8] sm:$0xff]  ;;  %v12199_v35 = vpack.c.bf16 %v7204_v23, %v7194_v1  ;;  %v7214_v42 = vld [vmem:[#allocation10 + $0x1040] sm:$0xff] }
 0x9bd   :  { %v12347_v62 = vpack.c.bf16 %v7206_v30, %v7196_v29  ;;  %v7276_v30 = vld [vmem:[#allocation10 + $0x1230] sm:$0xff] }
 0x9bf   :  { %12176 = vmatpush1.bf16.msra.mxu1 %v12175_v20  ;;  %12324 = vmatpush1.bf16.msra.mxu0 %v12323_v55  ;;  %v12191_v20 = vpack.c.bf16 %v7164_v51, %v7154_v40  ;;  %v12339_v55 = vpack.c.bf16 %v7166_v38, %v7156_v7  ;;  %v12349_v40 = vpack.c.bf16 %v7227_v39, %v7217_v26  ;;  %v7216_v51 = vld [vmem:[#allocation10 + $0x1050] sm:$0xff]  ;;  %v7245_v7 = vld [vmem:[#allocation10 + $0x1138] sm:$0xff] }
 0x9c0   :  { %12178 = vmatprep.subr.bf16.mxu1 %v12177_v56  ;;  %12326 = vmatprep.subr.bf16.mxu0 %v12325_v59  ;;  %v6044_v59 = vrot.slane %v17287_v58, %v14850_v60  ;;  %v7237_v38 = vld [vmem:[#allocation10 + $0x10f8] sm:$0xff] }
 0x9c1   :  { %v12353_v31 = vpack.c.bf16 %v7247_v41, %v7237_v38  ;;  %v7305_v26 = vld [vmem:[#allocation10 + $0x1318] sm:$0xff]  ;;  %v7296_v38 = vld [vmem:[#allocation10 + $0x12d0] sm:$0xff]  ;;  %v7306_v41 = vld [vmem:[#allocation10 + $0x1320] sm:$0xff] }
 0x9c2   :  { %v7297_v39 = vld [vmem:[#allocation10 + $0x12d8] sm:$0xff] }
 0x9c3   :  { %12180 = vmatpush1.bf16.msra.mxu1 %v12179_v5  ;;  %12328 = vmatpush1.bf16.msra.mxu0 %v12327_v8  ;;  %v7205_v8 = vld [vmem:[#allocation10 + $0xff8] sm:$0xff] }
 0x9c4   :  { %12182 = vmatprep.subr.bf16.mxu1 %v12181_v9  ;;  %12330 = vmatprep.subr.bf16.mxu0 %v12329_v24 }
 0x9c7   :  { %12184 = vmatpush1.bf16.msra.mxu1 %v12183_v47  ;;  %12332 = vmatpush1.bf16.msra.mxu0 %v12331_v27  ;;  %v12197_v47 = vpack.c.bf16 %v7205_v8, %v7195_v45  ;;  %v12345_v27 = vpack.c.bf16 %v7207_v57, %v7197_v16  ;;  %v7256_v57 = vld [vmem:[#allocation10 + $0x1190] sm:$0xff] }
 0x9c8   :  { %12186 = vmatprep.subr.bf16.mxu1 %v12185_v13  ;;  %12334 = vmatprep.subr.bf16.mxu0 %v12333_v28  ;;  %v7215_v13 = vld [vmem:[#allocation10 + $0x1048] sm:$0xff]  ;;  %v7225_v28 = vld [vmem:[#allocation10 + $0x1098] sm:$0xff] }
 0x9cb   :  { %12188 = vmatpush1.bf16.msra.mxu1 %v12187_v46  ;;  %12336 = vmatpush1.bf16.msra.mxu0 %v12335_v52  ;;  %v7224_v46 = vld [vmem:[#allocation10 + $0x1090] sm:$0xff]  ;;  %v12201_v52 = vpack.c.bf16 %v7225_v28, %v7215_v13  ;;  %v7286_v13 = vld [vmem:[#allocation10 + $0x1280] sm:$0xff]  ;;  %v7295_v28 = vld [vmem:[#allocation10 + $0x12c8] sm:$0xff] }
 0x9cc   :  { %v9617_v56 = vpop.f32.mrb[38].mxu0  ;;  %12190 = vmatprep.subr.bf16.mxu1 %v12189_v22  ;;  %12338 = vmatprep.subr.bf16.mxu0 %v12337_v33  ;;  %v7226_v22 = vld [vmem:[#allocation10 + $0x10a0] sm:$0xff]  ;;  %v7235_v33 = vld [vmem:[#allocation10 + $0x10e8] sm:$0xff]  ;;  %v12203_v48 = vpack.c.bf16 %v7224_v46, %v7214_v42 }
 0x9cd   :  { %v9652_v36 = vpop.f32.mrb[32].mxu1  ;;  %v9618_v5 = vpop.f32.mrb[39].mxu0  ;;  %v12351_v49 = vpack.c.bf16 %v7226_v22, %v7216_v51  ;;  %v7294_v51 = vld [vmem:[#allocation10 + $0x12c0] sm:$0xff]  ;;  %v7304_v22 = vld [vmem:[#allocation10 + $0x1310] sm:$0xff] }
 0x9ce   :  { %v9619_v9 = vadd.f32 %v9618_v5, %v9617_v56  ;;  %v9653_v24 = vpop.f32.mrb[33].mxu1  ;;  %v7246_v56 = vld [vmem:[#allocation10 + $0x1140] sm:$0xff]  ;;  %v7264_v5 = vld [vmem:[#allocation10 + $0x11d0] sm:$0xff] }
 0x9cf   :  { %v9654_v21 = vadd.f32 %v9653_v24, %v9652_v36  ;;  %12192 = vmatpush1.bf16.msra.mxu1 %v12191_v20  ;;  %12340 = vmatpush1.bf16.msra.mxu0 %v12339_v55  ;;  %v7244_v20 = vld [vmem:[#allocation10 + $0x1130] sm:$0xff]  ;;  %v12205_v55 = vpack.c.bf16 %v7245_v7, %v7235_v33  ;;  %v12355_v45 = vpack.c.bf16 %v7246_v56, %v7236_v19  ;;  %v7254_v36 = vld [vmem:[#allocation10 + $0x1180] sm:$0xff]  ;;  %v7275_v24 = vld [vmem:[#allocation10 + $0x1228] sm:$0xff] }
 0x9d0   :  { %v6546_v6 = vadd.f32 %v9619_v9, %v6044_v59  ;;  %12194 = vmatprep.subr.bf16.mxu1 %v12193_v43  ;;  %12342 = vmatprep.subr.bf16.mxu0 %v12341_v34  ;;  %v7255_v59 = vld [vmem:[#allocation10 + $0x1188] sm:$0xff]  ;;  %v7265_v43 = vld [vmem:[#allocation10 + $0x11d8] sm:$0xff]  ;;  %v12207_v4 = vpack.c.bf16 %v7244_v20, %v7234_v54  ;;  %v7266_v9 = vld [vmem:[#allocation10 + $0x11e0] sm:$0xff]  ;;  %v12211_v1 = vpack.c.bf16 %v7264_v5, %v7254_v36 }
 0x9d1   :  { %v7257_v34 = vld [vmem:[#allocation10 + $0x1198] sm:$0xff]  ;;  %v12209_v8 = vpack.c.bf16 %v7265_v43, %v7255_v59  ;;  %v12359_v23 = vpack.c.bf16 %v7266_v9, %v7256_v57  ;;  %v12217_v33 = vpack.c.bf16 %v7305_v26, %v7295_v28  ;;  %v7327_v20 = vld [vmem:[#allocation10 + $0x13c8] sm:$0xff]  ;;  %v7324_v19 = vld [vmem:[#allocation10 + $0x13b0] sm:$0xff]  ;;  %v6036_v56 = vrot.slane %v17287_v58, %v14443_v50 }
 0x9d2   :  { %v17311_v37 = vadd.f32 %v9654_v21, %v6546_v6  ;;  %v12357_v16 = vpack.c.bf16 %v7267_v2, %v7257_v34  ;;  %v7285_v21 = vld [vmem:[#allocation10 + $0x1278] sm:$0xff]  ;;  %v7274_v6 = vld [vmem:[#allocation10 + $0x1220] sm:$0xff]  ;;  %v7316_v34 = vld [vmem:[#allocation10 + $0x1370] sm:$0xff] }
 0x9d3   :  { %12196 = vmatpush1.bf16.msra.mxu1 %v12195_v63  ;;  %12344 = vmatpush1.bf16.msra.mxu0 %v12343_v10  ;;  %v7277_v63 = vld [vmem:[#allocation10 + $0x1238] sm:$0xff]  ;;  %v7287_v10 = vld [vmem:[#allocation10 + $0x1288] sm:$0xff]  ;;  %v7326_v2 = vld [vmem:[#allocation10 + $0x13c0] sm:$0xff] }
 0x9d4   :  { %12198 = vmatprep.subr.bf16.mxu1 %v12197_v47  ;;  %12346 = vmatprep.subr.bf16.mxu0 %v12345_v27  ;;  %v7284_v47 = vld [vmem:[#allocation10 + $0x1270] sm:$0xff]  ;;  %v12213_v27 = vpack.c.bf16 %v7285_v21, %v7275_v24  ;;  %v12361_v29 = vpack.c.bf16 %v7287_v10, %v7277_v63  ;;  %v7317_v54 = vld [vmem:[#allocation10 + $0x1378] sm:$0xff]  ;;  %v7347_v5 = vld [vmem:[#allocation10 + $0x1468] sm:$0xff]  ;;  %v13022_v24 = vadd.f32 %v17295_v53, %v6036_v56 }
 0x9d5   :  { %v12369_v43 = vpack.c.bf16 %v7327_v20, %v7317_v54  ;;  %v7337_v36 = vld [vmem:[#allocation10 + $0x1418] sm:$0xff]  ;;  %v7334_v57 = vld [vmem:[#allocation10 + $0x1400] sm:$0xff]  ;;  %v7344_v9 = vld [vmem:[#allocation10 + $0x1450] sm:$0xff] }
 0x9d6   :  { %v12373_v21 = vpack.c.bf16 %v7347_v5, %v7337_v36  ;;  %v7336_v63 = vld [vmem:[#allocation10 + $0x1410] sm:$0xff]  ;;  %v7346_v10 = vld [vmem:[#allocation10 + $0x1460] sm:$0xff]  ;;  %v17319_v28 = vmax.f32 %v13022_v24, 0.0  ;;  %v7395_v54 = vld [vmem:[#allocation10 + $0x15e8] sm:$0xff] }
 0x9d7   :  { %12200 = vmatpush1.bf16.msra.mxu1 %v12199_v35  ;;  %12348 = vmatpush1.bf16.msra.mxu0 %v12347_v62  ;;  %v7307_v35 = vld [vmem:[#allocation10 + $0x1328] sm:$0xff]  ;;  %v7405_v20 = vld [vmem:[#allocation10 + $0x1638] sm:$0xff]  ;;  %v7394_v56 = vld [vmem:[#allocation10 + $0x15e0] sm:$0xff] }
 0x9d8   :  { %12202 = vmatprep.subr.bf16.mxu1 %v12201_v52  ;;  %12350 = vmatprep.subr.bf16.mxu0 %v12349_v40  ;;  %v12215_v52 = vpack.c.bf16 %v7284_v47, %v7274_v6  ;;  %v12363_v40 = vpack.c.bf16 %v7286_v13, %v7276_v30  ;;  %v12365_v7 = vpack.c.bf16 %v7307_v35, %v7297_v39  ;;  %v7357_v6 = vld [vmem:[#allocation10 + $0x14b8] sm:$0xff]  ;;  %v7367_v47 = vld [vmem:[#allocation10 + $0x1508] sm:$0xff]  ;;  %v7354_v30 = vld [vmem:[#allocation10 + $0x14a0] sm:$0xff] }
 0x9d9   :  { %v7364_v13 = vld [vmem:[#allocation10 + $0x14f0] sm:$0xff]  ;;  %v12377_v26 = vpack.c.bf16 %v7367_v47, %v7357_v6  ;;  %v7366_v35 = vld [vmem:[#allocation10 + $0x1500] sm:$0xff]  ;;  %v7425_v36 = vld [vmem:[#allocation10 + $0x16d8] sm:$0xff] }
 0x9da   :  { %v7356_v39 = vld [vmem:[#allocation10 + $0x14b0] sm:$0xff]  ;;  %v7417_v5 = vld [vmem:[#allocation10 + $0x1698] sm:$0xff]  ;;  %v7435_v6 = vld [vmem:[#allocation10 + $0x1728] sm:$0xff] }
 0x9db   :  { %12204 = vmatpush1.bf16.msra.mxu1 %v12203_v48  ;;  %12352 = vmatpush1.bf16.msra.mxu0 %v12351_v49  ;;  %v7315_v48 = vld [vmem:[#allocation10 + $0x1368] sm:$0xff]  ;;  %v7325_v49 = vld [vmem:[#allocation10 + $0x13b8] sm:$0xff] }
 0x9dc   :  { %12206 = vmatprep.subr.bf16.mxu1 %v12205_v55  ;;  %12354 = vmatprep.subr.bf16.mxu0 %v12353_v31  ;;  %v12367_v55 = vpack.c.bf16 %v7306_v41, %v7296_v38  ;;  %v7314_v31 = vld [vmem:[#allocation10 + $0x1360] sm:$0xff]  ;;  %v12221_v59 = vpack.c.bf16 %v7325_v49, %v7315_v48  ;;  %v7376_v48 = vld [vmem:[#allocation10 + $0x1550] sm:$0xff]  ;;  %v7437_v47 = vld [vmem:[#allocation10 + $0x1738] sm:$0xff] }
 0x9dd   :  { %v7386_v49 = vld [vmem:[#allocation10 + $0x15a0] sm:$0xff] }
 0x9df   :  { %12208 = vmatpush1.bf16.msra.mxu1 %v12207_v4  ;;  %12356 = vmatpush1.bf16.msra.mxu0 %v12355_v45  ;;  %v7335_v4 = vld [vmem:[#allocation10 + $0x1408] sm:$0xff]  ;;  %v7345_v45 = vld [vmem:[#allocation10 + $0x1458] sm:$0xff] }
 0x9e0   :  { %12210 = vmatprep.subr.bf16.mxu1 %v12209_v8  ;;  %12358 = vmatprep.subr.bf16.mxu0 %v12357_v16  ;;  %v12223_v8 = vpack.c.bf16 %v7324_v19, %v7314_v31  ;;  %v12371_v16 = vpack.c.bf16 %v7326_v2, %v7316_v34  ;;  %v12225_v58 = vpack.c.bf16 %v7345_v45, %v7335_v4  ;;  %v7396_v2 = vld [vmem:[#allocation10 + $0x15f0] sm:$0xff]  ;;  %v7406_v4 = vld [vmem:[#allocation10 + $0x1640] sm:$0xff]  ;;  %v7415_v45 = vld [vmem:[#allocation10 + $0x1688] sm:$0xff] }
 0x9e1   :  { %v12383_v19 = vpack.c.bf16 %v7386_v49, %v7376_v48  ;;  %v12241_v24 = vpack.c.bf16 %v7425_v36, %v7415_v45  ;;  %v6718_v49 = vld [vmem:[#allocation10 + $0xc0] sm:$0xff]  ;;  %v6748_v45 = vld [vmem:[#allocation10 + $0x1b0] sm:$0xff] }
 0x9e2   :  { %v6685_v62 = vpop.f32.mrb[40].mxu0  ;;  %v6740_v36 = vld [vmem:[#allocation10 + $0x170] sm:$0xff] }
 0x9e3   :  { %v17314_v42 = vadd.f32 %v6685_v62, %v17311_v37  ;;  %v9914_v46 = vpop.f32.mrb[41].mxu0  ;;  %12212 = vmatpush1.bf16.msra.mxu1 %v12211_v1  ;;  %12360 = vmatpush1.bf16.msra.mxu0 %v12359_v23  ;;  %v12219_v37 = vpack.c.bf16 %v7304_v22, %v7294_v51  ;;  %v7355_v1 = vld [vmem:[#allocation10 + $0x14a8] sm:$0xff]  ;;  %v7365_v23 = vld [vmem:[#allocation10 + $0x14f8] sm:$0xff]  ;;  %v12231_v51 = vpack.c.bf16 %v7364_v13, %v7354_v30 }
 0x9e4   :  { %12214 = vmatprep.subr.bf16.mxu1 %v12213_v27  ;;  %12362 = vmatprep.subr.bf16.mxu0 %v12361_v29  ;;  %v12227_v27 = vpack.c.bf16 %v7344_v9, %v7334_v57  ;;  %v12375_v29 = vpack.c.bf16 %v7346_v10, %v7336_v63  ;;  %v12229_v53 = vpack.c.bf16 %v7365_v23, %v7355_v1  ;;  %v7375_v62 = vld [vmem:[#allocation10 + $0x1548] sm:$0xff]  ;;  %v7385_v46 = vld [vmem:[#allocation10 + $0x1598] sm:$0xff]  ;;  %v7414_v9 = vld [vmem:[#allocation10 + $0x1680] sm:$0xff] }
 0x9e5   :  { %v12379_v22 = vpack.c.bf16 %v7366_v35, %v7356_v39  ;;  %v12233_v38 = vpack.c.bf16 %v7385_v46, %v7375_v62  ;;  %v12387_v57 = vpack.c.bf16 %v7406_v4, %v7396_v2  ;;  %v7416_v63 = vld [vmem:[#allocation10 + $0x1690] sm:$0xff]  ;;  %v7426_v10 = vld [vmem:[#allocation10 + $0x16e0] sm:$0xff]  ;;  %v6709_v30 = vld [vmem:[#allocation10 + $0x78] sm:$0xff] }
 0x9e6   :  { %v12391_v23 = vpack.c.bf16 %v7426_v10, %v7416_v63  ;;  %v6701_v13 = vld [vmem:[#allocation10 + $0x38] sm:$0xff]  ;;  %v6698_v39 = vld [vmem:[#allocation10 + $0x20] sm:$0xff]  ;;  %v6708_v35 = vld [vmem:[#allocation10 + $0x70] sm:$0xff] }
 0x9e7   :  { %12216 = vmatpush1.bf16.msra.mxu1 %v12215_v52  ;;  %12364 = vmatpush1.bf16.msra.mxu0 %v12363_v40  ;;  %v7377_v52 = vld [vmem:[#allocation10 + $0x1558] sm:$0xff]  ;;  %v7387_v40 = vld [vmem:[#allocation10 + $0x15a8] sm:$0xff]  ;;  %v6700_v62 = vld [vmem:[#allocation10 + $0x30] sm:$0xff] }
 0x9e8   :  { %12218 = vmatprep.subr.bf16.mxu1 %v12217_v33  ;;  %12366 = vmatprep.subr.bf16.mxu0 %v12365_v7  ;;  %v7374_v33 = vld [vmem:[#allocation10 + $0x1540] sm:$0xff]  ;;  %v7384_v7 = vld [vmem:[#allocation10 + $0x1590] sm:$0xff]  ;;  %v12381_v41 = vpack.c.bf16 %v7387_v40, %v7377_v52  ;;  %v6719_v52 = vld [vmem:[#allocation10 + $0xc8] sm:$0xff] }
 0x9e9   :  { %v12235_v31 = vpack.c.bf16 %v7384_v7, %v7374_v33  ;;  %v6710_v46 = vld [vmem:[#allocation10 + $0x80] sm:$0xff]  ;;  %v6721_v33 = vld [vmem:[#allocation10 + $0xd8] sm:$0xff]  ;;  %v6731_v7 = vld [vmem:[#allocation10 + $0x128] sm:$0xff] }
 0x9ea   :  { %v12543_v48 = vpack.c.bf16 %v6710_v46, %v6700_v62  ;;  %v6738_v4 = vld [vmem:[#allocation10 + $0x160] sm:$0xff]  ;;  %v6788_v62 = vld [vmem:[#allocation10 + $0x2f0] sm:$0xff] }
 0x9eb   :  { %12220 = vmatpush1.bf16.msra.mxu1 %v12219_v37  ;;  %12368 = vmatpush1.bf16.msra.mxu0 %v12367_v55  ;;  %v7397_v37 = vld [vmem:[#allocation10 + $0x15f8] sm:$0xff]  ;;  %v7407_v55 = vld [vmem:[#allocation10 + $0x1648] sm:$0xff]  ;;  %v6758_v10 = vld [vmem:[#allocation10 + $0x200] sm:$0xff] }
 0x9ec   :  { %12222 = vmatprep.subr.bf16.mxu1 %v12221_v59  ;;  %12370 = vmatprep.subr.bf16.mxu0 %v12369_v43  ;;  %v7404_v59 = vld [vmem:[#allocation10 + $0x1630] sm:$0xff]  ;;  %v12237_v43 = vpack.c.bf16 %v7405_v20, %v7395_v54  ;;  %v12385_v34 = vpack.c.bf16 %v7407_v55, %v7397_v37  ;;  %v12545_v55 = vpack.c.bf16 %v6731_v7, %v6721_v33  ;;  %v6801_v33 = vld [vmem:[#allocation10 + $0x358] sm:$0xff]  ;;  %v6811_v7 = vld [vmem:[#allocation10 + $0x3a8] sm:$0xff] }
 0x9ed   :  { %v6728_v54 = vld [vmem:[#allocation10 + $0x110] sm:$0xff] }
 0x9ee   :  { %v6720_v20 = vld [vmem:[#allocation10 + $0xd0] sm:$0xff] }
 0x9ef   :  { %12224 = vmatpush1.bf16.msra.mxu1 %v12223_v8  ;;  %12372 = vmatpush1.bf16.msra.mxu0 %v12371_v16  ;;  %v7427_v8 = vld [vmem:[#allocation10 + $0x16e8] sm:$0xff]  ;;  %v12239_v16 = vpack.c.bf16 %v7404_v59, %v7394_v56  ;;  %v6749_v56 = vld [vmem:[#allocation10 + $0x1b8] sm:$0xff]  ;;  %v6780_v46 = vld [vmem:[#allocation10 + $0x2b0] sm:$0xff] }
 0x9f0   :  { %12226 = vmatprep.subr.bf16.mxu1 %v12225_v58  ;;  %12374 = vmatprep.subr.bf16.mxu0 %v12373_v21  ;;  %v12389_v58 = vpack.c.bf16 %v7427_v8, %v7417_v5  ;;  %v7424_v21 = vld [vmem:[#allocation10 + $0x16d0] sm:$0xff]  ;;  %v6751_v59 = vld [vmem:[#allocation10 + $0x1c8] sm:$0xff]  ;;  %v6750_v8 = vld [vmem:[#allocation10 + $0x1c0] sm:$0xff] }
 0x9f1   :  { %v12243_v1 = vpack.c.bf16 %v7424_v21, %v7414_v9  ;;  %v6761_v9 = vld [vmem:[#allocation10 + $0x218] sm:$0xff]  ;;  %v12551_v21 = vpack.c.bf16 %v6750_v8, %v6740_v36  ;;  %v6820_v36 = vld [vmem:[#allocation10 + $0x3f0] sm:$0xff]  ;;  %v6830_v8 = vld [vmem:[#allocation10 + $0x440] sm:$0xff] }
 0x9f2   :  { %7637 = vmatmul.mubr.f32.vlgmr.msra.gmra.mrb[34].mxu1 %v17319_v28  ;;  %7850 = vmatmul.mubr.f32.vlgmr.msra.gmra.mrb[42].mxu0 %v17319_v28 }
 0x9f3   :  { %12228 = vmatpush1.bf16.msra.mxu1 %v12227_v27  ;;  %12376 = vmatpush1.bf16.msra.mxu0 %v12375_v29  ;;  %v6699_v27 = vld [vmem:[#allocation10 + $0x28] sm:$0xff]  ;;  %v7434_v29 = vld [vmem:[#allocation10 + $0x1720] sm:$0xff] }
 0x9f4   :  { %12230 = vmatprep.subr.bf16.mxu1 %v12229_v53  ;;  %12378 = vmatprep.subr.bf16.mxu0 %v12377_v26  ;;  %v6711_v53 = vld [vmem:[#allocation10 + $0x88] sm:$0xff]  ;;  %v7436_v26 = vld [vmem:[#allocation10 + $0x1730] sm:$0xff]  ;;  %v12393_v40 = vpack.c.bf16 %v6709_v30, %v6699_v27  ;;  %v6781_v30 = vld [vmem:[#allocation10 + $0x2b8] sm:$0xff] }
 0x9f5   :  { %7707 = vmatprep.mubr.f32.mxu1 %v13287_v0  ;;  %7920 = vmatprep.mubr.f32.mxu0 %v13287_v0  ;;  %v6779_v27 = vld [vmem:[#allocation10 + $0x2a8] sm:$0xff] }
 0x9f7   :  { %12232 = vmatpush1.bf16.msra.mxu1 %v12231_v51  ;;  %12380 = vmatpush1.bf16.msra.mxu0 %v12379_v22  ;;  %v12541_v51 = vpack.c.bf16 %v6711_v53, %v6701_v13  ;;  %v6729_v22 = vld [vmem:[#allocation10 + $0x118] sm:$0xff]  ;;  %v6791_v13 = vld [vmem:[#allocation10 + $0x308] sm:$0xff] }
 0x9f8   :  { %12234 = vmatprep.subr.bf16.mxu1 %v12233_v38  ;;  %12382 = vmatprep.subr.bf16.mxu0 %v12381_v41  ;;  %v17326_v38 = vmax.f32 %v17314_v42, 0.0  ;;  %v12395_v41 = vpack.c.bf16 %v6708_v35, %v6698_v39  ;;  %v12397_v37 = vpack.c.bf16 %v6729_v22, %v6719_v52  ;;  %v6741_v42 = vld [vmem:[#allocation10 + $0x178] sm:$0xff]  ;;  %v6778_v35 = vld [vmem:[#allocation10 + $0x2a0] sm:$0xff]  ;;  %v12557_v52 = vpack.c.bf16 %v6791_v13, %v6781_v30  ;;  %v6871_v13 = vld [vmem:[#allocation10 + $0x588] sm:$0xff] }
 0x9f9   :  { %v12549_v5 = vpack.c.bf16 %v6751_v59, %v6741_v42  ;;  %v6809_v22 = vld [vmem:[#allocation10 + $0x398] sm:$0xff]  ;;  %v6831_v59 = vld [vmem:[#allocation10 + $0x448] sm:$0xff] }
 0x9fa   :  { %v6821_v42 = vld [vmem:[#allocation10 + $0x3f8] sm:$0xff] }
 0x9fb   :  { %12236 = vmatpush1.bf16.msra.mxu1 %v12235_v31  ;;  %12384 = vmatpush1.bf16.msra.mxu0 %v12383_v19  ;;  %v6730_v31 = vld [vmem:[#allocation10 + $0x120] sm:$0xff]  ;;  %v6739_v19 = vld [vmem:[#allocation10 + $0x168] sm:$0xff]  ;;  %v6861_v30 = vld [vmem:[#allocation10 + $0x538] sm:$0xff] }
 0x9fc   :  { %12238 = vmatprep.subr.bf16.mxu1 %v12237_v43  ;;  %12386 = vmatprep.subr.bf16.mxu0 %v12385_v34  ;;  %v12399_v43 = vpack.c.bf16 %v6728_v54, %v6718_v49  ;;  %v12547_v34 = vpack.c.bf16 %v6730_v31, %v6720_v20  ;;  %v12401_v2 = vpack.c.bf16 %v6749_v56, %v6739_v19  ;;  %v6798_v54 = vld [vmem:[#allocation10 + $0x340] sm:$0xff]  ;;  %v6808_v20 = vld [vmem:[#allocation10 + $0x390] sm:$0xff]  ;;  %v6819_v19 = vld [vmem:[#allocation10 + $0x3e8] sm:$0xff] }
 0x9fd   :  { %v6810_v31 = vld [vmem:[#allocation10 + $0x3a0] sm:$0xff]  ;;  %v6829_v56 = vld [vmem:[#allocation10 + $0x438] sm:$0xff] }
 0x9ff   :  { %12240 = vmatpush1.bf16.msra.mxu1 %v12239_v16  ;;  %12388 = vmatpush1.bf16.msra.mxu0 %v12387_v57  ;;  %v6759_v16 = vld [vmem:[#allocation10 + $0x208] sm:$0xff]  ;;  %v6769_v57 = vld [vmem:[#allocation10 + $0x258] sm:$0xff] }
 0xa00   :  { %12242 = vmatprep.subr.bf16.mxu1 %v12241_v24  ;;  %12390 = vmatprep.subr.bf16.mxu0 %v12389_v58  ;;  %v6771_v24 = vld [vmem:[#allocation10 + $0x268] sm:$0xff]  ;;  %v12403_v58 = vpack.c.bf16 %v6748_v45, %v6738_v4  ;;  %v12405_v63 = vpack.c.bf16 %v6769_v57, %v6759_v16  ;;  %v6818_v4 = vld [vmem:[#allocation10 + $0x3e0] sm:$0xff]  ;;  %v6828_v45 = vld [vmem:[#allocation10 + $0x430] sm:$0xff] }
 0xa01   :  { %v6839_v16 = vld [vmem:[#allocation10 + $0x488] sm:$0xff]  ;;  %v6849_v57 = vld [vmem:[#allocation10 + $0x4d8] sm:$0xff] }
 0xa03   :  { %12244 = vmatpush1.bf16.msra.mxu1 %v12243_v1  ;;  %12392 = vmatpush1.bf16.msra.mxu0 %v12391_v23  ;;  %v6768_v1 = vld [vmem:[#allocation10 + $0x250] sm:$0xff] }
 0xa04   :  { %7663 = vmatprep.subr.mxu1 %v7435_v6  ;;  %7876 = vmatprep.subr.mxu0 %v7437_v47  ;;  %v6760_v23 = vld [vmem:[#allocation10 + $0x210] sm:$0xff]  ;;  %v12553_v6 = vpack.c.bf16 %v6771_v24, %v6761_v9  ;;  %v6770_v47 = vld [vmem:[#allocation10 + $0x260] sm:$0xff]  ;;  %v12407_v53 = vpack.c.bf16 %v6768_v1, %v6758_v10  ;;  %v6841_v9 = vld [vmem:[#allocation10 + $0x498] sm:$0xff] }
 0xa05   :  { %v6851_v24 = vld [vmem:[#allocation10 + $0x4e8] sm:$0xff]  ;;  %v6838_v10 = vld [vmem:[#allocation10 + $0x480] sm:$0xff]  ;;  %v6848_v1 = vld [vmem:[#allocation10 + $0x4d0] sm:$0xff] }
 0xa07   :  { %7664 = vmatpush1.msra.mxu1 %v7434_v29  ;;  %7877 = vmatpush1.msra.mxu0 %v7436_v26  ;;  %v6789_v29 = vld [vmem:[#allocation10 + $0x2f8] sm:$0xff]  ;;  %v12555_v26 = vpack.c.bf16 %v6770_v47, %v6760_v23  ;;  %v6840_v23 = vld [vmem:[#allocation10 + $0x490] sm:$0xff]  ;;  %v6850_v47 = vld [vmem:[#allocation10 + $0x4e0] sm:$0xff] }
 0xa08   :  { %9154 = vmatmul.mubr.msk.f32.vlgmr.msra.gmra.mrb[34].mxu1 %vm2873_vm5, %v17326_v38  ;;  %9155 = vmatmul.mubr.msk.f32.vlgmr.msra.gmra.mrb[42].mxu0 %vm2873_vm5, %v17326_v38  ;;  %v12409_v39 = vpack.c.bf16 %v6789_v29, %v6779_v27  ;;  %v6859_v27 = vld [vmem:[#allocation10 + $0x528] sm:$0xff]  ;;  %v6869_v29 = vld [vmem:[#allocation10 + $0x578] sm:$0xff] }
 0xa09   :  { %12394 = vmatprep.subr.bf16.mxu1 %v12393_v40  ;;  %12542 = vmatprep.subr.bf16.mxu0 %v12541_v51  ;;  %v6790_v40 = vld [vmem:[#allocation10 + $0x300] sm:$0xff]  ;;  %v6799_v51 = vld [vmem:[#allocation10 + $0x348] sm:$0xff] }
 0xa0a   :  { %12396 = vmatpush1.bf16.msra.mxu1 %v12395_v41  ;;  %7991 = vmatprep.mubr.f32.mxu1 %v17297_v44  ;;  %v12411_v41 = vpack.c.bf16 %v6788_v62, %v6778_v35  ;;  %v12413_v49 = vpack.c.bf16 %v6809_v22, %v6799_v51  ;;  %v6858_v35 = vld [vmem:[#allocation10 + $0x520] sm:$0xff]  ;;  %v6868_v62 = vld [vmem:[#allocation10 + $0x570] sm:$0xff]  ;;  %v6879_v51 = vld [vmem:[#allocation10 + $0x5c8] sm:$0xff] }
 0xa0b   :  { %12544 = vmatpush1.bf16.msra.mxu0 %v12543_v48  ;;  %8204 = vmatprep.mubr.f32.mxu0 %v17297_v44  ;;  %v12559_v48 = vpack.c.bf16 %v6790_v40, %v6780_v46  ;;  %v6860_v46 = vld [vmem:[#allocation10 + $0x530] sm:$0xff]  ;;  %v6870_v40 = vld [vmem:[#allocation10 + $0x580] sm:$0xff]  ;;  %v6889_v22 = vld [vmem:[#allocation10 + $0x618] sm:$0xff] }
 0xa0c   :  { %12398 = vmatprep.subr.bf16.mxu1 %v12397_v37  ;;  %12546 = vmatprep.subr.bf16.mxu0 %v12545_v55  ;;  %v6800_v37 = vld [vmem:[#allocation10 + $0x350] sm:$0xff]  ;;  %v12561_v55 = vpack.c.bf16 %v6811_v7, %v6801_v33  ;;  %v6881_v33 = vld [vmem:[#allocation10 + $0x5d8] sm:$0xff]  ;;  %v6891_v7 = vld [vmem:[#allocation10 + $0x628] sm:$0xff] }
 0xa0e   :  { %12400 = vmatpush1.bf16.msra.mxu1 %v12399_v43  ;;  %v12415_v43 = vpack.c.bf16 %v6808_v20, %v6798_v54  ;;  %v6878_v54 = vld [vmem:[#allocation10 + $0x5c0] sm:$0xff]  ;;  %v6888_v20 = vld [vmem:[#allocation10 + $0x610] sm:$0xff] }
 0xa0f   :  { %12548 = vmatpush1.bf16.msra.mxu0 %v12547_v34  ;;  %12402 = vmatprep.subr.bf16.mxu1 %v12401_v2  ;;  %v12563_v34 = vpack.c.bf16 %v6810_v31, %v6800_v37  ;;  %v12417_v2 = vpack.c.bf16 %v6829_v56, %v6819_v19  ;;  %v6880_v37 = vld [vmem:[#allocation10 + $0x5d0] sm:$0xff]  ;;  %v6890_v31 = vld [vmem:[#allocation10 + $0x620] sm:$0xff]  ;;  %v6899_v19 = vld [vmem:[#allocation10 + $0x668] sm:$0xff] }
 0xa10   :  { %12550 = vmatprep.subr.bf16.mxu0 %v12549_v5  ;;  %v12565_v5 = vpack.c.bf16 %v6831_v59, %v6821_v42  ;;  %v6909_v56 = vld [vmem:[#allocation10 + $0x6b8] sm:$0xff]  ;;  %v6911_v59 = vld [vmem:[#allocation10 + $0x6c8] sm:$0xff] }
 0xa11   :  { %v6901_v42 = vld [vmem:[#allocation10 + $0x678] sm:$0xff] }
 0xa12   :  { %12404 = vmatpush1.bf16.msra.mxu1 %v12403_v58  ;;  %v12419_v58 = vpack.c.bf16 %v6828_v45, %v6818_v4  ;;  %v6898_v4 = vld [vmem:[#allocation10 + $0x660] sm:$0xff]  ;;  %v6908_v45 = vld [vmem:[#allocation10 + $0x6b0] sm:$0xff] }
 0xa13   :  { %12552 = vmatpush1.bf16.msra.mxu0 %v12551_v21  ;;  %12406 = vmatprep.subr.bf16.mxu1 %v12405_v63  ;;  %v12567_v21 = vpack.c.bf16 %v6830_v8, %v6820_v36  ;;  %v12421_v63 = vpack.c.bf16 %v6849_v57, %v6839_v16  ;;  %v6900_v36 = vld [vmem:[#allocation10 + $0x670] sm:$0xff]  ;;  %v6910_v8 = vld [vmem:[#allocation10 + $0x6c0] sm:$0xff]  ;;  %v6919_v16 = vld [vmem:[#allocation10 + $0x708] sm:$0xff] }
 0xa14   :  { %12554 = vmatprep.subr.bf16.mxu0 %v12553_v6  ;;  %v12569_v6 = vpack.c.bf16 %v6851_v24, %v6841_v9  ;;  %v6929_v57 = vld [vmem:[#allocation10 + $0x758] sm:$0xff]  ;;  %v6931_v24 = vld [vmem:[#allocation10 + $0x768] sm:$0xff] }
 0xa15   :  { %v6921_v9 = vld [vmem:[#allocation10 + $0x718] sm:$0xff] }
 0xa16   :  { %12408 = vmatpush1.bf16.msra.mxu1 %v12407_v53  ;;  %v12423_v53 = vpack.c.bf16 %v6848_v1, %v6838_v10  ;;  %v6918_v10 = vld [vmem:[#allocation10 + $0x700] sm:$0xff]  ;;  %v6928_v1 = vld [vmem:[#allocation10 + $0x750] sm:$0xff] }
 0xa17   :  { %12556 = vmatpush1.bf16.msra.mxu0 %v12555_v26  ;;  %12410 = vmatprep.subr.bf16.mxu1 %v12409_v39  ;;  %v12571_v26 = vpack.c.bf16 %v6850_v47, %v6840_v23  ;;  %v12425_v39 = vpack.c.bf16 %v6869_v29, %v6859_v27  ;;  %v6920_v23 = vld [vmem:[#allocation10 + $0x710] sm:$0xff]  ;;  %v6930_v47 = vld [vmem:[#allocation10 + $0x760] sm:$0xff]  ;;  %v6939_v27 = vld [vmem:[#allocation10 + $0x7a8] sm:$0xff] }
 0xa18   :  { %12558 = vmatprep.subr.bf16.mxu0 %v12557_v52  ;;  %v12573_v52 = vpack.c.bf16 %v6871_v13, %v6861_v30  ;;  %v6949_v29 = vld [vmem:[#allocation10 + $0x7f8] sm:$0xff]  ;;  %v6951_v13 = vld [vmem:[#allocation10 + $0x808] sm:$0xff] }
 0xa19   :  { %v6941_v30 = vld [vmem:[#allocation10 + $0x7b8] sm:$0xff] }
 0xa1a   :  { %12412 = vmatpush1.bf16.msra.mxu1 %v12411_v41  ;;  %v12427_v41 = vpack.c.bf16 %v6868_v62, %v6858_v35  ;;  %v6938_v35 = vld [vmem:[#allocation10 + $0x7a0] sm:$0xff]  ;;  %v6948_v62 = vld [vmem:[#allocation10 + $0x7f0] sm:$0xff] }
 0xa1b   :  { %12560 = vmatpush1.bf16.msra.mxu0 %v12559_v48  ;;  %12414 = vmatprep.subr.bf16.mxu1 %v12413_v49  ;;  %v12575_v48 = vpack.c.bf16 %v6870_v40, %v6860_v46  ;;  %v12429_v49 = vpack.c.bf16 %v6889_v22, %v6879_v51  ;;  %v6940_v46 = vld [vmem:[#allocation10 + $0x7b0] sm:$0xff]  ;;  %v6950_v40 = vld [vmem:[#allocation10 + $0x800] sm:$0xff]  ;;  %v6959_v51 = vld [vmem:[#allocation10 + $0x848] sm:$0xff] }
 0xa1c   :  { %12562 = vmatprep.subr.bf16.mxu0 %v12561_v55  ;;  %v12577_v55 = vpack.c.bf16 %v6891_v7, %v6881_v33  ;;  %v6969_v22 = vld [vmem:[#allocation10 + $0x898] sm:$0xff]  ;;  %v6971_v7 = vld [vmem:[#allocation10 + $0x8a8] sm:$0xff] }
 0xa1d   :  { %v6961_v33 = vld [vmem:[#allocation10 + $0x858] sm:$0xff] }
 0xa1e   :  { %12416 = vmatpush1.bf16.msra.mxu1 %v12415_v43  ;;  %v12431_v43 = vpack.c.bf16 %v6888_v20, %v6878_v54  ;;  %v6958_v54 = vld [vmem:[#allocation10 + $0x840] sm:$0xff]  ;;  %v6968_v20 = vld [vmem:[#allocation10 + $0x890] sm:$0xff] }
 0xa1f   :  { %12564 = vmatpush1.bf16.msra.mxu0 %v12563_v34  ;;  %12418 = vmatprep.subr.bf16.mxu1 %v12417_v2  ;;  %v12579_v34 = vpack.c.bf16 %v6890_v31, %v6880_v37  ;;  %v12433_v2 = vpack.c.bf16 %v6909_v56, %v6899_v19  ;;  %v6960_v37 = vld [vmem:[#allocation10 + $0x850] sm:$0xff]  ;;  %v6970_v31 = vld [vmem:[#allocation10 + $0x8a0] sm:$0xff]  ;;  %v6979_v19 = vld [vmem:[#allocation10 + $0x8e8] sm:$0xff] }
 0xa20   :  { %12566 = vmatprep.subr.bf16.mxu0 %v12565_v5  ;;  %v12581_v5 = vpack.c.bf16 %v6911_v59, %v6901_v42  ;;  %v6989_v56 = vld [vmem:[#allocation10 + $0x938] sm:$0xff]  ;;  %v6991_v59 = vld [vmem:[#allocation10 + $0x948] sm:$0xff] }
 0xa21   :  { %v6981_v42 = vld [vmem:[#allocation10 + $0x8f8] sm:$0xff] }
 0xa22   :  { %12420 = vmatpush1.bf16.msra.mxu1 %v12419_v58  ;;  %v12435_v58 = vpack.c.bf16 %v6908_v45, %v6898_v4  ;;  %v6978_v4 = vld [vmem:[#allocation10 + $0x8e0] sm:$0xff]  ;;  %v6988_v45 = vld [vmem:[#allocation10 + $0x930] sm:$0xff] }
 0xa23   :  { %12568 = vmatpush1.bf16.msra.mxu0 %v12567_v21  ;;  %12422 = vmatprep.subr.bf16.mxu1 %v12421_v63  ;;  %v12583_v21 = vpack.c.bf16 %v6910_v8, %v6900_v36  ;;  %v12437_v63 = vpack.c.bf16 %v6929_v57, %v6919_v16  ;;  %v6980_v36 = vld [vmem:[#allocation10 + $0x8f0] sm:$0xff]  ;;  %v6990_v8 = vld [vmem:[#allocation10 + $0x940] sm:$0xff]  ;;  %v6999_v16 = vld [vmem:[#allocation10 + $0x988] sm:$0xff] }
 0xa24   :  { %12570 = vmatprep.subr.bf16.mxu0 %v12569_v6  ;;  %v12585_v6 = vpack.c.bf16 %v6931_v24, %v6921_v9  ;;  %v7009_v57 = vld [vmem:[#allocation10 + $0x9d8] sm:$0xff]  ;;  %v7011_v24 = vld [vmem:[#allocation10 + $0x9e8] sm:$0xff] }
 0xa25   :  { %v7001_v9 = vld [vmem:[#allocation10 + $0x998] sm:$0xff] }
 0xa26   :  { %12424 = vmatpush1.bf16.msra.mxu1 %v12423_v53  ;;  %v12439_v53 = vpack.c.bf16 %v6928_v1, %v6918_v10  ;;  %v6998_v10 = vld [vmem:[#allocation10 + $0x980] sm:$0xff]  ;;  %v7008_v1 = vld [vmem:[#allocation10 + $0x9d0] sm:$0xff] }
 0xa27   :  { %12572 = vmatpush1.bf16.msra.mxu0 %v12571_v26  ;;  %12426 = vmatprep.subr.bf16.mxu1 %v12425_v39  ;;  %v12587_v26 = vpack.c.bf16 %v6930_v47, %v6920_v23  ;;  %v12441_v39 = vpack.c.bf16 %v6949_v29, %v6939_v27  ;;  %v7000_v23 = vld [vmem:[#allocation10 + $0x990] sm:$0xff]  ;;  %v7010_v47 = vld [vmem:[#allocation10 + $0x9e0] sm:$0xff]  ;;  %v7019_v27 = vld [vmem:[#allocation10 + $0xa28] sm:$0xff] }
 0xa28   :  { %12574 = vmatprep.subr.bf16.mxu0 %v12573_v52  ;;  %v12589_v52 = vpack.c.bf16 %v6951_v13, %v6941_v30  ;;  %v7029_v29 = vld [vmem:[#allocation10 + $0xa78] sm:$0xff]  ;;  %v7031_v13 = vld [vmem:[#allocation10 + $0xa88] sm:$0xff] }
 0xa29   :  { %v7021_v30 = vld [vmem:[#allocation10 + $0xa38] sm:$0xff] }
 0xa2a   :  { %12428 = vmatpush1.bf16.msra.mxu1 %v12427_v41  ;;  %v12443_v41 = vpack.c.bf16 %v6948_v62, %v6938_v35  ;;  %v7018_v35 = vld [vmem:[#allocation10 + $0xa20] sm:$0xff]  ;;  %v7028_v62 = vld [vmem:[#allocation10 + $0xa70] sm:$0xff] }
 0xa2b   :  { %12576 = vmatpush1.bf16.msra.mxu0 %v12575_v48  ;;  %12430 = vmatprep.subr.bf16.mxu1 %v12429_v49  ;;  %v12591_v48 = vpack.c.bf16 %v6950_v40, %v6940_v46  ;;  %v12445_v49 = vpack.c.bf16 %v6969_v22, %v6959_v51  ;;  %v12605_v46 = vpack.c.bf16 %v7031_v13, %v7021_v30  ;;  %v7030_v40 = vld [vmem:[#allocation10 + $0xa80] sm:$0xff]  ;;  %v7039_v51 = vld [vmem:[#allocation10 + $0xac8] sm:$0xff]  ;;  %v7049_v22 = vld [vmem:[#allocation10 + $0xb18] sm:$0xff] }
 0xa2c   :  { %12578 = vmatprep.subr.bf16.mxu0 %v12577_v55  ;;  %v12593_v55 = vpack.c.bf16 %v6971_v7, %v6961_v33  ;;  %v12459_v33 = vpack.c.bf16 %v7028_v62, %v7018_v35  ;;  %v7041_v7 = vld [vmem:[#allocation10 + $0xad8] sm:$0xff]  ;;  %v7111_v13 = vld [vmem:[#allocation10 + $0xd08] sm:$0xff]  ;;  %v7098_v35 = vld [vmem:[#allocation10 + $0xca0] sm:$0xff] }
 0xa2d   :  { %v7101_v30 = vld [vmem:[#allocation10 + $0xcb8] sm:$0xff]  ;;  %v7108_v62 = vld [vmem:[#allocation10 + $0xcf0] sm:$0xff] }
 0xa2e   :  { %12432 = vmatpush1.bf16.msra.mxu1 %v12431_v43  ;;  %v12447_v43 = vpack.c.bf16 %v6968_v20, %v6958_v54  ;;  %v7048_v54 = vld [vmem:[#allocation10 + $0xb10] sm:$0xff] }
 0xa2f   :  { %12580 = vmatpush1.bf16.msra.mxu0 %v12579_v34  ;;  %12434 = vmatprep.subr.bf16.mxu1 %v12433_v2  ;;  %v12595_v34 = vpack.c.bf16 %v6970_v31, %v6960_v37  ;;  %v12449_v2 = vpack.c.bf16 %v6989_v56, %v6979_v19  ;;  %v7040_v20 = vld [vmem:[#allocation10 + $0xad0] sm:$0xff]  ;;  %v12461_v37 = vpack.c.bf16 %v7049_v22, %v7039_v51  ;;  %v7059_v31 = vld [vmem:[#allocation10 + $0xb68] sm:$0xff]  ;;  %v7069_v19 = vld [vmem:[#allocation10 + $0xbb8] sm:$0xff] }
 0xa30   :  { %12582 = vmatprep.subr.bf16.mxu0 %v12581_v5  ;;  %v12597_v5 = vpack.c.bf16 %v6991_v59, %v6981_v42  ;;  %v7061_v42 = vld [vmem:[#allocation10 + $0xb78] sm:$0xff]  ;;  %v7071_v59 = vld [vmem:[#allocation10 + $0xbc8] sm:$0xff] }
 0xa31   :  { %v7119_v51 = vld [vmem:[#allocation10 + $0xd48] sm:$0xff]  ;;  %v7129_v22 = vld [vmem:[#allocation10 + $0xd98] sm:$0xff] }
 0xa32   :  { %12436 = vmatpush1.bf16.msra.mxu1 %v12435_v58  ;;  %v12451_v58 = vpack.c.bf16 %v6988_v45, %v6978_v4  ;;  %v7058_v4 = vld [vmem:[#allocation10 + $0xb60] sm:$0xff]  ;;  %v7068_v45 = vld [vmem:[#allocation10 + $0xbb0] sm:$0xff] }
 0xa33   :  { %12584 = vmatpush1.bf16.msra.mxu0 %v12583_v21  ;;  %12438 = vmatprep.subr.bf16.mxu1 %v12437_v63  ;;  %v12599_v21 = vpack.c.bf16 %v6990_v8, %v6980_v36  ;;  %v12453_v63 = vpack.c.bf16 %v7009_v57, %v6999_v16  ;;  %v7060_v36 = vld [vmem:[#allocation10 + $0xb70] sm:$0xff]  ;;  %v7070_v8 = vld [vmem:[#allocation10 + $0xbc0] sm:$0xff]  ;;  %v7079_v16 = vld [vmem:[#allocation10 + $0xc08] sm:$0xff] }
 0xa34   :  { %12586 = vmatprep.subr.bf16.mxu0 %v12585_v6  ;;  %v12601_v6 = vpack.c.bf16 %v7011_v24, %v7001_v9  ;;  %v7089_v57 = vld [vmem:[#allocation10 + $0xc58] sm:$0xff]  ;;  %v7091_v24 = vld [vmem:[#allocation10 + $0xc68] sm:$0xff] }
 0xa35   :  { %v7081_v9 = vld [vmem:[#allocation10 + $0xc18] sm:$0xff] }
 0xa36   :  { %12440 = vmatpush1.bf16.msra.mxu1 %v12439_v53  ;;  %v12455_v53 = vpack.c.bf16 %v7008_v1, %v6998_v10  ;;  %v7078_v10 = vld [vmem:[#allocation10 + $0xc00] sm:$0xff]  ;;  %v7088_v1 = vld [vmem:[#allocation10 + $0xc50] sm:$0xff] }
 0xa37   :  { %12588 = vmatpush1.bf16.msra.mxu0 %v12587_v26  ;;  %12442 = vmatprep.subr.bf16.mxu1 %v12441_v39  ;;  %v12603_v26 = vpack.c.bf16 %v7010_v47, %v7000_v23  ;;  %v12457_v39 = vpack.c.bf16 %v7029_v29, %v7019_v27  ;;  %v7080_v23 = vld [vmem:[#allocation10 + $0xc10] sm:$0xff]  ;;  %v7090_v47 = vld [vmem:[#allocation10 + $0xc60] sm:$0xff]  ;;  %v7099_v27 = vld [vmem:[#allocation10 + $0xca8] sm:$0xff] }
 0xa38   :  { %12590 = vmatprep.subr.bf16.mxu0 %v12589_v52  ;;  %v7020_v52 = vld [vmem:[#allocation10 + $0xa30] sm:$0xff]  ;;  %v7109_v29 = vld [vmem:[#allocation10 + $0xcf8] sm:$0xff] }
 0xa3a   :  { %12444 = vmatpush1.bf16.msra.mxu1 %v12443_v41  ;;  %v7051_v41 = vld [vmem:[#allocation10 + $0xb28] sm:$0xff] }
 0xa3b   :  { %12592 = vmatpush1.bf16.msra.mxu0 %v12591_v48  ;;  %12446 = vmatprep.subr.bf16.mxu1 %v12445_v49  ;;  %v12607_v48 = vpack.c.bf16 %v7030_v40, %v7020_v52  ;;  %v7038_v49 = vld [vmem:[#allocation10 + $0xac0] sm:$0xff]  ;;  %v12609_v56 = vpack.c.bf16 %v7051_v41, %v7041_v7  ;;  %v12621_v52 = vpack.c.bf16 %v7111_v13, %v7101_v30  ;;  %v7131_v7 = vld [vmem:[#allocation10 + $0xda8] sm:$0xff]  ;;  %v7181_v30 = vld [vmem:[#allocation10 + $0xf38] sm:$0xff] }
 0xa3c   :  { %12594 = vmatprep.subr.bf16.mxu0 %v12593_v55  ;;  %v7050_v55 = vld [vmem:[#allocation10 + $0xb20] sm:$0xff]  ;;  %v12475_v41 = vpack.c.bf16 %v7108_v62, %v7098_v35  ;;  %v7191_v13 = vld [vmem:[#allocation10 + $0xf88] sm:$0xff]  ;;  %v7188_v62 = vld [vmem:[#allocation10 + $0xf70] sm:$0xff] }
 0xa3d   :  { %v7110_v40 = vld [vmem:[#allocation10 + $0xd00] sm:$0xff] }
 0xa3e   :  { %12448 = vmatpush1.bf16.msra.mxu1 %v12447_v43  ;;  %v12463_v43 = vpack.c.bf16 %v7048_v54, %v7038_v49  ;;  %v12477_v49 = vpack.c.bf16 %v7129_v22, %v7119_v51  ;;  %v7118_v54 = vld [vmem:[#allocation10 + $0xd40] sm:$0xff]  ;;  %v7199_v51 = vld [vmem:[#allocation10 + $0xfc8] sm:$0xff]  ;;  %v7209_v22 = vld [vmem:[#allocation10 + $0x1018] sm:$0xff] }
 0xa3f   :  { %12596 = vmatpush1.bf16.msra.mxu0 %v12595_v34  ;;  %12450 = vmatprep.subr.bf16.mxu1 %v12449_v2  ;;  %v12611_v34 = vpack.c.bf16 %v7050_v55, %v7040_v20  ;;  %v12465_v2 = vpack.c.bf16 %v7069_v19, %v7059_v31  ;;  %v7128_v20 = vld [vmem:[#allocation10 + $0xd90] sm:$0xff]  ;;  %v7130_v31 = vld [vmem:[#allocation10 + $0xda0] sm:$0xff]  ;;  %v7139_v19 = vld [vmem:[#allocation10 + $0xde8] sm:$0xff] }
 0xa40   :  { %12598 = vmatprep.subr.bf16.mxu0 %v12597_v5  ;;  %v12613_v5 = vpack.c.bf16 %v7071_v59, %v7061_v42  ;;  %v7141_v42 = vld [vmem:[#allocation10 + $0xdf8] sm:$0xff]  ;;  %v7151_v59 = vld [vmem:[#allocation10 + $0xe48] sm:$0xff]  ;;  %v7178_v35 = vld [vmem:[#allocation10 + $0xf20] sm:$0xff] }
 0xa42   :  { %12452 = vmatpush1.bf16.msra.mxu1 %v12451_v58  ;;  %v12467_v58 = vpack.c.bf16 %v7068_v45, %v7058_v4  ;;  %v7138_v4 = vld [vmem:[#allocation10 + $0xde0] sm:$0xff]  ;;  %v7148_v45 = vld [vmem:[#allocation10 + $0xe30] sm:$0xff] }
 0xa43   :  { %12600 = vmatpush1.bf16.msra.mxu0 %v12599_v21  ;;  %12454 = vmatprep.subr.bf16.mxu1 %v12453_v63  ;;  %v12615_v21 = vpack.c.bf16 %v7070_v8, %v7060_v36  ;;  %v12469_v63 = vpack.c.bf16 %v7089_v57, %v7079_v16  ;;  %v7140_v36 = vld [vmem:[#allocation10 + $0xdf0] sm:$0xff]  ;;  %v7150_v8 = vld [vmem:[#allocation10 + $0xe40] sm:$0xff]  ;;  %v7159_v16 = vld [vmem:[#allocation10 + $0xe88] sm:$0xff] }
 0xa44   :  { %12602 = vmatprep.subr.bf16.mxu0 %v12601_v6  ;;  %v12617_v6 = vpack.c.bf16 %v7091_v24, %v7081_v9  ;;  %v7169_v57 = vld [vmem:[#allocation10 + $0xed8] sm:$0xff]  ;;  %v7171_v24 = vld [vmem:[#allocation10 + $0xee8] sm:$0xff] }
 0xa45   :  { %v7161_v9 = vld [vmem:[#allocation10 + $0xe98] sm:$0xff] }
 0xa46   :  { %12456 = vmatpush1.bf16.msra.mxu1 %v12455_v53  ;;  %v12471_v53 = vpack.c.bf16 %v7088_v1, %v7078_v10  ;;  %v7158_v10 = vld [vmem:[#allocation10 + $0xe80] sm:$0xff]  ;;  %v7168_v1 = vld [vmem:[#allocation10 + $0xed0] sm:$0xff] }
 0xa47   :  { %12604 = vmatpush1.bf16.msra.mxu0 %v12603_v26  ;;  %12458 = vmatprep.subr.bf16.mxu1 %v12457_v39  ;;  %v12619_v26 = vpack.c.bf16 %v7090_v47, %v7080_v23  ;;  %v12473_v39 = vpack.c.bf16 %v7109_v29, %v7099_v27  ;;  %v7160_v23 = vld [vmem:[#allocation10 + $0xe90] sm:$0xff]  ;;  %v7170_v47 = vld [vmem:[#allocation10 + $0xee0] sm:$0xff]  ;;  %v7179_v27 = vld [vmem:[#allocation10 + $0xf28] sm:$0xff] }
 0xa48   :  { %12606 = vmatprep.subr.bf16.mxu0 %v12605_v46  ;;  %v7100_v46 = vld [vmem:[#allocation10 + $0xcb0] sm:$0xff]  ;;  %v7189_v29 = vld [vmem:[#allocation10 + $0xf78] sm:$0xff] }
 0xa49   :  { %7992 = vmatmul.mubr.f32.vlgmr.msra.gmra.mrb[36].mxu1 %v17299_v17 }
 0xa4a   :  { %8205 = vmatmul.mubr.f32.vlgmr.msra.gmra.mrb[44].mxu0 %v17299_v17  ;;  %12460 = vmatpush1.bf16.msra.mxu1 %v12459_v33  ;;  %v7121_v33 = vld [vmem:[#allocation10 + $0xd58] sm:$0xff] }
 0xa4b   :  { %8062 = vmatprep.mubr.f32.mxu1 %v17303_v25  ;;  %12608 = vmatpush1.bf16.msra.mxu0 %v12607_v48  ;;  %v12623_v48 = vpack.c.bf16 %v7110_v40, %v7100_v46  ;;  %v12625_v55 = vpack.c.bf16 %v7131_v7, %v7121_v33  ;;  %v7180_v46 = vld [vmem:[#allocation10 + $0xf30] sm:$0xff]  ;;  %v7190_v40 = vld [vmem:[#allocation10 + $0xf80] sm:$0xff]  ;;  %v7201_v33 = vld [vmem:[#allocation10 + $0xfd8] sm:$0xff] }
 0xa4c   :  { %8275 = vmatprep.mubr.f32.mxu0 %v17303_v25  ;;  %12462 = vmatprep.subr.bf16.mxu1 %v12461_v37  ;;  %v7120_v37 = vld [vmem:[#allocation10 + $0xd50] sm:$0xff]  ;;  %v7211_v7 = vld [vmem:[#allocation10 + $0x1028] sm:$0xff] }
 0xa4d   :  { %12610 = vmatprep.subr.bf16.mxu0 %v12609_v56  ;;  %v7149_v56 = vld [vmem:[#allocation10 + $0xe38] sm:$0xff] }
 0xa4e   :  { %12464 = vmatpush1.bf16.msra.mxu1 %v12463_v43  ;;  %v12479_v43 = vpack.c.bf16 %v7128_v20, %v7118_v54  ;;  %v7198_v54 = vld [vmem:[#allocation10 + $0xfc0] sm:$0xff]  ;;  %v7208_v20 = vld [vmem:[#allocation10 + $0x1010] sm:$0xff] }
 0xa4f   :  { %12612 = vmatpush1.bf16.msra.mxu0 %v12611_v34  ;;  %12466 = vmatprep.subr.bf16.mxu1 %v12465_v2  ;;  %v12627_v34 = vpack.c.bf16 %v7130_v31, %v7120_v37  ;;  %v12481_v2 = vpack.c.bf16 %v7149_v56, %v7139_v19  ;;  %v7200_v37 = vld [vmem:[#allocation10 + $0xfd0] sm:$0xff]  ;;  %v7210_v31 = vld [vmem:[#allocation10 + $0x1020] sm:$0xff]  ;;  %v7219_v19 = vld [vmem:[#allocation10 + $0x1068] sm:$0xff] }
 0xa50   :  { %12614 = vmatprep.subr.bf16.mxu0 %v12613_v5  ;;  %v12629_v5 = vpack.c.bf16 %v7151_v59, %v7141_v42  ;;  %v7229_v56 = vld [vmem:[#allocation10 + $0x10b8] sm:$0xff]  ;;  %v7231_v59 = vld [vmem:[#allocation10 + $0x10c8] sm:$0xff] }
 0xa51   :  { %v7221_v42 = vld [vmem:[#allocation10 + $0x1078] sm:$0xff] }
 0xa52   :  { %12468 = vmatpush1.bf16.msra.mxu1 %v12467_v58  ;;  %v12483_v58 = vpack.c.bf16 %v7148_v45, %v7138_v4  ;;  %v7218_v4 = vld [vmem:[#allocation10 + $0x1060] sm:$0xff]  ;;  %v7228_v45 = vld [vmem:[#allocation10 + $0x10b0] sm:$0xff] }
 0xa53   :  { %12616 = vmatpush1.bf16.msra.mxu0 %v12615_v21  ;;  %12470 = vmatprep.subr.bf16.mxu1 %v12469_v63  ;;  %v12631_v21 = vpack.c.bf16 %v7150_v8, %v7140_v36  ;;  %v12485_v63 = vpack.c.bf16 %v7169_v57, %v7159_v16  ;;  %v7220_v36 = vld [vmem:[#allocation10 + $0x1070] sm:$0xff]  ;;  %v7230_v8 = vld [vmem:[#allocation10 + $0x10c0] sm:$0xff]  ;;  %v7239_v16 = vld [vmem:[#allocation10 + $0x1108] sm:$0xff] }
 0xa54   :  { %12618 = vmatprep.subr.bf16.mxu0 %v12617_v6  ;;  %v12633_v6 = vpack.c.bf16 %v7171_v24, %v7161_v9  ;;  %v7249_v57 = vld [vmem:[#allocation10 + $0x1158] sm:$0xff]  ;;  %v7251_v24 = vld [vmem:[#allocation10 + $0x1168] sm:$0xff] }
 0xa55   :  { %v7241_v9 = vld [vmem:[#allocation10 + $0x1118] sm:$0xff] }
 0xa56   :  { %12472 = vmatpush1.bf16.msra.mxu1 %v12471_v53  ;;  %v12487_v53 = vpack.c.bf16 %v7168_v1, %v7158_v10  ;;  %v7238_v10 = vld [vmem:[#allocation10 + $0x1100] sm:$0xff]  ;;  %v7248_v1 = vld [vmem:[#allocation10 + $0x1150] sm:$0xff] }
 0xa57   :  { %12620 = vmatpush1.bf16.msra.mxu0 %v12619_v26  ;;  %12474 = vmatprep.subr.bf16.mxu1 %v12473_v39  ;;  %v12635_v26 = vpack.c.bf16 %v7170_v47, %v7160_v23  ;;  %v12489_v39 = vpack.c.bf16 %v7189_v29, %v7179_v27  ;;  %v7240_v23 = vld [vmem:[#allocation10 + $0x1110] sm:$0xff]  ;;  %v7250_v47 = vld [vmem:[#allocation10 + $0x1160] sm:$0xff]  ;;  %v7259_v27 = vld [vmem:[#allocation10 + $0x11a8] sm:$0xff] }
 0xa58   :  { %12622 = vmatprep.subr.bf16.mxu0 %v12621_v52  ;;  %v12637_v52 = vpack.c.bf16 %v7191_v13, %v7181_v30  ;;  %v7269_v29 = vld [vmem:[#allocation10 + $0x11f8] sm:$0xff]  ;;  %v7271_v13 = vld [vmem:[#allocation10 + $0x1208] sm:$0xff] }
 0xa59   :  { %v7261_v30 = vld [vmem:[#allocation10 + $0x11b8] sm:$0xff] }
 0xa5a   :  { %12476 = vmatpush1.bf16.msra.mxu1 %v12475_v41  ;;  %v12491_v41 = vpack.c.bf16 %v7188_v62, %v7178_v35  ;;  %v7258_v35 = vld [vmem:[#allocation10 + $0x11a0] sm:$0xff]  ;;  %v7268_v62 = vld [vmem:[#allocation10 + $0x11f0] sm:$0xff] }
 0xa5b   :  { %12624 = vmatpush1.bf16.msra.mxu0 %v12623_v48  ;;  %12478 = vmatprep.subr.bf16.mxu1 %v12477_v49  ;;  %v12639_v48 = vpack.c.bf16 %v7190_v40, %v7180_v46  ;;  %v12493_v49 = vpack.c.bf16 %v7209_v22, %v7199_v51  ;;  %v7260_v46 = vld [vmem:[#allocation10 + $0x11b0] sm:$0xff]  ;;  %v7270_v40 = vld [vmem:[#allocation10 + $0x1200] sm:$0xff]  ;;  %v7279_v51 = vld [vmem:[#allocation10 + $0x1248] sm:$0xff] }
 0xa5c   :  { %12626 = vmatprep.subr.bf16.mxu0 %v12625_v55  ;;  %v12641_v55 = vpack.c.bf16 %v7211_v7, %v7201_v33  ;;  %v7289_v22 = vld [vmem:[#allocation10 + $0x1298] sm:$0xff]  ;;  %v7291_v7 = vld [vmem:[#allocation10 + $0x12a8] sm:$0xff] }
 0xa5d   :  { %v7281_v33 = vld [vmem:[#allocation10 + $0x1258] sm:$0xff] }
 0xa5e   :  { %12480 = vmatpush1.bf16.msra.mxu1 %v12479_v43  ;;  %v12495_v43 = vpack.c.bf16 %v7208_v20, %v7198_v54  ;;  %v7278_v54 = vld [vmem:[#allocation10 + $0x1240] sm:$0xff]  ;;  %v7288_v20 = vld [vmem:[#allocation10 + $0x1290] sm:$0xff] }
 0xa5f   :  { %12628 = vmatpush1.bf16.msra.mxu0 %v12627_v34  ;;  %12482 = vmatprep.subr.bf16.mxu1 %v12481_v2  ;;  %v12643_v34 = vpack.c.bf16 %v7210_v31, %v7200_v37  ;;  %v12497_v2 = vpack.c.bf16 %v7229_v56, %v7219_v19  ;;  %v7280_v37 = vld [vmem:[#allocation10 + $0x1250] sm:$0xff]  ;;  %v7290_v31 = vld [vmem:[#allocation10 + $0x12a0] sm:$0xff]  ;;  %v7299_v19 = vld [vmem:[#allocation10 + $0x12e8] sm:$0xff] }
 0xa60   :  { %12630 = vmatprep.subr.bf16.mxu0 %v12629_v5  ;;  %v12645_v5 = vpack.c.bf16 %v7231_v59, %v7221_v42  ;;  %v7309_v56 = vld [vmem:[#allocation10 + $0x1338] sm:$0xff]  ;;  %v7311_v59 = vld [vmem:[#allocation10 + $0x1348] sm:$0xff] }
 0xa61   :  { %v7301_v42 = vld [vmem:[#allocation10 + $0x12f8] sm:$0xff] }
 0xa62   :  { %12484 = vmatpush1.bf16.msra.mxu1 %v12483_v58  ;;  %v12499_v58 = vpack.c.bf16 %v7228_v45, %v7218_v4  ;;  %v7298_v4 = vld [vmem:[#allocation10 + $0x12e0] sm:$0xff]  ;;  %v7308_v45 = vld [vmem:[#allocation10 + $0x1330] sm:$0xff] }
 0xa63   :  { %12632 = vmatpush1.bf16.msra.mxu0 %v12631_v21  ;;  %12486 = vmatprep.subr.bf16.mxu1 %v12485_v63  ;;  %v12647_v21 = vpack.c.bf16 %v7230_v8, %v7220_v36  ;;  %v12501_v63 = vpack.c.bf16 %v7249_v57, %v7239_v16  ;;  %v7300_v36 = vld [vmem:[#allocation10 + $0x12f0] sm:$0xff]  ;;  %v7310_v8 = vld [vmem:[#allocation10 + $0x1340] sm:$0xff]  ;;  %v7319_v16 = vld [vmem:[#allocation10 + $0x1388] sm:$0xff] }
 0xa64   :  { %12634 = vmatprep.subr.bf16.mxu0 %v12633_v6  ;;  %v12649_v6 = vpack.c.bf16 %v7251_v24, %v7241_v9  ;;  %v7329_v57 = vld [vmem:[#allocation10 + $0x13d8] sm:$0xff]  ;;  %v7331_v24 = vld [vmem:[#allocation10 + $0x13e8] sm:$0xff] }
 0xa65   :  { %v7321_v9 = vld [vmem:[#allocation10 + $0x1398] sm:$0xff] }
 0xa66   :  { %12488 = vmatpush1.bf16.msra.mxu1 %v12487_v53  ;;  %v12503_v53 = vpack.c.bf16 %v7248_v1, %v7238_v10  ;;  %v7318_v10 = vld [vmem:[#allocation10 + $0x1380] sm:$0xff]  ;;  %v7328_v1 = vld [vmem:[#allocation10 + $0x13d0] sm:$0xff] }
 0xa67   :  { %12636 = vmatpush1.bf16.msra.mxu0 %v12635_v26  ;;  %12490 = vmatprep.subr.bf16.mxu1 %v12489_v39  ;;  %v12651_v26 = vpack.c.bf16 %v7250_v47, %v7240_v23  ;;  %v12505_v39 = vpack.c.bf16 %v7269_v29, %v7259_v27  ;;  %v7320_v23 = vld [vmem:[#allocation10 + $0x1390] sm:$0xff]  ;;  %v7330_v47 = vld [vmem:[#allocation10 + $0x13e0] sm:$0xff]  ;;  %v7339_v27 = vld [vmem:[#allocation10 + $0x1428] sm:$0xff] }
 0xa68   :  { %12638 = vmatprep.subr.bf16.mxu0 %v12637_v52  ;;  %v12653_v52 = vpack.c.bf16 %v7271_v13, %v7261_v30  ;;  %v7349_v29 = vld [vmem:[#allocation10 + $0x1478] sm:$0xff]  ;;  %v7351_v13 = vld [vmem:[#allocation10 + $0x1488] sm:$0xff] }
 0xa69   :  { %v7341_v30 = vld [vmem:[#allocation10 + $0x1438] sm:$0xff] }
 0xa6a   :  { %12492 = vmatpush1.bf16.msra.mxu1 %v12491_v41  ;;  %v12507_v41 = vpack.c.bf16 %v7268_v62, %v7258_v35  ;;  %v7338_v35 = vld [vmem:[#allocation10 + $0x1420] sm:$0xff]  ;;  %v7348_v62 = vld [vmem:[#allocation10 + $0x1470] sm:$0xff] }
 0xa6b   :  { %12640 = vmatpush1.bf16.msra.mxu0 %v12639_v48  ;;  %12494 = vmatprep.subr.bf16.mxu1 %v12493_v49  ;;  %v12655_v48 = vpack.c.bf16 %v7270_v40, %v7260_v46  ;;  %v12509_v49 = vpack.c.bf16 %v7289_v22, %v7279_v51  ;;  %v7340_v46 = vld [vmem:[#allocation10 + $0x1430] sm:$0xff]  ;;  %v7350_v40 = vld [vmem:[#allocation10 + $0x1480] sm:$0xff]  ;;  %v7359_v51 = vld [vmem:[#allocation10 + $0x14c8] sm:$0xff] }
 0xa6c   :  { %12642 = vmatprep.subr.bf16.mxu0 %v12641_v55  ;;  %v12657_v55 = vpack.c.bf16 %v7291_v7, %v7281_v33  ;;  %v7369_v22 = vld [vmem:[#allocation10 + $0x1518] sm:$0xff]  ;;  %v7371_v7 = vld [vmem:[#allocation10 + $0x1528] sm:$0xff] }
 0xa6d   :  { %v7361_v33 = vld [vmem:[#allocation10 + $0x14d8] sm:$0xff] }
 0xa6e   :  { %12496 = vmatpush1.bf16.msra.mxu1 %v12495_v43  ;;  %v12511_v43 = vpack.c.bf16 %v7288_v20, %v7278_v54  ;;  %v7358_v54 = vld [vmem:[#allocation10 + $0x14c0] sm:$0xff]  ;;  %v7368_v20 = vld [vmem:[#allocation10 + $0x1510] sm:$0xff] }
 0xa6f   :  { %12644 = vmatpush1.bf16.msra.mxu0 %v12643_v34  ;;  %12498 = vmatprep.subr.bf16.mxu1 %v12497_v2  ;;  %v12659_v34 = vpack.c.bf16 %v7290_v31, %v7280_v37  ;;  %v12513_v2 = vpack.c.bf16 %v7309_v56, %v7299_v19  ;;  %v7360_v37 = vld [vmem:[#allocation10 + $0x14d0] sm:$0xff]  ;;  %v7370_v31 = vld [vmem:[#allocation10 + $0x1520] sm:$0xff]  ;;  %v7379_v19 = vld [vmem:[#allocation10 + $0x1568] sm:$0xff] }
 0xa70   :  { %12646 = vmatprep.subr.bf16.mxu0 %v12645_v5  ;;  %v12661_v5 = vpack.c.bf16 %v7311_v59, %v7301_v42  ;;  %v7389_v56 = vld [vmem:[#allocation10 + $0x15b8] sm:$0xff]  ;;  %v7391_v59 = vld [vmem:[#allocation10 + $0x15c8] sm:$0xff] }
 0xa71   :  { %v7381_v42 = vld [vmem:[#allocation10 + $0x1578] sm:$0xff] }
 0xa72   :  { %12500 = vmatpush1.bf16.msra.mxu1 %v12499_v58  ;;  %v12515_v58 = vpack.c.bf16 %v7308_v45, %v7298_v4  ;;  %v7378_v4 = vld [vmem:[#allocation10 + $0x1560] sm:$0xff]  ;;  %v7388_v45 = vld [vmem:[#allocation10 + $0x15b0] sm:$0xff] }
 0xa73   :  { %12648 = vmatpush1.bf16.msra.mxu0 %v12647_v21  ;;  %12502 = vmatprep.subr.bf16.mxu1 %v12501_v63  ;;  %v12663_v21 = vpack.c.bf16 %v7310_v8, %v7300_v36  ;;  %v12517_v63 = vpack.c.bf16 %v7329_v57, %v7319_v16  ;;  %v7380_v36 = vld [vmem:[#allocation10 + $0x1570] sm:$0xff]  ;;  %v7390_v8 = vld [vmem:[#allocation10 + $0x15c0] sm:$0xff]  ;;  %v7399_v16 = vld [vmem:[#allocation10 + $0x1608] sm:$0xff] }
 0xa74   :  { %12650 = vmatprep.subr.bf16.mxu0 %v12649_v6  ;;  %v12665_v6 = vpack.c.bf16 %v7331_v24, %v7321_v9  ;;  %v7409_v57 = vld [vmem:[#allocation10 + $0x1658] sm:$0xff]  ;;  %v7411_v24 = vld [vmem:[#allocation10 + $0x1668] sm:$0xff] }
 0xa75   :  { %v7401_v9 = vld [vmem:[#allocation10 + $0x1618] sm:$0xff] }
 0xa76   :  { %12504 = vmatpush1.bf16.msra.mxu1 %v12503_v53  ;;  %v12519_v53 = vpack.c.bf16 %v7328_v1, %v7318_v10  ;;  %v7398_v10 = vld [vmem:[#allocation10 + $0x1600] sm:$0xff]  ;;  %v7408_v1 = vld [vmem:[#allocation10 + $0x1650] sm:$0xff] }
 0xa77   :  { %12652 = vmatpush1.bf16.msra.mxu0 %v12651_v26  ;;  %12506 = vmatprep.subr.bf16.mxu1 %v12505_v39  ;;  %v12667_v26 = vpack.c.bf16 %v7330_v47, %v7320_v23  ;;  %v12521_v39 = vpack.c.bf16 %v7349_v29, %v7339_v27  ;;  %v7400_v23 = vld [vmem:[#allocation10 + $0x1610] sm:$0xff]  ;;  %v7410_v47 = vld [vmem:[#allocation10 + $0x1660] sm:$0xff]  ;;  %v7419_v27 = vld [vmem:[#allocation10 + $0x16a8] sm:$0xff] }
 0xa78   :  { %12654 = vmatprep.subr.bf16.mxu0 %v12653_v52  ;;  %v12669_v52 = vpack.c.bf16 %v7351_v13, %v7341_v30  ;;  %v7429_v29 = vld [vmem:[#allocation10 + $0x16f8] sm:$0xff]  ;;  %v7431_v13 = vld [vmem:[#allocation10 + $0x1708] sm:$0xff] }
 0xa79   :  { %v7421_v30 = vld [vmem:[#allocation10 + $0x16b8] sm:$0xff] }
 0xa7a   :  { %12508 = vmatpush1.bf16.msra.mxu1 %v12507_v41  ;;  %v12523_v41 = vpack.c.bf16 %v7348_v62, %v7338_v35  ;;  %v7418_v35 = vld [vmem:[#allocation10 + $0x16a0] sm:$0xff]  ;;  %v7428_v62 = vld [vmem:[#allocation10 + $0x16f0] sm:$0xff] }
 0xa7b   :  { %12656 = vmatpush1.bf16.msra.mxu0 %v12655_v48  ;;  %12510 = vmatprep.subr.bf16.mxu1 %v12509_v49  ;;  %v12671_v48 = vpack.c.bf16 %v7350_v40, %v7340_v46  ;;  %v12525_v49 = vpack.c.bf16 %v7369_v22, %v7359_v51  ;;  %v12685_v46 = vpack.c.bf16 %v7431_v13, %v7421_v30  ;;  %v7430_v40 = vld [vmem:[#allocation10 + $0x1700] sm:$0xff]  ;;  %v8580_v13 = vld [vmem:[%s17897_s19 + $0x20] sm:$0xff] }
 0xa7c   :  { %12658 = vmatprep.subr.bf16.mxu0 %v12657_v55  ;;  %v12673_v55 = vpack.c.bf16 %v7371_v7, %v7361_v33  ;;  %v12539_v51 = vpack.c.bf16 %v7428_v62, %v7418_v35  ;;  %v7439_v33 = vld [vmem:[#allocation10 + $0x1748] sm:$0xff]  ;;  %v7441_v7 = vld [vmem:[#allocation10 + $0x1758] sm:$0xff] }
 0xa7d   :  { %v8599_v35 = vld [vmem:[%s17897_s19 + $0xb8] sm:$0xff] }
 0xa7e   :  { %12512 = vmatpush1.bf16.msra.mxu1 %v12511_v43  ;;  %v12527_v43 = vpack.c.bf16 %v7368_v20, %v7358_v54  ;;  %v6702_v54 = vld [vmem:[#allocation10 + $0x40] sm:$0xff]  ;;  %v6712_v20 = vld [vmem:[#allocation10 + $0x90] sm:$0xff] }
 0xa7f   :  { %12660 = vmatpush1.bf16.msra.mxu0 %v12659_v34  ;;  %12514 = vmatprep.subr.bf16.mxu1 %v12513_v2  ;;  %v12675_v34 = vpack.c.bf16 %v7370_v31, %v7360_v37  ;;  %v12529_v2 = vpack.c.bf16 %v7389_v56, %v7379_v19  ;;  %v6723_v37 = vld [vmem:[#allocation10 + $0xe8] sm:$0xff]  ;;  %v8592_v31 = vld [vmem:[%s17897_s19 + $0x80] sm:$0xff]  ;;  %v8593_v19 = vld [vmem:[%s17897_s19 + $0x88] sm:$0xff] }
 0xa80   :  { %12662 = vmatprep.subr.bf16.mxu0 %v12661_v5  ;;  %v12677_v5 = vpack.c.bf16 %v7391_v59, %v7381_v42  ;;  %v7440_v56 = vld [vmem:[#allocation10 + $0x1750] sm:$0xff] }
 0xa81   :  { %v8576_v59 = vld [vmem:[%s17897_s19] sm:$0xff] }
 0xa82   :  { %12516 = vmatpush1.bf16.msra.mxu1 %v12515_v58  ;;  %v12531_v58 = vpack.c.bf16 %v7388_v45, %v7378_v4  ;;  %v8595_v4 = vld [vmem:[%s17897_s19 + $0x98] sm:$0xff] }
 0xa83   :  { %12664 = vmatpush1.bf16.msra.mxu0 %v12663_v21  ;;  %12518 = vmatprep.subr.bf16.mxu1 %v12517_v63  ;;  %v12679_v21 = vpack.c.bf16 %v7390_v8, %v7380_v36  ;;  %v12533_v63 = vpack.c.bf16 %v7409_v57, %v7399_v16  ;;  %v6722_v36 = vld [vmem:[#allocation10 + $0xe0] sm:$0xff]  ;;  %v12837_v8 = vpack.c.bf16 %v8593_v19, %v8592_v31  ;;  %v6743_v16 = vld [vmem:[#allocation10 + $0x188] sm:$0xff]  ;;  %v6753_v57 = vld [vmem:[#allocation10 + $0x1d8] sm:$0xff] }
 0xa84   :  { %12666 = vmatprep.subr.bf16.mxu0 %v12665_v6  ;;  %v12681_v6 = vpack.c.bf16 %v7411_v24, %v7401_v9  ;;  %v6803_v31 = vld [vmem:[#allocation10 + $0x368] sm:$0xff]  ;;  %v6813_v19 = vld [vmem:[#allocation10 + $0x3b8] sm:$0xff] }
 0xa86   :  { %12520 = vmatpush1.bf16.msra.mxu1 %v12519_v53  ;;  %v12535_v53 = vpack.c.bf16 %v7408_v1, %v7398_v10  ;;  %v8596_v10 = vld [vmem:[%s17897_s19 + $0xa0] sm:$0xff]  ;;  %v8597_v1 = vld [vmem:[%s17897_s19 + $0xa8] sm:$0xff] }
 0xa87   :  { %12668 = vmatpush1.bf16.msra.mxu0 %v12667_v26  ;;  %12522 = vmatprep.subr.bf16.mxu1 %v12521_v39  ;;  %v12683_v26 = vpack.c.bf16 %v7410_v47, %v7400_v23  ;;  %v12537_v39 = vpack.c.bf16 %v7429_v29, %v7419_v27  ;;  %v12697_v23 = vpack.c.bf16 %v6753_v57, %v6743_v16  ;;  %v6752_v47 = vld [vmem:[#allocation10 + $0x1d0] sm:$0xff]  ;;  %v6763_v27 = vld [vmem:[#allocation10 + $0x228] sm:$0xff]  ;;  %v6773_v29 = vld [vmem:[#allocation10 + $0x278] sm:$0xff] }
 0xa88   :  { %12670 = vmatprep.subr.bf16.mxu0 %v12669_v52  ;;  %v7420_v52 = vld [vmem:[#allocation10 + $0x16b0] sm:$0xff]  ;;  %v12701_v62 = vpack.c.bf16 %v6773_v29, %v6763_v27  ;;  %v6833_v16 = vld [vmem:[#allocation10 + $0x458] sm:$0xff] }
 0xa89   :  { %8063 = vmatmul.mubr.f32.vlgmr.msra.gmra.mrb[36].mxu1 %v17319_v28  ;;  %v12687_v22 = vpack.c.bf16 %v7430_v40, %v7420_v52  ;;  %v6772_v52 = vld [vmem:[#allocation10 + $0x270] sm:$0xff]  ;;  %v6783_v40 = vld [vmem:[#allocation10 + $0x2c8] sm:$0xff]  ;;  %v6853_v27 = vld [vmem:[#allocation10 + $0x4f8] sm:$0xff] }
 0xa8a   :  { %8276 = vmatmul.mubr.f32.vlgmr.msra.gmra.mrb[44].mxu0 %v17319_v28  ;;  %12524 = vmatpush1.bf16.msra.mxu1 %v12523_v41  ;;  %v7438_v41 = vld [vmem:[#allocation10 + $0x1740] sm:$0xff] }
 0xa8b   :  { %12672 = vmatpush1.bf16.msra.mxu0 %v12671_v48  ;;  %12526 = vmatprep.subr.bf16.mxu1 %v12525_v49  ;;  %v6703_v48 = vld [vmem:[#allocation10 + $0x48] sm:$0xff]  ;;  %v6713_v49 = vld [vmem:[#allocation10 + $0x98] sm:$0xff] }
 0xa8c   :  { %12674 = vmatprep.subr.bf16.mxu0 %v12673_v55  ;;  %8133 = vmatprep.mubr.f32.mxu1 %v13287_v0  ;;  %v6733_v55 = vld [vmem:[#allocation10 + $0x138] sm:$0xff]  ;;  %v12689_v42 = vpack.c.bf16 %v6713_v49, %v6703_v48  ;;  %v8600_v49 = vld [vmem:[%s17897_s19 + $0xc0] sm:$0xff] }
 0xa8d   :  { %8346 = vmatprep.mubr.f32.mxu0 %v13287_v0  ;;  %v12693_v45 = vpack.c.bf16 %v6733_v55, %v6723_v37  ;;  %v6782_v37 = vld [vmem:[#allocation10 + $0x2c0] sm:$0xff]  ;;  %v6792_v55 = vld [vmem:[#allocation10 + $0x310] sm:$0xff] }
 0xa8e   :  { %12528 = vmatpush1.bf16.msra.mxu1 %v12527_v43  ;;  %v8577_v43 = vld [vmem:[%s17897_s19 + $0x8] sm:$0xff] }
 0xa8f   :  { %12676 = vmatpush1.bf16.msra.mxu0 %v12675_v34  ;;  %12530 = vmatprep.subr.bf16.mxu1 %v12529_v2  ;;  %v12691_v34 = vpack.c.bf16 %v6712_v20, %v6702_v54  ;;  %v8594_v2 = vld [vmem:[%s17897_s19 + $0x90] sm:$0xff]  ;;  %v12839_v9 = vpack.c.bf16 %v8577_v43, %v8576_v59  ;;  %v8601_v54 = vld [vmem:[%s17897_s19 + $0xc8] sm:$0xff]  ;;  %v8584_v59 = vld [vmem:[%s17897_s19 + $0x40] sm:$0xff] }
 0xa90   :  { %12678 = vmatprep.subr.bf16.mxu0 %v12677_v5  ;;  %v6732_v5 = vld [vmem:[#allocation10 + $0x130] sm:$0xff]  ;;  %v12841_v24 = vpack.c.bf16 %v8595_v4, %v8594_v2  ;;  %v8585_v43 = vld [vmem:[%s17897_s19 + $0x48] sm:$0xff]  ;;  %v8602_v2 = vld [vmem:[%s17897_s19 + $0xd0] sm:$0xff] }
 0xa91   :  { %v8603_v4 = vld [vmem:[%s17897_s19 + $0xd8] sm:$0xff]  ;;  %v12855_v57 = vpack.c.bf16 %v8585_v43, %v8584_v59  ;;  %v6882_v43 = vld [vmem:[#allocation10 + $0x5e0] sm:$0xff] }
 0xa92   :  { %12532 = vmatpush1.bf16.msra.mxu1 %v12531_v58  ;;  %v8578_v58 = vld [vmem:[%s17897_s19 + $0x10] sm:$0xff] }
 0xa93   :  { %12680 = vmatpush1.bf16.msra.mxu0 %v12679_v21  ;;  %12534 = vmatprep.subr.bf16.mxu1 %v12533_v63  ;;  %v8579_v21 = vld [vmem:[%s17897_s19 + $0x18] sm:$0xff]  ;;  %v12695_v63 = vpack.c.bf16 %v6732_v5, %v6722_v36  ;;  %v6802_v36 = vld [vmem:[#allocation10 + $0x360] sm:$0xff]  ;;  %v6812_v5 = vld [vmem:[#allocation10 + $0x3b0] sm:$0xff] }
 0xa94   :  { %12682 = vmatprep.subr.bf16.mxu0 %v12681_v6  ;;  %v6742_v6 = vld [vmem:[#allocation10 + $0x180] sm:$0xff]  ;;  %v12843_v30 = vpack.c.bf16 %v8579_v21, %v8578_v58  ;;  %v8587_v58 = vld [vmem:[%s17897_s19 + $0x58] sm:$0xff]  ;;  %v12711_v21 = vpack.c.bf16 %v6812_v5, %v6802_v36 }
 0xa95   :  { %v6902_v5 = vld [vmem:[#allocation10 + $0x680] sm:$0xff] }
 0xa96   :  { %12536 = vmatpush1.bf16.msra.mxu1 %v12535_v53  ;;  %v8581_v53 = vld [vmem:[%s17897_s19 + $0x28] sm:$0xff] }
 0xa97   :  { %12684 = vmatpush1.bf16.msra.mxu0 %v12683_v26  ;;  %12538 = vmatprep.subr.bf16.mxu1 %v12537_v39  ;;  %v12699_v26 = vpack.c.bf16 %v6752_v47, %v6742_v6  ;;  %v8598_v39 = vld [vmem:[%s17897_s19 + $0xb0] sm:$0xff]  ;;  %v6832_v6 = vld [vmem:[#allocation10 + $0x450] sm:$0xff]  ;;  %v6843_v47 = vld [vmem:[#allocation10 + $0x4a8] sm:$0xff] }
 0xa98   :  { %12686 = vmatprep.subr.bf16.mxu0 %v12685_v46  ;;  %v6762_v46 = vld [vmem:[#allocation10 + $0x220] sm:$0xff] }
 0xa99   :  { %v12703_v48 = vpack.c.bf16 %v6772_v52, %v6762_v46  ;;  %v6852_v46 = vld [vmem:[#allocation10 + $0x4f0] sm:$0xff]  ;;  %v6863_v52 = vld [vmem:[#allocation10 + $0x548] sm:$0xff] }
 0xa9a   :  { %12540 = vmatpush1.bf16.msra.mxu1 %v12539_v51  ;;  %v6793_v51 = vld [vmem:[#allocation10 + $0x318] sm:$0xff] }
 0xa9b   :  { %12688 = vmatpush1.bf16.msra.mxu0 %v12687_v22  ;;  %8089 = vmatprep.subr.mxu1 %v7439_v33  ;;  %v12847_v22 = vpack.c.bf16 %v8581_v53, %v8580_v13  ;;  %v12849_v33 = vpack.c.bf16 %v8599_v35, %v8598_v39  ;;  %v12705_v20 = vpack.c.bf16 %v6793_v51, %v6783_v40  ;;  %v8589_v13 = vld [vmem:[%s17897_s19 + $0x68] sm:$0xff]  ;;  %v8607_v39 = vld [vmem:[%s17897_s19 + $0xf8] sm:$0xff] }
 0xa9c   :  { %8302 = vmatprep.subr.mxu0 %v7441_v7  ;;  %v8582_v7 = vld [vmem:[%s17897_s19 + $0x30] sm:$0xff]  ;;  %v12717_v35 = vpack.c.bf16 %v6853_v27, %v6843_v47  ;;  %v6873_v40 = vld [vmem:[#allocation10 + $0x598] sm:$0xff]  ;;  %v6952_v47 = vld [vmem:[#allocation10 + $0x810] sm:$0xff] }
 0xa9d   :  { %v6963_v27 = vld [vmem:[#allocation10 + $0x868] sm:$0xff] }
 0xa9e   :  { %8090 = vmatpush1.msra.mxu1 %v7438_v41  ;;  %v8583_v41 = vld [vmem:[%s17897_s19 + $0x38] sm:$0xff] }
 0xa9f   :  { %8303 = vmatpush1.msra.mxu0 %v7440_v56  ;;  %9156 = vmatmul.mubr.msk.f32.vlgmr.msra.gmra.mrb[36].mxu1 %vm2873_vm5, %v17326_v38  ;;  %v12851_v56 = vpack.c.bf16 %v8583_v41, %v8582_v7  ;;  %v8591_v7 = vld [vmem:[%s17897_s19 + $0x78] sm:$0xff] }
 0xaa0   :  { %9157 = vmatmul.mubr.msk.f32.vlgmr.msra.gmra.mrb[44].mxu0 %vm2873_vm5, %v17326_v38  ;;  %12690 = vmatprep.subr.bf16.mxu1 %v12689_v42  ;;  %v12853_v42 = vpack.c.bf16 %v8601_v54, %v8600_v49  ;;  %v8625_v49 = vld [vmem:[%s17897_s19 + $0x188] sm:$0xff]  ;;  %v12721_v54 = vpack.c.bf16 %v6873_v40, %v6863_v52  ;;  %v6992_v52 = vld [vmem:[#allocation10 + $0x950] sm:$0xff]  ;;  %v7003_v40 = vld [vmem:[#allocation10 + $0x9a8] sm:$0xff] }
 0xaa1   :  { %12692 = vmatpush1.bf16.msra.mxu1 %v12691_v34  ;;  %8417 = vmatprep.mubr.f32.mxu1 %v17297_v44  ;;  %v12845_v44 = vpack.c.bf16 %v8597_v1, %v8596_v10  ;;  %v12707_v34 = vpack.c.bf16 %v6792_v55, %v6782_v37  ;;  %v8605_v10 = vld [vmem:[%s17897_s19 + $0xe8] sm:$0xff]  ;;  %v6872_v37 = vld [vmem:[#allocation10 + $0x590] sm:$0xff]  ;;  %v6883_v55 = vld [vmem:[#allocation10 + $0x5e8] sm:$0xff] }
 0xaa2   :  { %12694 = vmatprep.subr.bf16.mxu1 %v12693_v45  ;;  %12838 = vmatprep.subr.bf16.mxu0 %v12837_v8  ;;  %v12709_v45 = vpack.c.bf16 %v6813_v19, %v6803_v31  ;;  %v6823_v8 = vld [vmem:[#allocation10 + $0x408] sm:$0xff]  ;;  %v6893_v31 = vld [vmem:[#allocation10 + $0x638] sm:$0xff] }
 0xaa3   :  { %12840 = vmatpush3.bf16.msra.mxu0 %v12839_v9  ;;  %v12857_v9 = vpack.c.bf16 %v8603_v4, %v8602_v2  ;;  %v12713_v1 = vpack.c.bf16 %v6833_v16, %v6823_v8  ;;  %v12725_v59 = vpack.c.bf16 %v6893_v31, %v6883_v55  ;;  %v6903_v2 = vld [vmem:[#allocation10 + $0x688] sm:$0xff]  ;;  %v6913_v4 = vld [vmem:[#allocation10 + $0x6d8] sm:$0xff]  ;;  %v6912_v8 = vld [vmem:[#allocation10 + $0x6d0] sm:$0xff] }
 0xaa4   :  { %12842 = vmatprep.subr.bf16.mxu0 %v12841_v24  ;;  %v8586_v24 = vld [vmem:[%s17897_s19 + $0x50] sm:$0xff]  ;;  %v12729_v36 = vpack.c.bf16 %v6913_v4, %v6903_v2  ;;  %v6923_v16 = vld [vmem:[#allocation10 + $0x728] sm:$0xff]  ;;  %v7053_v2 = vld [vmem:[#allocation10 + $0xb38] sm:$0xff] }
 0xaa5   :  { %12696 = vmatpush1.bf16.msra.mxu1 %v12695_v63  ;;  %v8604_v63 = vld [vmem:[%s17897_s19 + $0xe0] sm:$0xff]  ;;  %v12859_v29 = vpack.c.bf16 %v8587_v58, %v8586_v24  ;;  %v6922_v58 = vld [vmem:[#allocation10 + $0x720] sm:$0xff] }
 0xaa6   :  { %12698 = vmatprep.subr.bf16.mxu1 %v12697_v23  ;;  %v6822_v23 = vld [vmem:[#allocation10 + $0x400] sm:$0xff] }
 0xaa7   :  { %12844 = vmatpush3.bf16.msra.mxu0 %v12843_v30  ;;  %v12861_v30 = vpack.c.bf16 %v8605_v10, %v8604_v63  ;;  %v12715_v53 = vpack.c.bf16 %v6832_v6, %v6822_v23  ;;  %v6943_v63 = vld [vmem:[#allocation10 + $0x7c8] sm:$0xff]  ;;  %v6953_v10 = vld [vmem:[#allocation10 + $0x818] sm:$0xff]  ;;  %v6942_v6 = vld [vmem:[#allocation10 + $0x7c0] sm:$0xff] }
 0xaa8   :  { %12846 = vmatprep.subr.bf16.mxu0 %v12845_v44  ;;  %v8588_v44 = vld [vmem:[%s17897_s19 + $0x60] sm:$0xff]  ;;  %v12737_v23 = vpack.c.bf16 %v6953_v10, %v6943_v63  ;;  %v8627_v63 = vld [vmem:[%s17897_s19 + $0x198] sm:$0xff] }
 0xaa9   :  { %12700 = vmatpush1.bf16.msra.mxu1 %v12699_v26  ;;  %v8606_v26 = vld [vmem:[%s17897_s19 + $0xf0] sm:$0xff]  ;;  %v12863_v51 = vpack.c.bf16 %v8589_v13, %v8588_v44 }
 0xaaa   :  { %12702 = vmatprep.subr.bf16.mxu1 %v12701_v62  ;;  %v6842_v62 = vld [vmem:[#allocation10 + $0x4a0] sm:$0xff] }
 0xaab   :  { %12848 = vmatpush3.bf16.msra.mxu0 %v12847_v22  ;;  %v12865_v22 = vpack.c.bf16 %v8607_v39, %v8606_v26  ;;  %v12719_v41 = vpack.c.bf16 %v6852_v46, %v6842_v62  ;;  %v6962_v13 = vld [vmem:[#allocation10 + $0x860] sm:$0xff]  ;;  %v6983_v26 = vld [vmem:[#allocation10 + $0x908] sm:$0xff]  ;;  %v6993_v39 = vld [vmem:[#allocation10 + $0x958] sm:$0xff] }
 0xaac   :  { %12850 = vmatprep.subr.bf16.mxu0 %v12849_v33  ;;  %v8590_v33 = vld [vmem:[%s17897_s19 + $0x70] sm:$0xff]  ;;  %v12745_v62 = vpack.c.bf16 %v6993_v39, %v6983_v26  ;;  %v7072_v26 = vld [vmem:[#allocation10 + $0xbd0] sm:$0xff]  ;;  %v8629_v39 = vld [vmem:[%s17897_s19 + $0x1a8] sm:$0xff] }
 0xaad   :  { %12704 = vmatpush1.bf16.msra.mxu1 %v12703_v48  ;;  %v8624_v48 = vld [vmem:[%s17897_s19 + $0x180] sm:$0xff]  ;;  %v12867_v19 = vpack.c.bf16 %v8591_v7, %v8590_v33  ;;  %v6982_v46 = vld [vmem:[#allocation10 + $0x900] sm:$0xff] }
 0xaae   :  { %12706 = vmatprep.subr.bf16.mxu1 %v12705_v20  ;;  %v6862_v20 = vld [vmem:[#allocation10 + $0x540] sm:$0xff]  ;;  %v17452_v7 = vld [vmem:[%s17896_s18] sm:$0xff] }
 0xaaf   :  { %12852 = vmatpush3.bf16.msra.mxu0 %v12851_v56  ;;  %v12869_v56 = vpack.c.bf16 %v8625_v49, %v8624_v48  ;;  %v7012_v48 = vld [vmem:[#allocation10 + $0x9f0] sm:$0xff]  ;;  %v7023_v49 = vld [vmem:[#allocation10 + $0xa48] sm:$0xff]  ;;  %v7455_v55 = vrot.slane %v17452_v7, %v14041_v12  ;;  %v7463_v31 = vrot.slane %v17452_v7, %v14052_v15  ;;  %v8609_v15 = vld [vmem:[%s17897_s19 + $0x108] sm:$0xff] }
 0xab0   :  { %12854 = vmatprep.subr.bf16.mxu0 %v12853_v42  ;;  %v12723_v42 = vpack.c.bf16 %v6872_v37, %v6862_v20  ;;  %v7451_v20 = vrot.slane %v17452_v7, %v14049_v14 }
 0xab1   :  { %12708 = vmatpush1.bf16.msra.mxu1 %v12707_v34  ;;  %v6892_v34 = vld [vmem:[#allocation10 + $0x630] sm:$0xff] }
 0xab2   :  { %12710 = vmatprep.subr.bf16.mxu1 %v12709_v45  ;;  %v12727_v45 = vpack.c.bf16 %v6892_v34, %v6882_v43  ;;  %v7043_v34 = vld [vmem:[#allocation10 + $0xae8] sm:$0xff] }
 0xab3   :  { %12856 = vmatpush3.bf16.msra.mxu0 %v12855_v57  ;;  %v6933_v57 = vld [vmem:[#allocation10 + $0x778] sm:$0xff] }
 0xab4   :  { %12858 = vmatprep.subr.bf16.mxu0 %v12857_v9  ;;  %v12731_v9 = vpack.c.bf16 %v6912_v8, %v6902_v5  ;;  %v12733_v24 = vpack.c.bf16 %v6933_v57, %v6923_v16  ;;  %v8608_v16 = vld [vmem:[%s17897_s19 + $0x100] sm:$0xff]  ;;  %v7042_v57 = vld [vmem:[#allocation10 + $0xae0] sm:$0xff] }
 0xab5   :  { %12712 = vmatpush1.bf16.msra.mxu1 %v12711_v21  ;;  %v6932_v21 = vld [vmem:[#allocation10 + $0x770] sm:$0xff] }
 0xab6   :  { %12714 = vmatprep.subr.bf16.mxu1 %v12713_v1  ;;  %v12735_v1 = vpack.c.bf16 %v6932_v21, %v6922_v58  ;;  %v7052_v58 = vld [vmem:[#allocation10 + $0xb30] sm:$0xff]  ;;  %v8626_v21 = vld [vmem:[%s17897_s19 + $0x190] sm:$0xff] }
 0xab7   :  { %12860 = vmatpush3.bf16.msra.mxu0 %v12859_v29  ;;  %v6973_v29 = vld [vmem:[#allocation10 + $0x8b8] sm:$0xff] }
 0xab8   :  { %12862 = vmatprep.subr.bf16.mxu0 %v12861_v30  ;;  %v12739_v30 = vpack.c.bf16 %v6952_v47, %v6942_v6  ;;  %v12741_v44 = vpack.c.bf16 %v6973_v29, %v6963_v27  ;;  %v12871_v6 = vpack.c.bf16 %v8609_v15, %v8608_v16  ;;  %v12759_v27 = vpack.c.bf16 %v7052_v58, %v7042_v57  ;;  %v8616_v57 = vld [vmem:[%s17897_s19 + $0x140] sm:$0xff] }
 0xab9   :  { %12716 = vmatpush1.bf16.msra.mxu1 %v12715_v53  ;;  %v6972_v53 = vld [vmem:[#allocation10 + $0x8b0] sm:$0xff]  ;;  %v12873_v29 = vpack.c.bf16 %v8627_v63, %v8626_v21  ;;  %v8634_v63 = vld [vmem:[%s17897_s19 + $0x1d0] sm:$0xff] }
 0xaba   :  { %12718 = vmatprep.subr.bf16.mxu1 %v12717_v35  ;;  %v12743_v35 = vpack.c.bf16 %v6972_v53, %v6962_v13  ;;  %v7062_v13 = vld [vmem:[#allocation10 + $0xb80] sm:$0xff]  ;;  %v7132_v21 = vld [vmem:[#allocation10 + $0xdb0] sm:$0xff] }
 0xabb   :  { %12864 = vmatpush3.bf16.msra.mxu0 %v12863_v51  ;;  %v7013_v51 = vld [vmem:[#allocation10 + $0x9f8] sm:$0xff] }
 0xabc   :  { %12866 = vmatprep.subr.bf16.mxu0 %v12865_v22  ;;  %v12747_v22 = vpack.c.bf16 %v6992_v52, %v6982_v46  ;;  %v12749_v33 = vpack.c.bf16 %v7013_v51, %v7003_v40  ;;  %v12763_v52 = vpack.c.bf16 %v7072_v26, %v7062_v13  ;;  %v8612_v51 = vld [vmem:[%s17897_s19 + $0x120] sm:$0xff]  ;;  %v8637_v26 = vld [vmem:[%s17897_s19 + $0x1e8] sm:$0xff] }
 0xabd   :  { %12720 = vmatpush1.bf16.msra.mxu1 %v12719_v41  ;;  %v7002_v41 = vld [vmem:[#allocation10 + $0x9a0] sm:$0xff] }
 0xabe   :  { %12722 = vmatprep.subr.bf16.mxu1 %v12721_v54  ;;  %v7033_v54 = vld [vmem:[#allocation10 + $0xa98] sm:$0xff]  ;;  %v12751_v37 = vpack.c.bf16 %v7012_v48, %v7002_v41  ;;  %v7092_v48 = vld [vmem:[#allocation10 + $0xc70] sm:$0xff] }
 0xabf   :  { %12868 = vmatpush3.bf16.msra.mxu0 %v12867_v19  ;;  %v12753_v19 = vpack.c.bf16 %v7033_v54, %v7023_v49  ;;  %v8630_v49 = vld [vmem:[%s17897_s19 + $0x1b0] sm:$0xff]  ;;  %v8631_v54 = vld [vmem:[%s17897_s19 + $0x1b8] sm:$0xff] }
 0xac0   :  { %12870 = vmatprep.subr.bf16.mxu0 %v12869_v56  ;;  %v7022_v56 = vld [vmem:[#allocation10 + $0xa40] sm:$0xff] }
 0xac1   :  { %12724 = vmatpush1.bf16.msra.mxu1 %v12723_v42  ;;  %v7032_v42 = vld [vmem:[#allocation10 + $0xa90] sm:$0xff] }
 0xac2   :  { %12726 = vmatprep.subr.bf16.mxu1 %v12725_v59  ;;  %v12755_v8 = vpack.c.bf16 %v7032_v42, %v7022_v56  ;;  %v8614_v56 = vld [vmem:[%s17897_s19 + $0x130] sm:$0xff]  ;;  %v8615_v42 = vld [vmem:[%s17897_s19 + $0x138] sm:$0xff] }
 0xac5   :  { %12728 = vmatpush1.bf16.msra.mxu1 %v12727_v45 }
 0xac6   :  { %12730 = vmatprep.subr.bf16.mxu1 %v12729_v36 }
 0xac9   :  { %12732 = vmatpush1.bf16.msra.mxu1 %v12731_v9 }
 0xaca   :  { %12734 = vmatprep.subr.bf16.mxu1 %v12733_v24  ;;  %v12757_v24 = vpack.c.bf16 %v7053_v2, %v7043_v34  ;;  %v7112_v2 = vld [vmem:[#allocation10 + $0xd10] sm:$0xff] }
 0xacd   :  { %12736 = vmatpush1.bf16.msra.mxu1 %v12735_v1  ;;  %v7063_v1 = vld [vmem:[#allocation10 + $0xb88] sm:$0xff] }
 0xace   :  { %12738 = vmatprep.subr.bf16.mxu1 %v12737_v23  ;;  %v7073_v23 = vld [vmem:[#allocation10 + $0xbd8] sm:$0xff] }
 0xad1   :  { %12740 = vmatpush1.bf16.msra.mxu1 %v12739_v30  ;;  %v8610_v30 = vld [vmem:[%s17897_s19 + $0x110] sm:$0xff] }
 0xad2   :  { %12742 = vmatprep.subr.bf16.mxu1 %v12741_v44  ;;  %v8611_v44 = vld [vmem:[%s17897_s19 + $0x118] sm:$0xff] }
 0xad3   :  { %v12875_v46 = vpack.c.bf16 %v8611_v44, %v8610_v30  ;;  %v8619_v30 = vld [vmem:[%s17897_s19 + $0x158] sm:$0xff]  ;;  %v7142_v44 = vld [vmem:[#allocation10 + $0xe00] sm:$0xff] }
 0xad5   :  { %12744 = vmatpush1.bf16.msra.mxu1 %v12743_v35  ;;  %v7083_v35 = vld [vmem:[#allocation10 + $0xc28] sm:$0xff] }
 0xad6   :  { %12746 = vmatprep.subr.bf16.mxu1 %v12745_v62  ;;  %v7093_v62 = vld [vmem:[#allocation10 + $0xc78] sm:$0xff] }
 0xad7   :  { %v12765_v41 = vpack.c.bf16 %v7093_v62, %v7083_v35 }
 0xad9   :  { %12748 = vmatpush1.bf16.msra.mxu1 %v12747_v22  ;;  %v8613_v22 = vld [vmem:[%s17897_s19 + $0x128] sm:$0xff] }
 0xada   :  { %12750 = vmatprep.subr.bf16.mxu1 %v12749_v33  ;;  %v7082_v33 = vld [vmem:[#allocation10 + $0xc20] sm:$0xff] }
 0xadb   :  { %v7709_v59 = vpop.f32.mrb[34].mxu1  ;;  %v17460_v43 = vpop.f32.mrb[42].mxu0 }
 0xadc   :  { %v7711_v4 = vpop.f32.mrb[35].mxu1  ;;  %v7924_v45 = vpop.f32.mrb[43].mxu0  ;;  %v13024_v36 = vadd.f32 %v7709_v59, %v7451_v20  ;;  %v7103_v20 = vld [vmem:[#allocation10 + $0xcc8] sm:$0xff]  ;;  %v7102_v59 = vld [vmem:[#allocation10 + $0xcc0] sm:$0xff] }
 0xadd   :  { %12752 = vmatpush1.bf16.msra.mxu1 %v12751_v37  ;;  %v13025_v5 = vadd.f32 %v7711_v4, %v7455_v55  ;;  %v13027_v9 = vadd.f32 %v7924_v45, %v7463_v31  ;;  %v7113_v37 = vld [vmem:[#allocation10 + $0xd18] sm:$0xff]  ;;  %v12879_v55 = vpack.c.bf16 %v8613_v22, %v8612_v51  ;;  %v12767_v31 = vpack.c.bf16 %v7092_v48, %v7082_v33  ;;  %v8632_v4 = vld [vmem:[%s17897_s19 + $0x1c0] sm:$0xff]  ;;  %v7162_v51 = vld [vmem:[#allocation10 + $0xea0] sm:$0xff] }
 0xade   :  { %12754 = vmatprep.subr.bf16.mxu1 %v12753_v19  ;;  %v8566_v47 = vmax.f32 %v13024_v36, 0.0  ;;  %v12881_v19 = vpack.c.bf16 %v8631_v54, %v8630_v49  ;;  %v12769_v34 = vpack.c.bf16 %v7113_v37, %v7103_v20  ;;  %v8633_v45 = vld [vmem:[%s17897_s19 + $0x1c8] sm:$0xff]  ;;  %v7123_v36 = vld [vmem:[#allocation10 + $0xd68] sm:$0xff]  ;;  %v12771_v16 = vpack.c.bf16 %v7112_v2, %v7102_v59  ;;  %v7172_v33 = vld [vmem:[#allocation10 + $0xef0] sm:$0xff] }
 0xadf   :  { %v8567_v10 = vmax.f32 %v13025_v5, 0.0  ;;  %v8569_v53 = vmax.f32 %v13027_v9, 0.0  ;;  %v7133_v5 = vld [vmem:[#allocation10 + $0xdb8] sm:$0xff]  ;;  %v12885_v15 = vpack.c.bf16 %v8633_v45, %v8632_v4  ;;  %v8639_v48 = vld [vmem:[%s17897_s19 + $0x1f8] sm:$0xff]  ;;  %v7459_v37 = vrot.slane %v17452_v7, %v14443_v50  ;;  %v8656_v50 = vld [vmem:[%s17897_s19 + $0x280] sm:$0xff] }
 0xae0   :  { %8418 = vmatmul.mubr.f32.vlgmr.msra.gmra.mrb[38].mxu1 %v17299_v17  ;;  %v12761_v17 = vpack.c.bf16 %v7073_v23, %v7063_v1  ;;  %v8617_v9 = vld [vmem:[%s17897_s19 + $0x148] sm:$0xff]  ;;  %v12773_v58 = vpack.c.bf16 %v7133_v5, %v7123_v36  ;;  %v7143_v1 = vld [vmem:[#allocation10 + $0xe08] sm:$0xff] }
 0xae1   :  { %12756 = vmatpush1.bf16.msra.mxu1 %v12755_v8  ;;  %8488 = vmatprep.mubr.f32.mxu1 %v17303_v25  ;;  %v8628_v25 = vld [vmem:[%s17897_s19 + $0x1a0] sm:$0xff]  ;;  %v12883_v8 = vpack.c.bf16 %v8615_v42, %v8614_v56  ;;  %v7153_v23 = vld [vmem:[#allocation10 + $0xe58] sm:$0xff]  ;;  %v7183_v49 = vld [vmem:[#allocation10 + $0xf48] sm:$0xff]  ;;  %v13026_v5 = vadd.f32 %v17460_v43, %v7459_v37 }
 0xae2   :  { %8800 = vmatprep.mubr.f32.mxu0 %v8567_v10  ;;  %12758 = vmatprep.subr.bf16.mxu1 %v12757_v24  ;;  %v12877_v40 = vpack.c.bf16 %v8629_v39, %v8628_v25  ;;  %v7122_v24 = vld [vmem:[#allocation10 + $0xd60] sm:$0xff]  ;;  %v8635_v10 = vld [vmem:[%s17897_s19 + $0x1d8] sm:$0xff]  ;;  %v12777_v13 = vpack.c.bf16 %v7153_v23, %v7143_v1  ;;  %v7173_v39 = vld [vmem:[#allocation10 + $0xef8] sm:$0xff] }
 0xae3   :  { %8801 = vmatmul.mubr.f32.vlgmr.msra.gmra.mrb[46].mxu0 %v8566_v47  ;;  %v12775_v47 = vpack.c.bf16 %v7132_v21, %v7122_v24  ;;  %v7163_v25 = vld [vmem:[#allocation10 + $0xea8] sm:$0xff]  ;;  %v7193_v54 = vld [vmem:[#allocation10 + $0xf98] sm:$0xff]  ;;  %v7182_v42 = vld [vmem:[#allocation10 + $0xf40] sm:$0xff]  ;;  %v8568_v23 = vmax.f32 %v13026_v5, 0.0 }
 0xae4   :  { %12872 = vmatpush3.bf16.msra.mxu0 %v12871_v6  ;;  %8870 = vmatprep.mubr.f32.mxu0 %v8569_v53  ;;  %v12887_v6 = vpack.c.bf16 %v8617_v9, %v8616_v57  ;;  %v7152_v53 = vld [vmem:[#allocation10 + $0xe50] sm:$0xff]  ;;  %v12781_v22 = vpack.c.bf16 %v7173_v39, %v7163_v25  ;;  %v8623_v56 = vld [vmem:[%s17897_s19 + $0x178] sm:$0xff]  ;;  %v12785_v59 = vpack.c.bf16 %v7193_v54, %v7183_v49  ;;  %v8657_v2 = vld [vmem:[%s17897_s19 + $0x288] sm:$0xff] }
 0xae5   :  { %12760 = vmatpush1.bf16.msra.mxu1 %v12759_v27  ;;  %12874 = vmatprep.subr.bf16.mxu0 %v12873_v29  ;;  %v12889_v27 = vpack.c.bf16 %v8635_v10, %v8634_v63  ;;  %v8618_v29 = vld [vmem:[%s17897_s19 + $0x150] sm:$0xff]  ;;  %v12779_v62 = vpack.c.bf16 %v7152_v53, %v7142_v44  ;;  %v7203_v4 = vld [vmem:[#allocation10 + $0xfe8] sm:$0xff]  ;;  %v7213_v45 = vld [vmem:[#allocation10 + $0x1038] sm:$0xff] }
 0xae6   :  { %12762 = vmatprep.subr.bf16.mxu1 %v12761_v17  ;;  %v8636_v17 = vld [vmem:[%s17897_s19 + $0x1e0] sm:$0xff]  ;;  %v12891_v35 = vpack.c.bf16 %v8619_v30, %v8618_v29  ;;  %v8641_v9 = vld [vmem:[%s17897_s19 + $0x208] sm:$0xff]  ;;  %v12789_v24 = vpack.c.bf16 %v7213_v45, %v7203_v4  ;;  %v8658_v43 = vld [vmem:[%s17897_s19 + $0x290] sm:$0xff] }
 0xae7   :  { %v8640_v57 = vld [vmem:[%s17897_s19 + $0x200] sm:$0xff]  ;;  %v8659_v21 = vld [vmem:[%s17897_s19 + $0x298] sm:$0xff]  ;;  %v7233_v10 = vld [vmem:[#allocation10 + $0x10d8] sm:$0xff] }
 0xae8   :  { %12876 = vmatpush3.bf16.msra.mxu0 %v12875_v46  ;;  %v12893_v46 = vpack.c.bf16 %v8637_v26, %v8636_v17  ;;  %v7223_v63 = vld [vmem:[#allocation10 + $0x1088] sm:$0xff]  ;;  %v12903_v1 = vpack.c.bf16 %v8641_v9, %v8640_v57  ;;  %v8642_v29 = vld [vmem:[%s17897_s19 + $0x210] sm:$0xff]  ;;  %v8660_v53 = vld [vmem:[%s17897_s19 + $0x2a0] sm:$0xff] }
 0xae9   :  { %12764 = vmatpush1.bf16.msra.mxu1 %v12763_v52  ;;  %12878 = vmatprep.subr.bf16.mxu0 %v12877_v40  ;;  %v8620_v52 = vld [vmem:[%s17897_s19 + $0x160] sm:$0xff]  ;;  %v8621_v40 = vld [vmem:[%s17897_s19 + $0x168] sm:$0xff]  ;;  %v8643_v30 = vld [vmem:[%s17897_s19 + $0x218] sm:$0xff]  ;;  %v12793_v44 = vpack.c.bf16 %v7233_v10, %v7223_v63 }
 0xaea   :  { %12766 = vmatprep.subr.bf16.mxu1 %v12765_v41  ;;  %v8638_v41 = vld [vmem:[%s17897_s19 + $0x1f0] sm:$0xff]  ;;  %v12895_v20 = vpack.c.bf16 %v8621_v40, %v8620_v52  ;;  %v8661_v17 = vld [vmem:[%s17897_s19 + $0x2a8] sm:$0xff]  ;;  %v7243_v26 = vld [vmem:[#allocation10 + $0x1128] sm:$0xff]  ;;  %v12907_v39 = vpack.c.bf16 %v8643_v30, %v8642_v29 }
 0xaeb   :  { %v7253_v25 = vld [vmem:[#allocation10 + $0x1178] sm:$0xff]  ;;  %v8644_v52 = vld [vmem:[%s17897_s19 + $0x220] sm:$0xff]  ;;  %v7262_v37 = vld [vmem:[#allocation10 + $0x11c0] sm:$0xff] }
 0xaec   :  { %12880 = vmatpush3.bf16.msra.mxu0 %v12879_v55  ;;  %v12783_v55 = vpack.c.bf16 %v7172_v33, %v7162_v51  ;;  %v8645_v40 = vld [vmem:[%s17897_s19 + $0x228] sm:$0xff]  ;;  %v12797_v51 = vpack.c.bf16 %v7253_v25, %v7243_v26  ;;  %v8662_v33 = vld [vmem:[%s17897_s19 + $0x2b0] sm:$0xff]  ;;  %v7292_v57 = vld [vmem:[#allocation10 + $0x12b0] sm:$0xff] }
 0xaed   :  { %12768 = vmatpush1.bf16.msra.mxu1 %v12767_v31  ;;  %12882 = vmatprep.subr.bf16.mxu0 %v12881_v19  ;;  %v12897_v31 = vpack.c.bf16 %v8639_v48, %v8638_v41  ;;  %v8622_v19 = vld [vmem:[%s17897_s19 + $0x170] sm:$0xff]  ;;  %v8663_v41 = vld [vmem:[%s17897_s19 + $0x2b8] sm:$0xff]  ;;  %v7273_v49 = vld [vmem:[#allocation10 + $0x1218] sm:$0xff]  ;;  %v12911_v54 = vpack.c.bf16 %v8645_v40, %v8644_v52 }
 0xaee   :  { %12770 = vmatprep.subr.bf16.mxu1 %v12769_v34  ;;  %v7192_v34 = vld [vmem:[#allocation10 + $0xf90] sm:$0xff]  ;;  %v12899_v36 = vpack.c.bf16 %v8623_v56, %v8622_v19  ;;  %v7263_v48 = vld [vmem:[#allocation10 + $0x11c8] sm:$0xff]  ;;  %v8666_v9 = vld [vmem:[%s17897_s19 + $0x2d0] sm:$0xff] }
 0xaef   :  { %v8647_v19 = vld [vmem:[%s17897_s19 + $0x238] sm:$0xff]  ;;  %v12801_v56 = vpack.c.bf16 %v7273_v49, %v7263_v48  ;;  %v7302_v10 = vld [vmem:[#allocation10 + $0x1300] sm:$0xff]  ;;  %v8668_v29 = vld [vmem:[%s17897_s19 + $0x2e0] sm:$0xff] }
 0xaf0   :  { %12884 = vmatpush3.bf16.msra.mxu0 %v12883_v8  ;;  %v12787_v8 = vpack.c.bf16 %v7192_v34, %v7182_v42  ;;  %v7272_v42 = vld [vmem:[#allocation10 + $0x1210] sm:$0xff]  ;;  %v8665_v34 = vld [vmem:[%s17897_s19 + $0x2c8] sm:$0xff]  ;;  %v7322_v26 = vld [vmem:[#allocation10 + $0x13a0] sm:$0xff] }
 0xaf1   :  { %12772 = vmatpush1.bf16.msra.mxu1 %v12771_v16  ;;  %12886 = vmatprep.subr.bf16.mxu0 %v12885_v15  ;;  %v7202_v16 = vld [vmem:[#allocation10 + $0xfe0] sm:$0xff]  ;;  %v12901_v15 = vpack.c.bf16 %v8657_v2, %v8656_v50  ;;  %v7283_v50 = vld [vmem:[#allocation10 + $0x1268] sm:$0xff]  ;;  %v7293_v2 = vld [vmem:[#allocation10 + $0x12b8] sm:$0xff]  ;;  %v12803_v45 = vpack.c.bf16 %v7272_v42, %v7262_v37 }
 0xaf2   :  { %12774 = vmatprep.subr.bf16.mxu1 %v12773_v58  ;;  %v7212_v58 = vld [vmem:[#allocation10 + $0x1030] sm:$0xff]  ;;  %v8669_v30 = vld [vmem:[%s17897_s19 + $0x2e8] sm:$0xff]  ;;  %v8670_v52 = vld [vmem:[%s17897_s19 + $0x2f0] sm:$0xff] }
 0xaf3   :  { %v12925_v25 = vpack.c.bf16 %v8669_v30, %v8668_v29  ;;  %v8671_v40 = vld [vmem:[%s17897_s19 + $0x2f8] sm:$0xff]  ;;  %v8654_v49 = vld [vmem:[%s17897_s19 + $0x270] sm:$0xff]  ;;  %v8689_v42 = vld [vmem:[%s17897_s19 + $0x388] sm:$0xff]  ;;  %v7467_v30 = vrot.slane %v17452_v7, %v14850_v60 }
 0xaf4   :  { %12888 = vmatpush3.bf16.msra.mxu0 %v12887_v6  ;;  %v12791_v6 = vpack.c.bf16 %v7212_v58, %v7202_v16  ;;  %v8649_v16 = vld [vmem:[%s17897_s19 + $0x248] sm:$0xff]  ;;  %v7303_v58 = vld [vmem:[#allocation10 + $0x1308] sm:$0xff]  ;;  %v12929_v48 = vpack.c.bf16 %v8671_v40, %v8670_v52  ;;  %v7342_v37 = vld [vmem:[#allocation10 + $0x1440] sm:$0xff] }
 0xaf5   :  { %12776 = vmatpush1.bf16.msra.mxu1 %v12775_v47  ;;  %12890 = vmatprep.subr.bf16.mxu0 %v12889_v27  ;;  %v7222_v47 = vld [vmem:[#allocation10 + $0x1080] sm:$0xff]  ;;  %v12905_v27 = vpack.c.bf16 %v8659_v21, %v8658_v43  ;;  %v7313_v43 = vld [vmem:[#allocation10 + $0x1358] sm:$0xff] }
 0xaf6   :  { %12778 = vmatprep.subr.bf16.mxu1 %v12777_v13  ;;  %v7232_v13 = vld [vmem:[#allocation10 + $0x10d0] sm:$0xff]  ;;  %v7442_v29 = vld [vmem:[#allocation10 + $0x1760] sm:$0xff]  ;;  %v8673_v60 = vld [vmem:[%s17897_s19 + $0x308] sm:$0xff] }
 0xaf8   :  { %12892 = vmatpush3.bf16.msra.mxu0 %v12891_v35  ;;  %v12795_v35 = vpack.c.bf16 %v7232_v13, %v7222_v47  ;;  %v12809_v47 = vpack.c.bf16 %v7313_v43, %v7303_v58  ;;  %v7333_v13 = vld [vmem:[#allocation10 + $0x13f8] sm:$0xff] }
 0xaf9   :  { %12780 = vmatpush1.bf16.msra.mxu1 %v12779_v62  ;;  %12894 = vmatprep.subr.bf16.mxu0 %v12893_v46  ;;  %v7242_v62 = vld [vmem:[#allocation10 + $0x1120] sm:$0xff]  ;;  %v12909_v46 = vpack.c.bf16 %v8661_v17, %v8660_v53 }
 0xafa   :  { %12782 = vmatprep.subr.bf16.mxu1 %v12781_v22  ;;  %v7252_v22 = vld [vmem:[#allocation10 + $0x1170] sm:$0xff] }
 0xafc   :  { %12896 = vmatpush3.bf16.msra.mxu0 %v12895_v20  ;;  %v12799_v20 = vpack.c.bf16 %v7252_v22, %v7242_v62  ;;  %v7353_v22 = vld [vmem:[#allocation10 + $0x1498] sm:$0xff] }
 0xafd   :  { %12784 = vmatpush1.bf16.msra.mxu1 %v12783_v55  ;;  %12898 = vmatprep.subr.bf16.mxu0 %v12897_v31  ;;  %v12913_v55 = vpack.c.bf16 %v8663_v41, %v8662_v33  ;;  %v8646_v31 = vld [vmem:[%s17897_s19 + $0x230] sm:$0xff] }
 0xafe   :  { %12786 = vmatprep.subr.bf16.mxu1 %v12785_v59  ;;  %v8664_v59 = vld [vmem:[%s17897_s19 + $0x2c0] sm:$0xff]  ;;  %v12915_v4 = vpack.c.bf16 %v8647_v19, %v8646_v31  ;;  %v7363_v31 = vld [vmem:[#allocation10 + $0x14e8] sm:$0xff]  ;;  %v7373_v19 = vld [vmem:[#allocation10 + $0x1538] sm:$0xff] }
 0xaff   :  { %v12917_v5 = vpack.c.bf16 %v8665_v34, %v8664_v59 }
 0xb00   :  { %12900 = vmatpush3.bf16.msra.mxu0 %v12899_v36  ;;  %v7282_v36 = vld [vmem:[#allocation10 + $0x1260] sm:$0xff] }
 0xb01   :  { %12788 = vmatpush1.bf16.msra.mxu1 %v12787_v8  ;;  %12902 = vmatprep.subr.bf16.mxu0 %v12901_v15  ;;  %v8648_v8 = vld [vmem:[%s17897_s19 + $0x240] sm:$0xff]  ;;  %v12805_v15 = vpack.c.bf16 %v7293_v2, %v7283_v50  ;;  %v12807_v63 = vpack.c.bf16 %v7292_v57, %v7282_v36  ;;  %v12821_v50 = vpack.c.bf16 %v7373_v19, %v7363_v31  ;;  %v7362_v2 = vld [vmem:[#allocation10 + $0x14e0] sm:$0xff]  ;;  %v7383_v36 = vld [vmem:[#allocation10 + $0x1588] sm:$0xff] }
 0xb02   :  { %12790 = vmatprep.subr.bf16.mxu1 %v12789_v24  ;;  %v8667_v24 = vld [vmem:[%s17897_s19 + $0x2d8] sm:$0xff]  ;;  %v12919_v21 = vpack.c.bf16 %v8649_v16, %v8648_v8  ;;  %v7392_v57 = vld [vmem:[#allocation10 + $0x15d0] sm:$0xff]  ;;  %v8694_v31 = vld [vmem:[%s17897_s19 + $0x3b0] sm:$0xff] }
 0xb03   :  { %8871 = vmatmul.mubr.f32.vlgmr.msra.gmra.mrb[48].mxu0 %v8568_v23  ;;  %v8650_v23 = vld [vmem:[%s17897_s19 + $0x250] sm:$0xff]  ;;  %v8695_v19 = vld [vmem:[%s17897_s19 + $0x3b8] sm:$0xff] }
 0xb04   :  { %12904 = vmatpush3.bf16.msra.mxu0 %v12903_v1  ;;  %v12921_v1 = vpack.c.bf16 %v8667_v24, %v8666_v9  ;;  %v7403_v9 = vld [vmem:[#allocation10 + $0x1628] sm:$0xff]  ;;  %v7413_v24 = vld [vmem:[#allocation10 + $0x1678] sm:$0xff] }
 0xb05   :  { %12792 = vmatpush1.bf16.msra.mxu1 %v12791_v6  ;;  %12906 = vmatprep.subr.bf16.mxu0 %v12905_v27  ;;  %v8651_v6 = vld [vmem:[%s17897_s19 + $0x258] sm:$0xff]  ;;  %v7312_v27 = vld [vmem:[#allocation10 + $0x1350] sm:$0xff]  ;;  %v12829_v43 = vpack.c.bf16 %v7413_v24, %v7403_v9  ;;  %v8682_v9 = vld [vmem:[%s17897_s19 + $0x350] sm:$0xff] }
 0xb06   :  { %12794 = vmatprep.subr.bf16.mxu1 %v12793_v44  ;;  %v7323_v44 = vld [vmem:[#allocation10 + $0x13a8] sm:$0xff]  ;;  %v12923_v53 = vpack.c.bf16 %v8651_v6, %v8650_v23  ;;  %v12811_v17 = vpack.c.bf16 %v7312_v27, %v7302_v10  ;;  %v7432_v6 = vld [vmem:[#allocation10 + $0x1710] sm:$0xff] }
 0xb07   :  { %v12813_v62 = vpack.c.bf16 %v7333_v13, %v7323_v44  ;;  %v7423_v10 = vld [vmem:[#allocation10 + $0x16c8] sm:$0xff]  ;;  %v7471_v44 = vrot.slane %v17452_v7, %v207_v3  ;;  %v7479_v13 = vrot.slane %v17452_v7, %v215_v18  ;;  %v8690_v3 = vld [vmem:[%s17897_s19 + $0x390] sm:$0xff] }
 0xb08   :  { %12908 = vmatpush3.bf16.msra.mxu0 %v12907_v39  ;;  %v8652_v39 = vld [vmem:[%s17897_s19 + $0x260] sm:$0xff]  ;;  %v7443_v27 = vld [vmem:[#allocation10 + $0x1768] sm:$0xff] }
 0xb09   :  { %12796 = vmatpush1.bf16.msra.mxu1 %v12795_v35  ;;  %12910 = vmatprep.subr.bf16.mxu0 %v12909_v46  ;;  %v8653_v35 = vld [vmem:[%s17897_s19 + $0x268] sm:$0xff]  ;;  %v7332_v46 = vld [vmem:[#allocation10 + $0x13f0] sm:$0xff]  ;;  %v8691_v18 = vld [vmem:[%s17897_s19 + $0x398] sm:$0xff] }
 0xb0a   :  { %12798 = vmatprep.subr.bf16.mxu1 %v12797_v51  ;;  %v7343_v51 = vld [vmem:[#allocation10 + $0x1448] sm:$0xff]  ;;  %v12927_v33 = vpack.c.bf16 %v8653_v35, %v8652_v39  ;;  %v12815_v41 = vpack.c.bf16 %v7332_v46, %v7322_v26 }
 0xb0b   :  { %v8683_v24 = vld [vmem:[%s17897_s19 + $0x358] sm:$0xff] }
 0xb0c   :  { %12912 = vmatpush3.bf16.msra.mxu0 %v12911_v54  ;;  %v8655_v54 = vld [vmem:[%s17897_s19 + $0x278] sm:$0xff] }
 0xb0d   :  { %12800 = vmatpush1.bf16.msra.mxu1 %v12799_v20  ;;  %12914 = vmatprep.subr.bf16.mxu0 %v12913_v55  ;;  %v12817_v20 = vpack.c.bf16 %v7353_v22, %v7343_v51  ;;  %v7352_v55 = vld [vmem:[#allocation10 + $0x1490] sm:$0xff]  ;;  %v12931_v59 = vpack.c.bf16 %v8655_v54, %v8654_v49  ;;  %v12937_v51 = vpack.c.bf16 %v8691_v18, %v8690_v3  ;;  %v8674_v22 = vld [vmem:[%s17897_s19 + $0x310] sm:$0xff]  ;;  %v8693_v49 = vld [vmem:[%s17897_s19 + $0x3a8] sm:$0xff] }
 0xb0e   :  { %12802 = vmatprep.subr.bf16.mxu1 %v12801_v56  ;;  %v8688_v56 = vld [vmem:[%s17897_s19 + $0x380] sm:$0xff]  ;;  %v12819_v34 = vpack.c.bf16 %v7352_v55, %v7342_v37  ;;  %v8677_v55 = vld [vmem:[%s17897_s19 + $0x328] sm:$0xff] }
 0xb0f   :  { %v8676_v37 = vld [vmem:[%s17897_s19 + $0x320] sm:$0xff] }
 0xb10   :  { %12916 = vmatpush3.bf16.msra.mxu0 %v12915_v4  ;;  %v7372_v4 = vld [vmem:[#allocation10 + $0x1530] sm:$0xff] }
 0xb11   :  { %12804 = vmatpush1.bf16.msra.mxu1 %v12803_v45  ;;  %12918 = vmatprep.subr.bf16.mxu0 %v12917_v5  ;;  %v12933_v45 = vpack.c.bf16 %v8689_v42, %v8688_v56  ;;  %v7393_v5 = vld [vmem:[#allocation10 + $0x15d8] sm:$0xff]  ;;  %v12823_v8 = vpack.c.bf16 %v7372_v4, %v7362_v2  ;;  %v12943_v56 = vpack.c.bf16 %v8677_v55, %v8676_v37  ;;  %v8712_v18 = vld [vmem:[%s17897_s19 + $0x440] sm:$0xff] }
 0xb12   :  { %12806 = vmatprep.subr.bf16.mxu1 %v12805_v15  ;;  %v12825_v16 = vpack.c.bf16 %v7393_v5, %v7383_v36  ;;  %v7382_v15 = vld [vmem:[#allocation10 + $0x1580] sm:$0xff]  ;;  %v12945_v42 = vpack.c.bf16 %v8695_v19, %v8694_v31  ;;  %v8697_v2 = vld [vmem:[%s17897_s19 + $0x3c8] sm:$0xff]  ;;  %v8680_v36 = vld [vmem:[%s17897_s19 + $0x340] sm:$0xff] }
 0xb13   :  { %v12827_v58 = vpack.c.bf16 %v7392_v57, %v7382_v15  ;;  %v8681_v5 = vld [vmem:[%s17897_s19 + $0x348] sm:$0xff] }
 0xb14   :  { %12920 = vmatpush3.bf16.msra.mxu0 %v12919_v21  ;;  %v7402_v21 = vld [vmem:[#allocation10 + $0x1620] sm:$0xff]  ;;  %v12951_v15 = vpack.c.bf16 %v8681_v5, %v8680_v36  ;;  %v8721_v37 = vld [vmem:[%s17897_s19 + $0x488] sm:$0xff] }
 0xb15   :  { %12808 = vmatpush1.bf16.msra.mxu1 %v12807_v63  ;;  %12922 = vmatprep.subr.bf16.mxu0 %v12921_v1  ;;  %v7412_v63 = vld [vmem:[#allocation10 + $0x1670] sm:$0xff] }
 0xb16   :  { %12810 = vmatprep.subr.bf16.mxu1 %v12809_v47  ;;  %v12831_v1 = vpack.c.bf16 %v7412_v63, %v7402_v21  ;;  %v12955_v21 = vpack.c.bf16 %v8683_v24, %v8682_v9 }
 0xb18   :  { %12924 = vmatpush3.bf16.msra.mxu0 %v12923_v53 }
 0xb19   :  { %12812 = vmatpush1.bf16.msra.mxu1 %v12811_v17  ;;  %12926 = vmatprep.subr.bf16.mxu0 %v12925_v25 }
 0xb1a   :  { %12814 = vmatprep.subr.bf16.mxu1 %v12813_v62 }
 0xb1c   :  { %12928 = vmatpush3.bf16.msra.mxu0 %v12927_v33  ;;  %v8675_v33 = vld [vmem:[%s17897_s19 + $0x318] sm:$0xff] }
 0xb1d   :  { %12816 = vmatpush1.bf16.msra.mxu1 %v12815_v41  ;;  %12930 = vmatprep.subr.bf16.mxu0 %v12929_v48  ;;  %v8692_v48 = vld [vmem:[%s17897_s19 + $0x3a0] sm:$0xff]  ;;  %v12939_v54 = vpack.c.bf16 %v8675_v33, %v8674_v22  ;;  %v8717_v33 = vld [vmem:[%s17897_s19 + $0x468] sm:$0xff] }
 0xb1e   :  { %12818 = vmatprep.subr.bf16.mxu1 %v12817_v20  ;;  %v12941_v20 = vpack.c.bf16 %v8693_v49, %v8692_v48  ;;  %v8716_v22 = vld [vmem:[%s17897_s19 + $0x460] sm:$0xff]  ;;  %v8718_v48 = vld [vmem:[%s17897_s19 + $0x470] sm:$0xff]  ;;  %v8719_v49 = vld [vmem:[%s17897_s19 + $0x478] sm:$0xff] }
 0xb20   :  { %8489 = vmatmul.mubr.f32.vlgmr.msra.gmra.mrb[38].mxu1 %v17319_v28  ;;  %12932 = vmatpush3.bf16.msra.mxu0 %v12931_v59  ;;  %v7433_v28 = vld [vmem:[#allocation10 + $0x1718] sm:$0xff]  ;;  %v8678_v59 = vld [vmem:[%s17897_s19 + $0x330] sm:$0xff] }
 0xb21   :  { %12820 = vmatpush1.bf16.msra.mxu1 %v12819_v34  ;;  %8559 = vmatprep.mubr.f32.mxu1 %v13287_v0  ;;  %v12833_v23 = vpack.c.bf16 %v7433_v28, %v7423_v10  ;;  %v7422_v0 = vld [vmem:[#allocation10 + $0x16c0] sm:$0xff]  ;;  %v8679_v34 = vld [vmem:[%s17897_s19 + $0x338] sm:$0xff]  ;;  %v8684_v10 = vld [vmem:[%s17897_s19 + $0x360] sm:$0xff] }
 0xb22   :  { %12822 = vmatprep.subr.bf16.mxu1 %v12821_v50  ;;  %12934 = vmatprep.subr.bf16.mxu0 %v12933_v45  ;;  %v12835_v47 = vpack.c.bf16 %v7432_v6, %v7422_v0  ;;  %v8696_v50 = vld [vmem:[%s17897_s19 + $0x3c0] sm:$0xff]  ;;  %v12947_v4 = vpack.c.bf16 %v8679_v34, %v8678_v59  ;;  %v8685_v28 = vld [vmem:[%s17897_s19 + $0x368] sm:$0xff]  ;;  %v7475_v6 = vrot.slane %v17452_v7, %v211_v32 }
 0xb23   :  { %v12949_v45 = vpack.c.bf16 %v8697_v2, %v8696_v50  ;;  %v12959_v0 = vpack.c.bf16 %v8685_v28, %v8684_v10  ;;  %v8705_v32 = vld [vmem:[%s17897_s19 + $0x408] sm:$0xff]  ;;  %v8724_v50 = vld [vmem:[%s17897_s19 + $0x4a0] sm:$0xff] }
 0xb24   :  { %v12966_v7 = vpack.c.bf16 %v8705_v32, %v8704_v11  ;;  %v8725_v2 = vld [vmem:[%s17897_s19 + $0x4a8] sm:$0xff] }
 0xb25   :  { %12824 = vmatpush1.bf16.msra.mxu1 %v12823_v8  ;;  %v8698_v8 = vld [vmem:[%s17897_s19 + $0x3d0] sm:$0xff] }
 0xb26   :  { %12826 = vmatprep.subr.bf16.mxu1 %v12825_v16  ;;  %v8699_v16 = vld [vmem:[%s17897_s19 + $0x3d8] sm:$0xff] }
 0xb27   :  { %v12953_v57 = vpack.c.bf16 %v8699_v16, %v8698_v8 }
 0xb29   :  { %12828 = vmatpush1.bf16.msra.mxu1 %v12827_v58  ;;  %v8700_v58 = vld [vmem:[%s17897_s19 + $0x3e0] sm:$0xff] }
 0xb2a   :  { %12830 = vmatprep.subr.bf16.mxu1 %v12829_v43  ;;  %v8701_v43 = vld [vmem:[%s17897_s19 + $0x3e8] sm:$0xff] }
 0xb2b   :  { %v12957_v63 = vpack.c.bf16 %v8701_v43, %v8700_v58 }
 0xb2d   :  { %12832 = vmatpush1.bf16.msra.mxu1 %v12831_v1  ;;  %v8702_v1 = vld [vmem:[%s17897_s19 + $0x3f0] sm:$0xff] }
 0xb2e   :  { %12834 = vmatprep.subr.bf16.mxu1 %v12833_v23  ;;  %v8703_v23 = vld [vmem:[%s17897_s19 + $0x3f8] sm:$0xff] }
 0xb31   :  { %12836 = vmatpush1.bf16.msra.mxu1 %v12835_v47  ;;  %v12961_v47 = vpack.c.bf16 %v8703_v23, %v8702_v1 }
 0xb32   :  { %8515 = vmatprep.subr.mxu1 %v7443_v27  ;;  %v8686_v27 = vld [vmem:[%s17897_s19 + $0x370] sm:$0xff] }
 0xb35   :  { %8516 = vmatpush1.msra.mxu1 %v7442_v29  ;;  %v8687_v29 = vld [vmem:[%s17897_s19 + $0x378] sm:$0xff] }
 0xb36   :  { %9158 = vmatmul.mubr.msk.f32.vlgmr.msra.gmra.mrb[38].mxu1 %vm2873_vm5, %v17326_v38  ;;  %v8672_v38 = vld [vmem:[%s17897_s19 + $0x300] sm:$0xff] }
 0xb37   :  { %v12935_v52 = vpack.c.bf16 %v8673_v60, %v8672_v38  ;;  %v8709_v38 = vld [vmem:[%s17897_s19 + $0x428] sm:$0xff] }
 0xb72   :  { %v8135_v53 = vpop.f32.mrb[36].mxu1 }
 0xb73   :  { %v13028_v17 = vadd.f32 %v8135_v53, %v7467_v30  ;;  %v17671_v26 = vpop.f32.mrb[44].mxu0  ;;  %v8137_v25 = vpop.f32.mrb[37].mxu1  ;;  %v12963_v30 = vpack.c.bf16 %v8687_v29, %v8686_v27  ;;  %v8706_v53 = vld [vmem:[%s17897_s19 + $0x410] sm:$0xff] }
 0xb74   :  { %v13029_v39 = vadd.f32 %v8137_v25, %v7471_v44  ;;  %v8350_v35 = vpop.f32.mrb[45].mxu0  ;;  %v13030_v44 = vadd.f32 %v17671_v26, %v7475_v6  ;;  %v8708_v25 = vld [vmem:[%s17897_s19 + $0x420] sm:$0xff] }
 0xb75   :  { %v13031_v62 = vadd.f32 %v8350_v35, %v7479_v13  ;;  %v8570_v40 = vmax.f32 %v13028_v17, 0.0  ;;  %v8707_v17 = vld [vmem:[%s17897_s19 + $0x418] sm:$0xff]  ;;  %v12972_v60 = vpack.c.bf16 %v8709_v38, %v8708_v25 }
 0xb76   :  { %v8571_v46 = vmax.f32 %v13029_v39, 0.0  ;;  %v8572_v13 = vmax.f32 %v13030_v44, 0.0  ;;  %v12969_v26 = vpack.c.bf16 %v8707_v17, %v8706_v53  ;;  %v8710_v39 = vld [vmem:[%s17897_s19 + $0x430] sm:$0xff]  ;;  %v8711_v35 = vld [vmem:[%s17897_s19 + $0x438] sm:$0xff] }
 0xb77   :  { %v8573_v41 = vmax.f32 %v13031_v62, 0.0  ;;  %v12975_v3 = vpack.c.bf16 %v8711_v35, %v8710_v39  ;;  %v8713_v62 = vld [vmem:[%s17897_s19 + $0x448] sm:$0xff] }
 0xb78   :  { %8940 = vmatprep.mubr.f32.mxu0 %v8571_v46  ;;  %v12978_v46 = vpack.c.bf16 %v8713_v62, %v8712_v18 }
 0xb79   :  { %8941 = vmatmul.mubr.f32.vlgmr.msra.gmra.mrb[50].mxu0 %v8570_v40  ;;  %v8715_v40 = vld [vmem:[%s17897_s19 + $0x458] sm:$0xff] }
 0xb7a   :  { %12936 = vmatpush3.bf16.msra.mxu0 %v12935_v52  ;;  %9010 = vmatprep.mubr.f32.mxu0 %v8573_v41  ;;  %v8714_v52 = vld [vmem:[%s17897_s19 + $0x450] sm:$0xff]  ;;  %v12984_v41 = vpack.c.bf16 %v8717_v33, %v8716_v22 }
 0xb7b   :  { %12938 = vmatprep.subr.bf16.mxu0 %v12937_v51  ;;  %v12981_v51 = vpack.c.bf16 %v8715_v40, %v8714_v52 }
 0xb7e   :  { %12940 = vmatpush3.bf16.msra.mxu0 %v12939_v54  ;;  %v12987_v54 = vpack.c.bf16 %v8719_v49, %v8718_v48 }
 0xb7f   :  { %12942 = vmatprep.subr.bf16.mxu0 %v12941_v20  ;;  %v8720_v20 = vld [vmem:[%s17897_s19 + $0x480] sm:$0xff] }
 0xb80   :  { %v12990_v31 = vpack.c.bf16 %v8721_v37, %v8720_v20 }
 0xb82   :  { %12944 = vmatpush3.bf16.msra.mxu0 %v12943_v56  ;;  %v8722_v56 = vld [vmem:[%s17897_s19 + $0x490] sm:$0xff] }
 0xb83   :  { %12946 = vmatprep.subr.bf16.mxu0 %v12945_v42  ;;  %v8723_v42 = vld [vmem:[%s17897_s19 + $0x498] sm:$0xff]  ;;  %s13291_s19 = smov [#allocation11]  }
 0xb84   :  { %v12993_v34 = vpack.c.bf16 %v8723_v42, %v8722_v56 }
 0xb86   :  { %12948 = vmatpush3.bf16.msra.mxu0 %v12947_v4  ;;  %v12996_v4 = vpack.c.bf16 %v8725_v2, %v8724_v50 }
 0xb87   :  { %12950 = vmatprep.subr.bf16.mxu0 %v12949_v45  ;;  %v9159_v45 = vld [vmem:[%s17898_s20] ss:$0 sm:$0xff]  ;;  %s9093_s20 = sshll.u32 %s13291_s19, 4  ;;  %s9094_s20 = int_to_ptr.vmem [resolvable:$true] %s9093_s20 }
 0xb88   :  { %p13227_p13 = scmp.lt.s32.totalorder %s9094_s20, %s9094_s20 }
 0xb8a   :  { %12952 = vmatpush3.bf16.msra.mxu0 %v12951_v15 }
 0xb8b   :  { %12954 = vmatprep.subr.bf16.mxu0 %v12953_v57  ;;  %v7445_v57 = vld [vmem:[%s17896_s18 + $0x8] sm:$0x3]  ;;  %s13222_s18 = scalar_lea.vmem %s9094_s20, 384 }
 0xb8c   :  { %v7483_v9 = vrot.slane %v7445_v57, %v14049_v14  ;;  %v7487_v24 = vrot.slane %v7445_v57, %v14041_v12  ;;  %p13223_p12 = scmp.ne.s32.totalorder %s9094_s20, %s13222_s18  ;;  %p13228_p0 = scmp.lt.s32.totalorder %s13222_s18, %s13222_s18 }
 0xb8e   :  { %12956 = vmatpush3.bf16.msra.mxu0 %v12955_v21  ;;  %p13229_p1 = por %p13228_p0, %p13227_p13 }
 0xb8f   :  { %12958 = vmatprep.subr.bf16.mxu0 %v12957_v63 }
 0xb90   :  { %p13230_p2 = pnand %p13229_p1, %p13223_p12 }
 0xb92   :  { %12960 = vmatpush3.bf16.msra.mxu0 %v12959_v0 }
 0xb93   :  { %12962 = vmatprep.subr.bf16.mxu0 %v12961_v47 }
 0xb96   :  { %12964 = vmatpush3.bf16.msra.mxu0 %v12963_v30 }
 0xb97   :  { %12965 = vmatprep.subr.bf16.mxu0 %v13289_v61 }
 0xb99   :  { %9011 = vmatmul.mubr.f32.vlgmr.msra.gmra.mrb[52].mxu0 %v8572_v13 }
 0xb9a   :  { %12967 = vmatpush1.bf16.msra.mxu0 %v12966_v7 }
 0xb9b   :  { %12968 = vmatprep.subr.bf16.mxu0 %v13289_v61 }
 0xb9e   :  { %12970 = vmatpush1.bf16.msra.mxu0 %v12969_v26 }
 0xb9f   :  { %12971 = vmatprep.subr.bf16.mxu0 %v13289_v61 }
 0xba2   :  { %12973 = vmatpush1.bf16.msra.mxu0 %v12972_v60 }
 0xba3   :  { %12974 = vmatprep.subr.bf16.mxu0 %v13289_v61 }
 0xba6   :  { %12976 = vmatpush1.bf16.msra.mxu0 %v12975_v3 }
 0xba7   :  { %12977 = vmatprep.subr.bf16.mxu0 %v13289_v61 }
 0xbaa   :  { %12979 = vmatpush1.bf16.msra.mxu0 %v12978_v46 }
 0xbab   :  { %12980 = vmatprep.subr.bf16.mxu0 %v13289_v61 }
 0xbae   :  { %12982 = vmatpush1.bf16.msra.mxu0 %v12981_v51 }
 0xbaf   :  { %12983 = vmatprep.subr.bf16.mxu0 %v13289_v61 }
 0xbb2   :  { %12985 = vmatpush1.bf16.msra.mxu0 %v12984_v41 }
 0xbb3   :  { %12986 = vmatprep.subr.bf16.mxu0 %v13289_v61 }
 0xbb6   :  { %v9699_v55 = vpop.f32.mrb[46].mxu0  ;;  %12988 = vmatpush1.bf16.msra.mxu0 %v12987_v54 }
 0xbb7   :  { %v9700_v19 = vpop.f32.mrb[47].mxu0  ;;  %12989 = vmatprep.subr.bf16.mxu0 %v13289_v61 }
 0xbb8   :  { %v9701_v59 = vadd.f32 %v9700_v19, %v9699_v55 }
 0xbba   :  { %12991 = vmatpush1.bf16.msra.mxu0 %v12990_v31  ;;  %v8803_v8 = vadd.f32 %v9701_v59, %v9159_v45 }
 0xbbb   :  { %12992 = vmatprep.subr.bf16.mxu0 %v13289_v61 }
 0xbbe   :  { %12994 = vmatpush1.bf16.msra.mxu0 %v12993_v34 }
 0xbbf   :  { %12995 = vmatprep.subr.bf16.mxu0 %v13289_v61 }
 0xbc2   :  { %12997 = vmatpush1.bf16.msra.mxu0 %v12996_v4 }
 0xbd6   :  { %v9734_v36 = vpop.f32.mrb[48].mxu0 }
 0xbd7   :  { %v9735_v5 = vpop.f32.mrb[49].mxu0 }
 0xbd8   :  { %v9736_v16 = vadd.f32 %v9735_v5, %v9734_v36 }
 0xbda   :  { %v8873_v15 = vadd.f32 %v9736_v16, %v8803_v8 }
 0xc09   :  { %v8561_v58 = vpop.f32.mrb[38].mxu1 }
 0xc0a   :  { %v13032_v61 = vadd.f32 %v8561_v58, %v7483_v9  ;;  %v8563_v43 = vpop.f32.mrb[39].mxu1 }
 0xc0b   :  { %v13033_v21 = vadd.f32 %v8563_v43, %v7487_v24 }
 0xc0c   :  { %v8574_v10 = vmax.f32 %v13032_v61, 0.0 }
 0xc0d   :  { %v8575_v63 = vmax.f32 %v13033_v21, 0.0 }
 0xc0f   :  { %9160 = vmatprep.mubr.msk.f32.mxu0 %vm1402_vm4, %v8575_v63 }
 0xc10   :  { %9081 = vmatmul.mubr.f32.vlgmr.msra.gmra.mrb[54].mxu0 %v8574_v10 }
 0xc4c   :  { %v9769_v28 = vpop.f32.mrb[50].mxu0 }
 0xc4d   :  { %v9770_v1 = vpop.f32.mrb[51].mxu0 }
 0xc4e   :  { %v9771_v23 = vadd.f32 %v9770_v1, %v9769_v28 }
 0xc50   :  { %v8943_v0 = vadd.f32 %v9771_v23, %v8873_v15 }
 0xc51   :  { %13233 = shalt.err (!%p13230_p2)
}
 0xc52   :  { %s13234_s4 = scalar_lea.hbm %s17899_s21, 384 }
 0xc53   :  { %p13235_p3 = scmp.ne.s32.totalorder %s17899_s21, %s13234_s4  ;;  %p13238_p4 = scmp.lt.u32.totalorder %s13234_s4, %s17899_s21 }
 0xc55   :  { %p13240_p5 = pnand %p13238_p4, %p13235_p3 }
 0xc57   :  { %13243 = shalt.err (!%p13240_p5)
}
 0xc58   :  { %9096 = dma.vmem_to_hbm [thread:$0]  %s9094_s20, 384, %s17899_s21, [#allocation4]  }
 0xc59   :  { %s13292_s8 = smov [#allocation12]  }
 0xc5a   :  { %s9103_s23 = sshll.u32 %s13292_s8, 4  ;;  %s9104_s23 = int_to_ptr.vmem [resolvable:$true] %s9103_s23 }
 0xc5b   :  { %s13244_s10 = scalar_lea.vmem %s9104_s23, 128  ;;  %p13249_p7 = scmp.lt.s32.totalorder %s9104_s23, %s9104_s23 }
 0xc5c   :  { %p13245_p6 = scmp.ne.s32.totalorder %s9104_s23, %s13244_s10  ;;  %p13250_p8 = scmp.lt.s32.totalorder %s13244_s10, %s13244_s10 }
 0xc5e   :  { %p13251_p9 = por %p13250_p8, %p13249_p7 }
 0xc60   :  { %p13252_p10 = pnand %p13251_p9, %p13245_p6 }
 0xc6c   :  { %v9804_v12 = vpop.f32.mrb[52].mxu0 }
 0xc6d   :  { %v9805_v14 = vpop.f32.mrb[53].mxu0 }
 0xc6e   :  { %v9806_v6 = vadd.f32 %v9805_v14, %v9804_v12 }
 0xc70   :  { %v9013_v47 = vadd.f32 %v9806_v6, %v8943_v0 }
 0xce3   :  { %v9082_v27 = vpop.f32.mrb[54].mxu0 }
 0xce4   :  { %v9083_v29 = vadd.f32 %v9082_v27, %v9013_v47  ;;  %v9084_v30 = vpop.f32.mrb[55].mxu0 }
 0xce6   :  { %9086 = vst.msk [vmem:[#allocation12] sm:$0xff] %vm235_vm3, %v9083_v29 }
 0xce7   :  { %13255 = shalt.err (!%p13252_p10)
}
 0xce8   :  { %s17925_s30 = sld [smem:[#allocation26_spill]] }
 0xcee   :  { %s13256_s12 = scalar_lea.hbm %s17925_s30, 128 }
 0xcef   :  { %p13257_p11 = scmp.ne.s32.totalorder %s17925_s30, %s13256_s12  ;;  %p13260_p12 = scmp.lt.u32.totalorder %s13256_s12, %s17925_s30 }
 0xcf1   :  { %p13262_p13 = pnand %p13260_p12, %p13257_p11 }
 0xcf3   :  { %13265 = shalt.err (!%p13262_p13)
}
 0xcf4   :  { %9106 = dma.vmem_to_hbm [thread:$0]  %s9104_s23, 128, %s17925_s30, [#allocation13]  }
 0xcf5   :  { %13272 = dma.done.wait [#allocation4], 384  }
 0xcf6   :  { %13273 = vsyncadd [#allocation4], 4294966912 }
 0xcf7   :  { %13274 = dma.done.wait [#allocation13], 128  }
 0xcf8   :  { %13275 = vsyncadd [#allocation13], 4294967168 }
 0xcf9   :  { %9113 = vsyncpa [#allocation3], 1 }
 0xcfa   :  { %9114 = vsyncpa [#allocation6], 1 }
 0xcfb   :  { %9115 = vsyncpa [#allocation9], 1 }
 0xcfc   :  { %9116 = vsyncpa [#allocation4], 1 }
 0xcfd   :  { %9117 = vsyncpa [#allocation13], 1 }

</bundles_post_ra>
